<compile_context>
chip_gen: v6e
topology: v6e:2x2x1
jax: 0.10.0
libtpu: 0.0.40
codegen_flags: <defaults>
</compile_context>

<pallas_src>
import functools
import math
import numpy as np
import jax
import jax.numpy as jnp
from jax import lax
from jax.experimental import pallas as pl
from jax.experimental.pallas import tpu as pltpu

# ----------------------------- constants (torchaudio MelSpectrogram defaults) ------------------
SAMPLE_RATE = 16000
N_FFT = 400
N_FFT_PAD = 512                 # contraction dim zero-padded to 4x128 lanes (exact)
HOP = 200
N_MELS = 128
N_FREQ = N_FFT // 2 + 1         # 201
N_FREQ_PAD = 256                # lane-dense padding; padded cols/rows are zero -> exact
HIDDEN = 128
GATES = 4 * HIDDEN              # 512
N_CLASSES = 35
KW = 3                          # Conv1d kernel width
HEAD_TIME_CHUNK = 16            # time steps streamed per head grid step


def _vmem_limit(est_bytes):
    # Explicit scoped-VMEM budget (review item): real estimate with headroom, clamped well below
    # the smallest physical VMEM across generations (v7x: 64 MiB / TensorCore).
    return int(min(48 * 1024 * 1024, max(16 * 1024 * 1024, 3 * est_bytes)))


# ----------------------------- Pallas kernels ---------------------------------------------------
def _frontend_kernel(fr_ref, cs_ref, fb_ref, cw_ref, w1_ref, b_ref, o_ref, *, t_out):
    """Per batch element: |DFT|^2 -> mel fbank -> Conv1d (3 shifted matmuls) -> x@W1 + b_comb.

    DFT imaginary part uses +sin instead of -sin; harmless because only |.|^2 is consumed.
    """
    fr = fr_ref[...]                                                         # (F, 512)
    ri = jnp.dot(fr, cs_ref[...], preferred_element_type=jnp.float32)        # (F, 512) = [re | im]
    re = ri[:, :N_FREQ_PAD]
    im = ri[:, N_FREQ_PAD:]
    power = re * re + im * im                                                # (F, 256)
    mel = jnp.dot(power, fb_ref[...], preferred_element_type=jnp.float32)    # (F, 128)

    # Conv1d over time as 3 shifted matmuls (no unfold/concat buffer); tap k: (in, out)
    conv = (jnp.dot(mel[0:t_out], cw_ref[0], preferred_element_type=jnp.float32)
            + jnp.dot(mel[1:t_out + 1], cw_ref[1], preferred_element_type=jnp.float32)
            + jnp.dot(mel[2:t_out + 2], cw_ref[2], preferred_element_type=jnp.float32))

    # dropout(p=0) is identity; conv bias + LSTM-1 bias folded into b_ref host-side.
    o_ref[...] = (jnp.dot(conv, w1_ref[...], preferred_element_type=jnp.float32)
                  + b_ref[...])                                              # (T, 4H)


def _lstm_head_kernel(xw_ref, u1_ref, w2u2_ref, b2_ref, wfp_ref, bfp_ref, o_ref,
                      h1_ref, c1_ref, h2_ref, c2_ref, acc_ref,
                      *, t_real, t_chunk, unroll):
    """Both LSTM layers (software-pipelined) over one time chunk; mean + folded fc1/project at end."""
    chunk = pl.program_id(1)

    @pl.when(chunk == 0)
    def _():
        h1_ref[...] = jnp.zeros_like(h1_ref)
        c1_ref[...] = jnp.zeros_like(c1_ref)
        h2_ref[...] = jnp.zeros_like(h2_ref)
        c2_ref[...] = jnp.zeros_like(c2_ref)
        acc_ref[...] = jnp.zeros_like(acc_ref)

    u1 = u1_ref[...]            # (H, 4H)
    w2u2 = w2u2_ref[...]        # (2H, 4H)  fused [W2; U2] -> one K=256 matmul per step
    b2 = b2_ref[...]            # (1, 4H)
    H = u1.shape[0]

    def gates_to_hc(g, c_prev):
        # gate order [i, f, g, o] — matches the reference custom LSTM's slicing.
        i_t = jax.nn.sigmoid(g[:, 0 * H:1 * H])
        f_t = jax.nn.sigmoid(g[:, 1 * H:2 * H])
        g_t = jnp.tanh(g[:, 2 * H:3 * H])
        o_t = jax.nn.sigmoid(g[:, 3 * H:4 * H])
        c_new = f_t * c_prev + i_t * g_t
        return o_t * jnp.tanh(c_new), c_new

    base = chunk * t_chunk      # global index of this chunk's first time step

    # chunk prologue: layer-1 for local step 0 (uses the carried h1/c1 from the previous chunk)
    g1 = xw_ref[0] + jnp.dot(h1_ref[...], u1, preferred_element_type=jnp.float32)
    h1, c1 = gates_to_hc(g1, c1_ref[...])
    h2, c2, acc = h2_ref[...], c2_ref[...], acc_ref[...]

    def step(t, carry):
        h1, c1, h2, c2, acc = carry
        # layer-2 step t (needs h1(t), h2(t-1)) — independent of layer-1 step t+1 below, so the
        # two MXU pushes can be issued back-to-back (software pipeline of the two layers).
        g2 = (jnp.dot(jnp.concatenate([h1, h2], axis=-1), w2u2,
                      preferred_element_type=jnp.float32) + b2)
        g1n = xw_ref[t + 1] + jnp.dot(h1, u1, preferred_element_type=jnp.float32)
        h2n, c2n = gates_to_hc(g2, c2)
        h1n, c1n = gates_to_hc(g1n, c1)
        # mask out padded time steps (only the tail of the last chunk can be padded)
        acc = acc + jnp.where(base + t < t_real, h2n, 0.0)
        return h1n, c1n, h2n, c2n, acc

    carry = (h1, c1, h2, c2, acc)
    trips = t_chunk - 1
    if trips > 0:
        u = min(unroll, trips)
        n_major = trips // u

        def unrolled(j, c):          # manual partial unroll inside a visible fori_loop
            for k in range(u):
                c = step(j * u + k, c)
            return c

        if n_major > 0:
            carry = lax.fori_loop(0, n_major, unrolled, carry)
        for t in range(n_major * u, trips):      # static remainder, python-unrolled
            carry = step(t, carry)
    h1, c1, h2, c2, acc = carry

    # chunk epilogue: layer-2 for the last local step (no look-ahead across the chunk edge)
    g2 = (jnp.dot(jnp.concatenate([h1, h2], axis=-1), w2u2,
                  preferred_element_type=jnp.float32) + b2)
    h2, c2 = gates_to_hc(g2, c2)
    acc = acc + jnp.where(base + t_chunk - 1 < t_real, h2, 0.0)

    h1_ref[...] = h1
    c1_ref[...] = c1
    h2_ref[...] = h2
    c2_ref[...] = c2
    acc_ref[...] = acc

    @pl.when(chunk == pl.num_programs(1) - 1)
    def _():
        # mean over time commutes with the (fc1 ∘ project) affine (no nonlinearity, dropout p=0)
        m = acc * (1.0 / t_real)
        o_ref[...] = (jnp.dot(m, wfp_ref[...], preferred_element_type=jnp.float32)
                      + bfp_ref[...])


# ----------------------------- Pallas wrappers ---------------------------------------------------
def frontend_pallas(frames, cossin, mel_fb, conv_taps, l1_W, b_comb):
    B, Fn, K = frames.shape
    T = Fn - (KW - 1)
    G = l1_W.shape[1]
    est = 4 * (3 * Fn * K + K * K + mel_fb.size + conv_taps.size + l1_W.size + G
               + 3 * T * G + Fn * K + Fn * N_FREQ_PAD + 6 * Fn * N_MELS)
    kern = functools.partial(_frontend_kernel, t_out=T)
    return pl.pallas_call(
        kern,
        out_shape=jax.ShapeDtypeStruct((B, T, G), jnp.float32),
        grid=(B,),
        in_specs=[pl.BlockSpec((None, Fn, K), lambda b: (b, 0, 0)),
                  pl.BlockSpec(cossin.shape, lambda b: (0, 0)),
                  pl.BlockSpec(mel_fb.shape, lambda b: (0, 0)),
                  pl.BlockSpec(conv_taps.shape, lambda b: (0, 0, 0)),
                  pl.BlockSpec(l1_W.shape, lambda b: (0, 0)),
                  pl.BlockSpec((1, G), lambda b: (0, 0))],
        out_specs=pl.BlockSpec((None, T, G), lambda b: (b, 0, 0)),
        compiler_params=pltpu.CompilerParams(
            dimension_semantics=("parallel",),
            vmem_limit_bytes=_vmem_limit(est)),
    )(frames, cossin, mel_fb, conv_taps, l1_W, b_comb.reshape(1, -1))


def lstm_head_pallas(xw, l1_U, w2u2, l2_b, w_fp, b_fp):
    T, B, G = xw.shape
    H = l1_U.shape[0]
    O = w_fp.shape[1]
    Tc = min(T, HEAD_TIME_CHUNK)
    n_chunks = int(pl.cdiv(T, Tc))
    Tpad = n_chunks * Tc
    if Tpad != T:
        xw = jnp.pad(xw, ((0, Tpad - T), (0, 0), (0, 0)))        # padded steps masked in-kernel
    bs = 2 if (B % 16 == 0) else 1       # batch split for v7x megacore (>=8 sublanes per split)
    Bs = B // bs
    est = 4 * (3 * Tc * Bs * G + 4 * H * G + G + H * O + O + Bs * O
               + 5 * Bs * H + 12 * Bs * G)
    kern = functools.partial(_lstm_head_kernel, t_real=T, t_chunk=Tc, unroll=4)
    return pl.pallas_call(
        kern,
        out_shape=jax.ShapeDtypeStruct((B, O), jnp.float32),
        grid=(bs, n_chunks),
        in_specs=[pl.BlockSpec((Tc, Bs, G), lambda b, t: (t, b, 0)),
                  pl.BlockSpec((H, G), lambda b, t: (0, 0)),
                  pl.BlockSpec((2 * H, G), lambda b, t: (0, 0)),
                  pl.BlockSpec((1, G), lambda b, t: (0, 0)),
                  pl.BlockSpec((H, O), lambda b, t: (0, 0)),
                  pl.BlockSpec((1, O), lambda b, t: (0, 0))],
        out_specs=pl.BlockSpec((Bs, O), lambda b, t: (b, 0)),
        scratch_shapes=[pltpu.VMEM((Bs, H), jnp.float32)] * 5,   # h1, c1, h2, c2, acc
        compiler_params=pltpu.CompilerParams(
            dimension_semantics=("parallel", "arbitrary"),
            vmem_limit_bytes=_vmem_limit(est)),
    )(xw, l1_U, w2u2, l2_b.reshape(1, -1), w_fp, b_fp.reshape(1, -1))


# ----------------------------- MelSpectrogram constants & framing glue ---------------------------
def _hann_window(n):
    k = np.arange(n)
    return 0.5 - 0.5 * np.cos(2.0 * np.pi * k / n)   # periodic Hann (torch.hann_window default)


def _dft_cossin():
    """Single fused windowed-DFT matrix [win*cos | win*sin], zero-padded to (512, 512)."""
    win = _hann_window(N_FFT)
    n = np.arange(N_FFT)[:, None]
    k = np.arange(N_FREQ)[None, :]
    ang = 2.0 * np.pi * n * k / N_FFT
    m = np.zeros((N_FFT_PAD, 2 * N_FREQ_PAD), np.float32)
    m[:N_FFT, :N_FREQ] = win[:, None] * np.cos(ang)
    m[:N_FFT, N_FREQ_PAD:N_FREQ_PAD + N_FREQ] = win[:, None] * np.sin(ang)  # +sin: power-only use
    return jnp.asarray(m)


def _mel_fbanks():
    """HTK mel filterbank, norm=None (torchaudio MelSpectrogram defaults), zero-padded rows."""
    all_freqs = np.linspace(0.0, SAMPLE_RATE // 2, N_FREQ)
    hz2mel = lambda f: 2595.0 * np.log10(1.0 + f / 700.0)
    mel2hz = lambda m: 700.0 * (10.0 ** (m / 2595.0) - 1.0)
    m_pts = np.linspace(hz2mel(0.0), hz2mel(SAMPLE_RATE / 2.0), N_MELS + 2)
    f_pts = mel2hz(m_pts)
    f_diff = f_pts[1:] - f_pts[:-1]
    slopes = f_pts[None, :] - all_freqs[:, None]
    down = -slopes[:, :-2] / f_diff[:-1]
    up = slopes[:, 2:] / f_diff[1:]
    fb = np.maximum(0.0, np.minimum(down, up)).astype(np.float32)   # (n_freq, n_mels)
    fb_p = np.zeros((N_FREQ_PAD, N_MELS), np.float32)
    fb_p[:N_FREQ] = fb
    return jnp.asarray(fb_p)


def frame_signal(x):
    """center=True reflect-padded framing (torch.stft semantics): (B, L) -> (B, F, n_fft).
    hop == n_fft/2, so frame f = [chunk_f, chunk_{f+1}] of non-overlapping 200-sample chunks."""
    B, L = x.shape
    pad = N_FFT // 2
    xp = jnp.pad(x, ((0, 0), (pad, pad)), mode="reflect")
    n_frames = 1 + L // HOP
    if L % HOP == 0:
        chunks = xp.reshape(B, L // HOP + 2, HOP)
        frames = jnp.concatenate([chunks[:, :-1, :], chunks[:, 1:, :]], axis=-1)
    else:
        # TODO(synk): general-hop fallback lowers to a gather HLO (correct but slower).
        idx = jnp.arange(n_frames)[:, None] * HOP + jnp.arange(N_FFT)[None, :]
        frames = xp[:, idx]
    return frames                                     # (B, F, n_fft)


# ----------------------------- parameters --------------------------------------------------------
def init_params(key):
    ks = jax.random.split(key, 12)
    u = lambda k, shape, bound: jax.random.uniform(k, shape, jnp.float32, -bound, bound)
    stdv = 1.0 / math.sqrt(HIDDEN)
    cb = 1.0 / math.sqrt(128 * KW)
    lb = 1.0 / math.sqrt(128)
    return dict(
        conv_w=u(ks[0], (128, 128, KW), cb), conv_b=u(ks[1], (128,), cb),
        l1_W=u(ks[2], (128, GATES), stdv), l1_U=u(ks[3], (HIDDEN, GATES), stdv),
        l1_b=u(ks[4], (GATES,), stdv),
        l2_W=u(ks[5], (128, GATES), stdv), l2_U=u(ks[6], (HIDDEN, GATES), stdv),
        l2_b=u(ks[7], (GATES,), stdv),
        fc1_w=u(ks[8], (128, 128), lb), fc1_b=u(ks[9], (128,), lb),
        proj_w=u(ks[10], (N_CLASSES, 128), lb), proj_b=u(ks[11], (N_CLASSES,), lb),
    )


# ----------------------------- forward ------------------------------------------------------------
def forward(params, x):
    B, L = x.shape
    cossin = _dft_cossin()                                                # (512, 512)
    mel_fb = _mel_fbanks()                                                # (256, 128)

    frames = frame_signal(x)                                              # (B, F, 400)
    frames = jnp.pad(frames, ((0, 0), (0, 0), (0, N_FFT_PAD - N_FFT)))    # zero-pad K to 512

    conv_taps = jnp.transpose(params["conv_w"], (2, 1, 0))                # (3, in, out)
    # fold Conv1d bias into the hoisted LSTM-1 input projection: (conv+cb)@W1 + b1 = conv@W1 + bcomb
    b_comb = params["conv_b"] @ params["l1_W"] + params["l1_b"]           # (4H,)

    xw = frontend_pallas(frames, cossin, mel_fb, conv_taps, params["l1_W"], b_comb)  # (B, T, 4H)
    xw = jnp.transpose(xw, (1, 0, 2))                                     # (T, B, 4H) time-major

    w2u2 = jnp.concatenate([params["l2_W"], params["l2_U"]], axis=0)      # (2H, 4H) fused K=256
    # fold fc1 -> project into one affine (exact: no nonlinearity between them, dropout p=0);
    # pad 35 -> 128 output lanes for an unmasked store, slice back outside the kernel.
    w_fp = params["fc1_w"].T @ params["proj_w"].T                         # (128, 35)
    b_fp = params["fc1_b"] @ params["proj_w"].T + params["proj_b"]        # (35,)
    w_fp = jnp.pad(w_fp, ((0, 0), (0, HIDDEN - N_CLASSES)))
    b_fp = jnp.pad(b_fp, ((0, HIDDEN - N_CLASSES),))

    logits = lstm_head_pallas(xw, params["l1_U"], w2u2, params["l2_b"], w_fp, b_fp)   # (B, 128)
    return logits[:, :N_CLASSES]


if __name__ == "__main__":
    key = jax.random.PRNGKey(0)
    k_x, k_p = jax.random.split(key)
    B, L = 2, 1600                     # 1600 samples -> 9 spectrogram frames -> 7 conv frames
    x = jax.random.normal(k_x, (B, L), jnp.float32)
    params = init_params(k_p)

    fwd = jax.jit(forward)
    out = jax.block_until_ready(fwd(params, x))
    assert out.shape == (B, N_CLASSES), out.shape
    assert bool(jnp.all(jnp.isfinite(out)))
    print("KERNEL_OK")
</pallas_src>

<mosaic_0001>
module attributes {stable_mosaic.version = 11 : i64} {
  func.func @_frontend_kernel(%arg0: i32, %arg1: memref<1x9x512xf32, #tpu.memory_space<vmem>>, %arg2: memref<512x512xf32, #tpu.memory_space<vmem>>, %arg3: memref<256x128xf32, #tpu.memory_space<vmem>>, %arg4: memref<3x128x128xf32, #tpu.memory_space<vmem>>, %arg5: memref<128x512xf32, #tpu.memory_space<vmem>>, %arg6: memref<1x512xf32, #tpu.memory_space<vmem>>, %arg7: memref<1x7x512xf32, #tpu.memory_space<vmem>>) attributes {dimension_semantics = [#tpu.dimension_semantics<parallel>], iteration_bounds = array<i64: 2>, scalar_prefetch = 0 : i64, scratch_operands = 0 : i64, tpu.core_type = #tpu.core_type<tc>, window_params = [{transform_indices = @transform_0, window_bounds = array<i64: 1, 9, 512>}, {pipeline_mode = #tpu.pipeline_mode<synchronous>, transform_indices = @transform_1, window_bounds = array<i64: 512, 512>}, {pipeline_mode = #tpu.pipeline_mode<synchronous>, transform_indices = @transform_2, window_bounds = array<i64: 256, 128>}, {pipeline_mode = #tpu.pipeline_mode<synchronous>, transform_indices = @transform_3, window_bounds = array<i64: 3, 128, 128>}, {pipeline_mode = #tpu.pipeline_mode<synchronous>, transform_indices = @transform_4, window_bounds = array<i64: 128, 512>}, {pipeline_mode = #tpu.pipeline_mode<synchronous>, transform_indices = @transform_5, window_bounds = array<i64: 1, 512>}, {transform_indices = @transform_6, window_bounds = array<i64: 1, 7, 512>}]} {
    %c0 = arith.constant 0 : index
    %c0_0 = arith.constant 0 : index
    %c0_1 = arith.constant 0 : index
    %0 = vector.load %arg1[%c0, %c0_0, %c0_1] : memref<1x9x512xf32, #tpu.memory_space<vmem>>, vector<1x9x512xf32>
    %1 = vector.shape_cast %0 : vector<1x9x512xf32> to vector<9x512xf32>
    %c0_2 = arith.constant 0 : index
    %c0_3 = arith.constant 0 : index
    %2 = vector.load %arg2[%c0_2, %c0_3] : memref<512x512xf32, #tpu.memory_space<vmem>>, vector<512x512xf32>
    %cst = arith.constant dense<0.000000e+00> : vector<9x512xf32>
    %3 = tpu.matmul %1, %2, %cst {dimension_numbers = #tpu.dot_dimension_numbers<[1], [0], [0], [1], [0, 0, 1, 1], [], []>} : vector<9x512xf32>, vector<512x512xf32>, vector<9x512xf32> -> vector<9x512xf32>
    %4 = vector.extract_strided_slice %3 {offsets = [0, 0], sizes = [9, 256], strides = [1, 1]} : vector<9x512xf32> to vector<9x256xf32>
    %5 = vector.extract_strided_slice %3 {offsets = [0, 256], sizes = [9, 256], strides = [1, 1]} : vector<9x512xf32> to vector<9x256xf32>
    %6 = arith.mulf %4, %4 : vector<9x256xf32>
    %7 = arith.mulf %5, %5 : vector<9x256xf32>
    %8 = arith.addf %6, %7 : vector<9x256xf32>
    %c0_4 = arith.constant 0 : index
    %c0_5 = arith.constant 0 : index
    %9 = vector.load %arg3[%c0_4, %c0_5] : memref<256x128xf32, #tpu.memory_space<vmem>>, vector<256x128xf32>
    %cst_6 = arith.constant dense<0.000000e+00> : vector<9x128xf32>
    %10 = tpu.matmul %8, %9, %cst_6 {dimension_numbers = #tpu.dot_dimension_numbers<[1], [0], [0], [1], [0, 0, 1, 1], [], []>} : vector<9x256xf32>, vector<256x128xf32>, vector<9x128xf32> -> vector<9x128xf32>
    %11 = vector.extract_strided_slice %10 {offsets = [0, 0], sizes = [7, 128], strides = [1, 1]} : vector<9x128xf32> to vector<7x128xf32>
    %c0_7 = arith.constant 0 : index
    %c0_8 = arith.constant 0 : index
    %c0_9 = arith.constant 0 : index
    %12 = vector.load %arg4[%c0_7, %c0_8, %c0_9] : memref<3x128x128xf32, #tpu.memory_space<vmem>>, vector<1x128x128xf32>
    %13 = vector.shape_cast %12 : vector<1x128x128xf32> to vector<128x128xf32>
    %cst_10 = arith.constant dense<0.000000e+00> : vector<7x128xf32>
    %14 = tpu.matmul %11, %13, %cst_10 {dimension_numbers = #tpu.dot_dimension_numbers<[1], [0], [0], [1], [0, 0, 1, 1], [], []>} : vector<7x128xf32>, vector<128x128xf32>, vector<7x128xf32> -> vector<7x128xf32>
    %15 = vector.extract_strided_slice %10 {offsets = [1, 0], sizes = [7, 128], strides = [1, 1]} : vector<9x128xf32> to vector<7x128xf32>
    %c1 = arith.constant 1 : index
    %c0_11 = arith.constant 0 : index
    %c0_12 = arith.constant 0 : index
    %16 = vector.load %arg4[%c1, %c0_11, %c0_12] : memref<3x128x128xf32, #tpu.memory_space<vmem>>, vector<1x128x128xf32>
    %17 = vector.shape_cast %16 : vector<1x128x128xf32> to vector<128x128xf32>
    %cst_13 = arith.constant dense<0.000000e+00> : vector<7x128xf32>
    %18 = tpu.matmul %15, %17, %cst_13 {dimension_numbers = #tpu.dot_dimension_numbers<[1], [0], [0], [1], [0, 0, 1, 1], [], []>} : vector<7x128xf32>, vector<128x128xf32>, vector<7x128xf32> -> vector<7x128xf32>
    %19 = arith.addf %14, %18 : vector<7x128xf32>
    %20 = vector.extract_strided_slice %10 {offsets = [2, 0], sizes = [7, 128], strides = [1, 1]} : vector<9x128xf32> to vector<7x128xf32>
    %c2 = arith.constant 2 : index
    %c0_14 = arith.constant 0 : index
    %c0_15 = arith.constant 0 : index
    %21 = vector.load %arg4[%c2, %c0_14, %c0_15] : memref<3x128x128xf32, #tpu.memory_space<vmem>>, vector<1x128x128xf32>
    %22 = vector.shape_cast %21 : vector<1x128x128xf32> to vector<128x128xf32>
    %cst_16 = arith.constant dense<0.000000e+00> : vector<7x128xf32>
    %23 = tpu.matmul %20, %22, %cst_16 {dimension_numbers = #tpu.dot_dimension_numbers<[1], [0], [0], [1], [0, 0, 1, 1], [], []>} : vector<7x128xf32>, vector<128x128xf32>, vector<7x128xf32> -> vector<7x128xf32>
    %24 = arith.addf %19, %23 : vector<7x128xf32>
    %c0_17 = arith.constant 0 : index
    %c0_18 = arith.constant 0 : index
    %25 = vector.load %arg5[%c0_17, %c0_18] : memref<128x512xf32, #tpu.memory_space<vmem>>, vector<128x512xf32>
    %cst_19 = arith.constant dense<0.000000e+00> : vector<7x512xf32>
    %26 = tpu.matmul %24, %25, %cst_19 {dimension_numbers = #tpu.dot_dimension_numbers<[1], [0], [0], [1], [0, 0, 1, 1], [], []>} : vector<7x128xf32>, vector<128x512xf32>, vector<7x512xf32> -> vector<7x512xf32>
    %c0_20 = arith.constant 0 : index
    %c0_21 = arith.constant 0 : index
    %27 = vector.load %arg6[%c0_20, %c0_21] : memref<1x512xf32, #tpu.memory_space<vmem>>, vector<1x512xf32>
    %28 = vector.broadcast %27 : vector<1x512xf32> to vector<7x512xf32>
    %29 = arith.addf %26, %28 : vector<7x512xf32>
    %c0_22 = arith.constant 0 : index
    %c0_23 = arith.constant 0 : index
    %c0_24 = arith.constant 0 : index
    %30 = vector.load %arg7[%c0_22, %c0_23, %c0_24] : memref<1x7x512xf32, #tpu.memory_space<vmem>>, vector<1x7x512xf32>
    %31 = vector.shape_cast %30 : vector<1x7x512xf32> to vector<7x512xf32>
    %32 = vector.shape_cast %29 : vector<7x512xf32> to vector<1x7x512xf32>
    tpu.vector_store %arg7[%c0_22, %c0_23, %c0_24], %32 {strides = array<i32>} : memref<1x7x512xf32, #tpu.memory_space<vmem>>, vector<1x7x512xf32>,
    return
  }
  func.func @transform_0(%arg0: i32) -> (i32, i32, i32) {
    %c0_i32 = arith.constant 0 : i32
    %c0_i32_0 = arith.constant 0 : i32
    %c0_i32_1 = arith.constant 0 : i32
    return %arg0, %c0_i32, %c0_i32_0 : i32, i32, i32
  }
  func.func @transform_1(%arg0: i32) -> (i32, i32) {
    %c0_i32 = arith.constant 0 : i32
    %c0_i32_0 = arith.constant 0 : i32
    %c0_i32_1 = arith.constant 0 : i32
    return %c0_i32, %c0_i32_0 : i32, i32
  }
  func.func @transform_2(%arg0: i32) -> (i32, i32) {
    %c0_i32 = arith.constant 0 : i32
    %c0_i32_0 = arith.constant 0 : i32
    %c0_i32_1 = arith.constant 0 : i32
    return %c0_i32, %c0_i32_0 : i32, i32
  }
  func.func @transform_3(%arg0: i32) -> (i32, i32, i32) {
    %c0_i32 = arith.constant 0 : i32
    %c0_i32_0 = arith.constant 0 : i32
    %c0_i32_1 = arith.constant 0 : i32
    %c0_i32_2 = arith.constant 0 : i32
    return %c0_i32, %c0_i32_0, %c0_i32_1 : i32, i32, i32
  }
  func.func @transform_4(%arg0: i32) -> (i32, i32) {
    %c0_i32 = arith.constant 0 : i32
    %c0_i32_0 = arith.constant 0 : i32
    %c0_i32_1 = arith.constant 0 : i32
    return %c0_i32, %c0_i32_0 : i32, i32
  }
  func.func @transform_5(%arg0: i32) -> (i32, i32) {
    %c0_i32 = arith.constant 0 : i32
    %c0_i32_0 = arith.constant 0 : i32
    %c0_i32_1 = arith.constant 0 : i32
    return %c0_i32, %c0_i32_0 : i32, i32
  }
  func.func @transform_6(%arg0: i32) -> (i32, i32, i32) {
    %c0_i32 = arith.constant 0 : i32
    %c0_i32_0 = arith.constant 0 : i32
    %c0_i32_1 = arith.constant 0 : i32
    return %arg0, %c0_i32, %c0_i32_0 : i32, i32, i32
  }
}

module attributes {stable_mosaic.version = 11 : i64} {
  func.func @_lstm_head_kernel(%arg0: i32, %arg1: i32, %arg2: memref<7x2x512xf32, #tpu.memory_space<vmem>>, %arg3: memref<128x512xf32, #tpu.memory_space<vmem>>, %arg4: memref<256x512xf32, #tpu.memory_space<vmem>>, %arg5: memref<1x512xf32, #tpu.memory_space<vmem>>, %arg6: memref<128x128xf32, #tpu.memory_space<vmem>>, %arg7: memref<1x128xf32, #tpu.memory_space<vmem>>, %arg8: memref<2x128xf32, #tpu.memory_space<vmem>>, %arg9: memref<2x128xf32, #tpu.memory_space<vmem>>, %arg10: memref<2x128xf32, #tpu.memory_space<vmem>>, %arg11: memref<2x128xf32, #tpu.memory_space<vmem>>, %arg12: memref<2x128xf32, #tpu.memory_space<vmem>>, %arg13: memref<2x128xf32, #tpu.memory_space<vmem>>) attributes {dimension_semantics = [#tpu.dimension_semantics<parallel>, #tpu.dimension_semantics<arbitrary>], iteration_bounds = array<i64: 1, 1>, scalar_prefetch = 0 : i64, scratch_operands = 5 : i64, tpu.core_type = #tpu.core_type<tc>, window_params = [{transform_indices = @transform_0, window_bounds = array<i64: 7, 2, 512>}, {pipeline_mode = #tpu.pipeline_mode<synchronous>, transform_indices = @transform_1, window_bounds = array<i64: 128, 512>}, {pipeline_mode = #tpu.pipeline_mode<synchronous>, transform_indices = @transform_2, window_bounds = array<i64: 256, 512>}, {pipeline_mode = #tpu.pipeline_mode<synchronous>, transform_indices = @transform_3, window_bounds = array<i64: 1, 512>}, {pipeline_mode = #tpu.pipeline_mode<synchronous>, transform_indices = @transform_4, window_bounds = array<i64: 128, 128>}, {pipeline_mode = #tpu.pipeline_mode<synchronous>, transform_indices = @transform_5, window_bounds = array<i64: 1, 128>}, {transform_indices = @transform_6, window_bounds = array<i64: 2, 128>}]} {
    %c0_i32 = arith.constant 0 : i32
    %0 = arith.cmpi eq, %arg1, %c0_i32 : i32
    %1 = arith.extui %0 : i1 to i32
    %c0_i32_0 = arith.constant 0 : i32
    %2 = arith.cmpi ne, %1, %c0_i32_0 : i32
    scf.if %2 {
      %cst_125 = arith.constant 0.000000e+00 : f32
      %478 = vector.broadcast %cst_125 : f32 to vector<2x128xf32>
      %c0_126 = arith.constant 0 : index
      %c0_127 = arith.constant 0 : index
      %479 = vector.load %arg9[%c0_126, %c0_127] : memref<2x128xf32, #tpu.memory_space<vmem>>, vector<2x128xf32>
      tpu.vector_store %arg9[%c0_126, %c0_127], %478 {strides = array<i32>} : memref<2x128xf32, #tpu.memory_space<vmem>>, vector<2x128xf32>,
      %cst_128 = arith.constant 0.000000e+00 : f32
      %480 = vector.broadcast %cst_128 : f32 to vector<2x128xf32>
      %c0_129 = arith.constant 0 : index
      %c0_130 = arith.constant 0 : index
      %481 = vector.load %arg10[%c0_129, %c0_130] : memref<2x128xf32, #tpu.memory_space<vmem>>, vector<2x128xf32>
      tpu.vector_store %arg10[%c0_129, %c0_130], %480 {strides = array<i32>} : memref<2x128xf32, #tpu.memory_space<vmem>>, vector<2x128xf32>,
      %cst_131 = arith.constant 0.000000e+00 : f32
      %482 = vector.broadcast %cst_131 : f32 to vector<2x128xf32>
      %c0_132 = arith.constant 0 : index
      %c0_133 = arith.constant 0 : index
      %483 = vector.load %arg11[%c0_132, %c0_133] : memref<2x128xf32, #tpu.memory_space<vmem>>, vector<2x128xf32>
      tpu.vector_store %arg11[%c0_132, %c0_133], %482 {strides = array<i32>} : memref<2x128xf32, #tpu.memory_space<vmem>>, vector<2x128xf32>,
      %cst_134 = arith.constant 0.000000e+00 : f32
      %484 = vector.broadcast %cst_134 : f32 to vector<2x128xf32>
      %c0_135 = arith.constant 0 : index
      %c0_136 = arith.constant 0 : index
      %485 = vector.load %arg12[%c0_135, %c0_136] : memref<2x128xf32, #tpu.memory_space<vmem>>, vector<2x128xf32>
      tpu.vector_store %arg12[%c0_135, %c0_136], %484 {strides = array<i32>} : memref<2x128xf32, #tpu.memory_space<vmem>>, vector<2x128xf32>,
      %cst_137 = arith.constant 0.000000e+00 : f32
      %486 = vector.broadcast %cst_137 : f32 to vector<2x128xf32>
      %c0_138 = arith.constant 0 : index
      %c0_139 = arith.constant 0 : index
      %487 = vector.load %arg13[%c0_138, %c0_139] : memref<2x128xf32, #tpu.memory_space<vmem>>, vector<2x128xf32>
      tpu.vector_store %arg13[%c0_138, %c0_139], %486 {strides = array<i32>} : memref<2x128xf32, #tpu.memory_space<vmem>>, vector<2x128xf32>,
    } else {
    }
    %c0 = arith.constant 0 : index
    %c0_1 = arith.constant 0 : index
    %3 = vector.load %arg3[%c0, %c0_1] : memref<128x512xf32, #tpu.memory_space<vmem>>, vector<128x512xf32>
    %c0_2 = arith.constant 0 : index
    %c0_3 = arith.constant 0 : index
    %4 = vector.load %arg4[%c0_2, %c0_3] : memref<256x512xf32, #tpu.memory_space<vmem>>, vector<256x512xf32>
    %c0_4 = arith.constant 0 : index
    %c0_5 = arith.constant 0 : index
    %5 = vector.load %arg5[%c0_4, %c0_5] : memref<1x512xf32, #tpu.memory_space<vmem>>, vector<1x512xf32>
    %c7_i32 = arith.constant 7 : i32
    %6 = arith.muli %arg1, %c7_i32 : i32
    %c0_6 = arith.constant 0 : index
    %c0_7 = arith.constant 0 : index
    %c0_8 = arith.constant 0 : index
    %7 = vector.load %arg2[%c0_6, %c0_7, %c0_8] : memref<7x2x512xf32, #tpu.memory_space<vmem>>, vector<1x2x512xf32>
    %8 = vector.shape_cast %7 : vector<1x2x512xf32> to vector<2x512xf32>
    %c0_9 = arith.constant 0 : index
    %c0_10 = arith.constant 0 : index
    %9 = vector.load %arg9[%c0_9, %c0_10] : memref<2x128xf32, #tpu.memory_space<vmem>>, vector<2x128xf32>
    %cst = arith.constant dense<0.000000e+00> : vector<2x512xf32>
    %10 = tpu.matmul %9, %3, %cst {dimension_numbers = #tpu.dot_dimension_numbers<[1], [0], [0], [1], [0, 0, 1, 1], [], []>} : vector<2x128xf32>, vector<128x512xf32>, vector<2x512xf32> -> vector<2x512xf32>
    %11 = arith.addf %8, %10 : vector<2x512xf32>
    %c0_11 = arith.constant 0 : index
    %c0_12 = arith.constant 0 : index
    %12 = vector.load %arg10[%c0_11, %c0_12] : memref<2x128xf32, #tpu.memory_space<vmem>>, vector<2x128xf32>
    %13 = vector.extract_strided_slice %11 {offsets = [0, 0], sizes = [2, 128], strides = [1, 1]} : vector<2x512xf32> to vector<2x128xf32>
    %14 = arith.negf %13 : vector<2x128xf32>
    %15 = math.exp %14 : vector<2x128xf32>
    %cst_13 = arith.constant 1.000000e+00 : f32
    %16 = vector.broadcast %cst_13 : f32 to vector<2x128xf32>
    %17 = arith.addf %16, %15 : vector<2x128xf32>
    %18 = arith.divf %16, %17 : vector<2x128xf32>
    %19 = vector.extract_strided_slice %11 {offsets = [0, 128], sizes = [2, 128], strides = [1, 1]} : vector<2x512xf32> to vector<2x128xf32>
    %20 = arith.negf %19 : vector<2x128xf32>
    %21 = math.exp %20 : vector<2x128xf32>
    %cst_14 = arith.constant 1.000000e+00 : f32
    %22 = vector.broadcast %cst_14 : f32 to vector<2x128xf32>
    %23 = arith.addf %22, %21 : vector<2x128xf32>
    %24 = arith.divf %22, %23 : vector<2x128xf32>
    %25 = vector.extract_strided_slice %11 {offsets = [0, 256], sizes = [2, 128], strides = [1, 1]} : vector<2x512xf32> to vector<2x128xf32>
    %26 = math.tanh %25 : vector<2x128xf32>
    %27 = vector.extract_strided_slice %11 {offsets = [0, 384], sizes = [2, 128], strides = [1, 1]} : vector<2x512xf32> to vector<2x128xf32>
    %28 = arith.negf %27 : vector<2x128xf32>
    %29 = math.exp %28 : vector<2x128xf32>
    %cst_15 = arith.constant 1.000000e+00 : f32
    %30 = vector.broadcast %cst_15 : f32 to vector<2x128xf32>
    %31 = arith.addf %30, %29 : vector<2x128xf32>
    %32 = arith.divf %30, %31 : vector<2x128xf32>
    %33 = arith.mulf %24, %12 : vector<2x128xf32>
    %34 = arith.mulf %18, %26 : vector<2x128xf32>
    %35 = arith.addf %33, %34 : vector<2x128xf32>
    %36 = math.tanh %35 : vector<2x128xf32>
    %37 = arith.mulf %32, %36 : vector<2x128xf32>
    %c0_16 = arith.constant 0 : index
    %c0_17 = arith.constant 0 : index
    %38 = vector.load %arg11[%c0_16, %c0_17] : memref<2x128xf32, #tpu.memory_space<vmem>>, vector<2x128xf32>
    %c0_18 = arith.constant 0 : index
    %c0_19 = arith.constant 0 : index
    %39 = vector.load %arg12[%c0_18, %c0_19] : memref<2x128xf32, #tpu.memory_space<vmem>>, vector<2x128xf32>
    %c0_20 = arith.constant 0 : index
    %c0_21 = arith.constant 0 : index
    %40 = vector.load %arg13[%c0_20, %c0_21] : memref<2x128xf32, #tpu.memory_space<vmem>>, vector<2x128xf32>
    %c0_i32_22 = arith.constant 0 : i32
    %c4_i32 = arith.constant 4 : i32
    %41 = arith.muli %c0_i32_22, %c4_i32 : i32
    %c0_i32_23 = arith.constant 0 : i32
    %42 = arith.addi %41, %c0_i32_23 : i32
    %43 = tpu.concatenate %37, %38 in 1 : vector<2x128xf32>, vector<2x128xf32> -> vector<2x256xf32>
    %cst_24 = arith.constant dense<0.000000e+00> : vector<2x512xf32>
    %44 = tpu.matmul %43, %4, %cst_24 {dimension_numbers = #tpu.dot_dimension_numbers<[1], [0], [0], [1], [0, 0, 1, 1], [], []>} : vector<2x256xf32>, vector<256x512xf32>, vector<2x512xf32> -> vector<2x512xf32>
    %45 = vector.broadcast %5 : vector<1x512xf32> to vector<2x512xf32>
    %46 = arith.addf %44, %45 : vector<2x512xf32>
    %c1_i32 = arith.constant 1 : i32
    %47 = arith.addi %42, %c1_i32 : i32
    %48 = arith.index_cast %47 : i32 to index
    %c0_25 = arith.constant 0 : index
    %c0_26 = arith.constant 0 : index
    %49 = vector.load %arg2[%48, %c0_25, %c0_26] : memref<7x2x512xf32, #tpu.memory_space<vmem>>, vector<1x2x512xf32>
    %50 = vector.shape_cast %49 : vector<1x2x512xf32> to vector<2x512xf32>
    %cst_27 = arith.constant dense<0.000000e+00> : vector<2x512xf32>
    %51 = tpu.matmul %37, %3, %cst_27 {dimension_numbers = #tpu.dot_dimension_numbers<[1], [0], [0], [1], [0, 0, 1, 1], [], []>} : vector<2x128xf32>, vector<128x512xf32>, vector<2x512xf32> -> vector<2x512xf32>
    %52 = arith.addf %50, %51 : vector<2x512xf32>
    %53 = vector.extract_strided_slice %46 {offsets = [0, 0], sizes = [2, 128], strides = [1, 1]} : vector<2x512xf32> to vector<2x128xf32>
    %54 = arith.negf %53 : vector<2x128xf32>
    %55 = math.exp %54 : vector<2x128xf32>
    %cst_28 = arith.constant 1.000000e+00 : f32
    %56 = vector.broadcast %cst_28 : f32 to vector<2x128xf32>
    %57 = arith.addf %56, %55 : vector<2x128xf32>
    %58 = arith.divf %56, %57 : vector<2x128xf32>
    %59 = vector.extract_strided_slice %46 {offsets = [0, 128], sizes = [2, 128], strides = [1, 1]} : vector<2x512xf32> to vector<2x128xf32>
    %60 = arith.negf %59 : vector<2x128xf32>
    %61 = math.exp %60 : vector<2x128xf32>
    %cst_29 = arith.constant 1.000000e+00 : f32
    %62 = vector.broadcast %cst_29 : f32 to vector<2x128xf32>
    %63 = arith.addf %62, %61 : vector<2x128xf32>
    %64 = arith.divf %62, %63 : vector<2x128xf32>
    %65 = vector.extract_strided_slice %46 {offsets = [0, 256], sizes = [2, 128], strides = [1, 1]} : vector<2x512xf32> to vector<2x128xf32>
    %66 = math.tanh %65 : vector<2x128xf32>
    %67 = vector.extract_strided_slice %46 {offsets = [0, 384], sizes = [2, 128], strides = [1, 1]} : vector<2x512xf32> to vector<2x128xf32>
    %68 = arith.negf %67 : vector<2x128xf32>
    %69 = math.exp %68 : vector<2x128xf32>
    %cst_30 = arith.constant 1.000000e+00 : f32
    %70 = vector.broadcast %cst_30 : f32 to vector<2x128xf32>
    %71 = arith.addf %70, %69 : vector<2x128xf32>
    %72 = arith.divf %70, %71 : vector<2x128xf32>
    %73 = arith.mulf %64, %39 : vector<2x128xf32>
    %74 = arith.mulf %58, %66 : vector<2x128xf32>
    %75 = arith.addf %73, %74 : vector<2x128xf32>
    %76 = math.tanh %75 : vector<2x128xf32>
    %77 = arith.mulf %72, %76 : vector<2x128xf32>
    %78 = vector.extract_strided_slice %52 {offsets = [0, 0], sizes = [2, 128], strides = [1, 1]} : vector<2x512xf32> to vector<2x128xf32>
    %79 = arith.negf %78 : vector<2x128xf32>
    %80 = math.exp %79 : vector<2x128xf32>
    %cst_31 = arith.constant 1.000000e+00 : f32
    %81 = vector.broadcast %cst_31 : f32 to vector<2x128xf32>
    %82 = arith.addf %81, %80 : vector<2x128xf32>
    %83 = arith.divf %81, %82 : vector<2x128xf32>
    %84 = vector.extract_strided_slice %52 {offsets = [0, 128], sizes = [2, 128], strides = [1, 1]} : vector<2x512xf32> to vector<2x128xf32>
    %85 = arith.negf %84 : vector<2x128xf32>
    %86 = math.exp %85 : vector<2x128xf32>
    %cst_32 = arith.constant 1.000000e+00 : f32
    %87 = vector.broadcast %cst_32 : f32 to vector<2x128xf32>
    %88 = arith.addf %87, %86 : vector<2x128xf32>
    %89 = arith.divf %87, %88 : vector<2x128xf32>
    %90 = vector.extract_strided_slice %52 {offsets = [0, 256], sizes = [2, 128], strides = [1, 1]} : vector<2x512xf32> to vector<2x128xf32>
    %91 = math.tanh %90 : vector<2x128xf32>
    %92 = vector.extract_strided_slice %52 {offsets = [0, 384], sizes = [2, 128], strides = [1, 1]} : vector<2x512xf32> to vector<2x128xf32>
    %93 = arith.negf %92 : vector<2x128xf32>
    %94 = math.exp %93 : vector<2x128xf32>
    %cst_33 = arith.constant 1.000000e+00 : f32
    %95 = vector.broadcast %cst_33 : f32 to vector<2x128xf32>
    %96 = arith.addf %95, %94 : vector<2x128xf32>
    %97 = arith.divf %95, %96 : vector<2x128xf32>
    %98 = arith.mulf %89, %35 : vector<2x128xf32>
    %99 = arith.mulf %83, %91 : vector<2x128xf32>
    %100 = arith.addf %98, %99 : vector<2x128xf32>
    %101 = math.tanh %100 : vector<2x128xf32>
    %102 = arith.mulf %97, %101 : vector<2x128xf32>
    %103 = arith.addi %6, %42 : i32
    %c7_i32_34 = arith.constant 7 : i32
    %104 = arith.cmpi slt, %103, %c7_i32_34 : i32
    %cst_35 = arith.constant 0.000000e+00 : f32
    %105 = vector.broadcast %cst_35 : f32 to vector<2x128xf32>
    %106 = arith.select %104, %77, %105 : vector<2x128xf32>
    %107 = arith.addf %40, %106 : vector<2x128xf32>
    %c4_i32_36 = arith.constant 4 : i32
    %108 = arith.muli %c0_i32_22, %c4_i32_36 : i32
    %c1_i32_37 = arith.constant 1 : i32
    %109 = arith.addi %108, %c1_i32_37 : i32
    %110 = tpu.concatenate %102, %77 in 1 : vector<2x128xf32>, vector<2x128xf32> -> vector<2x256xf32>
    %cst_38 = arith.constant dense<0.000000e+00> : vector<2x512xf32>
    %111 = tpu.matmul %110, %4, %cst_38 {dimension_numbers = #tpu.dot_dimension_numbers<[1], [0], [0], [1], [0, 0, 1, 1], [], []>} : vector<2x256xf32>, vector<256x512xf32>, vector<2x512xf32> -> vector<2x512xf32>
    %112 = vector.broadcast %5 : vector<1x512xf32> to vector<2x512xf32>
    %113 = arith.addf %111, %112 : vector<2x512xf32>
    %c1_i32_39 = arith.constant 1 : i32
    %114 = arith.addi %109, %c1_i32_39 : i32
    %115 = arith.index_cast %114 : i32 to index
    %c0_40 = arith.constant 0 : index
    %c0_41 = arith.constant 0 : index
    %116 = vector.load %arg2[%115, %c0_40, %c0_41] : memref<7x2x512xf32, #tpu.memory_space<vmem>>, vector<1x2x512xf32>
    %117 = vector.shape_cast %116 : vector<1x2x512xf32> to vector<2x512xf32>
    %cst_42 = arith.constant dense<0.000000e+00> : vector<2x512xf32>
    %118 = tpu.matmul %102, %3, %cst_42 {dimension_numbers = #tpu.dot_dimension_numbers<[1], [0], [0], [1], [0, 0, 1, 1], [], []>} : vector<2x128xf32>, vector<128x512xf32>, vector<2x512xf32> -> vector<2x512xf32>
    %119 = arith.addf %117, %118 : vector<2x512xf32>
    %120 = vector.extract_strided_slice %113 {offsets = [0, 0], sizes = [2, 128], strides = [1, 1]} : vector<2x512xf32> to vector<2x128xf32>
    %121 = arith.negf %120 : vector<2x128xf32>
    %122 = math.exp %121 : vector<2x128xf32>
    %cst_43 = arith.constant 1.000000e+00 : f32
    %123 = vector.broadcast %cst_43 : f32 to vector<2x128xf32>
    %124 = arith.addf %123, %122 : vector<2x128xf32>
    %125 = arith.divf %123, %124 : vector<2x128xf32>
    %126 = vector.extract_strided_slice %113 {offsets = [0, 128], sizes = [2, 128], strides = [1, 1]} : vector<2x512xf32> to vector<2x128xf32>
    %127 = arith.negf %126 : vector<2x128xf32>
    %128 = math.exp %127 : vector<2x128xf32>
    %cst_44 = arith.constant 1.000000e+00 : f32
    %129 = vector.broadcast %cst_44 : f32 to vector<2x128xf32>
    %130 = arith.addf %129, %128 : vector<2x128xf32>
    %131 = arith.divf %129, %130 : vector<2x128xf32>
    %132 = vector.extract_strided_slice %113 {offsets = [0, 256], sizes = [2, 128], strides = [1, 1]} : vector<2x512xf32> to vector<2x128xf32>
    %133 = math.tanh %132 : vector<2x128xf32>
    %134 = vector.extract_strided_slice %113 {offsets = [0, 384], sizes = [2, 128], strides = [1, 1]} : vector<2x512xf32> to vector<2x128xf32>
    %135 = arith.negf %134 : vector<2x128xf32>
    %136 = math.exp %135 : vector<2x128xf32>
    %cst_45 = arith.constant 1.000000e+00 : f32
    %137 = vector.broadcast %cst_45 : f32 to vector<2x128xf32>
    %138 = arith.addf %137, %136 : vector<2x128xf32>
    %139 = arith.divf %137, %138 : vector<2x128xf32>
    %140 = arith.mulf %131, %75 : vector<2x128xf32>
    %141 = arith.mulf %125, %133 : vector<2x128xf32>
    %142 = arith.addf %140, %141 : vector<2x128xf32>
    %143 = math.tanh %142 : vector<2x128xf32>
    %144 = arith.mulf %139, %143 : vector<2x128xf32>
    %145 = vector.extract_strided_slice %119 {offsets = [0, 0], sizes = [2, 128], strides = [1, 1]} : vector<2x512xf32> to vector<2x128xf32>
    %146 = arith.negf %145 : vector<2x128xf32>
    %147 = math.exp %146 : vector<2x128xf32>
    %cst_46 = arith.constant 1.000000e+00 : f32
    %148 = vector.broadcast %cst_46 : f32 to vector<2x128xf32>
    %149 = arith.addf %148, %147 : vector<2x128xf32>
    %150 = arith.divf %148, %149 : vector<2x128xf32>
    %151 = vector.extract_strided_slice %119 {offsets = [0, 128], sizes = [2, 128], strides = [1, 1]} : vector<2x512xf32> to vector<2x128xf32>
    %152 = arith.negf %151 : vector<2x128xf32>
    %153 = math.exp %152 : vector<2x128xf32>
    %cst_47 = arith.constant 1.000000e+00 : f32
    %154 = vector.broadcast %cst_47 : f32 to vector<2x128xf32>
    %155 = arith.addf %154, %153 : vector<2x128xf32>
    %156 = arith.divf %154, %155 : vector<2x128xf32>
    %157 = vector.extract_strided_slice %119 {offsets = [0, 256], sizes = [2, 128], strides = [1, 1]} : vector<2x512xf32> to vector<2x128xf32>
    %158 = math.tanh %157 : vector<2x128xf32>
    %159 = vector.extract_strided_slice %119 {offsets = [0, 384], sizes = [2, 128], strides = [1, 1]} : vector<2x512xf32> to vector<2x128xf32>
    %160 = arith.negf %159 : vector<2x128xf32>
    %161 = math.exp %160 : vector<2x128xf32>
    %cst_48 = arith.constant 1.000000e+00 : f32
    %162 = vector.broadcast %cst_48 : f32 to vector<2x128xf32>
    %163 = arith.addf %162, %161 : vector<2x128xf32>
    %164 = arith.divf %162, %163 : vector<2x128xf32>
    %165 = arith.mulf %156, %100 : vector<2x128xf32>
    %166 = arith.mulf %150, %158 : vector<2x128xf32>
    %167 = arith.addf %165, %166 : vector<2x128xf32>
    %168 = math.tanh %167 : vector<2x128xf32>
    %169 = arith.mulf %164, %168 : vector<2x128xf32>
    %170 = arith.addi %6, %109 : i32
    %c7_i32_49 = arith.constant 7 : i32
    %171 = arith.cmpi slt, %170, %c7_i32_49 : i32
    %cst_50 = arith.constant 0.000000e+00 : f32
    %172 = vector.broadcast %cst_50 : f32 to vector<2x128xf32>
    %173 = arith.select %171, %144, %172 : vector<2x128xf32>
    %174 = arith.addf %107, %173 : vector<2x128xf32>
    %c4_i32_51 = arith.constant 4 : i32
    %175 = arith.muli %c0_i32_22, %c4_i32_51 : i32
    %c2_i32 = arith.constant 2 : i32
    %176 = arith.addi %175, %c2_i32 : i32
    %177 = tpu.concatenate %169, %144 in 1 : vector<2x128xf32>, vector<2x128xf32> -> vector<2x256xf32>
    %cst_52 = arith.constant dense<0.000000e+00> : vector<2x512xf32>
    %178 = tpu.matmul %177, %4, %cst_52 {dimension_numbers = #tpu.dot_dimension_numbers<[1], [0], [0], [1], [0, 0, 1, 1], [], []>} : vector<2x256xf32>, vector<256x512xf32>, vector<2x512xf32> -> vector<2x512xf32>
    %179 = vector.broadcast %5 : vector<1x512xf32> to vector<2x512xf32>
    %180 = arith.addf %178, %179 : vector<2x512xf32>
    %c1_i32_53 = arith.constant 1 : i32
    %181 = arith.addi %176, %c1_i32_53 : i32
    %182 = arith.index_cast %181 : i32 to index
    %c0_54 = arith.constant 0 : index
    %c0_55 = arith.constant 0 : index
    %183 = vector.load %arg2[%182, %c0_54, %c0_55] : memref<7x2x512xf32, #tpu.memory_space<vmem>>, vector<1x2x512xf32>
    %184 = vector.shape_cast %183 : vector<1x2x512xf32> to vector<2x512xf32>
    %cst_56 = arith.constant dense<0.000000e+00> : vector<2x512xf32>
    %185 = tpu.matmul %169, %3, %cst_56 {dimension_numbers = #tpu.dot_dimension_numbers<[1], [0], [0], [1], [0, 0, 1, 1], [], []>} : vector<2x128xf32>, vector<128x512xf32>, vector<2x512xf32> -> vector<2x512xf32>
    %186 = arith.addf %184, %185 : vector<2x512xf32>
    %187 = vector.extract_strided_slice %180 {offsets = [0, 0], sizes = [2, 128], strides = [1, 1]} : vector<2x512xf32> to vector<2x128xf32>
    %188 = arith.negf %187 : vector<2x128xf32>
    %189 = math.exp %188 : vector<2x128xf32>
    %cst_57 = arith.constant 1.000000e+00 : f32
    %190 = vector.broadcast %cst_57 : f32 to vector<2x128xf32>
    %191 = arith.addf %190, %189 : vector<2x128xf32>
    %192 = arith.divf %190, %191 : vector<2x128xf32>
    %193 = vector.extract_strided_slice %180 {offsets = [0, 128], sizes = [2, 128], strides = [1, 1]} : vector<2x512xf32> to vector<2x128xf32>
    %194 = arith.negf %193 : vector<2x128xf32>
    %195 = math.exp %194 : vector<2x128xf32>
    %cst_58 = arith.constant 1.000000e+00 : f32
    %196 = vector.broadcast %cst_58 : f32 to vector<2x128xf32>
    %197 = arith.addf %196, %195 : vector<2x128xf32>
    %198 = arith.divf %196, %197 : vector<2x128xf32>
    %199 = vector.extract_strided_slice %180 {offsets = [0, 256], sizes = [2, 128], strides = [1, 1]} : vector<2x512xf32> to vector<2x128xf32>
    %200 = math.tanh %199 : vector<2x128xf32>
    %201 = vector.extract_strided_slice %180 {offsets = [0, 384], sizes = [2, 128], strides = [1, 1]} : vector<2x512xf32> to vector<2x128xf32>
    %202 = arith.negf %201 : vector<2x128xf32>
    %203 = math.exp %202 : vector<2x128xf32>
    %cst_59 = arith.constant 1.000000e+00 : f32
    %204 = vector.broadcast %cst_59 : f32 to vector<2x128xf32>
    %205 = arith.addf %204, %203 : vector<2x128xf32>
    %206 = arith.divf %204, %205 : vector<2x128xf32>
    %207 = arith.mulf %198, %142 : vector<2x128xf32>
    %208 = arith.mulf %192, %200 : vector<2x128xf32>
    %209 = arith.addf %207, %208 : vector<2x128xf32>
    %210 = math.tanh %209 : vector<2x128xf32>
    %211 = arith.mulf %206, %210 : vector<2x128xf32>
    %212 = vector.extract_strided_slice %186 {offsets = [0, 0], sizes = [2, 128], strides = [1, 1]} : vector<2x512xf32> to vector<2x128xf32>
    %213 = arith.negf %212 : vector<2x128xf32>
    %214 = math.exp %213 : vector<2x128xf32>
    %cst_60 = arith.constant 1.000000e+00 : f32
    %215 = vector.broadcast %cst_60 : f32 to vector<2x128xf32>
    %216 = arith.addf %215, %214 : vector<2x128xf32>
    %217 = arith.divf %215, %216 : vector<2x128xf32>
    %218 = vector.extract_strided_slice %186 {offsets = [0, 128], sizes = [2, 128], strides = [1, 1]} : vector<2x512xf32> to vector<2x128xf32>
    %219 = arith.negf %218 : vector<2x128xf32>
    %220 = math.exp %219 : vector<2x128xf32>
    %cst_61 = arith.constant 1.000000e+00 : f32
    %221 = vector.broadcast %cst_61 : f32 to vector<2x128xf32>
    %222 = arith.addf %221, %220 : vector<2x128xf32>
    %223 = arith.divf %221, %222 : vector<2x128xf32>
    %224 = vector.extract_strided_slice %186 {offsets = [0, 256], sizes = [2, 128], strides = [1, 1]} : vector<2x512xf32> to vector<2x128xf32>
    %225 = math.tanh %224 : vector<2x128xf32>
    %226 = vector.extract_strided_slice %186 {offsets = [0, 384], sizes = [2, 128], strides = [1, 1]} : vector<2x512xf32> to vector<2x128xf32>
    %227 = arith.negf %226 : vector<2x128xf32>
    %228 = math.exp %227 : vector<2x128xf32>
    %cst_62 = arith.constant 1.000000e+00 : f32
    %229 = vector.broadcast %cst_62 : f32 to vector<2x128xf32>
    %230 = arith.addf %229, %228 : vector<2x128xf32>
    %231 = arith.divf %229, %230 : vector<2x128xf32>
    %232 = arith.mulf %223, %167 : vector<2x128xf32>
    %233 = arith.mulf %217, %225 : vector<2x128xf32>
    %234 = arith.addf %232, %233 : vector<2x128xf32>
    %235 = math.tanh %234 : vector<2x128xf32>
    %236 = arith.mulf %231, %235 : vector<2x128xf32>
    %237 = arith.addi %6, %176 : i32
    %c7_i32_63 = arith.constant 7 : i32
    %238 = arith.cmpi slt, %237, %c7_i32_63 : i32
    %cst_64 = arith.constant 0.000000e+00 : f32
    %239 = vector.broadcast %cst_64 : f32 to vector<2x128xf32>
    %240 = arith.select %238, %211, %239 : vector<2x128xf32>
    %241 = arith.addf %174, %240 : vector<2x128xf32>
    %c4_i32_65 = arith.constant 4 : i32
    %242 = arith.muli %c0_i32_22, %c4_i32_65 : i32
    %c3_i32 = arith.constant 3 : i32
    %243 = arith.addi %242, %c3_i32 : i32
    %244 = tpu.concatenate %236, %211 in 1 : vector<2x128xf32>, vector<2x128xf32> -> vector<2x256xf32>
    %cst_66 = arith.constant dense<0.000000e+00> : vector<2x512xf32>
    %245 = tpu.matmul %244, %4, %cst_66 {dimension_numbers = #tpu.dot_dimension_numbers<[1], [0], [0], [1], [0, 0, 1, 1], [], []>} : vector<2x256xf32>, vector<256x512xf32>, vector<2x512xf32> -> vector<2x512xf32>
    %246 = vector.broadcast %5 : vector<1x512xf32> to vector<2x512xf32>
    %247 = arith.addf %245, %246 : vector<2x512xf32>
    %c1_i32_67 = arith.constant 1 : i32
    %248 = arith.addi %243, %c1_i32_67 : i32
    %249 = arith.index_cast %248 : i32 to index
    %c0_68 = arith.constant 0 : index
    %c0_69 = arith.constant 0 : index
    %250 = vector.load %arg2[%249, %c0_68, %c0_69] : memref<7x2x512xf32, #tpu.memory_space<vmem>>, vector<1x2x512xf32>
    %251 = vector.shape_cast %250 : vector<1x2x512xf32> to vector<2x512xf32>
    %cst_70 = arith.constant dense<0.000000e+00> : vector<2x512xf32>
    %252 = tpu.matmul %236, %3, %cst_70 {dimension_numbers = #tpu.dot_dimension_numbers<[1], [0], [0], [1], [0, 0, 1, 1], [], []>} : vector<2x128xf32>, vector<128x512xf32>, vector<2x512xf32> -> vector<2x512xf32>
    %253 = arith.addf %251, %252 : vector<2x512xf32>
    %254 = vector.extract_strided_slice %247 {offsets = [0, 0], sizes = [2, 128], strides = [1, 1]} : vector<2x512xf32> to vector<2x128xf32>
    %255 = arith.negf %254 : vector<2x128xf32>
    %256 = math.exp %255 : vector<2x128xf32>
    %cst_71 = arith.constant 1.000000e+00 : f32
    %257 = vector.broadcast %cst_71 : f32 to vector<2x128xf32>
    %258 = arith.addf %257, %256 : vector<2x128xf32>
    %259 = arith.divf %257, %258 : vector<2x128xf32>
    %260 = vector.extract_strided_slice %247 {offsets = [0, 128], sizes = [2, 128], strides = [1, 1]} : vector<2x512xf32> to vector<2x128xf32>
    %261 = arith.negf %260 : vector<2x128xf32>
    %262 = math.exp %261 : vector<2x128xf32>
    %cst_72 = arith.constant 1.000000e+00 : f32
    %263 = vector.broadcast %cst_72 : f32 to vector<2x128xf32>
    %264 = arith.addf %263, %262 : vector<2x128xf32>
    %265 = arith.divf %263, %264 : vector<2x128xf32>
    %266 = vector.extract_strided_slice %247 {offsets = [0, 256], sizes = [2, 128], strides = [1, 1]} : vector<2x512xf32> to vector<2x128xf32>
    %267 = math.tanh %266 : vector<2x128xf32>
    %268 = vector.extract_strided_slice %247 {offsets = [0, 384], sizes = [2, 128], strides = [1, 1]} : vector<2x512xf32> to vector<2x128xf32>
    %269 = arith.negf %268 : vector<2x128xf32>
    %270 = math.exp %269 : vector<2x128xf32>
    %cst_73 = arith.constant 1.000000e+00 : f32
    %271 = vector.broadcast %cst_73 : f32 to vector<2x128xf32>
    %272 = arith.addf %271, %270 : vector<2x128xf32>
    %273 = arith.divf %271, %272 : vector<2x128xf32>
    %274 = arith.mulf %265, %209 : vector<2x128xf32>
    %275 = arith.mulf %259, %267 : vector<2x128xf32>
    %276 = arith.addf %274, %275 : vector<2x128xf32>
    %277 = math.tanh %276 : vector<2x128xf32>
    %278 = arith.mulf %273, %277 : vector<2x128xf32>
    %279 = vector.extract_strided_slice %253 {offsets = [0, 0], sizes = [2, 128], strides = [1, 1]} : vector<2x512xf32> to vector<2x128xf32>
    %280 = arith.negf %279 : vector<2x128xf32>
    %281 = math.exp %280 : vector<2x128xf32>
    %cst_74 = arith.constant 1.000000e+00 : f32
    %282 = vector.broadcast %cst_74 : f32 to vector<2x128xf32>
    %283 = arith.addf %282, %281 : vector<2x128xf32>
    %284 = arith.divf %282, %283 : vector<2x128xf32>
    %285 = vector.extract_strided_slice %253 {offsets = [0, 128], sizes = [2, 128], strides = [1, 1]} : vector<2x512xf32> to vector<2x128xf32>
    %286 = arith.negf %285 : vector<2x128xf32>
    %287 = math.exp %286 : vector<2x128xf32>
    %cst_75 = arith.constant 1.000000e+00 : f32
    %288 = vector.broadcast %cst_75 : f32 to vector<2x128xf32>
    %289 = arith.addf %288, %287 : vector<2x128xf32>
    %290 = arith.divf %288, %289 : vector<2x128xf32>
    %291 = vector.extract_strided_slice %253 {offsets = [0, 256], sizes = [2, 128], strides = [1, 1]} : vector<2x512xf32> to vector<2x128xf32>
    %292 = math.tanh %291 : vector<2x128xf32>
    %293 = vector.extract_strided_slice %253 {offsets = [0, 384], sizes = [2, 128], strides = [1, 1]} : vector<2x512xf32> to vector<2x128xf32>
    %294 = arith.negf %293 : vector<2x128xf32>
    %295 = math.exp %294 : vector<2x128xf32>
    %cst_76 = arith.constant 1.000000e+00 : f32
    %296 = vector.broadcast %cst_76 : f32 to vector<2x128xf32>
    %297 = arith.addf %296, %295 : vector<2x128xf32>
    %298 = arith.divf %296, %297 : vector<2x128xf32>
    %299 = arith.mulf %290, %234 : vector<2x128xf32>
    %300 = arith.mulf %284, %292 : vector<2x128xf32>
    %301 = arith.addf %299, %300 : vector<2x128xf32>
    %302 = math.tanh %301 : vector<2x128xf32>
    %303 = arith.mulf %298, %302 : vector<2x128xf32>
    %304 = arith.addi %6, %243 : i32
    %c7_i32_77 = arith.constant 7 : i32
    %305 = arith.cmpi slt, %304, %c7_i32_77 : i32
    %cst_78 = arith.constant 0.000000e+00 : f32
    %306 = vector.broadcast %cst_78 : f32 to vector<2x128xf32>
    %307 = arith.select %305, %278, %306 : vector<2x128xf32>
    %308 = arith.addf %241, %307 : vector<2x128xf32>
    %c1_i32_79 = arith.constant 1 : i32
    %309 = tpu.concatenate %303, %278 in 1 : vector<2x128xf32>, vector<2x128xf32> -> vector<2x256xf32>
    %cst_80 = arith.constant dense<0.000000e+00> : vector<2x512xf32>
    %310 = tpu.matmul %309, %4, %cst_80 {dimension_numbers = #tpu.dot_dimension_numbers<[1], [0], [0], [1], [0, 0, 1, 1], [], []>} : vector<2x256xf32>, vector<256x512xf32>, vector<2x512xf32> -> vector<2x512xf32>
    %311 = vector.broadcast %5 : vector<1x512xf32> to vector<2x512xf32>
    %312 = arith.addf %310, %311 : vector<2x512xf32>
    %c5 = arith.constant 5 : index
    %c0_81 = arith.constant 0 : index
    %c0_82 = arith.constant 0 : index
    %313 = vector.load %arg2[%c5, %c0_81, %c0_82] : memref<7x2x512xf32, #tpu.memory_space<vmem>>, vector<1x2x512xf32>
    %314 = vector.shape_cast %313 : vector<1x2x512xf32> to vector<2x512xf32>
    %cst_83 = arith.constant dense<0.000000e+00> : vector<2x512xf32>
    %315 = tpu.matmul %303, %3, %cst_83 {dimension_numbers = #tpu.dot_dimension_numbers<[1], [0], [0], [1], [0, 0, 1, 1], [], []>} : vector<2x128xf32>, vector<128x512xf32>, vector<2x512xf32> -> vector<2x512xf32>
    %316 = arith.addf %314, %315 : vector<2x512xf32>
    %317 = vector.extract_strided_slice %312 {offsets = [0, 0], sizes = [2, 128], strides = [1, 1]} : vector<2x512xf32> to vector<2x128xf32>
    %318 = arith.negf %317 : vector<2x128xf32>
    %319 = math.exp %318 : vector<2x128xf32>
    %cst_84 = arith.constant 1.000000e+00 : f32
    %320 = vector.broadcast %cst_84 : f32 to vector<2x128xf32>
    %321 = arith.addf %320, %319 : vector<2x128xf32>
    %322 = arith.divf %320, %321 : vector<2x128xf32>
    %323 = vector.extract_strided_slice %312 {offsets = [0, 128], sizes = [2, 128], strides = [1, 1]} : vector<2x512xf32> to vector<2x128xf32>
    %324 = arith.negf %323 : vector<2x128xf32>
    %325 = math.exp %324 : vector<2x128xf32>
    %cst_85 = arith.constant 1.000000e+00 : f32
    %326 = vector.broadcast %cst_85 : f32 to vector<2x128xf32>
    %327 = arith.addf %326, %325 : vector<2x128xf32>
    %328 = arith.divf %326, %327 : vector<2x128xf32>
    %329 = vector.extract_strided_slice %312 {offsets = [0, 256], sizes = [2, 128], strides = [1, 1]} : vector<2x512xf32> to vector<2x128xf32>
    %330 = math.tanh %329 : vector<2x128xf32>
    %331 = vector.extract_strided_slice %312 {offsets = [0, 384], sizes = [2, 128], strides = [1, 1]} : vector<2x512xf32> to vector<2x128xf32>
    %332 = arith.negf %331 : vector<2x128xf32>
    %333 = math.exp %332 : vector<2x128xf32>
    %cst_86 = arith.constant 1.000000e+00 : f32
    %334 = vector.broadcast %cst_86 : f32 to vector<2x128xf32>
    %335 = arith.addf %334, %333 : vector<2x128xf32>
    %336 = arith.divf %334, %335 : vector<2x128xf32>
    %337 = arith.mulf %328, %276 : vector<2x128xf32>
    %338 = arith.mulf %322, %330 : vector<2x128xf32>
    %339 = arith.addf %337, %338 : vector<2x128xf32>
    %340 = math.tanh %339 : vector<2x128xf32>
    %341 = arith.mulf %336, %340 : vector<2x128xf32>
    %342 = vector.extract_strided_slice %316 {offsets = [0, 0], sizes = [2, 128], strides = [1, 1]} : vector<2x512xf32> to vector<2x128xf32>
    %343 = arith.negf %342 : vector<2x128xf32>
    %344 = math.exp %343 : vector<2x128xf32>
    %cst_87 = arith.constant 1.000000e+00 : f32
    %345 = vector.broadcast %cst_87 : f32 to vector<2x128xf32>
    %346 = arith.addf %345, %344 : vector<2x128xf32>
    %347 = arith.divf %345, %346 : vector<2x128xf32>
    %348 = vector.extract_strided_slice %316 {offsets = [0, 128], sizes = [2, 128], strides = [1, 1]} : vector<2x512xf32> to vector<2x128xf32>
    %349 = arith.negf %348 : vector<2x128xf32>
    %350 = math.exp %349 : vector<2x128xf32>
    %cst_88 = arith.constant 1.000000e+00 : f32
    %351 = vector.broadcast %cst_88 : f32 to vector<2x128xf32>
    %352 = arith.addf %351, %350 : vector<2x128xf32>
    %353 = arith.divf %351, %352 : vector<2x128xf32>
    %354 = vector.extract_strided_slice %316 {offsets = [0, 256], sizes = [2, 128], strides = [1, 1]} : vector<2x512xf32> to vector<2x128xf32>
    %355 = math.tanh %354 : vector<2x128xf32>
    %356 = vector.extract_strided_slice %316 {offsets = [0, 384], sizes = [2, 128], strides = [1, 1]} : vector<2x512xf32> to vector<2x128xf32>
    %357 = arith.negf %356 : vector<2x128xf32>
    %358 = math.exp %357 : vector<2x128xf32>
    %cst_89 = arith.constant 1.000000e+00 : f32
    %359 = vector.broadcast %cst_89 : f32 to vector<2x128xf32>
    %360 = arith.addf %359, %358 : vector<2x128xf32>
    %361 = arith.divf %359, %360 : vector<2x128xf32>
    %362 = arith.mulf %353, %301 : vector<2x128xf32>
    %363 = arith.mulf %347, %355 : vector<2x128xf32>
    %364 = arith.addf %362, %363 : vector<2x128xf32>
    %365 = math.tanh %364 : vector<2x128xf32>
    %366 = arith.mulf %361, %365 : vector<2x128xf32>
    %c4_i32_90 = arith.constant 4 : i32
    %367 = arith.addi %6, %c4_i32_90 : i32
    %c7_i32_91 = arith.constant 7 : i32
    %368 = arith.cmpi slt, %367, %c7_i32_91 : i32
    %cst_92 = arith.constant 0.000000e+00 : f32
    %369 = vector.broadcast %cst_92 : f32 to vector<2x128xf32>
    %370 = arith.select %368, %341, %369 : vector<2x128xf32>
    %371 = arith.addf %308, %370 : vector<2x128xf32>
    %372 = tpu.concatenate %366, %341 in 1 : vector<2x128xf32>, vector<2x128xf32> -> vector<2x256xf32>
    %cst_93 = arith.constant dense<0.000000e+00> : vector<2x512xf32>
    %373 = tpu.matmul %372, %4, %cst_93 {dimension_numbers = #tpu.dot_dimension_numbers<[1], [0], [0], [1], [0, 0, 1, 1], [], []>} : vector<2x256xf32>, vector<256x512xf32>, vector<2x512xf32> -> vector<2x512xf32>
    %374 = vector.broadcast %5 : vector<1x512xf32> to vector<2x512xf32>
    %375 = arith.addf %373, %374 : vector<2x512xf32>
    %c6 = arith.constant 6 : index
    %c0_94 = arith.constant 0 : index
    %c0_95 = arith.constant 0 : index
    %376 = vector.load %arg2[%c6, %c0_94, %c0_95] : memref<7x2x512xf32, #tpu.memory_space<vmem>>, vector<1x2x512xf32>
    %377 = vector.shape_cast %376 : vector<1x2x512xf32> to vector<2x512xf32>
    %cst_96 = arith.constant dense<0.000000e+00> : vector<2x512xf32>
    %378 = tpu.matmul %366, %3, %cst_96 {dimension_numbers = #tpu.dot_dimension_numbers<[1], [0], [0], [1], [0, 0, 1, 1], [], []>} : vector<2x128xf32>, vector<128x512xf32>, vector<2x512xf32> -> vector<2x512xf32>
    %379 = arith.addf %377, %378 : vector<2x512xf32>
    %380 = vector.extract_strided_slice %375 {offsets = [0, 0], sizes = [2, 128], strides = [1, 1]} : vector<2x512xf32> to vector<2x128xf32>
    %381 = arith.negf %380 : vector<2x128xf32>
    %382 = math.exp %381 : vector<2x128xf32>
    %cst_97 = arith.constant 1.000000e+00 : f32
    %383 = vector.broadcast %cst_97 : f32 to vector<2x128xf32>
    %384 = arith.addf %383, %382 : vector<2x128xf32>
    %385 = arith.divf %383, %384 : vector<2x128xf32>
    %386 = vector.extract_strided_slice %375 {offsets = [0, 128], sizes = [2, 128], strides = [1, 1]} : vector<2x512xf32> to vector<2x128xf32>
    %387 = arith.negf %386 : vector<2x128xf32>
    %388 = math.exp %387 : vector<2x128xf32>
    %cst_98 = arith.constant 1.000000e+00 : f32
    %389 = vector.broadcast %cst_98 : f32 to vector<2x128xf32>
    %390 = arith.addf %389, %388 : vector<2x128xf32>
    %391 = arith.divf %389, %390 : vector<2x128xf32>
    %392 = vector.extract_strided_slice %375 {offsets = [0, 256], sizes = [2, 128], strides = [1, 1]} : vector<2x512xf32> to vector<2x128xf32>
    %393 = math.tanh %392 : vector<2x128xf32>
    %394 = vector.extract_strided_slice %375 {offsets = [0, 384], sizes = [2, 128], strides = [1, 1]} : vector<2x512xf32> to vector<2x128xf32>
    %395 = arith.negf %394 : vector<2x128xf32>
    %396 = math.exp %395 : vector<2x128xf32>
    %cst_99 = arith.constant 1.000000e+00 : f32
    %397 = vector.broadcast %cst_99 : f32 to vector<2x128xf32>
    %398 = arith.addf %397, %396 : vector<2x128xf32>
    %399 = arith.divf %397, %398 : vector<2x128xf32>
    %400 = arith.mulf %391, %339 : vector<2x128xf32>
    %401 = arith.mulf %385, %393 : vector<2x128xf32>
    %402 = arith.addf %400, %401 : vector<2x128xf32>
    %403 = math.tanh %402 : vector<2x128xf32>
    %404 = arith.mulf %399, %403 : vector<2x128xf32>
    %405 = vector.extract_strided_slice %379 {offsets = [0, 0], sizes = [2, 128], strides = [1, 1]} : vector<2x512xf32> to vector<2x128xf32>
    %406 = arith.negf %405 : vector<2x128xf32>
    %407 = math.exp %406 : vector<2x128xf32>
    %cst_100 = arith.constant 1.000000e+00 : f32
    %408 = vector.broadcast %cst_100 : f32 to vector<2x128xf32>
    %409 = arith.addf %408, %407 : vector<2x128xf32>
    %410 = arith.divf %408, %409 : vector<2x128xf32>
    %411 = vector.extract_strided_slice %379 {offsets = [0, 128], sizes = [2, 128], strides = [1, 1]} : vector<2x512xf32> to vector<2x128xf32>
    %412 = arith.negf %411 : vector<2x128xf32>
    %413 = math.exp %412 : vector<2x128xf32>
    %cst_101 = arith.constant 1.000000e+00 : f32
    %414 = vector.broadcast %cst_101 : f32 to vector<2x128xf32>
    %415 = arith.addf %414, %413 : vector<2x128xf32>
    %416 = arith.divf %414, %415 : vector<2x128xf32>
    %417 = vector.extract_strided_slice %379 {offsets = [0, 256], sizes = [2, 128], strides = [1, 1]} : vector<2x512xf32> to vector<2x128xf32>
    %418 = math.tanh %417 : vector<2x128xf32>
    %419 = vector.extract_strided_slice %379 {offsets = [0, 384], sizes = [2, 128], strides = [1, 1]} : vector<2x512xf32> to vector<2x128xf32>
    %420 = arith.negf %419 : vector<2x128xf32>
    %421 = math.exp %420 : vector<2x128xf32>
    %cst_102 = arith.constant 1.000000e+00 : f32
    %422 = vector.broadcast %cst_102 : f32 to vector<2x128xf32>
    %423 = arith.addf %422, %421 : vector<2x128xf32>
    %424 = arith.divf %422, %423 : vector<2x128xf32>
    %425 = arith.mulf %416, %364 : vector<2x128xf32>
    %426 = arith.mulf %410, %418 : vector<2x128xf32>
    %427 = arith.addf %425, %426 : vector<2x128xf32>
    %428 = math.tanh %427 : vector<2x128xf32>
    %429 = arith.mulf %424, %428 : vector<2x128xf32>
    %c5_i32 = arith.constant 5 : i32
    %430 = arith.addi %6, %c5_i32 : i32
    %c7_i32_103 = arith.constant 7 : i32
    %431 = arith.cmpi slt, %430, %c7_i32_103 : i32
    %cst_104 = arith.constant 0.000000e+00 : f32
    %432 = vector.broadcast %cst_104 : f32 to vector<2x128xf32>
    %433 = arith.select %431, %404, %432 : vector<2x128xf32>
    %434 = arith.addf %371, %433 : vector<2x128xf32>
    %435 = tpu.concatenate %429, %404 in 1 : vector<2x128xf32>, vector<2x128xf32> -> vector<2x256xf32>
    %cst_105 = arith.constant dense<0.000000e+00> : vector<2x512xf32>
    %436 = tpu.matmul %435, %4, %cst_105 {dimension_numbers = #tpu.dot_dimension_numbers<[1], [0], [0], [1], [0, 0, 1, 1], [], []>} : vector<2x256xf32>, vector<256x512xf32>, vector<2x512xf32> -> vector<2x512xf32>
    %437 = vector.broadcast %5 : vector<1x512xf32> to vector<2x512xf32>
    %438 = arith.addf %436, %437 : vector<2x512xf32>
    %439 = vector.extract_strided_slice %438 {offsets = [0, 0], sizes = [2, 128], strides = [1, 1]} : vector<2x512xf32> to vector<2x128xf32>
    %440 = arith.negf %439 : vector<2x128xf32>
    %441 = math.exp %440 : vector<2x128xf32>
    %cst_106 = arith.constant 1.000000e+00 : f32
    %442 = vector.broadcast %cst_106 : f32 to vector<2x128xf32>
    %443 = arith.addf %442, %441 : vector<2x128xf32>
    %444 = arith.divf %442, %443 : vector<2x128xf32>
    %445 = vector.extract_strided_slice %438 {offsets = [0, 128], sizes = [2, 128], strides = [1, 1]} : vector<2x512xf32> to vector<2x128xf32>
    %446 = arith.negf %445 : vector<2x128xf32>
    %447 = math.exp %446 : vector<2x128xf32>
    %cst_107 = arith.constant 1.000000e+00 : f32
    %448 = vector.broadcast %cst_107 : f32 to vector<2x128xf32>
    %449 = arith.addf %448, %447 : vector<2x128xf32>
    %450 = arith.divf %448, %449 : vector<2x128xf32>
    %451 = vector.extract_strided_slice %438 {offsets = [0, 256], sizes = [2, 128], strides = [1, 1]} : vector<2x512xf32> to vector<2x128xf32>
    %452 = math.tanh %451 : vector<2x128xf32>
    %453 = vector.extract_strided_slice %438 {offsets = [0, 384], sizes = [2, 128], strides = [1, 1]} : vector<2x512xf32> to vector<2x128xf32>
    %454 = arith.negf %453 : vector<2x128xf32>
    %455 = math.exp %454 : vector<2x128xf32>
    %cst_108 = arith.constant 1.000000e+00 : f32
    %456 = vector.broadcast %cst_108 : f32 to vector<2x128xf32>
    %457 = arith.addf %456, %455 : vector<2x128xf32>
    %458 = arith.divf %456, %457 : vector<2x128xf32>
    %459 = arith.mulf %450, %402 : vector<2x128xf32>
    %460 = arith.mulf %444, %452 : vector<2x128xf32>
    %461 = arith.addf %459, %460 : vector<2x128xf32>
    %462 = math.tanh %461 : vector<2x128xf32>
    %463 = arith.mulf %458, %462 : vector<2x128xf32>
    %c7_i32_109 = arith.constant 7 : i32
    %464 = arith.addi %6, %c7_i32_109 : i32
    %c1_i32_110 = arith.constant 1 : i32
    %465 = arith.subi %464, %c1_i32_110 : i32
    %c7_i32_111 = arith.constant 7 : i32
    %466 = arith.cmpi slt, %465, %c7_i32_111 : i32
    %cst_112 = arith.constant 0.000000e+00 : f32
    %467 = vector.broadcast %cst_112 : f32 to vector<2x128xf32>
    %468 = arith.select %466, %463, %467 : vector<2x128xf32>
    %469 = arith.addf %434, %468 : vector<2x128xf32>
    %c0_113 = arith.constant 0 : index
    %c0_114 = arith.constant 0 : index
    %470 = vector.load %arg9[%c0_113, %c0_114] : memref<2x128xf32, #tpu.memory_space<vmem>>, vector<2x128xf32>
    tpu.vector_store %arg9[%c0_113, %c0_114], %429 {strides = array<i32>} : memref<2x128xf32, #tpu.memory_space<vmem>>, vector<2x128xf32>,
    %c0_115 = arith.constant 0 : index
    %c0_116 = arith.constant 0 : index
    %471 = vector.load %arg10[%c0_115, %c0_116] : memref<2x128xf32, #tpu.memory_space<vmem>>, vector<2x128xf32>
    tpu.vector_store %arg10[%c0_115, %c0_116], %427 {strides = array<i32>} : memref<2x128xf32, #tpu.memory_space<vmem>>, vector<2x128xf32>,
    %c0_117 = arith.constant 0 : index
    %c0_118 = arith.constant 0 : index
    %472 = vector.load %arg11[%c0_117, %c0_118] : memref<2x128xf32, #tpu.memory_space<vmem>>, vector<2x128xf32>
    tpu.vector_store %arg11[%c0_117, %c0_118], %463 {strides = array<i32>} : memref<2x128xf32, #tpu.memory_space<vmem>>, vector<2x128xf32>,
    %c0_119 = arith.constant 0 : index
    %c0_120 = arith.constant 0 : index
    %473 = vector.load %arg12[%c0_119, %c0_120] : memref<2x128xf32, #tpu.memory_space<vmem>>, vector<2x128xf32>
    tpu.vector_store %arg12[%c0_119, %c0_120], %461 {strides = array<i32>} : memref<2x128xf32, #tpu.memory_space<vmem>>, vector<2x128xf32>,
    %c0_121 = arith.constant 0 : index
    %c0_122 = arith.constant 0 : index
    %474 = vector.load %arg13[%c0_121, %c0_122] : memref<2x128xf32, #tpu.memory_space<vmem>>, vector<2x128xf32>
    tpu.vector_store %arg13[%c0_121, %c0_122], %469 {strides = array<i32>} : memref<2x128xf32, #tpu.memory_space<vmem>>, vector<2x128xf32>,
    %c0_i32_123 = arith.constant 0 : i32
    %475 = arith.cmpi eq, %arg1, %c0_i32_123 : i32
    %476 = arith.extui %475 : i1 to i32
    %c0_i32_124 = arith.constant 0 : i32
    %477 = arith.cmpi ne, %476, %c0_i32_124 : i32
    scf.if %477 {
      %cst_125 = arith.constant 0.142857149 : f32
      %478 = vector.broadcast %cst_125 : f32 to vector<2x128xf32>
      %479 = arith.mulf %469, %478 : vector<2x128xf32>
      %c0_126 = arith.constant 0 : index
      %c0_127 = arith.constant 0 : index
      %480 = vector.load %arg6[%c0_126, %c0_127] : memref<128x128xf32, #tpu.memory_space<vmem>>, vector<128x128xf32>
      %cst_128 = arith.constant dense<0.000000e+00> : vector<2x128xf32>
      %481 = tpu.matmul %479, %480, %cst_128 {dimension_numbers = #tpu.dot_dimension_numbers<[1], [0], [0], [1], [0, 0, 1, 1], [], []>} : vector<2x128xf32>, vector<128x128xf32>, vector<2x128xf32> -> vector<2x128xf32>
      %c0_129 = arith.constant 0 : index
      %c0_130 = arith.constant 0 : index
      %482 = vector.load %arg7[%c0_129, %c0_130] : memref<1x128xf32, #tpu.memory_space<vmem>>, vector<1x128xf32>
      %483 = vector.broadcast %482 : vector<1x128xf32> to vector<2x128xf32>
      %484 = arith.addf %481, %483 : vector<2x128xf32>
      %c0_131 = arith.constant 0 : index
      %c0_132 = arith.constant 0 : index
      %485 = vector.load %arg8[%c0_131, %c0_132] : memref<2x128xf32, #tpu.memory_space<vmem>>, vector<2x128xf32>
      tpu.vector_store %arg8[%c0_131, %c0_132], %484 {strides = array<i32>} : memref<2x128xf32, #tpu.memory_space<vmem>>, vector<2x128xf32>,
    } else {
    }
    return
  }
  func.func @transform_0(%arg0: i32, %arg1: i32) -> (i32, i32, i32) {
    %c0_i32 = arith.constant 0 : i32
    %c0_i32_0 = arith.constant 0 : i32
    return %arg1, %arg0, %c0_i32 : i32, i32, i32
  }
  func.func @transform_1(%arg0: i32, %arg1: i32) -> (i32, i32) {
    %c0_i32 = arith.constant 0 : i32
    %c0_i32_0 = arith.constant 0 : i32
    %c0_i32_1 = arith.constant 0 : i32
    return %c0_i32, %c0_i32_0 : i32, i32
  }
  func.func @transform_2(%arg0: i32, %arg1: i32) -> (i32, i32) {
    %c0_i32 = arith.constant 0 : i32
    %c0_i32_0 = arith.constant 0 : i32
    %c0_i32_1 = arith.constant 0 : i32
    return %c0_i32, %c0_i32_0 : i32, i32
  }
  func.func @transform_3(%arg0: i32, %arg1: i32) -> (i32, i32) {
    %c0_i32 = arith.constant 0 : i32
    %c0_i32_0 = arith.constant 0 : i32
    %c0_i32_1 = arith.constant 0 : i32
    return %c0_i32, %c0_i32_0 : i32, i32
  }
  func.func @transform_4(%arg0: i32, %arg1: i32) -> (i32, i32) {
    %c0_i32 = arith.constant 0 : i32
    %c0_i32_0 = arith.constant 0 : i32
    %c0_i32_1 = arith.constant 0 : i32
    return %c0_i32, %c0_i32_0 : i32, i32
  }
  func.func @transform_5(%arg0: i32, %arg1: i32) -> (i32, i32) {
    %c0_i32 = arith.constant 0 : i32
    %c0_i32_0 = arith.constant 0 : i32
    %c0_i32_1 = arith.constant 0 : i32
    return %c0_i32, %c0_i32_0 : i32, i32
  }
  func.func @transform_6(%arg0: i32, %arg1: i32) -> (i32, i32) {
    %c0_i32 = arith.constant 0 : i32
    %c0_i32_0 = arith.constant 0 : i32
    return %arg0, %c0_i32 : i32, i32
  }
}

</mosaic_0001>

<bundles_post_ra>
// kernel: reverse.1
= control target key start
LH: loop header
LB: loop body
LE: loop exit
PB: predicated region body
PF: predicated region fallthrough
CT: control target
= control target key end

     0   :  { %v2_v0 = vlaneseq  ;;  %s318_s0 = inlined_call_operand.vmem [shape: f32[2,256], index: 0, kind: input, shape index: {}]   ;;  %s319_s1 = inlined_call_operand.vmem [shape: f32[2,256], index: 1, kind: output, shape index: {}]  }
   0x2   :  { %v3_v1 = vsub.s32 127, %v2_v0 }
   0x4   :  { %4 = vset.pattern.permute.xlu0 %v3_v1 }
   0x5   :  { %s278_s6 = smov 0   ;;  %s280_s7 = smov 0  }
   0x6   :  { %s282_s8 = smov 0  }
   0x7 LB: > { %s208_s9 = sadd.s32 4294967295, %s266_s8   ;;  %s19_s10 = sadd.s32 1, %s262_s7  ;;  %s266_s8 = sphi %s282_s8, %s10_s8   ;;  %s262_s7 = sphi %s280_s7, %s321_s7   ;;  %s258_s6 = sphi %s278_s6, %s320_s6  }
   0x8   : > { %p20_p0 = scmp.ge.s32.totalorder %s19_s10, 2  ;;  %p210_p1 = scmp.ge.s32.totalorder %s266_s8, 2 }
   0x9   : > { %s38_s11 = sand.u32 (!%p210_p1), 1, %s266_s8   ;;  %s41_s12 = ssub.s32 (!%p210_p1), 1, %s262_s7 }
   0xa   : > { %s323_s10 = smov (%p20_p0, %s19_s10), 0  ;;  %36 = sbr.rel (%p210_p1) target bundleno = 17 (0x11), region = 16 }
   0xb   : > { %s211_s13 = sshll.u32 (!%p210_p1), %s38_s11, 1  ;;  %s212_s14 = sshll.u32 (!%p210_p1), %s41_s12, 1 }
   0xc   : > { %s45_s17 = scalar_lea.vmem (!%p210_p1), %s318_s0, %s212_s14  ;;  %s40_s18 = scalar_lea.vmem (!%p210_p1), [#allocation1], %s211_s13 }
   0xf   : > { %v62_v2 = vld [vmem:[%s45_s17] sm:$0x3] }
  0x10   : > { %63 = vst [vmem:[%s40_s18] sm:$0x3] %v62_v2 }
  0x11 PF: > { %p213_p2 = scmp.ge.s32.totalorder %s266_s8, 1  ;;  %p80_p3 = scmp.lt.s32.totalorder %s266_s8, 3 }
  0x13   : > { %p81_p4 = pnand %p213_p2, %p80_p3 }
  0x14   : > { %s91_s19 = sand.u32 (!%p81_p4), 1, %s208_s9   ;;  %s217_s23 = sshll.u32 (!%p81_p4), %s258_s6, 1 }
  0x15   : > { %84 = sbr.rel (%p81_p4) target bundleno = 176 (0xb0), region = 50  ;;  %s214_s20 = sshll.u32 (!%p81_p4), %s91_s19, 1 }
  0x16   : > { %s93_s21 = scalar_lea.vmem (!%p81_p4), [#allocation1], %s214_s20  ;;  %s97_s22 = scalar_lea.vmem (!%p81_p4), [#allocation3], %s214_s20 }
  0x17   : > { %s123_s26 = scalar_lea.vmem (!%p81_p4), %s319_s1, %s217_s23 }
  0x1a   : > { %v101_v3 = vld [vmem:[%s93_s21] sm:$0x3] }
  0x1b   : > { %102 = vst [vmem:[#allocation0] sm:$0x3] %v101_v3 }
  0x22   : > { %v104_v4 = vld [vmem:[#allocation0] sm:$0xff] }
  0x23   : > { %105 = vperm.xlu0 %4, %v104_v4  }
  0x9e   : > { %v106_v5 = vpop.permute.xlu0 %105 }
  0x9f   : > { %107 = vst [vmem:[#allocation2] sm:$0xff] %v106_v5 }
  0xa6   : > { %v112_v6 = vld [vmem:[#allocation2] sm:$0x3] }
  0xa7   : > { %115 = vst [vmem:[%s97_s22] sm:$0x3] %v112_v6 }
  0xae   : > { %v140_v7 = vld [vmem:[%s97_s22] sm:$0x3] }
  0xaf   : > { %141 = vst [vmem:[%s123_s26] sm:$0x3] %v140_v7 }
  0xb0 PF: > { %s10_s8 = sadd.s32 1, %s266_s8   ;;  %s320_s6 = smov %s262_s7 }
  0xb1   : > { %p7_p5 = scmp.ge.s32.totalorder %s10_s8, 4   ;;  %s321_s7 = smov %s323_s10 }
  0xb3   :  { %9 = sbr.rel (!%p7_p5) target bundleno = 7 (0x7), region = 110 }

// kernel: forward.2
= control target key start
LH: loop header
LB: loop body
LE: loop exit
PB: predicated region body
PF: predicated region fallthrough
CT: control target
= control target key end

     0   :  { %11 = vsyncpa [#allocation3], 0  ;;  %s1869_s21 = smov 0   ;;  %s3100_s0 = inlined_call_operand.vmem [shape: f32[2,9,512], index: 0, kind: input, shape index: {}]   ;;  %s3101_s1 = inlined_call_operand.vmem [shape: f32[512,512], index: 1, kind: input, shape index: {}]   ;;  %s3102_s2 = inlined_call_operand.hbm [shape: f32[256,128], index: 2, kind: input, shape index: {}]   ;;  %s3103_s3 = inlined_call_operand.vmem [shape: f32[3,128,128], index: 3, kind: input, shape index: {}]   ;;  %s3104_s4 = inlined_call_operand.vmem [shape: f32[128,512], index: 4, kind: input, shape index: {}]   ;;  %s3105_s5 = inlined_call_operand.vmem [shape: f32[1,512], index: 5, kind: input, shape index: {}]   ;;  %s3106_s6 = inlined_call_operand.vmem [shape: f32[2,7,512], index: 6, kind: output, shape index: {}]  }
   0x1 LB: > { %s1875_s22 = sadd.s32 4294967295, %s1827_s21   ;;  %p1529_p0 = scmp.ge.s32.totalorder %s1827_s21, 1  ;;  %s1827_s21 = sphi %s1869_s21, %s17_s21  }
   0x2   : > { %p179_p1 = scmp.lt.s32.totalorder %s1827_s21, 3  ;;  %s1829_s23 = smov [#allocation2]  }
   0x3   : > { %s194_s24 = sshll.u32 %s1829_s23, 4  ;;  %p1776_p3 = scmp.eq.s32.totalorder %s1875_s22, 0  ;;  %s195_s24 = int_to_ptr.vmem [resolvable:$true] %s194_s24 }
   0x4   : > { %p1879_p2 = pnand %p1529_p0, %p179_p1  ;;  %s1802_s26 = scalar_lea.vmem %s195_s24, 4096 }
   0x5   : > { %p1803_p7 = scmp.ne.s32.totalorder %s195_s24, %s1802_s26  ;;  %p1810_p10 = scmp.lt.s32.totalorder %s195_s24, %s195_s24 }
   0x6   : > { %p1772_p4 = pneg %p1879_p2  ;;  %p1811_p11 = scmp.lt.s32.totalorder %s1802_s26, %s1802_s26 }
   0x8   : > { %p1773_p5 = pnand %p1776_p3, %p1772_p4  ;;  %p1812_p12 = por %p1811_p11, %p1810_p10 }
   0xa   : > { %p1793_p6 = pneg %p1773_p5 }
   0xc   : > { %p1805_p8 = pnand %p1803_p7, %p1793_p6 }
   0xe   : > { %p1806_p9 = pneg %p1805_p8 }
  0x10   : > { %p1813_p13 = pnand %p1812_p12, %p1806_p9 }
  0x12   : > { %1816 = shalt.err (!%p1813_p13)
}
  0x13   : > { %s1830_s27 = smov 128   ;;  %s1831_s28 = smov 8  }
  0x14   : > { %1775 = dma.hbm_to_vmem [thread:$0]  (!%p1773_p5), %s3102_s2, 4096, %s195_s24, [#allocation3], %s1830_s27, %s1830_s27, %s1831_s28  }
  0x15   : > { %227 = sbr.rel (%p1879_p2) target bundleno = 988 (0x3dc), region = 44 }
  0x1a   : > { %1822 = dma.done.wait (%p1776_p3), [#allocation3], 4096  }
  0x1b   : > { %1824 = vsyncadd (%p1776_p3), [#allocation3], 4294963200  ;;  %v336_v0 = vld [vmem:[%s3101_s1 + $0x1e8] sm:$0xff]  ;;  %v335_v2 = vld [vmem:[%s3101_s1 + $0x1e0] sm:$0xff]  ;;  %p257_p0 = scmp.lt.s32.totalorder %s1875_s22, 1  ;;  %vm1833_vm0 = vmmov 0  }
  0x1c   : > { %v464_v1 = vld [vmem:[%s3101_s1 + $0x5e8] sm:$0xff]  ;;  %531 = vmatprep.subr.mxu0 %v336_v0  ;;  %v463_v3 = vld [vmem:[%s3101_s1 + $0x5e0] sm:$0xff]  ;;  %vm1152_vm1 = vcmask 1045504  }
  0x1d   : > { %608 = vmatprep.subr.mxu1 %v464_v1  ;;  %v332_v4 = vld [vmem:[%s3101_s1 + $0x1c8] sm:$0xff]  ;;  %532 = vmatpush1.msra.mxu0 %v335_v2  ;;  %v331_v6 = vld [vmem:[%s3101_s1 + $0x1c0] sm:$0xff]  ;;  %s3109_s22 = smov (!%p257_p0, %s1875_s22), 1 }
  0x1e   : > { %v460_v5 = vld [vmem:[%s3101_s1 + $0x5c8] sm:$0xff]  ;;  %609 = vmatpush1.msra.mxu1 %v463_v3  ;;  %v459_v7 = vld [vmem:[%s3101_s1 + $0x5c0] sm:$0xff]  ;;  %533 = vmatprep.subr.mxu0 %v332_v4  ;;  %s1572_s19 = sshll.u32 %s3109_s22, 6 }
  0x1f   : > { %v328_v8 = vld [vmem:[%s3101_s1 + $0x1a8] sm:$0xff]  ;;  %610 = vmatprep.subr.mxu1 %v460_v5  ;;  %v327_v10 = vld [vmem:[%s3101_s1 + $0x1a0] sm:$0xff]  ;;  %534 = vmatpush1.msra.mxu0 %v331_v6  ;;  %s2273_s12 = scalar_lea.vmem %s3100_s0, %s1572_s19 }
  0x20   : > { %v456_v9 = vld [vmem:[%s3101_s1 + $0x5a8] sm:$0xff]  ;;  %v455_v11 = vld [vmem:[%s3101_s1 + $0x5a0] sm:$0xff]  ;;  %611 = vmatpush1.msra.mxu1 %v459_v7  ;;  %535 = vmatprep.subr.mxu0 %v328_v8 }
  0x21   : > { %v324_v12 = vld [vmem:[%s3101_s1 + $0x188] sm:$0xff]  ;;  %612 = vmatprep.subr.mxu1 %v456_v9  ;;  %v323_v14 = vld [vmem:[%s3101_s1 + $0x180] sm:$0xff]  ;;  %536 = vmatpush1.msra.mxu0 %v327_v10 }
  0x22   : > { %v452_v13 = vld [vmem:[%s3101_s1 + $0x588] sm:$0xff]  ;;  %v451_v15 = vld [vmem:[%s3101_s1 + $0x580] sm:$0xff]  ;;  %613 = vmatpush1.msra.mxu1 %v455_v11  ;;  %537 = vmatprep.subr.mxu0 %v324_v12 }
  0x23   : > { %v320_v16 = vld [vmem:[%s3101_s1 + $0x168] sm:$0xff]  ;;  %614 = vmatprep.subr.mxu1 %v452_v13  ;;  %v319_v18 = vld [vmem:[%s3101_s1 + $0x160] sm:$0xff]  ;;  %538 = vmatpush1.msra.mxu0 %v323_v14 }
  0x24   : > { %v448_v17 = vld [vmem:[%s3101_s1 + $0x568] sm:$0xff]  ;;  %v447_v19 = vld [vmem:[%s3101_s1 + $0x560] sm:$0xff]  ;;  %615 = vmatpush1.msra.mxu1 %v451_v15  ;;  %539 = vmatprep.subr.mxu0 %v320_v16 }
  0x25   : > { %v316_v20 = vld [vmem:[%s3101_s1 + $0x148] sm:$0xff]  ;;  %616 = vmatprep.subr.mxu1 %v448_v17  ;;  %v315_v22 = vld [vmem:[%s3101_s1 + $0x140] sm:$0xff]  ;;  %540 = vmatpush1.msra.mxu0 %v319_v18 }
  0x26   : > { %v444_v21 = vld [vmem:[%s3101_s1 + $0x548] sm:$0xff]  ;;  %v443_v23 = vld [vmem:[%s3101_s1 + $0x540] sm:$0xff]  ;;  %617 = vmatpush1.msra.mxu1 %v447_v19  ;;  %541 = vmatprep.subr.mxu0 %v316_v20 }
  0x27   : > { %v312_v24 = vld [vmem:[%s3101_s1 + $0x128] sm:$0xff]  ;;  %618 = vmatprep.subr.mxu1 %v444_v21  ;;  %v311_v26 = vld [vmem:[%s3101_s1 + $0x120] sm:$0xff]  ;;  %542 = vmatpush1.msra.mxu0 %v315_v22 }
  0x28   : > { %v440_v25 = vld [vmem:[%s3101_s1 + $0x528] sm:$0xff]  ;;  %v439_v27 = vld [vmem:[%s3101_s1 + $0x520] sm:$0xff]  ;;  %619 = vmatpush1.msra.mxu1 %v443_v23  ;;  %543 = vmatprep.subr.mxu0 %v312_v24 }
  0x29   : > { %v308_v28 = vld [vmem:[%s3101_s1 + $0x108] sm:$0xff]  ;;  %620 = vmatprep.subr.mxu1 %v440_v25  ;;  %v307_v30 = vld [vmem:[%s3101_s1 + $0x100] sm:$0xff]  ;;  %544 = vmatpush1.msra.mxu0 %v311_v26 }
  0x2a   : > { %v436_v29 = vld [vmem:[%s3101_s1 + $0x508] sm:$0xff]  ;;  %v435_v31 = vld [vmem:[%s3101_s1 + $0x500] sm:$0xff]  ;;  %621 = vmatpush1.msra.mxu1 %v439_v27  ;;  %545 = vmatprep.subr.mxu0 %v308_v28 }
  0x2b   : > { %v304_v32 = vld [vmem:[%s3101_s1 + $0xe8] sm:$0xff]  ;;  %622 = vmatprep.subr.mxu1 %v436_v29  ;;  %v303_v34 = vld [vmem:[%s3101_s1 + $0xe0] sm:$0xff]  ;;  %546 = vmatpush1.msra.mxu0 %v307_v30 }
  0x2c   : > { %v432_v33 = vld [vmem:[%s3101_s1 + $0x4e8] sm:$0xff]  ;;  %v431_v35 = vld [vmem:[%s3101_s1 + $0x4e0] sm:$0xff]  ;;  %623 = vmatpush1.msra.mxu1 %v435_v31  ;;  %547 = vmatprep.subr.mxu0 %v304_v32 }
  0x2d   : > { %v300_v36 = vld [vmem:[%s3101_s1 + $0xc8] sm:$0xff]  ;;  %624 = vmatprep.subr.mxu1 %v432_v33  ;;  %v299_v38 = vld [vmem:[%s3101_s1 + $0xc0] sm:$0xff]  ;;  %548 = vmatpush1.msra.mxu0 %v303_v34 }
  0x2e   : > { %v428_v37 = vld [vmem:[%s3101_s1 + $0x4c8] sm:$0xff]  ;;  %v427_v39 = vld [vmem:[%s3101_s1 + $0x4c0] sm:$0xff]  ;;  %625 = vmatpush1.msra.mxu1 %v431_v35  ;;  %549 = vmatprep.subr.mxu0 %v300_v36 }
  0x2f   : > { %v296_v40 = vld [vmem:[%s3101_s1 + $0xa8] sm:$0xff]  ;;  %626 = vmatprep.subr.mxu1 %v428_v37  ;;  %v295_v42 = vld [vmem:[%s3101_s1 + $0xa0] sm:$0xff]  ;;  %550 = vmatpush1.msra.mxu0 %v299_v38 }
  0x30   : > { %v424_v41 = vld [vmem:[%s3101_s1 + $0x4a8] sm:$0xff]  ;;  %v423_v43 = vld [vmem:[%s3101_s1 + $0x4a0] sm:$0xff]  ;;  %627 = vmatpush1.msra.mxu1 %v427_v39  ;;  %551 = vmatprep.subr.mxu0 %v296_v40 }
  0x31   : > { %v292_v44 = vld [vmem:[%s3101_s1 + $0x88] sm:$0xff]  ;;  %628 = vmatprep.subr.mxu1 %v424_v41  ;;  %v291_v46 = vld [vmem:[%s3101_s1 + $0x80] sm:$0xff]  ;;  %552 = vmatpush1.msra.mxu0 %v295_v42 }
  0x32   : > { %v420_v45 = vld [vmem:[%s3101_s1 + $0x488] sm:$0xff]  ;;  %v419_v47 = vld [vmem:[%s3101_s1 + $0x480] sm:$0xff]  ;;  %629 = vmatpush1.msra.mxu1 %v423_v43  ;;  %553 = vmatprep.subr.mxu0 %v292_v44 }
  0x33   : > { %v288_v48 = vld [vmem:[%s3101_s1 + $0x68] sm:$0xff]  ;;  %630 = vmatprep.subr.mxu1 %v420_v45  ;;  %v287_v50 = vld [vmem:[%s3101_s1 + $0x60] sm:$0xff]  ;;  %554 = vmatpush1.msra.mxu0 %v291_v46 }
  0x34   : > { %v416_v49 = vld [vmem:[%s3101_s1 + $0x468] sm:$0xff]  ;;  %v415_v51 = vld [vmem:[%s3101_s1 + $0x460] sm:$0xff]  ;;  %631 = vmatpush1.msra.mxu1 %v419_v47  ;;  %555 = vmatprep.subr.mxu0 %v288_v48 }
  0x35   : > { %v284_v52 = vld [vmem:[%s3101_s1 + $0x48] sm:$0xff]  ;;  %632 = vmatprep.subr.mxu1 %v416_v49  ;;  %v283_v54 = vld [vmem:[%s3101_s1 + $0x40] sm:$0xff]  ;;  %556 = vmatpush1.msra.mxu0 %v287_v50 }
  0x36   : > { %v412_v53 = vld [vmem:[%s3101_s1 + $0x448] sm:$0xff]  ;;  %v411_v55 = vld [vmem:[%s3101_s1 + $0x440] sm:$0xff]  ;;  %633 = vmatpush1.msra.mxu1 %v415_v51  ;;  %557 = vmatprep.subr.mxu0 %v284_v52 }
  0x37   : > { %v280_v56 = vld [vmem:[%s3101_s1 + $0x28] sm:$0xff]  ;;  %634 = vmatprep.subr.mxu1 %v412_v53  ;;  %v279_v58 = vld [vmem:[%s3101_s1 + $0x20] sm:$0xff]  ;;  %558 = vmatpush1.msra.mxu0 %v283_v54 }
  0x38   : > { %v408_v57 = vld [vmem:[%s3101_s1 + $0x428] sm:$0xff]  ;;  %v407_v59 = vld [vmem:[%s3101_s1 + $0x420] sm:$0xff]  ;;  %635 = vmatpush1.msra.mxu1 %v411_v55  ;;  %559 = vmatprep.subr.mxu0 %v280_v56 }
  0x39   : > { %v276_v60 = vld [vmem:[%s3101_s1 + $0x8] sm:$0xff]  ;;  %636 = vmatprep.subr.mxu1 %v408_v57  ;;  %v275_v62 = vld [vmem:[%s3101_s1] sm:$0xff]  ;;  %560 = vmatpush1.msra.mxu0 %v279_v58 }
  0x3a   : > { %v404_v61 = vld [vmem:[%s3101_s1 + $0x408] sm:$0xff]  ;;  %v403_v63 = vld [vmem:[%s3101_s1 + $0x400] sm:$0xff]  ;;  %637 = vmatpush1.msra.mxu1 %v407_v59  ;;  %561 = vmatprep.subr.mxu0 %v276_v60 }
  0x3b   : > { %v400_v0 = vld [vmem:[%s3101_s1 + $0x3e8] sm:$0xff]  ;;  %638 = vmatprep.subr.mxu1 %v404_v61  ;;  %v399_v2 = vld [vmem:[%s3101_s1 + $0x3e0] sm:$0xff]  ;;  %562 = vmatpush1.msra.mxu0 %v275_v62 }
  0x3c   : > { %v528_v1 = vld [vmem:[%s3101_s1 + $0x7e8] sm:$0xff]  ;;  %v527_v3 = vld [vmem:[%s3101_s1 + $0x7e0] sm:$0xff]  ;;  %639 = vmatpush1.msra.mxu1 %v403_v63  ;;  %563 = vmatprep.subr.mxu0 %v400_v0 }
  0x3d   : > { %v396_v4 = vld [vmem:[%s3101_s1 + $0x3c8] sm:$0xff]  ;;  %640 = vmatprep.subr.mxu1 %v528_v1  ;;  %v395_v6 = vld [vmem:[%s3101_s1 + $0x3c0] sm:$0xff]  ;;  %564 = vmatpush2.msra.mxu0 %v399_v2  ;;  %v2297_v1 = vld [vmem:[%s2273_s12 + $0x18] sm:$0xff] }
  0x3e   : > { %v524_v5 = vld [vmem:[%s3101_s1 + $0x7c8] sm:$0xff]  ;;  %v523_v7 = vld [vmem:[%s3101_s1 + $0x7c0] sm:$0xff]  ;;  %641 = vmatpush2.msra.mxu1 %v527_v3  ;;  %565 = vmatprep.subr.mxu0 %v396_v4  ;;  %v2303_v3 = vld [vmem:[%s2273_s12 + $0x10] sm:$0xff] }
  0x3f   : > { %v392_v8 = vld [vmem:[%s3101_s1 + $0x3a8] sm:$0xff]  ;;  %642 = vmatprep.subr.mxu1 %v524_v5  ;;  %v391_v10 = vld [vmem:[%s3101_s1 + $0x3a0] sm:$0xff]  ;;  %566 = vmatpush2.msra.mxu0 %v395_v6  ;;  %v338_v4 = vld [vmem:[%s3101_s1 + $0x1f8] sm:$0xff] }
  0x40   : > { %v520_v9 = vld [vmem:[%s3101_s1 + $0x7a8] sm:$0xff]  ;;  %v519_v11 = vld [vmem:[%s3101_s1 + $0x7a0] sm:$0xff]  ;;  %643 = vmatpush2.msra.mxu1 %v523_v7  ;;  %567 = vmatprep.subr.mxu0 %v392_v8  ;;  %v466_v5 = vld [vmem:[%s3101_s1 + $0x5f8] sm:$0xff] }
  0x41   : > { %v388_v12 = vld [vmem:[%s3101_s1 + $0x388] sm:$0xff]  ;;  %644 = vmatprep.subr.mxu1 %v520_v9  ;;  %v387_v14 = vld [vmem:[%s3101_s1 + $0x380] sm:$0xff]  ;;  %568 = vmatpush2.msra.mxu0 %v391_v10  ;;  %v337_v6 = vld [vmem:[%s3101_s1 + $0x1f0] sm:$0xff] }
  0x42   : > { %v516_v13 = vld [vmem:[%s3101_s1 + $0x788] sm:$0xff]  ;;  %v515_v15 = vld [vmem:[%s3101_s1 + $0x780] sm:$0xff]  ;;  %645 = vmatpush2.msra.mxu1 %v519_v11  ;;  %569 = vmatprep.subr.mxu0 %v388_v12  ;;  %v465_v7 = vld [vmem:[%s3101_s1 + $0x5f0] sm:$0xff] }
  0x43   : > { %v384_v16 = vld [vmem:[%s3101_s1 + $0x368] sm:$0xff]  ;;  %646 = vmatprep.subr.mxu1 %v516_v13  ;;  %v383_v18 = vld [vmem:[%s3101_s1 + $0x360] sm:$0xff]  ;;  %570 = vmatpush2.msra.mxu0 %v387_v14  ;;  %v334_v8 = vld [vmem:[%s3101_s1 + $0x1d8] sm:$0xff] }
  0x44   : > { %v512_v17 = vld [vmem:[%s3101_s1 + $0x768] sm:$0xff]  ;;  %v511_v19 = vld [vmem:[%s3101_s1 + $0x760] sm:$0xff]  ;;  %647 = vmatpush2.msra.mxu1 %v515_v15  ;;  %571 = vmatprep.subr.mxu0 %v384_v16  ;;  %v462_v9 = vld [vmem:[%s3101_s1 + $0x5d8] sm:$0xff] }
  0x45   : > { %v380_v20 = vld [vmem:[%s3101_s1 + $0x348] sm:$0xff]  ;;  %648 = vmatprep.subr.mxu1 %v512_v17  ;;  %v379_v22 = vld [vmem:[%s3101_s1 + $0x340] sm:$0xff]  ;;  %572 = vmatpush2.msra.mxu0 %v383_v18  ;;  %v333_v10 = vld [vmem:[%s3101_s1 + $0x1d0] sm:$0xff] }
  0x46   : > { %v508_v21 = vld [vmem:[%s3101_s1 + $0x748] sm:$0xff]  ;;  %v507_v23 = vld [vmem:[%s3101_s1 + $0x740] sm:$0xff]  ;;  %649 = vmatpush2.msra.mxu1 %v511_v19  ;;  %573 = vmatprep.subr.mxu0 %v380_v20  ;;  %v461_v11 = vld [vmem:[%s3101_s1 + $0x5d0] sm:$0xff] }
  0x47   : > { %v376_v24 = vld [vmem:[%s3101_s1 + $0x328] sm:$0xff]  ;;  %650 = vmatprep.subr.mxu1 %v508_v21  ;;  %v375_v26 = vld [vmem:[%s3101_s1 + $0x320] sm:$0xff]  ;;  %574 = vmatpush2.msra.mxu0 %v379_v22  ;;  %v330_v12 = vld [vmem:[%s3101_s1 + $0x1b8] sm:$0xff] }
  0x48   : > { %v504_v25 = vld [vmem:[%s3101_s1 + $0x728] sm:$0xff]  ;;  %v503_v27 = vld [vmem:[%s3101_s1 + $0x720] sm:$0xff]  ;;  %651 = vmatpush2.msra.mxu1 %v507_v23  ;;  %575 = vmatprep.subr.mxu0 %v376_v24  ;;  %v458_v13 = vld [vmem:[%s3101_s1 + $0x5b8] sm:$0xff] }
  0x49   : > { %v372_v28 = vld [vmem:[%s3101_s1 + $0x308] sm:$0xff]  ;;  %652 = vmatprep.subr.mxu1 %v504_v25  ;;  %v371_v30 = vld [vmem:[%s3101_s1 + $0x300] sm:$0xff]  ;;  %576 = vmatpush2.msra.mxu0 %v375_v26  ;;  %v329_v14 = vld [vmem:[%s3101_s1 + $0x1b0] sm:$0xff] }
  0x4a   : > { %v500_v29 = vld [vmem:[%s3101_s1 + $0x708] sm:$0xff]  ;;  %v499_v31 = vld [vmem:[%s3101_s1 + $0x700] sm:$0xff]  ;;  %653 = vmatpush2.msra.mxu1 %v503_v27  ;;  %577 = vmatprep.subr.mxu0 %v372_v28  ;;  %v457_v15 = vld [vmem:[%s3101_s1 + $0x5b0] sm:$0xff] }
  0x4b   : > { %v368_v32 = vld [vmem:[%s3101_s1 + $0x2e8] sm:$0xff]  ;;  %654 = vmatprep.subr.mxu1 %v500_v29  ;;  %v367_v34 = vld [vmem:[%s3101_s1 + $0x2e0] sm:$0xff]  ;;  %578 = vmatpush2.msra.mxu0 %v371_v30  ;;  %v326_v16 = vld [vmem:[%s3101_s1 + $0x198] sm:$0xff] }
  0x4c   : > { %v496_v33 = vld [vmem:[%s3101_s1 + $0x6e8] sm:$0xff]  ;;  %v495_v35 = vld [vmem:[%s3101_s1 + $0x6e0] sm:$0xff]  ;;  %655 = vmatpush2.msra.mxu1 %v499_v31  ;;  %579 = vmatprep.subr.mxu0 %v368_v32  ;;  %v454_v17 = vld [vmem:[%s3101_s1 + $0x598] sm:$0xff] }
  0x4d   : > { %v364_v36 = vld [vmem:[%s3101_s1 + $0x2c8] sm:$0xff]  ;;  %656 = vmatprep.subr.mxu1 %v496_v33  ;;  %v363_v38 = vld [vmem:[%s3101_s1 + $0x2c0] sm:$0xff]  ;;  %580 = vmatpush2.msra.mxu0 %v367_v34  ;;  %v325_v18 = vld [vmem:[%s3101_s1 + $0x190] sm:$0xff] }
  0x4e   : > { %v492_v37 = vld [vmem:[%s3101_s1 + $0x6c8] sm:$0xff]  ;;  %v491_v39 = vld [vmem:[%s3101_s1 + $0x6c0] sm:$0xff]  ;;  %657 = vmatpush2.msra.mxu1 %v495_v35  ;;  %581 = vmatprep.subr.mxu0 %v364_v36  ;;  %v453_v19 = vld [vmem:[%s3101_s1 + $0x590] sm:$0xff] }
  0x4f   : > { %v360_v40 = vld [vmem:[%s3101_s1 + $0x2a8] sm:$0xff]  ;;  %658 = vmatprep.subr.mxu1 %v492_v37  ;;  %v359_v42 = vld [vmem:[%s3101_s1 + $0x2a0] sm:$0xff]  ;;  %582 = vmatpush2.msra.mxu0 %v363_v38  ;;  %v322_v20 = vld [vmem:[%s3101_s1 + $0x178] sm:$0xff] }
  0x50   : > { %v488_v41 = vld [vmem:[%s3101_s1 + $0x6a8] sm:$0xff]  ;;  %v487_v43 = vld [vmem:[%s3101_s1 + $0x6a0] sm:$0xff]  ;;  %659 = vmatpush2.msra.mxu1 %v491_v39  ;;  %583 = vmatprep.subr.mxu0 %v360_v40  ;;  %v450_v21 = vld [vmem:[%s3101_s1 + $0x578] sm:$0xff] }
  0x51   : > { %v356_v44 = vld [vmem:[%s3101_s1 + $0x288] sm:$0xff]  ;;  %660 = vmatprep.subr.mxu1 %v488_v41  ;;  %v355_v46 = vld [vmem:[%s3101_s1 + $0x280] sm:$0xff]  ;;  %584 = vmatpush2.msra.mxu0 %v359_v42  ;;  %v321_v22 = vld [vmem:[%s3101_s1 + $0x170] sm:$0xff] }
  0x52   : > { %v484_v45 = vld [vmem:[%s3101_s1 + $0x688] sm:$0xff]  ;;  %v483_v47 = vld [vmem:[%s3101_s1 + $0x680] sm:$0xff]  ;;  %661 = vmatpush2.msra.mxu1 %v487_v43  ;;  %585 = vmatprep.subr.mxu0 %v356_v44  ;;  %v449_v23 = vld [vmem:[%s3101_s1 + $0x570] sm:$0xff] }
  0x53   : > { %v352_v48 = vld [vmem:[%s3101_s1 + $0x268] sm:$0xff]  ;;  %662 = vmatprep.subr.mxu1 %v484_v45  ;;  %v351_v50 = vld [vmem:[%s3101_s1 + $0x260] sm:$0xff]  ;;  %586 = vmatpush2.msra.mxu0 %v355_v46  ;;  %v318_v24 = vld [vmem:[%s3101_s1 + $0x158] sm:$0xff] }
  0x54   : > { %v480_v49 = vld [vmem:[%s3101_s1 + $0x668] sm:$0xff]  ;;  %v479_v51 = vld [vmem:[%s3101_s1 + $0x660] sm:$0xff]  ;;  %663 = vmatpush2.msra.mxu1 %v483_v47  ;;  %587 = vmatprep.subr.mxu0 %v352_v48  ;;  %v446_v25 = vld [vmem:[%s3101_s1 + $0x558] sm:$0xff] }
  0x55   : > { %v348_v52 = vld [vmem:[%s3101_s1 + $0x248] sm:$0xff]  ;;  %664 = vmatprep.subr.mxu1 %v480_v49  ;;  %v347_v54 = vld [vmem:[%s3101_s1 + $0x240] sm:$0xff]  ;;  %588 = vmatpush2.msra.mxu0 %v351_v50  ;;  %v317_v26 = vld [vmem:[%s3101_s1 + $0x150] sm:$0xff] }
  0x56   : > { %v476_v53 = vld [vmem:[%s3101_s1 + $0x648] sm:$0xff]  ;;  %v475_v55 = vld [vmem:[%s3101_s1 + $0x640] sm:$0xff]  ;;  %665 = vmatpush2.msra.mxu1 %v479_v51  ;;  %589 = vmatprep.subr.mxu0 %v348_v52  ;;  %v445_v27 = vld [vmem:[%s3101_s1 + $0x550] sm:$0xff] }
  0x57   : > { %v344_v56 = vld [vmem:[%s3101_s1 + $0x228] sm:$0xff]  ;;  %666 = vmatprep.subr.mxu1 %v476_v53  ;;  %v343_v58 = vld [vmem:[%s3101_s1 + $0x220] sm:$0xff]  ;;  %590 = vmatpush2.msra.mxu0 %v347_v54  ;;  %v314_v28 = vld [vmem:[%s3101_s1 + $0x138] sm:$0xff] }
  0x58   : > { %v472_v57 = vld [vmem:[%s3101_s1 + $0x628] sm:$0xff]  ;;  %v471_v59 = vld [vmem:[%s3101_s1 + $0x620] sm:$0xff]  ;;  %667 = vmatpush2.msra.mxu1 %v475_v55  ;;  %591 = vmatprep.subr.mxu0 %v344_v56  ;;  %v442_v29 = vld [vmem:[%s3101_s1 + $0x538] sm:$0xff] }
  0x59   : > { %v340_v60 = vld [vmem:[%s3101_s1 + $0x208] sm:$0xff]  ;;  %668 = vmatprep.subr.mxu1 %v472_v57  ;;  %v339_v62 = vld [vmem:[%s3101_s1 + $0x200] sm:$0xff]  ;;  %592 = vmatpush2.msra.mxu0 %v343_v58  ;;  %v313_v30 = vld [vmem:[%s3101_s1 + $0x130] sm:$0xff] }
  0x5a   : > { %v468_v61 = vld [vmem:[%s3101_s1 + $0x608] sm:$0xff]  ;;  %669 = vmatpush2.msra.mxu1 %v471_v59  ;;  %v467_v0 = vld [vmem:[%s3101_s1 + $0x600] sm:$0xff]  ;;  %593 = vmatprep.subr.mxu0 %v340_v60  ;;  %v441_v31 = vld [vmem:[%s3101_s1 + $0x530] sm:$0xff] }
  0x5b   : > { %v2291_v63 = vld [vmem:[%s2273_s12 + $0x8] sm:$0xff]  ;;  %670 = vmatprep.subr.mxu1 %v468_v61  ;;  %v2300_v2 = vld [vmem:[%s2273_s12] sm:$0xff]  ;;  %594 = vmatpush2.msra.mxu0 %v339_v62  ;;  %v310_v32 = vld [vmem:[%s3101_s1 + $0x118] sm:$0xff] }
  0x5c   : > { %595 = vmatprep.mubr.f32.mxu0 %v2291_v63  ;;  %671 = vmatpush2.msra.mxu1 %v467_v0  ;;  %v438_v33 = vld [vmem:[%s3101_s1 + $0x518] sm:$0xff]  ;;  %v309_v34 = vld [vmem:[%s3101_s1 + $0x110] sm:$0xff] }
  0x5d   : > { %672 = vmatprep.mubr.f32.mxu1 %v2297_v1  ;;  %596 = vmatmul.mubr.f32.vlgmr.msra.gmra.mxu0 %v2300_v2  ;;  %v437_v35 = vld [vmem:[%s3101_s1 + $0x510] sm:$0xff]  ;;  %v306_v36 = vld [vmem:[%s3101_s1 + $0xf8] sm:$0xff] }
  0x5e   : > { %673 = vmatmul.mubr.f32.vlgmr.msra.gmra.mxu1 %v2303_v3  ;;  %685 = vmatprep.subr.mxu0 %v338_v4  ;;  %v434_v37 = vld [vmem:[%s3101_s1 + $0x4f8] sm:$0xff]  ;;  %v305_v38 = vld [vmem:[%s3101_s1 + $0xf0] sm:$0xff] }
  0x5f   : > { %762 = vmatprep.subr.mxu1 %v466_v5  ;;  %686 = vmatpush1.msra.mxu0 %v337_v6  ;;  %v433_v39 = vld [vmem:[%s3101_s1 + $0x4f0] sm:$0xff]  ;;  %v302_v40 = vld [vmem:[%s3101_s1 + $0xd8] sm:$0xff] }
  0x60   : > { %763 = vmatpush1.msra.mxu1 %v465_v7  ;;  %687 = vmatprep.subr.mxu0 %v334_v8  ;;  %v430_v41 = vld [vmem:[%s3101_s1 + $0x4d8] sm:$0xff]  ;;  %v301_v42 = vld [vmem:[%s3101_s1 + $0xd0] sm:$0xff] }
  0x61   : > { %764 = vmatprep.subr.mxu1 %v462_v9  ;;  %688 = vmatpush1.msra.mxu0 %v333_v10  ;;  %v429_v43 = vld [vmem:[%s3101_s1 + $0x4d0] sm:$0xff]  ;;  %v298_v44 = vld [vmem:[%s3101_s1 + $0xb8] sm:$0xff] }
  0x62   : > { %765 = vmatpush1.msra.mxu1 %v461_v11  ;;  %689 = vmatprep.subr.mxu0 %v330_v12  ;;  %v426_v45 = vld [vmem:[%s3101_s1 + $0x4b8] sm:$0xff]  ;;  %v297_v46 = vld [vmem:[%s3101_s1 + $0xb0] sm:$0xff] }
  0x63   : > { %766 = vmatprep.subr.mxu1 %v458_v13  ;;  %690 = vmatpush1.msra.mxu0 %v329_v14  ;;  %v425_v47 = vld [vmem:[%s3101_s1 + $0x4b0] sm:$0xff]  ;;  %v294_v48 = vld [vmem:[%s3101_s1 + $0x98] sm:$0xff] }
  0x64   : > { %767 = vmatpush1.msra.mxu1 %v457_v15  ;;  %691 = vmatprep.subr.mxu0 %v326_v16  ;;  %v422_v49 = vld [vmem:[%s3101_s1 + $0x498] sm:$0xff]  ;;  %v293_v50 = vld [vmem:[%s3101_s1 + $0x90] sm:$0xff] }
  0x65   : > { %768 = vmatprep.subr.mxu1 %v454_v17  ;;  %692 = vmatpush1.msra.mxu0 %v325_v18  ;;  %v421_v51 = vld [vmem:[%s3101_s1 + $0x490] sm:$0xff]  ;;  %v290_v52 = vld [vmem:[%s3101_s1 + $0x78] sm:$0xff] }
  0x66   : > { %769 = vmatpush1.msra.mxu1 %v453_v19  ;;  %693 = vmatprep.subr.mxu0 %v322_v20  ;;  %v418_v53 = vld [vmem:[%s3101_s1 + $0x478] sm:$0xff]  ;;  %v289_v54 = vld [vmem:[%s3101_s1 + $0x70] sm:$0xff] }
  0x67   : > { %770 = vmatprep.subr.mxu1 %v450_v21  ;;  %694 = vmatpush1.msra.mxu0 %v321_v22  ;;  %v417_v55 = vld [vmem:[%s3101_s1 + $0x470] sm:$0xff]  ;;  %v286_v56 = vld [vmem:[%s3101_s1 + $0x58] sm:$0xff] }
  0x68   : > { %771 = vmatpush1.msra.mxu1 %v449_v23  ;;  %695 = vmatprep.subr.mxu0 %v318_v24  ;;  %v414_v57 = vld [vmem:[%s3101_s1 + $0x458] sm:$0xff]  ;;  %v285_v58 = vld [vmem:[%s3101_s1 + $0x50] sm:$0xff] }
  0x69   : > { %772 = vmatprep.subr.mxu1 %v446_v25  ;;  %696 = vmatpush1.msra.mxu0 %v317_v26  ;;  %v413_v59 = vld [vmem:[%s3101_s1 + $0x450] sm:$0xff]  ;;  %v282_v60 = vld [vmem:[%s3101_s1 + $0x38] sm:$0xff] }
  0x6a   : > { %773 = vmatpush1.msra.mxu1 %v445_v27  ;;  %697 = vmatprep.subr.mxu0 %v314_v28  ;;  %v410_v61 = vld [vmem:[%s3101_s1 + $0x438] sm:$0xff]  ;;  %v281_v62 = vld [vmem:[%s3101_s1 + $0x30] sm:$0xff] }
  0x6b   : > { %774 = vmatprep.subr.mxu1 %v442_v29  ;;  %698 = vmatpush1.msra.mxu0 %v313_v30  ;;  %v409_v0 = vld [vmem:[%s3101_s1 + $0x430] sm:$0xff]  ;;  %v278_v4 = vld [vmem:[%s3101_s1 + $0x18] sm:$0xff] }
  0x6c   : > { %775 = vmatpush1.msra.mxu1 %v441_v31  ;;  %699 = vmatprep.subr.mxu0 %v310_v32  ;;  %v406_v5 = vld [vmem:[%s3101_s1 + $0x418] sm:$0xff]  ;;  %v277_v6 = vld [vmem:[%s3101_s1 + $0x10] sm:$0xff] }
  0x6d   : > { %776 = vmatprep.subr.mxu1 %v438_v33  ;;  %700 = vmatpush1.msra.mxu0 %v309_v34  ;;  %v405_v7 = vld [vmem:[%s3101_s1 + $0x410] sm:$0xff]  ;;  %v402_v8 = vld [vmem:[%s3101_s1 + $0x3f8] sm:$0xff] }
  0x6e   : > { %777 = vmatpush1.msra.mxu1 %v437_v35  ;;  %701 = vmatprep.subr.mxu0 %v306_v36  ;;  %v530_v9 = vld [vmem:[%s3101_s1 + $0x7f8] sm:$0xff]  ;;  %v401_v10 = vld [vmem:[%s3101_s1 + $0x3f0] sm:$0xff] }
  0x6f   : > { %778 = vmatprep.subr.mxu1 %v434_v37  ;;  %702 = vmatpush1.msra.mxu0 %v305_v38  ;;  %v529_v11 = vld [vmem:[%s3101_s1 + $0x7f0] sm:$0xff]  ;;  %v398_v12 = vld [vmem:[%s3101_s1 + $0x3d8] sm:$0xff] }
  0x70   : > { %779 = vmatpush1.msra.mxu1 %v433_v39  ;;  %703 = vmatprep.subr.mxu0 %v302_v40  ;;  %v526_v13 = vld [vmem:[%s3101_s1 + $0x7d8] sm:$0xff]  ;;  %v397_v14 = vld [vmem:[%s3101_s1 + $0x3d0] sm:$0xff] }
  0x71   : > { %780 = vmatprep.subr.mxu1 %v430_v41  ;;  %704 = vmatpush1.msra.mxu0 %v301_v42  ;;  %v525_v15 = vld [vmem:[%s3101_s1 + $0x7d0] sm:$0xff]  ;;  %v394_v16 = vld [vmem:[%s3101_s1 + $0x3b8] sm:$0xff] }
  0x72   : > { %781 = vmatpush1.msra.mxu1 %v429_v43  ;;  %705 = vmatprep.subr.mxu0 %v298_v44  ;;  %v522_v17 = vld [vmem:[%s3101_s1 + $0x7b8] sm:$0xff]  ;;  %v393_v18 = vld [vmem:[%s3101_s1 + $0x3b0] sm:$0xff] }
  0x73   : > { %782 = vmatprep.subr.mxu1 %v426_v45  ;;  %706 = vmatpush1.msra.mxu0 %v297_v46  ;;  %v521_v19 = vld [vmem:[%s3101_s1 + $0x7b0] sm:$0xff]  ;;  %v390_v20 = vld [vmem:[%s3101_s1 + $0x398] sm:$0xff] }
  0x74   : > { %783 = vmatpush1.msra.mxu1 %v425_v47  ;;  %707 = vmatprep.subr.mxu0 %v294_v48  ;;  %v518_v21 = vld [vmem:[%s3101_s1 + $0x798] sm:$0xff]  ;;  %v389_v22 = vld [vmem:[%s3101_s1 + $0x390] sm:$0xff] }
  0x75   : > { %784 = vmatprep.subr.mxu1 %v422_v49  ;;  %708 = vmatpush1.msra.mxu0 %v293_v50  ;;  %v517_v23 = vld [vmem:[%s3101_s1 + $0x790] sm:$0xff]  ;;  %v386_v24 = vld [vmem:[%s3101_s1 + $0x378] sm:$0xff] }
  0x76   : > { %785 = vmatpush1.msra.mxu1 %v421_v51  ;;  %709 = vmatprep.subr.mxu0 %v290_v52  ;;  %v514_v25 = vld [vmem:[%s3101_s1 + $0x778] sm:$0xff]  ;;  %v385_v26 = vld [vmem:[%s3101_s1 + $0x370] sm:$0xff] }
  0x77   : > { %786 = vmatprep.subr.mxu1 %v418_v53  ;;  %710 = vmatpush1.msra.mxu0 %v289_v54  ;;  %v513_v27 = vld [vmem:[%s3101_s1 + $0x770] sm:$0xff]  ;;  %v382_v28 = vld [vmem:[%s3101_s1 + $0x358] sm:$0xff] }
  0x78   : > { %787 = vmatpush1.msra.mxu1 %v417_v55  ;;  %711 = vmatprep.subr.mxu0 %v286_v56  ;;  %v510_v29 = vld [vmem:[%s3101_s1 + $0x758] sm:$0xff]  ;;  %v381_v30 = vld [vmem:[%s3101_s1 + $0x350] sm:$0xff] }
  0x79   : > { %788 = vmatprep.subr.mxu1 %v414_v57  ;;  %712 = vmatpush1.msra.mxu0 %v285_v58  ;;  %v509_v31 = vld [vmem:[%s3101_s1 + $0x750] sm:$0xff]  ;;  %v378_v32 = vld [vmem:[%s3101_s1 + $0x338] sm:$0xff]  ;;  %v272_v58 = vld [vmem:[%s2273_s12 + $0x28] sm:$0x1] }
  0x7a   : > { %789 = vmatpush1.msra.mxu1 %v413_v59  ;;  %713 = vmatprep.subr.mxu0 %v282_v60  ;;  %v506_v33 = vld [vmem:[%s3101_s1 + $0x738] sm:$0xff]  ;;  %v377_v34 = vld [vmem:[%s3101_s1 + $0x330] sm:$0xff] }
  0x7b   : > { %790 = vmatprep.subr.mxu1 %v410_v61  ;;  %714 = vmatpush1.msra.mxu0 %v281_v62  ;;  %v505_v35 = vld [vmem:[%s3101_s1 + $0x730] sm:$0xff]  ;;  %v374_v36 = vld [vmem:[%s3101_s1 + $0x318] sm:$0xff]  ;;  %v271_v62 = vld [vmem:[%s2273_s12 + $0x20] sm:$0x1] }
  0x7c   : > { %791 = vmatpush1.msra.mxu1 %v409_v0  ;;  %715 = vmatprep.subr.mxu0 %v278_v4  ;;  %v502_v37 = vld [vmem:[%s3101_s1 + $0x718] sm:$0xff]  ;;  %v373_v38 = vld [vmem:[%s3101_s1 + $0x310] sm:$0xff] }
  0x7d   : > { %792 = vmatprep.subr.mxu1 %v406_v5  ;;  %716 = vmatpush1.msra.mxu0 %v277_v6  ;;  %v501_v39 = vld [vmem:[%s3101_s1 + $0x710] sm:$0xff]  ;;  %v370_v40 = vld [vmem:[%s3101_s1 + $0x2f8] sm:$0xff] }
  0x7e   : > { %793 = vmatpush1.msra.mxu1 %v405_v7  ;;  %717 = vmatprep.subr.mxu0 %v402_v8  ;;  %v498_v41 = vld [vmem:[%s3101_s1 + $0x6f8] sm:$0xff]  ;;  %v369_v42 = vld [vmem:[%s3101_s1 + $0x2f0] sm:$0xff] }
  0x7f   : > { %794 = vmatprep.subr.mxu1 %v530_v9  ;;  %718 = vmatpush2.msra.mxu0 %v401_v10  ;;  %v497_v43 = vld [vmem:[%s3101_s1 + $0x6f0] sm:$0xff]  ;;  %v366_v44 = vld [vmem:[%s3101_s1 + $0x2d8] sm:$0xff] }
  0x80   : > { %795 = vmatpush2.msra.mxu1 %v529_v11  ;;  %719 = vmatprep.subr.mxu0 %v398_v12  ;;  %v494_v45 = vld [vmem:[%s3101_s1 + $0x6d8] sm:$0xff]  ;;  %v365_v46 = vld [vmem:[%s3101_s1 + $0x2d0] sm:$0xff] }
  0x81   : > { %796 = vmatprep.subr.mxu1 %v526_v13  ;;  %720 = vmatpush2.msra.mxu0 %v397_v14  ;;  %v493_v47 = vld [vmem:[%s3101_s1 + $0x6d0] sm:$0xff]  ;;  %v362_v48 = vld [vmem:[%s3101_s1 + $0x2b8] sm:$0xff] }
  0x82   : > { %797 = vmatpush2.msra.mxu1 %v525_v15  ;;  %721 = vmatprep.subr.mxu0 %v394_v16  ;;  %v490_v49 = vld [vmem:[%s3101_s1 + $0x6b8] sm:$0xff]  ;;  %v361_v50 = vld [vmem:[%s3101_s1 + $0x2b0] sm:$0xff] }
  0x83   : > { %798 = vmatprep.subr.mxu1 %v522_v17  ;;  %722 = vmatpush2.msra.mxu0 %v393_v18  ;;  %v489_v51 = vld [vmem:[%s3101_s1 + $0x6b0] sm:$0xff]  ;;  %v358_v52 = vld [vmem:[%s3101_s1 + $0x298] sm:$0xff] }
  0x84   : > { %799 = vmatpush2.msra.mxu1 %v521_v19  ;;  %723 = vmatprep.subr.mxu0 %v390_v20  ;;  %v486_v53 = vld [vmem:[%s3101_s1 + $0x698] sm:$0xff]  ;;  %v357_v54 = vld [vmem:[%s3101_s1 + $0x290] sm:$0xff]  ;;  %v880_v20 = vld [vmem:[#allocation2 + $0xe8] sm:$0xff] }
  0x85   : > { %800 = vmatprep.subr.mxu1 %v518_v21  ;;  %724 = vmatpush2.msra.mxu0 %v389_v22  ;;  %v485_v55 = vld [vmem:[%s3101_s1 + $0x690] sm:$0xff]  ;;  %v354_v56 = vld [vmem:[%s3101_s1 + $0x278] sm:$0xff]  ;;  %v879_v21 = vld [vmem:[#allocation2 + $0xe0] sm:$0xff] }
  0x86   : > { %801 = vmatpush2.msra.mxu1 %v517_v23  ;;  %725 = vmatprep.subr.mxu0 %v386_v24  ;;  %v482_v57 = vld [vmem:[%s3101_s1 + $0x678] sm:$0xff]  ;;  %v353_v60 = vld [vmem:[%s3101_s1 + $0x270] sm:$0xff]  ;;  %v876_v24 = vld [vmem:[#allocation2 + $0xc8] sm:$0xff] }
  0x87   : > { %802 = vmatprep.subr.mxu1 %v514_v25  ;;  %726 = vmatpush2.msra.mxu0 %v385_v26  ;;  %v274_v59 = vld [vmem:[%s2273_s12 + $0x38] sm:$0x1]  ;;  %v481_v61 = vld [vmem:[%s3101_s1 + $0x670] sm:$0xff]  ;;  %v860_v25 = vld [vmem:[#allocation2 + $0x48] sm:$0xff] }
  0x88   : > { %803 = vmatpush2.msra.mxu1 %v513_v27  ;;  %727 = vmatprep.subr.mxu0 %v382_v28  ;;  %v273_v0 = vld [vmem:[%s2273_s12 + $0x30] sm:$0x1]  ;;  %v350_v4 = vld [vmem:[%s3101_s1 + $0x258] sm:$0xff]  ;;  %v875_v26 = vld [vmem:[#allocation2 + $0xc0] sm:$0xff]  ;;  %s1573_s12 = sshll.u32 %s3109_s22, 5 }
  0x89   : > { %804 = vmatprep.subr.mxu1 %v510_v29  ;;  %728 = vmatpush2.msra.mxu0 %v381_v30  ;;  %v478_v5 = vld [vmem:[%s3101_s1 + $0x658] sm:$0xff]  ;;  %v349_v6 = vld [vmem:[%s3101_s1 + $0x250] sm:$0xff]  ;;  %v859_v27 = vld [vmem:[#allocation2 + $0x40] sm:$0xff]  ;;  %s266_s15 = scalar_lea.vmem %s3106_s6, %s1573_s12 }
  0x8a   : > { %805 = vmatpush2.msra.mxu1 %v509_v31  ;;  %729 = vmatprep.subr.mxu0 %v378_v32  ;;  %v477_v7 = vld [vmem:[%s3101_s1 + $0x650] sm:$0xff]  ;;  %v346_v8 = vld [vmem:[%s3101_s1 + $0x238] sm:$0xff]  ;;  %v872_v32 = vld [vmem:[#allocation2 + $0xa8] sm:$0xff] }
  0x8b   : > { %806 = vmatprep.subr.mxu1 %v506_v33  ;;  %730 = vmatpush2.msra.mxu0 %v377_v34  ;;  %v474_v9 = vld [vmem:[%s3101_s1 + $0x638] sm:$0xff]  ;;  %v345_v10 = vld [vmem:[%s3101_s1 + $0x230] sm:$0xff]  ;;  %v856_v33 = vld [vmem:[#allocation2 + $0x28] sm:$0xff] }
  0x8c   : > { %807 = vmatpush2.msra.mxu1 %v505_v35  ;;  %731 = vmatprep.subr.mxu0 %v374_v36  ;;  %v473_v11 = vld [vmem:[%s3101_s1 + $0x630] sm:$0xff]  ;;  %v342_v12 = vld [vmem:[%s3101_s1 + $0x218] sm:$0xff]  ;;  %v871_v34 = vld [vmem:[#allocation2 + $0xa0] sm:$0xff] }
  0x8d   : > { %808 = vmatprep.subr.mxu1 %v502_v37  ;;  %732 = vmatpush2.msra.mxu0 %v373_v38  ;;  %v470_v13 = vld [vmem:[%s3101_s1 + $0x618] sm:$0xff]  ;;  %v341_v14 = vld [vmem:[%s3101_s1 + $0x210] sm:$0xff]  ;;  %v855_v35 = vld [vmem:[#allocation2 + $0x20] sm:$0xff] }
  0x8e   : > { %809 = vmatpush2.msra.mxu1 %v501_v39  ;;  %733 = vmatprep.subr.mxu0 %v370_v40  ;;  %v469_v15 = vld [vmem:[%s3101_s1 + $0x610] sm:$0xff]  ;;  %v882_v16 = vld [vmem:[#allocation2 + $0xf8] sm:$0xff]  ;;  %v868_v40 = vld [vmem:[#allocation2 + $0x88] sm:$0xff] }
  0x8f   : > { %810 = vmatprep.subr.mxu1 %v498_v41  ;;  %734 = vmatpush2.msra.mxu0 %v369_v42  ;;  %v866_v17 = vld [vmem:[#allocation2 + $0x78] sm:$0xff]  ;;  %v881_v18 = vld [vmem:[#allocation2 + $0xf0] sm:$0xff]  ;;  %v852_v41 = vld [vmem:[#allocation2 + $0x8] sm:$0xff] }
  0x90   : > { %811 = vmatpush2.msra.mxu1 %v497_v43  ;;  %735 = vmatprep.subr.mxu0 %v366_v44  ;;  %v865_v19 = vld [vmem:[#allocation2 + $0x70] sm:$0xff]  ;;  %v874_v28 = vld [vmem:[#allocation2 + $0xb8] sm:$0xff]  ;;  %v867_v42 = vld [vmem:[#allocation2 + $0x80] sm:$0xff] }
  0x91   : > { %812 = vmatprep.subr.mxu1 %v494_v45  ;;  %736 = vmatpush2.msra.mxu0 %v365_v46  ;;  %v877_v22 = vld [vmem:[#allocation2 + $0xd0] sm:$0xff]  ;;  %v858_v29 = vld [vmem:[#allocation2 + $0x38] sm:$0xff]  ;;  %v851_v43 = vld [vmem:[#allocation2] sm:$0xff]  ;;  %v1832_v45 = vmov 0.0  }
  0x92   : > { %813 = vmatpush2.msra.mxu1 %v493_v47  ;;  %737 = vmatprep.subr.mxu0 %v362_v48  ;;  %v861_v23 = vld [vmem:[#allocation2 + $0x50] sm:$0xff]  ;;  %v870_v36 = vld [vmem:[#allocation2 + $0x98] sm:$0xff]  ;;  %v1551_v47 = vld [vmem:[%s3103_s3 + $0xe8] sm:$0xff] }
  0x93   : > { %814 = vmatprep.subr.mxu1 %v490_v49  ;;  %738 = vmatpush2.msra.mxu0 %v361_v50  ;;  %v873_v30 = vld [vmem:[#allocation2 + $0xb0] sm:$0xff]  ;;  %v854_v37 = vld [vmem:[#allocation2 + $0x18] sm:$0xff]  ;;  %v1550_v48 = vld [vmem:[%s3103_s3 + $0xe0] sm:$0xff] }
  0x94   : > { %815 = vmatpush2.msra.mxu1 %v489_v51  ;;  %739 = vmatprep.subr.mxu0 %v358_v52  ;;  %v857_v31 = vld [vmem:[#allocation2 + $0x30] sm:$0xff]  ;;  %v1553_v44 = vld [vmem:[%s3103_s3 + $0xf8] sm:$0xff]  ;;  %v1547_v51 = vld [vmem:[%s3103_s3 + $0xc8] sm:$0xff] }
  0x95   : > { %816 = vmatprep.subr.mxu1 %v486_v53  ;;  %740 = vmatpush2.msra.mxu0 %v357_v54  ;;  %v869_v38 = vld [vmem:[#allocation2 + $0x90] sm:$0xff]  ;;  %v1549_v49 = vld [vmem:[%s3103_s3 + $0xd8] sm:$0xff]  ;;  %v1546_v52 = vld [vmem:[%s3103_s3 + $0xc0] sm:$0xff] }
  0x96   : > { %817 = vmatpush2.msra.mxu1 %v485_v55  ;;  %741 = vmatprep.subr.mxu0 %v354_v56  ;;  %v853_v39 = vld [vmem:[#allocation2 + $0x10] sm:$0xff]  ;;  %v1545_v53 = vld [vmem:[%s3103_s3 + $0xb8] sm:$0xff]  ;;  %v1543_v55 = vld [vmem:[%s3103_s3 + $0xa8] sm:$0xff] }
  0x97   : > { %818 = vmatprep.subr.mxu1 %v482_v57  ;;  %601 = vmatprep.mubr.f32.mxu0 %v272_v58  ;;  %v1552_v46 = vld [vmem:[%s3103_s3 + $0xf0] sm:$0xff]  ;;  %v1542_v56 = vld [vmem:[%s3103_s3 + $0xa0] sm:$0xff]  ;;  %v1541_v57 = vld [vmem:[%s3103_s3 + $0x98] sm:$0xff] }
  0x98   : > { %678 = vmatprep.mubr.f32.mxu1 %v274_v59  ;;  %742 = vmatpush2.msra.mxu0 %v353_v60  ;;  %v1548_v50 = vld [vmem:[%s3103_s3 + $0xd0] sm:$0xff] }
  0x99   : > { %819 = vmatpush2.msra.mxu1 %v481_v61  ;;  %602 = vmatmul.mubr.f32.gmra.mxu0 %v271_v62  ;;  %v1544_v54 = vld [vmem:[%s3103_s3 + $0xb0] sm:$0xff] }
  0x9a   : > { %679 = vmatmul.mubr.f32.gmra.mxu1 %v273_v0  ;;  %743 = vmatprep.subr.mxu0 %v350_v4 }
  0x9b   : > { %820 = vmatprep.subr.mxu1 %v478_v5  ;;  %744 = vmatpush2.msra.mxu0 %v349_v6 }
  0x9c   : > { %821 = vmatpush2.msra.mxu1 %v477_v7  ;;  %745 = vmatprep.subr.mxu0 %v346_v8 }
  0x9d   : > { %822 = vmatprep.subr.mxu1 %v474_v9  ;;  %746 = vmatpush2.msra.mxu0 %v345_v10 }
  0x9e   : > { %823 = vmatpush2.msra.mxu1 %v473_v11  ;;  %747 = vmatprep.subr.mxu0 %v342_v12 }
  0x9f   : > { %824 = vmatprep.subr.mxu1 %v470_v13  ;;  %748 = vmatpush2.msra.mxu0 %v341_v14 }
  0xa0   : > { %749 = vmatprep.mubr.f32.mxu0 %v2291_v63  ;;  %825 = vmatpush2.msra.mxu1 %v469_v15  ;;  %v864_v63 = vld [vmem:[#allocation2 + $0x68] sm:$0xff] }
  0xa1   : > { %826 = vmatprep.mubr.f32.mxu1 %v2297_v1  ;;  %750 = vmatmul.mubr.f32.vlgmr.msra.gmra.mxu0 %v2300_v2  ;;  %v863_v1 = vld [vmem:[#allocation2 + $0x60] sm:$0xff]  ;;  %v878_v2 = vld [vmem:[#allocation2 + $0xd8] sm:$0xff] }
  0xa2   : > { %827 = vmatmul.mubr.f32.vlgmr.msra.gmra.mxu1 %v2303_v3  ;;  %755 = vmatprep.mubr.f32.mxu0 %v272_v58  ;;  %v862_v3 = vld [vmem:[#allocation2 + $0x58] sm:$0xff] }
  0xa3   : > { %832 = vmatprep.mubr.f32.mxu1 %v274_v59  ;;  %1574 = vmatprep.subr.mxu0 %v882_v16 }
  0xa4   : > { %1575 = vmatpush3.msra.mxu0 %v866_v17  ;;  %1663 = vmatprep.subr.mxu1 %v1832_v45 }
  0xa5   : > { %756 = vmatmul.mubr.f32.gmra.mxu0 %v271_v62  ;;  %1576 = vmatprep.subr.mxu0 %v881_v18 }
  0xa6   : > { %833 = vmatmul.mubr.f32.gmra.mxu1 %v273_v0  ;;  %1577 = vmatpush3.msra.mxu0 %v865_v19 }
  0xa7   : > { %1578 = vmatprep.subr.mxu0 %v880_v20  ;;  %1664 = vmatpush3.msra.mxu1 %v1553_v44  ;;  %v1540_v44 = vld [vmem:[%s3103_s3 + $0x90] sm:$0xff] }
  0xa8   : > { %1579 = vmatpush3.msra.mxu0 %v864_v63  ;;  %1665 = vmatprep.subr.mxu1 %v1832_v45 }
  0xa9   : > { %1580 = vmatprep.subr.mxu0 %v879_v21  ;;  %1666 = vmatpush3.msra.mxu1 %v1552_v46  ;;  %v959_v46 = vld [vmem:[%s3103_s3 + $0x8] sm:$0xff] }
  0xaa   : > { %1581 = vmatpush3.msra.mxu0 %v863_v1  ;;  %1667 = vmatprep.subr.mxu1 %v1832_v45 }
  0xab   : > { %1582 = vmatprep.subr.mxu0 %v878_v2  ;;  %1668 = vmatpush3.msra.mxu1 %v1551_v47  ;;  %v1539_v47 = vld [vmem:[%s3103_s3 + $0x88] sm:$0xff] }
  0xac   : > { %1583 = vmatpush3.msra.mxu0 %v862_v3  ;;  %1669 = vmatprep.subr.mxu1 %v1832_v45 }
  0xad   : > { %1584 = vmatprep.subr.mxu0 %v877_v22  ;;  %1670 = vmatpush3.msra.mxu1 %v1550_v48  ;;  %v958_v48 = vld [vmem:[%s3103_s3] sm:$0xff] }
  0xae   : > { %1585 = vmatpush3.msra.mxu0 %v861_v23  ;;  %1671 = vmatprep.subr.mxu1 %v1832_v45 }
  0xaf   : > { %1586 = vmatprep.subr.mxu0 %v876_v24  ;;  %1672 = vmatpush3.msra.mxu1 %v1549_v49  ;;  %v1538_v49 = vld [vmem:[%s3103_s3 + $0x80] sm:$0xff] }
  0xb0   : > { %1587 = vmatpush3.msra.mxu0 %v860_v25  ;;  %1673 = vmatprep.subr.mxu1 %v1832_v45  ;;  %v973_v25 = vld [vmem:[%s3103_s3 + $0x78] sm:$0xff] }
  0xb1   : > { %1588 = vmatprep.subr.mxu0 %v875_v26  ;;  %1674 = vmatpush3.msra.mxu1 %v1548_v50 }
  0xb2   : > { %1589 = vmatpush3.msra.mxu0 %v859_v27  ;;  %1675 = vmatprep.subr.mxu1 %v1832_v45 }
  0xb3   : > { %1590 = vmatprep.subr.mxu0 %v874_v28  ;;  %1676 = vmatpush3.msra.mxu1 %v1547_v51 }
  0xb4   : > { %1591 = vmatpush3.msra.mxu0 %v858_v29  ;;  %1677 = vmatprep.subr.mxu1 %v1832_v45  ;;  %v972_v29 = vld [vmem:[%s3103_s3 + $0x70] sm:$0xff] }
  0xb5   : > { %1592 = vmatprep.subr.mxu0 %v873_v30  ;;  %1678 = vmatpush3.msra.mxu1 %v1546_v52 }
  0xb6   : > { %1593 = vmatpush3.msra.mxu0 %v857_v31  ;;  %1679 = vmatprep.subr.mxu1 %v1832_v45 }
  0xb7   : > { %1594 = vmatprep.subr.mxu0 %v872_v32  ;;  %1680 = vmatpush3.msra.mxu1 %v1545_v53  ;;  %v971_v32 = vld [vmem:[%s3103_s3 + $0x68] sm:$0xff] }
  0xb8   : > { %1595 = vmatpush3.msra.mxu0 %v856_v33  ;;  %1681 = vmatprep.subr.mxu1 %v1832_v45  ;;  %v970_v33 = vld [vmem:[%s3103_s3 + $0x60] sm:$0xff] }
  0xb9   : > { %1596 = vmatprep.subr.mxu0 %v871_v34  ;;  %1682 = vmatpush3.msra.mxu1 %v1544_v54  ;;  %v969_v34 = vld [vmem:[%s3103_s3 + $0x58] sm:$0xff] }
  0xba   : > { %1597 = vmatpush3.msra.mxu0 %v855_v35  ;;  %1683 = vmatprep.subr.mxu1 %v1832_v45  ;;  %v968_v35 = vld [vmem:[%s3103_s3 + $0x50] sm:$0xff]  ;;  %v1569_v54 = vld [vmem:[%s3103_s3 + $0x178] sm:$0xff] }
  0xbb   : > { %1598 = vmatprep.subr.mxu0 %v870_v36  ;;  %1684 = vmatpush3.msra.mxu1 %v1543_v55  ;;  %v967_v36 = vld [vmem:[%s3103_s3 + $0x48] sm:$0xff]  ;;  %v1568_v55 = vld [vmem:[%s3103_s3 + $0x170] sm:$0xff] }
  0xbc   : > { %1599 = vmatpush3.msra.mxu0 %v854_v37  ;;  %1685 = vmatprep.subr.mxu1 %v1832_v45  ;;  %v966_v37 = vld [vmem:[%s3103_s3 + $0x40] sm:$0xff] }
  0xbd   : > { %1600 = vmatprep.subr.mxu0 %v869_v38  ;;  %1686 = vmatpush3.msra.mxu1 %v1542_v56  ;;  %v965_v38 = vld [vmem:[%s3103_s3 + $0x38] sm:$0xff]  ;;  %v1567_v56 = vld [vmem:[%s3103_s3 + $0x168] sm:$0xff] }
  0xbe   : > { %1601 = vmatpush3.msra.mxu0 %v853_v39  ;;  %1687 = vmatprep.subr.mxu1 %v1832_v45  ;;  %v964_v39 = vld [vmem:[%s3103_s3 + $0x30] sm:$0xff] }
  0xbf   : > { %1602 = vmatprep.subr.mxu0 %v868_v40  ;;  %1688 = vmatpush3.msra.mxu1 %v1541_v57  ;;  %v963_v40 = vld [vmem:[%s3103_s3 + $0x28] sm:$0xff]  ;;  %v1566_v57 = vld [vmem:[%s3103_s3 + $0x160] sm:$0xff] }
  0xc0   : > { %1603 = vmatpush3.msra.mxu0 %v852_v41  ;;  %1689 = vmatprep.subr.mxu1 %v1832_v45  ;;  %v962_v41 = vld [vmem:[%s3103_s3 + $0x20] sm:$0xff] }
  0xc1   : > { %1604 = vmatprep.subr.mxu0 %v867_v42  ;;  %v961_v42 = vld [vmem:[%s3103_s3 + $0x18] sm:$0xff]  ;;  %1690 = vmatpush3.msra.mxu1 %v1540_v44 }
  0xc2   : > { %1605 = vmatpush3.msra.mxu0 %v851_v43  ;;  %v960_v43 = vld [vmem:[%s3103_s3 + $0x10] sm:$0xff]  ;;  %1691 = vmatprep.subr.mxu1 %v1832_v45  ;;  %v1259_v44 = vld [vmem:[%s3104_s4 + $0xf8] sm:$0xff] }
  0xc3   : > { %1698 = vmatprep.subr.mxu0 %v1832_v45  ;;  %1692 = vmatpush3.msra.mxu1 %v1539_v47  ;;  %v1258_v47 = vld [vmem:[%s3104_s4 + $0xf0] sm:$0xff] }
  0xc4   : > { %1693 = vmatprep.subr.mxu1 %v1832_v45  ;;  %1695 = vmatprep.mubr.msk.f32.mxu1 %vm1833_vm0, %v1832_v45 }
  0xc5   : > { %1694 = vmatpush3.msra.mxu1 %v1538_v49  ;;  %v1255_v49 = vld [vmem:[%s3104_s4 + $0xd8] sm:$0xff] }
  0xc6   : > { %1733 = vmatprep.subr.mxu1 %v1832_v45 }
 0x11d   : > { %v597_v58 = vpop.f32.mrf.mxu0 }
 0x11e   : > { %v674_v59 = vpop.f32.mrf.mxu1 }
 0x11f   : > { %v599_v60 = vpop.f32.mrf.mxu0  ;;  %v675_v10 = vadd.f32 %v674_v59, %v597_v58  ;;  %v1565_v58 = vld [vmem:[%s3103_s3 + $0x158] sm:$0xff]  ;;  %v1564_v59 = vld [vmem:[%s3103_s3 + $0x150] sm:$0xff] }
 0x120   : > { %v676_v61 = vpop.f32.mrf.mxu1 }
 0x121   : > { %v677_v8 = vadd.f32 %v676_v61, %v599_v60  ;;  %v839_v63 = vmul.f32 %v675_v10, %v675_v10  ;;  %v1563_v60 = vld [vmem:[%s3103_s3 + $0x148] sm:$0xff]  ;;  %v1562_v61 = vld [vmem:[%s3103_s3 + $0x140] sm:$0xff]  ;;  %v1556_v10 = vld [vmem:[%s3103_s3 + $0x110] sm:$0xff] }
 0x123   : > { %v840_v17 = vmul.f32 %v677_v8, %v677_v8  ;;  %v1557_v8 = vld [vmem:[%s3103_s3 + $0x118] sm:$0xff] }
 0x159   : > { %v603_v62 = vpop.f32.mrf.mxu0 }
 0x15a   : > { %v680_v0 = vpop.f32.mrf.mxu1 }
 0x15b   : > { %v605_v4 = vpop.f32.mrf.mxu0  ;;  %v681_v21 = vadd.f32 %v680_v0, %v603_v62  ;;  %v1561_v62 = vld [vmem:[%s3103_s3 + $0x138] sm:$0xff] }
 0x15c   : > { %v682_v5 = vpop.f32.mrf.mxu1 }
 0x15d   : > { %v683_v18 = vadd.f32 %v682_v5, %v605_v4  ;;  %v841_v28 = vmul.f32 %v681_v21, %v681_v21  ;;  %v1560_v4 = vld [vmem:[%s3103_s3 + $0x130] sm:$0xff]  ;;  %v1559_v5 = vld [vmem:[%s3103_s3 + $0x128] sm:$0xff] }
 0x15e   : > { %v1286_v21 = vld [vmem:[%s3104_s4 + $0x1d0] sm:$0xff] }
 0x15f   : > { %v842_v26 = vmul.f32 %v683_v18, %v683_v18  ;;  %v1288_v18 = vld [vmem:[%s3104_s4 + $0x1e0] sm:$0xff] }
 0x161   : > { %v751_v6 = vpop.f32.mrf.mxu0 }
 0x162   : > { %v828_v7 = vpop.f32.mrf.mxu1 }
 0x163   : > { %v829_v9 = vadd.f32 %v828_v7, %v751_v6  ;;  %v753_v11 = vpop.f32.mrf.mxu0  ;;  %v1558_v7 = vld [vmem:[%s3103_s3 + $0x120] sm:$0xff] }
 0x164   : > { %v830_v12 = vpop.f32.mrf.mxu1 }
 0x165   : > { %v831_v13 = vadd.f32 %v830_v12, %v753_v11  ;;  %v843_v14 = vmul.f32 %v829_v9, %v829_v9  ;;  %v757_v15 = vpop.f32.mrf.mxu0  ;;  %v1555_v11 = vld [vmem:[%s3103_s3 + $0x108] sm:$0xff] }
 0x166   : > { %v834_v16 = vpop.f32.mrf.mxu1 }
 0x167   : > { %v844_v19 = vmul.f32 %v831_v13, %v831_v13  ;;  %v835_v20 = vadd.f32 %v834_v16, %v757_v15  ;;  %v759_v1 = vpop.f32.mrf.mxu0  ;;  %v847_v23 = vadd.f32 %v843_v14, %v839_v63  ;;  %v1554_v13 = vld [vmem:[%s3103_s3 + $0x100] sm:$0xff]  ;;  %v1289_v16 = vld [vmem:[%s3104_s4 + $0x1e8] sm:$0xff] }
 0x168   : > { %v836_v2 = vpop.f32.mrf.mxu1  ;;  %v1284_v63 = vld [vmem:[%s3104_s4 + $0x1c0] sm:$0xff] }
 0x169   : > { %v848_v3 = vadd.f32 %v844_v19, %v840_v17  ;;  %v837_v22 = vadd.f32 %v836_v2, %v759_v1  ;;  %v845_v24 = vmul.f32 %v835_v20, %v835_v20  ;;  %v1291_v17 = vld [vmem:[%s3104_s4 + $0x1f8] sm:$0xff]  ;;  %v1290_v19 = vld [vmem:[%s3104_s4 + $0x1f0] sm:$0xff]  ;;  %v1281_v1 = vld [vmem:[%s3104_s4 + $0x1a8] sm:$0xff] }
 0x16a   : > { %v1287_v20 = vld [vmem:[%s3104_s4 + $0x1d8] sm:$0xff] }
 0x16b   : > { %v846_v27 = vmul.f32 %v837_v22, %v837_v22  ;;  %947 = vmatprep.mubr.f32.mxu0 %v848_v3  ;;  %v849_v31 = vadd.f32 %v845_v24, %v841_v28  ;;  %v1283_v2 = vld [vmem:[%s3104_s4 + $0x1b8] sm:$0xff]  ;;  %v1280_v3 = vld [vmem:[%s3104_s4 + $0x1a0] sm:$0xff]  ;;  %v1282_v22 = vld [vmem:[%s3104_s4 + $0x1b0] sm:$0xff] }
 0x16c   : > { %948 = vmatmul.mubr.f32.vlgmr.msra.gmra.mxu0 %v847_v23  ;;  %v1277_v23 = vld [vmem:[%s3104_s4 + $0x188] sm:$0xff]  ;;  %v1279_v24 = vld [vmem:[%s3104_s4 + $0x198] sm:$0xff] }
 0x16d   : > { %v850_v30 = vadd.f32 %v846_v27, %v842_v26  ;;  %1699 = vmatpush3.msra.mxu0 %v973_v25  ;;  %v1276_v25 = vld [vmem:[%s3104_s4 + $0x180] sm:$0xff]  ;;  %v1278_v26 = vld [vmem:[%s3104_s4 + $0x190] sm:$0xff]  ;;  %v1273_v27 = vld [vmem:[%s3104_s4 + $0x168] sm:$0xff] }
 0x16e   : > { %1700 = vmatprep.subr.mxu0 %v1832_v45  ;;  %v1275_v28 = vld [vmem:[%s3104_s4 + $0x178] sm:$0xff] }
 0x16f   : > { %952 = vmatprep.mubr.f32.mxu0 %v850_v30  ;;  %1701 = vmatpush3.msra.mxu0 %v972_v29  ;;  %v1272_v29 = vld [vmem:[%s3104_s4 + $0x160] sm:$0xff]  ;;  %v1274_v30 = vld [vmem:[%s3104_s4 + $0x170] sm:$0xff] }
 0x170   : > { %953 = vmatmul.mubr.f32.gmra.mxu0 %v849_v31  ;;  %1702 = vmatprep.subr.mxu0 %v1832_v45  ;;  %v1269_v31 = vld [vmem:[%s3104_s4 + $0x148] sm:$0xff] }
 0x171   : > { %1703 = vmatpush3.msra.mxu0 %v971_v32  ;;  %1730 = vmatprep.mubr.msk.f32.mxu0 %vm1833_vm0, %v1832_v45  ;;  %v1271_v32 = vld [vmem:[%s3104_s4 + $0x158] sm:$0xff] }
 0x172   : > { %1704 = vmatprep.subr.mxu0 %v1832_v45 }
 0x173   : > { %1705 = vmatpush3.msra.mxu0 %v970_v33  ;;  %v1268_v33 = vld [vmem:[%s3104_s4 + $0x140] sm:$0xff] }
 0x174   : > { %1706 = vmatprep.subr.mxu0 %v1832_v45 }
 0x175   : > { %1707 = vmatpush3.msra.mxu0 %v969_v34  ;;  %v1270_v34 = vld [vmem:[%s3104_s4 + $0x150] sm:$0xff] }
 0x176   : > { %1708 = vmatprep.subr.mxu0 %v1832_v45 }
 0x177   : > { %1709 = vmatpush3.msra.mxu0 %v968_v35  ;;  %v1265_v35 = vld [vmem:[%s3104_s4 + $0x128] sm:$0xff] }
 0x178   : > { %1710 = vmatprep.subr.mxu0 %v1832_v45 }
 0x179   : > { %1711 = vmatpush3.msra.mxu0 %v967_v36  ;;  %v1267_v36 = vld [vmem:[%s3104_s4 + $0x138] sm:$0xff] }
 0x17a   : > { %1712 = vmatprep.subr.mxu0 %v1832_v45 }
 0x17b   : > { %1713 = vmatpush3.msra.mxu0 %v966_v37  ;;  %v1264_v37 = vld [vmem:[%s3104_s4 + $0x120] sm:$0xff] }
 0x17c   : > { %1714 = vmatprep.subr.mxu0 %v1832_v45 }
 0x17d   : > { %1715 = vmatpush3.msra.mxu0 %v965_v38  ;;  %v1266_v38 = vld [vmem:[%s3104_s4 + $0x130] sm:$0xff] }
 0x17e   : > { %1716 = vmatprep.subr.mxu0 %v1832_v45 }
 0x17f   : > { %1717 = vmatpush3.msra.mxu0 %v964_v39  ;;  %v1261_v39 = vld [vmem:[%s3104_s4 + $0x108] sm:$0xff] }
 0x180   : > { %1718 = vmatprep.subr.mxu0 %v1832_v45 }
 0x181   : > { %1719 = vmatpush3.msra.mxu0 %v963_v40  ;;  %v1263_v40 = vld [vmem:[%s3104_s4 + $0x118] sm:$0xff] }
 0x182   : > { %1720 = vmatprep.subr.mxu0 %v1832_v45 }
 0x183   : > { %1721 = vmatpush3.msra.mxu0 %v962_v41  ;;  %v1260_v41 = vld [vmem:[%s3104_s4 + $0x100] sm:$0xff] }
 0x184   : > { %1722 = vmatprep.subr.mxu0 %v1832_v45 }
 0x185   : > { %1723 = vmatpush3.msra.mxu0 %v961_v42  ;;  %v1262_v42 = vld [vmem:[%s3104_s4 + $0x110] sm:$0xff] }
 0x186   : > { %1724 = vmatprep.subr.mxu0 %v1832_v45 }
 0x187   : > { %1725 = vmatpush3.msra.mxu0 %v960_v43  ;;  %v1257_v43 = vld [vmem:[%s3104_s4 + $0xe8] sm:$0xff] }
 0x188   : > { %1726 = vmatprep.subr.mxu0 %v1832_v45 }
 0x189   : > { %1727 = vmatpush3.msra.mxu0 %v959_v46  ;;  %v1256_v46 = vld [vmem:[%s3104_s4 + $0xe0] sm:$0xff] }
 0x18a   : > { %1728 = vmatprep.subr.mxu0 %v1832_v45 }
 0x18b   : > { %1729 = vmatpush3.msra.mxu0 %v958_v48  ;;  %v1253_v48 = vld [vmem:[%s3104_s4 + $0xc8] sm:$0xff] }
 0x18c   : > { %1314 = vmatprep.subr.mxu0 %v1289_v16 }
 0x22c   : > { %v1606_v50 = vpop.f32.mrf.mxu0 }
 0x22e   : > { %v1607_v51 = vpop.f32.mrf.mxu0 }
 0x22f   : > { %v1608_v52 = vadd.f32 %v1607_v51, %v1606_v50  ;;  %v1252_v50 = vld [vmem:[%s3104_s4 + $0xc0] sm:$0xff]  ;;  %v1254_v51 = vld [vmem:[%s3104_s4 + $0xd0] sm:$0xff] }
 0x230   : > { %v1609_v0 = vpop.f32.mrf.mxu0 }
 0x231   : > { %v992_v53 = vrot.slane %v1608_v52, 1  ;;  %1731 = vmatmul.mubr.f32.vlgmr.msra.gmra.mxu0 %v1608_v52  ;;  %v1153_v14 = vrot.slane %v1608_v52, 2  ;;  %v1249_v52 = vld [vmem:[%s3104_s4 + $0xa8] sm:$0xff] }
 0x232   : > { %1378 = vmatprep.mubr.f32.mxu0 %v1832_v45  ;;  %v1610_v6 = vpop.f32.mrf.mxu0  ;;  %1315 = vmatpush1.msra.mxu0 %v1288_v18 }
 0x233   : > { %1696 = vmatmul.mubr.f32.vlgmr.msra.gmra.mxu1 %v992_v53  ;;  %v1611_v9 = vadd.f32 %v1610_v6, %v1609_v0  ;;  %v1251_v53 = vld [vmem:[%s3104_s4 + $0xb8] sm:$0xff]  ;;  %v1242_v0 = vld [vmem:[%s3104_s4 + $0x70] sm:$0xff]  ;;  %v1236_v6 = vld [vmem:[%s3104_s4 + $0x40] sm:$0xff] }
 0x234   : > { %1734 = vmatpush3.msra.mxu1 %v1569_v54  ;;  %1765 = vmatprep.mubr.msk.f32.mxu1 %vm1833_vm0, %v1832_v45  ;;  %v1248_v54 = vld [vmem:[%s3104_s4 + $0xa0] sm:$0xff] }
 0x235   : > { %1735 = vmatprep.subr.mxu1 %v1832_v45  ;;  %v1154_v12 = vrot.slane %v1611_v9, 2  ;;  %v1235_v9 = vld [vmem:[%s3104_s4 + $0x38] sm:$0xff] }
 0x236   : > { %1736 = vmatpush3.msra.mxu1 %v1568_v55  ;;  %v1250_v55 = vld [vmem:[%s3104_s4 + $0xb0] sm:$0xff] }
 0x237   : > { %1737 = vmatprep.subr.mxu1 %v1832_v45  ;;  %v1155_v15 = vsel %vm1152_vm1, %v1153_v14, %v1154_v12  ;;  %v1229_v12 = vld [vmem:[%s3104_s4 + $0x8] sm:$0xff]  ;;  %v1228_v14 = vld [vmem:[%s3104_s4] sm:$0xff] }
 0x238   : > { %1738 = vmatpush3.msra.mxu1 %v1567_v56  ;;  %v1245_v56 = vld [vmem:[%s3104_s4 + $0x88] sm:$0xff] }
 0x239   : > { %1739 = vmatprep.subr.mxu1 %v1832_v45 }
 0x23a   : > { %1740 = vmatpush3.msra.mxu1 %v1566_v57  ;;  %v1247_v57 = vld [vmem:[%s3104_s4 + $0x98] sm:$0xff] }
 0x23b   : > { %1741 = vmatprep.subr.mxu1 %v1832_v45 }
 0x23c   : > { %1742 = vmatpush3.msra.mxu1 %v1565_v58  ;;  %v1244_v58 = vld [vmem:[%s3104_s4 + $0x80] sm:$0xff] }
 0x23d   : > { %1743 = vmatprep.subr.mxu1 %v1832_v45 }
 0x23e   : > { %1744 = vmatpush3.msra.mxu1 %v1564_v59  ;;  %v1246_v59 = vld [vmem:[%s3104_s4 + $0x90] sm:$0xff] }
 0x23f   : > { %1745 = vmatprep.subr.mxu1 %v1832_v45 }
 0x240   : > { %1746 = vmatpush3.msra.mxu1 %v1563_v60  ;;  %v1241_v60 = vld [vmem:[%s3104_s4 + $0x68] sm:$0xff] }
 0x241   : > { %1747 = vmatprep.subr.mxu1 %v1832_v45 }
 0x242   : > { %1748 = vmatpush3.msra.mxu1 %v1562_v61  ;;  %v1243_v61 = vld [vmem:[%s3104_s4 + $0x78] sm:$0xff] }
 0x243   : > { %1749 = vmatprep.subr.mxu1 %v1832_v45 }
 0x244   : > { %1750 = vmatpush3.msra.mxu1 %v1561_v62  ;;  %v1240_v62 = vld [vmem:[%s3104_s4 + $0x60] sm:$0xff] }
 0x245   : > { %1751 = vmatprep.subr.mxu1 %v1832_v45 }
 0x246   : > { %1752 = vmatpush3.msra.mxu1 %v1560_v4  ;;  %v1237_v4 = vld [vmem:[%s3104_s4 + $0x48] sm:$0xff] }
 0x247   : > { %1753 = vmatprep.subr.mxu1 %v1832_v45 }
 0x248   : > { %1754 = vmatpush3.msra.mxu1 %v1559_v5  ;;  %v1239_v5 = vld [vmem:[%s3104_s4 + $0x58] sm:$0xff] }
 0x249   : > { %1755 = vmatprep.subr.mxu1 %v1832_v45 }
 0x24a   : > { %1756 = vmatpush3.msra.mxu1 %v1558_v7  ;;  %v1238_v7 = vld [vmem:[%s3104_s4 + $0x50] sm:$0xff] }
 0x24b   : > { %1757 = vmatprep.subr.mxu1 %v1832_v45 }
 0x24c   : > { %1758 = vmatpush3.msra.mxu1 %v1557_v8  ;;  %v1233_v8 = vld [vmem:[%s3104_s4 + $0x28] sm:$0xff] }
 0x24d   : > { %1759 = vmatprep.subr.mxu1 %v1832_v45 }
 0x24e   : > { %1760 = vmatpush3.msra.mxu1 %v1556_v10  ;;  %v1232_v10 = vld [vmem:[%s3104_s4 + $0x20] sm:$0xff] }
 0x24f   : > { %1761 = vmatprep.subr.mxu1 %v1832_v45 }
 0x250   : > { %1762 = vmatpush3.msra.mxu1 %v1555_v11  ;;  %v1234_v11 = vld [vmem:[%s3104_s4 + $0x30] sm:$0xff] }
 0x251   : > { %1763 = vmatprep.subr.mxu1 %v1832_v45 }
 0x252   : > { %1764 = vmatpush3.msra.mxu1 %v1554_v13  ;;  %v1231_v13 = vld [vmem:[%s3104_s4 + $0x18] sm:$0xff] }
 0x253   : > { %1766 = vmatmul.mubr.f32.vlgmr.msra.gmra.mxu1 %v1155_v15  ;;  %1385 = vmatprep.subr.mxu1 %v1291_v17  ;;  %v1230_v15 = vld [vmem:[%s3104_s4 + $0x10] sm:$0xff] }
 0x254   : > { %1449 = vmatprep.mubr.f32.mxu1 %v1832_v45  ;;  %v1285_v45 = vld [vmem:[%s3104_s4 + $0x1c8] sm:$0xff]  ;;  %1386 = vmatpush1.msra.mxu1 %v1290_v19 }
 0x255   : > { %1316 = vmatprep.subr.mxu0 %v1285_v45  ;;  %1387 = vmatprep.subr.mxu1 %v1287_v20 }
 0x256   : > { %1317 = vmatpush1.msra.mxu0 %v1284_v63  ;;  %1388 = vmatpush1.msra.mxu1 %v1286_v21 }
 0x257   : > { %1318 = vmatprep.subr.mxu0 %v1281_v1  ;;  %1389 = vmatprep.subr.mxu1 %v1283_v2  ;;  %v1294_v1 = vlaneseq }
 0x258   : > { %1319 = vmatpush1.msra.mxu0 %v1280_v3  ;;  %1390 = vmatpush1.msra.mxu1 %v1282_v22 }
 0x259   : > { %1320 = vmatprep.subr.mxu0 %v1277_v23  ;;  %1391 = vmatprep.subr.mxu1 %v1279_v24  ;;  %v1295_v2 = vshrl.u32 %v1294_v1, 7  ;;  %v1292_v23 = vld [vmem:[%s3105_s5] sm:$0xf] }
 0x25a   : > { %1321 = vmatpush1.msra.mxu0 %v1276_v25  ;;  %1392 = vmatpush1.msra.mxu1 %v1278_v26 }
 0x25b   : > { %1322 = vmatprep.subr.mxu0 %v1273_v27  ;;  %1393 = vmatprep.subr.mxu1 %v1275_v28  ;;  %v1296_v3 = vsub.s32 0, %v1295_v2  ;;  %v1304_v22 = vsub.s32 2, %v1295_v2  ;;  %v1300_v24 = vsub.s32 1, %v1295_v2  ;;  %v1308_v25 = vsub.s32 3, %v1295_v2 }
 0x25c   : > { %1323 = vmatpush1.msra.mxu0 %v1272_v29  ;;  %1394 = vmatpush1.msra.mxu1 %v1274_v30 }
 0x25d   : > { %1324 = vmatprep.subr.mxu0 %v1269_v31  ;;  %1395 = vmatprep.subr.mxu1 %v1271_v32  ;;  %v1297_v26 = vrot.slane %v1292_v23, %v1296_v3  ;;  %v1305_v27 = vrot.slane %v1292_v23, %v1304_v22  ;;  %v1301_v28 = vrot.slane %v1292_v23, %v1300_v24 }
 0x25e   : > { %1325 = vmatpush1.msra.mxu0 %v1268_v33  ;;  %1396 = vmatpush1.msra.mxu1 %v1270_v34  ;;  %v1309_v29 = vrot.slane %v1292_v23, %v1308_v25 }
 0x25f   : > { %1326 = vmatprep.subr.mxu0 %v1265_v35  ;;  %1397 = vmatprep.subr.mxu1 %v1267_v36 }
 0x260   : > { %1327 = vmatpush1.msra.mxu0 %v1264_v37  ;;  %1398 = vmatpush1.msra.mxu1 %v1266_v38 }
 0x261   : > { %1328 = vmatprep.subr.mxu0 %v1261_v39  ;;  %1399 = vmatprep.subr.mxu1 %v1263_v40 }
 0x262   : > { %1329 = vmatpush1.msra.mxu0 %v1260_v41  ;;  %1400 = vmatpush1.msra.mxu1 %v1262_v42 }
 0x263   : > { %1330 = vmatprep.subr.mxu0 %v1257_v43  ;;  %1401 = vmatprep.subr.mxu1 %v1259_v44 }
 0x264   : > { %1331 = vmatpush1.msra.mxu0 %v1256_v46  ;;  %1402 = vmatpush1.msra.mxu1 %v1258_v47 }
 0x265   : > { %1332 = vmatprep.subr.mxu0 %v1253_v48  ;;  %1403 = vmatprep.subr.mxu1 %v1255_v49 }
 0x266   : > { %1333 = vmatpush1.msra.mxu0 %v1252_v50  ;;  %1404 = vmatpush1.msra.mxu1 %v1254_v51 }
 0x267   : > { %1334 = vmatprep.subr.mxu0 %v1249_v52  ;;  %1405 = vmatprep.subr.mxu1 %v1251_v53 }
 0x268   : > { %1335 = vmatpush1.msra.mxu0 %v1248_v54  ;;  %1406 = vmatpush1.msra.mxu1 %v1250_v55 }
 0x269   : > { %1336 = vmatprep.subr.mxu0 %v1245_v56  ;;  %1407 = vmatprep.subr.mxu1 %v1247_v57 }
 0x26a   : > { %1337 = vmatpush1.msra.mxu0 %v1244_v58  ;;  %1408 = vmatpush1.msra.mxu1 %v1246_v59 }
 0x26b   : > { %1338 = vmatprep.subr.mxu0 %v1241_v60  ;;  %1409 = vmatprep.subr.mxu1 %v1243_v61 }
 0x26c   : > { %1339 = vmatpush1.msra.mxu0 %v1240_v62  ;;  %1410 = vmatpush1.msra.mxu1 %v1242_v0 }
 0x26d   : > { %1340 = vmatprep.subr.mxu0 %v1237_v4  ;;  %1411 = vmatprep.subr.mxu1 %v1239_v5 }
 0x26e   : > { %1341 = vmatpush1.msra.mxu0 %v1236_v6  ;;  %1412 = vmatpush1.msra.mxu1 %v1238_v7 }
 0x26f   : > { %1342 = vmatprep.subr.mxu0 %v1233_v8  ;;  %1413 = vmatprep.subr.mxu1 %v1235_v9 }
 0x270   : > { %1343 = vmatpush1.msra.mxu0 %v1232_v10  ;;  %1414 = vmatpush1.msra.mxu1 %v1234_v11 }
 0x271   : > { %1344 = vmatprep.subr.mxu0 %v1229_v12  ;;  %1415 = vmatprep.subr.mxu1 %v1231_v13 }
 0x272   : > { %1345 = vmatpush1.msra.mxu0 %v1228_v14  ;;  %1416 = vmatpush1.msra.mxu1 %v1230_v15 }
 0x2f1   : > { %v1130_v16 = vpop.f32.mrf.mxu0 }
 0x2f3   : > { %v1060_v17 = vpop.f32.mrf.mxu1  ;;  %v1732_v18 = vpop.f32.mrf.mxu0 }
 0x2f4   : > { %v1131_v45 = vadd.f32 %v1130_v16, %v1060_v17 }
 0x2f5   : > { %v1697_v19 = vpop.f32.mrf.mxu1 }
 0x313   : > { %v1223_v20 = vpop.f32.mrf.mxu1 }
 0x314   : > { %v1227_v63 = vadd.f32 %v1223_v20, %v1131_v45 }
 0x315   : > { %v1767_v21 = vpop.f32.mrf.mxu1 }
 0x316   : > { %1379 = vmatmul.mubr.f32.vlgmr.msra.gmra.mxu0 %v1227_v63  ;;  %1450 = vmatmul.mubr.f32.vlgmr.msra.gmra.mxu1 %v1227_v63 }
 0x3d6   : > { %v1380_v30 = vpop.f32.mrf.mxu0  ;;  %v1451_v31 = vpop.f32.mrf.mxu1 }
 0x3d7   : > { %v1381_v32 = vadd.f32 %v1380_v30, %v1297_v26  ;;  %v1452_v33 = vadd.f32 %v1451_v31, %v1305_v27 }
 0x3d8   : > { %v1382_v34 = vpop.f32.mrf.mxu0  ;;  %v1453_v35 = vpop.f32.mrf.mxu1 }
 0x3d9   : > { %1456 = vst [vmem:[%s266_s15] sm:$0x7f] %v1381_v32  ;;  %1458 = vst [vmem:[%s266_s15 + $0x10] sm:$0x7f] %v1452_v33  ;;  %v1383_v36 = vadd.f32 %v1382_v34, %v1301_v28  ;;  %v1454_v37 = vadd.f32 %v1453_v35, %v1309_v29 }
 0x3db   : > { %1457 = vst [vmem:[%s266_s15 + $0x8] sm:$0x7f] %v1383_v36  ;;  %1459 = vst [vmem:[%s266_s15 + $0x18] sm:$0x7f] %v1454_v37 }
 0x3dc PF: > { %s17_s21 = sadd.s32 1, %s1827_s21  }
 0x3dd   : > { %p14_p1 = scmp.ge.s32.totalorder %s17_s21, 4  }
 0x3df   :  { %16 = sbr.rel (!%p14_p1) target bundleno = 1 (0x1), region = 81 }
 0x3e4   :  { %1481 = vsyncpa [#allocation3], 1 }
 0x3e5   :  { %1483 = vsyncpa [#allocation3 + $0x1], 1 }

// kernel: forward.3
= control target key start
LH: loop header
LB: loop body
LE: loop exit
PB: predicated region body
PF: predicated region fallthrough
CT: control target
= control target key end

     0   :  { %v8823_v6 = vmov 0.0   ;;  %s8816_s0 = inlined_call_operand.vmem [shape: f32[7,2,512], index: 0, kind: input, shape index: {}]   ;;  %s8817_s1 = inlined_call_operand.vmem [shape: f32[128,512], index: 1, kind: input, shape index: {}]   ;;  %s8818_s2 = inlined_call_operand.vmem [shape: f32[256,512], index: 2, kind: input, shape index: {}]   ;;  %s8819_s3 = inlined_call_operand.vmem [shape: f32[1,512], index: 3, kind: input, shape index: {}]   ;;  %s8820_s4 = inlined_call_operand.vmem [shape: f32[128,128], index: 4, kind: input, shape index: {}]   ;;  %s8821_s5 = inlined_call_operand.vmem [shape: f32[1,128], index: 5, kind: input, shape index: {}]   ;;  %s8822_s6 = inlined_call_operand.hbm [shape: f32[2,128], index: 6, kind: output, shape index: {}]  }
   0x1   :  { %v3934_v0 = vld [vmem:[%s8817_s1 + $0x1e8] sm:$0xff]  ;;  %v3939_v1 = vld [vmem:[%s8817_s1 + $0x1f8] sm:$0xff]  ;;  %v3944_v2 = vld [vmem:[%s8817_s1 + $0x1e0] sm:$0xff]  ;;  %28 = vst [vmem:[#allocation2] sm:$0x3] %v8823_v6 }
   0x2   :  { %229 = vmatprep.subr.mxu0 %v3934_v0  ;;  %300 = vmatprep.subr.mxu1 %v3939_v1  ;;  %v3951_v3 = vld [vmem:[%s8817_s1 + $0x1f0] sm:$0xff]  ;;  %v3956_v4 = vld [vmem:[%s8817_s1 + $0x1c8] sm:$0xff]  ;;  %v3961_v5 = vld [vmem:[%s8817_s1 + $0x1d8] sm:$0xff]  ;;  %29 = vst [vmem:[#allocation3] sm:$0x3] %v8823_v6 }
   0x3   :  { %30 = vst [vmem:[#allocation4] sm:$0x3] %v8823_v6  ;;  %31 = vst [vmem:[#allocation5] sm:$0x3] %v8823_v6  ;;  %230 = vmatpush1.msra.mxu0 %v3944_v2  ;;  %301 = vmatpush1.msra.mxu1 %v3951_v3  ;;  %v3973_v7 = vld [vmem:[%s8817_s1 + $0x1c0] sm:$0xff]  ;;  %v3978_v8 = vld [vmem:[%s8817_s1 + $0x1d0] sm:$0xff] }
   0x4   :  { %32 = vst [vmem:[#allocation6] sm:$0x3] %v8823_v6  ;;  %v3983_v9 = vld [vmem:[%s8817_s1 + $0x1a8] sm:$0xff]  ;;  %231 = vmatprep.subr.mxu0 %v3956_v4  ;;  %302 = vmatprep.subr.mxu1 %v3961_v5  ;;  %v3990_v10 = vld [vmem:[%s8817_s1 + $0x1b8] sm:$0xff]  ;;  %v3995_v11 = vld [vmem:[%s8817_s1 + $0x1a0] sm:$0xff] }
   0x5   :  { %v4000_v12 = vld [vmem:[%s8817_s1 + $0x1b0] sm:$0xff]  ;;  %232 = vmatpush1.msra.mxu0 %v3973_v7  ;;  %303 = vmatpush1.msra.mxu1 %v3978_v8  ;;  %v4007_v13 = vld [vmem:[%s8817_s1 + $0x188] sm:$0xff]  ;;  %v4012_v14 = vld [vmem:[%s8817_s1 + $0x198] sm:$0xff] }
   0x6   :  { %233 = vmatprep.subr.mxu0 %v3983_v9  ;;  %304 = vmatprep.subr.mxu1 %v3990_v10  ;;  %v4019_v15 = vld [vmem:[%s8817_s1 + $0x180] sm:$0xff]  ;;  %v4024_v16 = vld [vmem:[%s8817_s1 + $0x190] sm:$0xff]  ;;  %v4031_v17 = vld [vmem:[%s8817_s1 + $0x168] sm:$0xff] }
   0x7   :  { %234 = vmatpush1.msra.mxu0 %v3995_v11  ;;  %305 = vmatpush1.msra.mxu1 %v4000_v12  ;;  %v4036_v18 = vld [vmem:[%s8817_s1 + $0x178] sm:$0xff]  ;;  %v4043_v19 = vld [vmem:[%s8817_s1 + $0x160] sm:$0xff]  ;;  %v4048_v20 = vld [vmem:[%s8817_s1 + $0x170] sm:$0xff] }
   0x8   :  { %235 = vmatprep.subr.mxu0 %v4007_v13  ;;  %306 = vmatprep.subr.mxu1 %v4012_v14  ;;  %v4055_v21 = vld [vmem:[%s8817_s1 + $0x148] sm:$0xff]  ;;  %v4060_v22 = vld [vmem:[%s8817_s1 + $0x158] sm:$0xff]  ;;  %v4067_v23 = vld [vmem:[%s8817_s1 + $0x140] sm:$0xff] }
   0x9   :  { %236 = vmatpush1.msra.mxu0 %v4019_v15  ;;  %307 = vmatpush1.msra.mxu1 %v4024_v16  ;;  %v4072_v24 = vld [vmem:[%s8817_s1 + $0x150] sm:$0xff]  ;;  %v4079_v25 = vld [vmem:[%s8817_s1 + $0x128] sm:$0xff]  ;;  %v4084_v26 = vld [vmem:[%s8817_s1 + $0x138] sm:$0xff] }
   0xa   :  { %237 = vmatprep.subr.mxu0 %v4031_v17  ;;  %308 = vmatprep.subr.mxu1 %v4036_v18  ;;  %v4091_v27 = vld [vmem:[%s8817_s1 + $0x120] sm:$0xff]  ;;  %v4096_v28 = vld [vmem:[%s8817_s1 + $0x130] sm:$0xff]  ;;  %v4103_v29 = vld [vmem:[%s8817_s1 + $0x108] sm:$0xff] }
   0xb   :  { %238 = vmatpush1.msra.mxu0 %v4043_v19  ;;  %309 = vmatpush1.msra.mxu1 %v4048_v20  ;;  %v4108_v30 = vld [vmem:[%s8817_s1 + $0x118] sm:$0xff]  ;;  %v4115_v31 = vld [vmem:[%s8817_s1 + $0x100] sm:$0xff]  ;;  %v4120_v32 = vld [vmem:[%s8817_s1 + $0x110] sm:$0xff] }
   0xc   :  { %239 = vmatprep.subr.mxu0 %v4055_v21  ;;  %310 = vmatprep.subr.mxu1 %v4060_v22  ;;  %v4127_v33 = vld [vmem:[%s8817_s1 + $0xe8] sm:$0xff]  ;;  %v4132_v34 = vld [vmem:[%s8817_s1 + $0xf8] sm:$0xff]  ;;  %v4139_v35 = vld [vmem:[%s8817_s1 + $0xe0] sm:$0xff] }
   0xd   :  { %240 = vmatpush1.msra.mxu0 %v4067_v23  ;;  %311 = vmatpush1.msra.mxu1 %v4072_v24  ;;  %v4144_v36 = vld [vmem:[%s8817_s1 + $0xf0] sm:$0xff]  ;;  %v4151_v37 = vld [vmem:[%s8817_s1 + $0xc8] sm:$0xff]  ;;  %v4156_v38 = vld [vmem:[%s8817_s1 + $0xd8] sm:$0xff] }
   0xe   :  { %241 = vmatprep.subr.mxu0 %v4079_v25  ;;  %312 = vmatprep.subr.mxu1 %v4084_v26  ;;  %v4163_v39 = vld [vmem:[%s8817_s1 + $0xc0] sm:$0xff]  ;;  %v4168_v40 = vld [vmem:[%s8817_s1 + $0xd0] sm:$0xff]  ;;  %v4175_v41 = vld [vmem:[%s8817_s1 + $0xa8] sm:$0xff] }
   0xf   :  { %242 = vmatpush1.msra.mxu0 %v4091_v27  ;;  %313 = vmatpush1.msra.mxu1 %v4096_v28  ;;  %v4180_v42 = vld [vmem:[%s8817_s1 + $0xb8] sm:$0xff]  ;;  %v4187_v43 = vld [vmem:[%s8817_s1 + $0xa0] sm:$0xff]  ;;  %v4192_v44 = vld [vmem:[%s8817_s1 + $0xb0] sm:$0xff] }
  0x10   :  { %243 = vmatprep.subr.mxu0 %v4103_v29  ;;  %314 = vmatprep.subr.mxu1 %v4108_v30  ;;  %v4199_v45 = vld [vmem:[%s8817_s1 + $0x88] sm:$0xff]  ;;  %v4204_v46 = vld [vmem:[%s8817_s1 + $0x98] sm:$0xff]  ;;  %v4211_v47 = vld [vmem:[%s8817_s1 + $0x80] sm:$0xff] }
  0x11   :  { %244 = vmatpush1.msra.mxu0 %v4115_v31  ;;  %315 = vmatpush1.msra.mxu1 %v4120_v32  ;;  %v4216_v48 = vld [vmem:[%s8817_s1 + $0x90] sm:$0xff] }
  0x12   :  { %245 = vmatprep.subr.mxu0 %v4127_v33  ;;  %316 = vmatprep.subr.mxu1 %v4132_v34 }
  0x13   :  { %246 = vmatpush1.msra.mxu0 %v4139_v35  ;;  %317 = vmatpush1.msra.mxu1 %v4144_v36 }
  0x14   :  { %247 = vmatprep.subr.mxu0 %v4151_v37  ;;  %318 = vmatprep.subr.mxu1 %v4156_v38 }
  0x15   :  { %248 = vmatpush1.msra.mxu0 %v4163_v39  ;;  %319 = vmatpush1.msra.mxu1 %v4168_v40 }
  0x16   :  { %249 = vmatprep.subr.mxu0 %v4175_v41  ;;  %320 = vmatprep.subr.mxu1 %v4180_v42 }
  0x17   :  { %11 = vsyncpa [#allocation8], 0  ;;  %250 = vmatpush1.msra.mxu0 %v4187_v43  ;;  %321 = vmatpush1.msra.mxu1 %v4192_v44  ;;  %v4223_v49 = vld [vmem:[%s8817_s1 + $0x68] sm:$0xff]  ;;  %v4228_v50 = vld [vmem:[%s8817_s1 + $0x78] sm:$0xff]  ;;  %vm3894_vm0 = vmmov 0   ;;  %s3895_s7 = smov [#allocation7]  }
  0x18   :  { %9283 = vst [vmem:[#allocation10_spill] sm:$0xff] %v4223_v49  ;;  %9284 = vst [vmem:[#allocation11_spill] sm:$0xff] %v4228_v50  ;;  %251 = vmatprep.subr.mxu0 %v4199_v45  ;;  %322 = vmatprep.subr.mxu1 %v4204_v46  ;;  %v4235_v51 = vld [vmem:[%s8817_s1 + $0x60] sm:$0xff]  ;;  %v4240_v52 = vld [vmem:[%s8817_s1 + $0x70] sm:$0xff]  ;;  %s2957_s8 = sshll.u32 %s3895_s7, 4  ;;  %s2958_s8 = int_to_ptr.vmem [resolvable:$true] %s2957_s8 }
  0x19   :  { %9285 = vst [vmem:[#allocation12_spill] sm:$0xff] %v4235_v51  ;;  %9286 = vst [vmem:[#allocation13_spill] sm:$0xff] %v4240_v52  ;;  %252 = vmatpush1.msra.mxu0 %v4211_v47  ;;  %323 = vmatpush1.msra.mxu1 %v4216_v48  ;;  %v4247_v53 = vld [vmem:[%s8817_s1 + $0x48] sm:$0xff]  ;;  %v4252_v54 = vld [vmem:[%s8817_s1 + $0x58] sm:$0xff]  ;;  %s3870_s9 = scalar_lea.vmem %s2958_s8, 32  ;;  %p3875_p1 = scmp.lt.s32.totalorder %s2958_s8, %s2958_s8 }
  0x1a   :  { %9287 = vst [vmem:[#allocation14_spill] sm:$0xff] %v4247_v53  ;;  %9288 = vst [vmem:[#allocation15_spill] sm:$0xff] %v4252_v54  ;;  %253 = vmatprep.subr.mxu0 %v4223_v49  ;;  %324 = vmatprep.subr.mxu1 %v4228_v50  ;;  %v4259_v55 = vld [vmem:[%s8817_s1 + $0x40] sm:$0xff]  ;;  %v4264_v56 = vld [vmem:[%s8817_s1 + $0x50] sm:$0xff]  ;;  %p3871_p0 = scmp.ne.s32.totalorder %s2958_s8, %s3870_s9  ;;  %p3876_p2 = scmp.lt.s32.totalorder %s3870_s9, %s3870_s9 }
  0x1b   :  { %9289 = vst [vmem:[#allocation16_spill] sm:$0xff] %v4259_v55  ;;  %9290 = vst [vmem:[#allocation17_spill] sm:$0xff] %v4264_v56  ;;  %254 = vmatpush1.msra.mxu0 %v4235_v51  ;;  %325 = vmatpush1.msra.mxu1 %v4240_v52  ;;  %v4271_v57 = vld [vmem:[%s8817_s1 + $0x28] sm:$0xff]  ;;  %v4276_v58 = vld [vmem:[%s8817_s1 + $0x38] sm:$0xff] }
  0x1c   :  { %9291 = vst [vmem:[#allocation18_spill] sm:$0xff] %v4271_v57  ;;  %9292 = vst [vmem:[#allocation19_spill] sm:$0xff] %v4276_v58  ;;  %255 = vmatprep.subr.mxu0 %v4247_v53  ;;  %326 = vmatprep.subr.mxu1 %v4252_v54  ;;  %v4283_v59 = vld [vmem:[%s8817_s1 + $0x20] sm:$0xff]  ;;  %v4288_v60 = vld [vmem:[%s8817_s1 + $0x30] sm:$0xff]  ;;  %p3877_p3 = por %p3876_p2, %p3875_p1 }
  0x1d   :  { %9293 = vst [vmem:[#allocation20_spill] sm:$0xff] %v4283_v59  ;;  %9294 = vst [vmem:[#allocation21_spill] sm:$0xff] %v4288_v60  ;;  %256 = vmatpush1.msra.mxu0 %v4259_v55  ;;  %327 = vmatpush1.msra.mxu1 %v4264_v56  ;;  %v4295_v61 = vld [vmem:[%s8817_s1 + $0x8] sm:$0xff]  ;;  %v4300_v62 = vld [vmem:[%s8817_s1 + $0x18] sm:$0xff] }
  0x1e   :  { %9295 = vst [vmem:[#allocation22_spill] sm:$0xff] %v4295_v61  ;;  %9296 = vst [vmem:[#allocation23_spill] sm:$0xff] %v4300_v62  ;;  %257 = vmatprep.subr.mxu0 %v4271_v57  ;;  %328 = vmatprep.subr.mxu1 %v4276_v58  ;;  %v4307_v63 = vld [vmem:[%s8817_s1] sm:$0xff]  ;;  %v4314_v6 = vld [vmem:[%s8817_s1 + $0x10] sm:$0xff]  ;;  %v9299_v58 = vmov 0.0   ;;  %p3878_p4 = pnand %p3877_p3, %p3871_p0 }
  0x1f   :  { %9297 = vst [vmem:[#allocation24_spill] sm:$0xff] %v4307_v63  ;;  %258 = vmatpush1.msra.mxu0 %v4283_v59  ;;  %329 = vmatpush1.msra.mxu1 %v4288_v60  ;;  %9298 = vst [vmem:[#allocation25_spill] sm:$0xff] %v4314_v6  ;;  %v228_v57 = vld [vmem:[#allocation2] sm:$0x3]  ;;  %v4325_v60 = vld [vmem:[%s8818_s2 + $0x1e8] sm:$0xff] }
  0x20   :  { %259 = vmatprep.subr.mxu0 %v4295_v61  ;;  %330 = vmatprep.subr.mxu1 %v4300_v62  ;;  %9300 = vst [vmem:[#allocation26_spill] sm:$0xff] %v4325_v60  ;;  %v4330_v62 = vld [vmem:[%s8818_s2 + $0x1f8] sm:$0xff]  ;;  %v4753_v61 = vld [vmem:[%s8818_s2 + $0x3a8] sm:$0xff]  ;;  %v4770_v59 = vld [vmem:[%s8818_s2 + $0x3b0] sm:$0xff] }
  0x21   :  { %260 = vmatpush1.msra.mxu0 %v4307_v63  ;;  %293 = vmatprep.mubr.f32.mxu0 %v9299_v58  ;;  %9301 = vst [vmem:[#allocation27_spill] sm:$0xff] %v4330_v62  ;;  %v4736_v63 = vld [vmem:[%s8818_s2 + $0x3d8] sm:$0xff]  ;;  %9372 = vst [vmem:[#allocation98_spill] sm:$0xff] %v4753_v61  ;;  %v426_v56 = vld [vmem:[#allocation4] sm:$0x3] }
  0x22   :  { %331 = vmatpush1.msra.mxu1 %v4314_v6  ;;  %364 = vmatprep.mubr.f32.mxu1 %v9299_v58  ;;  %v4337_v6 = vld [vmem:[%s8818_s2 + $0x1e0] sm:$0xff]  ;;  %9369 = vst [vmem:[#allocation95_spill] sm:$0xff] %v4736_v63  ;;  %9375 = vst [vmem:[#allocation101_spill] sm:$0xff] %v4770_v59 }
  0x23   :  { %294 = vmatmul.mubr.f32.vlgmr.msra.gmra.mxu0 %v228_v57  ;;  %365 = vmatmul.mubr.f32.vlgmr.msra.gmra.mxu1 %v228_v57  ;;  %9302 = vst [vmem:[#allocation28_spill] sm:$0xff] %v4337_v6  ;;  %v4342_v57 = vld [vmem:[%s8818_s2 + $0x1f0] sm:$0xff]  ;;  %v4719_v58 = vld [vmem:[%s8818_s2 + $0x3e0] sm:$0xff] }
  0x24   :  { %450 = vmatprep.subr.mxu0 %v4325_v60  ;;  %521 = vmatprep.subr.mxu1 %v4330_v62  ;;  %9303 = vst [vmem:[#allocation29_spill] sm:$0xff] %v4342_v57  ;;  %v4349_v60 = vld [vmem:[%s8818_s2 + $0x1c8] sm:$0xff]  ;;  %v4354_v62 = vld [vmem:[%s8818_s2 + $0x1d8] sm:$0xff]  ;;  %9366 = vst [vmem:[#allocation92_spill] sm:$0xff] %v4719_v58 }
  0x25   :  { %451 = vmatpush1.msra.mxu0 %v4337_v6  ;;  %522 = vmatpush1.msra.mxu1 %v4342_v57  ;;  %9304 = vst [vmem:[#allocation30_spill] sm:$0xff] %v4349_v60  ;;  %9305 = vst [vmem:[#allocation31_spill] sm:$0xff] %v4354_v62  ;;  %v4361_v6 = vld [vmem:[%s8818_s2 + $0x1c0] sm:$0xff]  ;;  %v4366_v57 = vld [vmem:[%s8818_s2 + $0x1d0] sm:$0xff] }
  0x26   :  { %452 = vmatprep.subr.mxu0 %v4349_v60  ;;  %523 = vmatprep.subr.mxu1 %v4354_v62  ;;  %9306 = vst [vmem:[#allocation32_spill] sm:$0xff] %v4361_v6  ;;  %9307 = vst [vmem:[#allocation33_spill] sm:$0xff] %v4366_v57  ;;  %v4373_v60 = vld [vmem:[%s8818_s2 + $0x1a8] sm:$0xff]  ;;  %v4378_v62 = vld [vmem:[%s8818_s2 + $0x1b8] sm:$0xff] }
  0x27   :  { %453 = vmatpush1.msra.mxu0 %v4361_v6  ;;  %524 = vmatpush1.msra.mxu1 %v4366_v57  ;;  %9308 = vst [vmem:[#allocation34_spill] sm:$0xff] %v4373_v60  ;;  %9309 = vst [vmem:[#allocation35_spill] sm:$0xff] %v4378_v62  ;;  %v4385_v6 = vld [vmem:[%s8818_s2 + $0x1a0] sm:$0xff]  ;;  %v4390_v57 = vld [vmem:[%s8818_s2 + $0x1b0] sm:$0xff] }
  0x28   :  { %454 = vmatprep.subr.mxu0 %v4373_v60  ;;  %525 = vmatprep.subr.mxu1 %v4378_v62  ;;  %9310 = vst [vmem:[#allocation36_spill] sm:$0xff] %v4385_v6  ;;  %9311 = vst [vmem:[#allocation37_spill] sm:$0xff] %v4390_v57  ;;  %v4397_v60 = vld [vmem:[%s8818_s2 + $0x188] sm:$0xff]  ;;  %v4402_v62 = vld [vmem:[%s8818_s2 + $0x198] sm:$0xff] }
  0x29   :  { %455 = vmatpush1.msra.mxu0 %v4385_v6  ;;  %526 = vmatpush1.msra.mxu1 %v4390_v57  ;;  %9312 = vst [vmem:[#allocation38_spill] sm:$0xff] %v4397_v60  ;;  %9313 = vst [vmem:[#allocation39_spill] sm:$0xff] %v4402_v62  ;;  %v4409_v6 = vld [vmem:[%s8818_s2 + $0x180] sm:$0xff]  ;;  %v4414_v57 = vld [vmem:[%s8818_s2 + $0x190] sm:$0xff] }
  0x2a   :  { %456 = vmatprep.subr.mxu0 %v4397_v60  ;;  %527 = vmatprep.subr.mxu1 %v4402_v62  ;;  %9314 = vst [vmem:[#allocation40_spill] sm:$0xff] %v4409_v6  ;;  %9315 = vst [vmem:[#allocation41_spill] sm:$0xff] %v4414_v57  ;;  %v4421_v60 = vld [vmem:[%s8818_s2 + $0x168] sm:$0xff]  ;;  %v4426_v62 = vld [vmem:[%s8818_s2 + $0x178] sm:$0xff] }
  0x2b   :  { %457 = vmatpush1.msra.mxu0 %v4409_v6  ;;  %528 = vmatpush1.msra.mxu1 %v4414_v57  ;;  %9316 = vst [vmem:[#allocation42_spill] sm:$0xff] %v4421_v60  ;;  %9317 = vst [vmem:[#allocation43_spill] sm:$0xff] %v4426_v62  ;;  %v4433_v6 = vld [vmem:[%s8818_s2 + $0x160] sm:$0xff]  ;;  %v4438_v57 = vld [vmem:[%s8818_s2 + $0x170] sm:$0xff] }
  0x2c   :  { %458 = vmatprep.subr.mxu0 %v4421_v60  ;;  %529 = vmatprep.subr.mxu1 %v4426_v62  ;;  %9318 = vst [vmem:[#allocation44_spill] sm:$0xff] %v4433_v6  ;;  %9319 = vst [vmem:[#allocation45_spill] sm:$0xff] %v4438_v57  ;;  %v4445_v60 = vld [vmem:[%s8818_s2 + $0x148] sm:$0xff]  ;;  %v4450_v62 = vld [vmem:[%s8818_s2 + $0x158] sm:$0xff] }
  0x2d   :  { %459 = vmatpush1.msra.mxu0 %v4433_v6  ;;  %530 = vmatpush1.msra.mxu1 %v4438_v57  ;;  %9320 = vst [vmem:[#allocation46_spill] sm:$0xff] %v4445_v60  ;;  %9321 = vst [vmem:[#allocation47_spill] sm:$0xff] %v4450_v62  ;;  %v4457_v6 = vld [vmem:[%s8818_s2 + $0x140] sm:$0xff]  ;;  %v4462_v57 = vld [vmem:[%s8818_s2 + $0x150] sm:$0xff] }
  0x2e   :  { %460 = vmatprep.subr.mxu0 %v4445_v60  ;;  %531 = vmatprep.subr.mxu1 %v4450_v62  ;;  %9322 = vst [vmem:[#allocation48_spill] sm:$0xff] %v4457_v6  ;;  %9323 = vst [vmem:[#allocation49_spill] sm:$0xff] %v4462_v57  ;;  %v4469_v60 = vld [vmem:[%s8818_s2 + $0x128] sm:$0xff]  ;;  %v4474_v62 = vld [vmem:[%s8818_s2 + $0x138] sm:$0xff] }
  0x2f   :  { %461 = vmatpush1.msra.mxu0 %v4457_v6  ;;  %532 = vmatpush1.msra.mxu1 %v4462_v57  ;;  %9324 = vst [vmem:[#allocation50_spill] sm:$0xff] %v4469_v60  ;;  %9325 = vst [vmem:[#allocation51_spill] sm:$0xff] %v4474_v62  ;;  %v4481_v6 = vld [vmem:[%s8818_s2 + $0x120] sm:$0xff]  ;;  %v4486_v57 = vld [vmem:[%s8818_s2 + $0x130] sm:$0xff] }
  0x30   :  { %462 = vmatprep.subr.mxu0 %v4469_v60  ;;  %533 = vmatprep.subr.mxu1 %v4474_v62  ;;  %9326 = vst [vmem:[#allocation52_spill] sm:$0xff] %v4481_v6  ;;  %9327 = vst [vmem:[#allocation53_spill] sm:$0xff] %v4486_v57  ;;  %v4493_v60 = vld [vmem:[%s8818_s2 + $0x108] sm:$0xff]  ;;  %v4498_v62 = vld [vmem:[%s8818_s2 + $0x118] sm:$0xff] }
  0x31   :  { %463 = vmatpush1.msra.mxu0 %v4481_v6  ;;  %534 = vmatpush1.msra.mxu1 %v4486_v57  ;;  %9328 = vst [vmem:[#allocation54_spill] sm:$0xff] %v4493_v60  ;;  %9329 = vst [vmem:[#allocation55_spill] sm:$0xff] %v4498_v62  ;;  %v4505_v6 = vld [vmem:[%s8818_s2 + $0x100] sm:$0xff]  ;;  %v4510_v57 = vld [vmem:[%s8818_s2 + $0x110] sm:$0xff] }
  0x32   :  { %464 = vmatprep.subr.mxu0 %v4493_v60  ;;  %535 = vmatprep.subr.mxu1 %v4498_v62  ;;  %9330 = vst [vmem:[#allocation56_spill] sm:$0xff] %v4505_v6  ;;  %9331 = vst [vmem:[#allocation57_spill] sm:$0xff] %v4510_v57  ;;  %v4517_v60 = vld [vmem:[%s8818_s2 + $0xe8] sm:$0xff]  ;;  %v4522_v62 = vld [vmem:[%s8818_s2 + $0xf8] sm:$0xff] }
  0x33   :  { %465 = vmatpush1.msra.mxu0 %v4505_v6  ;;  %536 = vmatpush1.msra.mxu1 %v4510_v57  ;;  %9332 = vst [vmem:[#allocation58_spill] sm:$0xff] %v4517_v60  ;;  %9333 = vst [vmem:[#allocation59_spill] sm:$0xff] %v4522_v62  ;;  %v4529_v6 = vld [vmem:[%s8818_s2 + $0xe0] sm:$0xff]  ;;  %v4534_v57 = vld [vmem:[%s8818_s2 + $0xf0] sm:$0xff] }
  0x34   :  { %466 = vmatprep.subr.mxu0 %v4517_v60  ;;  %537 = vmatprep.subr.mxu1 %v4522_v62  ;;  %9334 = vst [vmem:[#allocation60_spill] sm:$0xff] %v4529_v6  ;;  %9335 = vst [vmem:[#allocation61_spill] sm:$0xff] %v4534_v57  ;;  %v4541_v60 = vld [vmem:[%s8818_s2 + $0xc8] sm:$0xff]  ;;  %v4546_v62 = vld [vmem:[%s8818_s2 + $0xd8] sm:$0xff] }
  0x35   :  { %467 = vmatpush1.msra.mxu0 %v4529_v6  ;;  %538 = vmatpush1.msra.mxu1 %v4534_v57  ;;  %9336 = vst [vmem:[#allocation62_spill] sm:$0xff] %v4541_v60  ;;  %9337 = vst [vmem:[#allocation63_spill] sm:$0xff] %v4546_v62  ;;  %v4553_v6 = vld [vmem:[%s8818_s2 + $0xc0] sm:$0xff]  ;;  %v4558_v57 = vld [vmem:[%s8818_s2 + $0xd0] sm:$0xff] }
  0x36   :  { %468 = vmatprep.subr.mxu0 %v4541_v60  ;;  %539 = vmatprep.subr.mxu1 %v4546_v62  ;;  %9338 = vst [vmem:[#allocation64_spill] sm:$0xff] %v4553_v6  ;;  %9339 = vst [vmem:[#allocation65_spill] sm:$0xff] %v4558_v57  ;;  %v4565_v60 = vld [vmem:[%s8818_s2 + $0xa8] sm:$0xff]  ;;  %v4570_v62 = vld [vmem:[%s8818_s2 + $0xb8] sm:$0xff] }
  0x37   :  { %469 = vmatpush1.msra.mxu0 %v4553_v6  ;;  %540 = vmatpush1.msra.mxu1 %v4558_v57  ;;  %9340 = vst [vmem:[#allocation66_spill] sm:$0xff] %v4565_v60  ;;  %9341 = vst [vmem:[#allocation67_spill] sm:$0xff] %v4570_v62  ;;  %v4577_v6 = vld [vmem:[%s8818_s2 + $0xa0] sm:$0xff]  ;;  %v4582_v57 = vld [vmem:[%s8818_s2 + $0xb0] sm:$0xff] }
  0x38   :  { %470 = vmatprep.subr.mxu0 %v4565_v60  ;;  %541 = vmatprep.subr.mxu1 %v4570_v62  ;;  %9342 = vst [vmem:[#allocation68_spill] sm:$0xff] %v4577_v6  ;;  %9343 = vst [vmem:[#allocation69_spill] sm:$0xff] %v4582_v57  ;;  %v4589_v60 = vld [vmem:[%s8818_s2 + $0x88] sm:$0xff]  ;;  %v4594_v62 = vld [vmem:[%s8818_s2 + $0x98] sm:$0xff] }
  0x39   :  { %471 = vmatpush1.msra.mxu0 %v4577_v6  ;;  %542 = vmatpush1.msra.mxu1 %v4582_v57  ;;  %9344 = vst [vmem:[#allocation70_spill] sm:$0xff] %v4589_v60  ;;  %9345 = vst [vmem:[#allocation71_spill] sm:$0xff] %v4594_v62  ;;  %v4601_v6 = vld [vmem:[%s8818_s2 + $0x80] sm:$0xff]  ;;  %v4606_v57 = vld [vmem:[%s8818_s2 + $0x90] sm:$0xff] }
  0x3a   :  { %472 = vmatprep.subr.mxu0 %v4589_v60  ;;  %543 = vmatprep.subr.mxu1 %v4594_v62  ;;  %9346 = vst [vmem:[#allocation72_spill] sm:$0xff] %v4601_v6  ;;  %9347 = vst [vmem:[#allocation73_spill] sm:$0xff] %v4606_v57  ;;  %v4613_v60 = vld [vmem:[%s8818_s2 + $0x68] sm:$0xff]  ;;  %v4618_v62 = vld [vmem:[%s8818_s2 + $0x78] sm:$0xff] }
  0x3b   :  { %473 = vmatpush1.msra.mxu0 %v4601_v6  ;;  %544 = vmatpush1.msra.mxu1 %v4606_v57  ;;  %9348 = vst [vmem:[#allocation74_spill] sm:$0xff] %v4613_v60  ;;  %9349 = vst [vmem:[#allocation75_spill] sm:$0xff] %v4618_v62  ;;  %v4625_v6 = vld [vmem:[%s8818_s2 + $0x60] sm:$0xff]  ;;  %v4630_v57 = vld [vmem:[%s8818_s2 + $0x70] sm:$0xff] }
  0x3c   :  { %474 = vmatprep.subr.mxu0 %v4613_v60  ;;  %545 = vmatprep.subr.mxu1 %v4618_v62  ;;  %9350 = vst [vmem:[#allocation76_spill] sm:$0xff] %v4625_v6  ;;  %9351 = vst [vmem:[#allocation77_spill] sm:$0xff] %v4630_v57  ;;  %v4637_v60 = vld [vmem:[%s8818_s2 + $0x48] sm:$0xff]  ;;  %v4642_v62 = vld [vmem:[%s8818_s2 + $0x58] sm:$0xff] }
  0x3d   :  { %475 = vmatpush1.msra.mxu0 %v4625_v6  ;;  %546 = vmatpush1.msra.mxu1 %v4630_v57  ;;  %9352 = vst [vmem:[#allocation78_spill] sm:$0xff] %v4637_v60  ;;  %9353 = vst [vmem:[#allocation79_spill] sm:$0xff] %v4642_v62  ;;  %v4649_v6 = vld [vmem:[%s8818_s2 + $0x40] sm:$0xff]  ;;  %v4654_v57 = vld [vmem:[%s8818_s2 + $0x50] sm:$0xff] }
  0x3e   :  { %476 = vmatprep.subr.mxu0 %v4637_v60  ;;  %547 = vmatprep.subr.mxu1 %v4642_v62  ;;  %9354 = vst [vmem:[#allocation80_spill] sm:$0xff] %v4649_v6  ;;  %9355 = vst [vmem:[#allocation81_spill] sm:$0xff] %v4654_v57  ;;  %v4661_v60 = vld [vmem:[%s8818_s2 + $0x28] sm:$0xff]  ;;  %v4666_v62 = vld [vmem:[%s8818_s2 + $0x38] sm:$0xff] }
  0x3f   :  { %477 = vmatpush1.msra.mxu0 %v4649_v6  ;;  %548 = vmatpush1.msra.mxu1 %v4654_v57  ;;  %9356 = vst [vmem:[#allocation82_spill] sm:$0xff] %v4661_v60  ;;  %9357 = vst [vmem:[#allocation83_spill] sm:$0xff] %v4666_v62  ;;  %v4673_v6 = vld [vmem:[%s8818_s2 + $0x20] sm:$0xff]  ;;  %v4678_v57 = vld [vmem:[%s8818_s2 + $0x30] sm:$0xff] }
  0x40   :  { %478 = vmatprep.subr.mxu0 %v4661_v60  ;;  %549 = vmatprep.subr.mxu1 %v4666_v62  ;;  %9358 = vst [vmem:[#allocation84_spill] sm:$0xff] %v4673_v6  ;;  %9359 = vst [vmem:[#allocation85_spill] sm:$0xff] %v4678_v57  ;;  %v4685_v60 = vld [vmem:[%s8818_s2 + $0x8] sm:$0xff]  ;;  %v4690_v62 = vld [vmem:[%s8818_s2 + $0x18] sm:$0xff] }
  0x41   :  { %479 = vmatpush1.msra.mxu0 %v4673_v6  ;;  %550 = vmatpush1.msra.mxu1 %v4678_v57  ;;  %9360 = vst [vmem:[#allocation86_spill] sm:$0xff] %v4685_v60  ;;  %9361 = vst [vmem:[#allocation87_spill] sm:$0xff] %v4690_v62  ;;  %v4697_v6 = vld [vmem:[%s8818_s2] sm:$0xff]  ;;  %v4702_v57 = vld [vmem:[%s8818_s2 + $0x10] sm:$0xff] }
  0x42   :  { %480 = vmatprep.subr.mxu0 %v4685_v60  ;;  %551 = vmatprep.subr.mxu1 %v4690_v62  ;;  %9362 = vst [vmem:[#allocation88_spill] sm:$0xff] %v4697_v6  ;;  %9363 = vst [vmem:[#allocation89_spill] sm:$0xff] %v4702_v57  ;;  %v4709_v60 = vld [vmem:[%s8818_s2 + $0x3e8] sm:$0xff]  ;;  %v4714_v62 = vld [vmem:[%s8818_s2 + $0x3f8] sm:$0xff] }
  0x43   :  { %481 = vmatpush1.msra.mxu0 %v4697_v6  ;;  %552 = vmatpush1.msra.mxu1 %v4702_v57  ;;  %9364 = vst [vmem:[#allocation90_spill] sm:$0xff] %v4709_v60  ;;  %9365 = vst [vmem:[#allocation91_spill] sm:$0xff] %v4714_v62  ;;  %v4726_v57 = vld [vmem:[%s8818_s2 + $0x3f0] sm:$0xff]  ;;  %v4731_v6 = vld [vmem:[%s8818_s2 + $0x3c8] sm:$0xff] }
  0x44   :  { %482 = vmatprep.subr.mxu0 %v4709_v60  ;;  %553 = vmatprep.subr.mxu1 %v4714_v62  ;;  %9367 = vst [vmem:[#allocation93_spill] sm:$0xff] %v4726_v57  ;;  %9368 = vst [vmem:[#allocation94_spill] sm:$0xff] %v4731_v6  ;;  %v4743_v62 = vld [vmem:[%s8818_s2 + $0x3c0] sm:$0xff]  ;;  %v4748_v60 = vld [vmem:[%s8818_s2 + $0x3d0] sm:$0xff] }
  0x45   :  { %483 = vmatpush2.msra.mxu0 %v4719_v58  ;;  %554 = vmatpush2.msra.mxu1 %v4726_v57  ;;  %9370 = vst [vmem:[#allocation96_spill] sm:$0xff] %v4743_v62  ;;  %9371 = vst [vmem:[#allocation97_spill] sm:$0xff] %v4748_v60  ;;  %v4760_v57 = vld [vmem:[%s8818_s2 + $0x3b8] sm:$0xff]  ;;  %v4765_v58 = vld [vmem:[%s8818_s2 + $0x3a0] sm:$0xff] }
  0x46   :  { %484 = vmatprep.subr.mxu0 %v4731_v6  ;;  %555 = vmatprep.subr.mxu1 %v4736_v63  ;;  %9373 = vst [vmem:[#allocation99_spill] sm:$0xff] %v4760_v57  ;;  %9374 = vst [vmem:[#allocation100_spill] sm:$0xff] %v4765_v58  ;;  %v4777_v63 = vld [vmem:[%s8818_s2 + $0x388] sm:$0xff]  ;;  %v4782_v6 = vld [vmem:[%s8818_s2 + $0x398] sm:$0xff] }
  0x47   :  { %485 = vmatpush2.msra.mxu0 %v4743_v62  ;;  %556 = vmatpush2.msra.mxu1 %v4748_v60  ;;  %9376 = vst [vmem:[#allocation102_spill] sm:$0xff] %v4777_v63  ;;  %9377 = vst [vmem:[#allocation103_spill] sm:$0xff] %v4782_v6  ;;  %v4789_v62 = vld [vmem:[%s8818_s2 + $0x380] sm:$0xff]  ;;  %v4794_v60 = vld [vmem:[%s8818_s2 + $0x390] sm:$0xff] }
  0x48   :  { %486 = vmatprep.subr.mxu0 %v4753_v61  ;;  %557 = vmatprep.subr.mxu1 %v4760_v57  ;;  %9378 = vst [vmem:[#allocation104_spill] sm:$0xff] %v4789_v62  ;;  %9379 = vst [vmem:[#allocation105_spill] sm:$0xff] %v4794_v60  ;;  %v4801_v61 = vld [vmem:[%s8818_s2 + $0x368] sm:$0xff]  ;;  %v4806_v57 = vld [vmem:[%s8818_s2 + $0x378] sm:$0xff] }
  0x49   :  { %487 = vmatpush2.msra.mxu0 %v4765_v58  ;;  %558 = vmatpush2.msra.mxu1 %v4770_v59  ;;  %9380 = vst [vmem:[#allocation106_spill] sm:$0xff] %v4801_v61  ;;  %9381 = vst [vmem:[#allocation107_spill] sm:$0xff] %v4806_v57  ;;  %v4813_v58 = vld [vmem:[%s8818_s2 + $0x360] sm:$0xff]  ;;  %v4818_v59 = vld [vmem:[%s8818_s2 + $0x370] sm:$0xff] }
  0x4a   :  { %488 = vmatprep.subr.mxu0 %v4777_v63  ;;  %559 = vmatprep.subr.mxu1 %v4782_v6  ;;  %9382 = vst [vmem:[#allocation108_spill] sm:$0xff] %v4813_v58  ;;  %9383 = vst [vmem:[#allocation109_spill] sm:$0xff] %v4818_v59  ;;  %v4825_v63 = vld [vmem:[%s8818_s2 + $0x348] sm:$0xff]  ;;  %v4830_v6 = vld [vmem:[%s8818_s2 + $0x358] sm:$0xff] }
  0x4b   :  { %489 = vmatpush2.msra.mxu0 %v4789_v62  ;;  %560 = vmatpush2.msra.mxu1 %v4794_v60  ;;  %9384 = vst [vmem:[#allocation110_spill] sm:$0xff] %v4825_v63  ;;  %9385 = vst [vmem:[#allocation111_spill] sm:$0xff] %v4830_v6  ;;  %v4837_v62 = vld [vmem:[%s8818_s2 + $0x340] sm:$0xff]  ;;  %v4842_v60 = vld [vmem:[%s8818_s2 + $0x350] sm:$0xff] }
  0x4c   :  { %490 = vmatprep.subr.mxu0 %v4801_v61  ;;  %561 = vmatprep.subr.mxu1 %v4806_v57  ;;  %9386 = vst [vmem:[#allocation112_spill] sm:$0xff] %v4837_v62  ;;  %9387 = vst [vmem:[#allocation113_spill] sm:$0xff] %v4842_v60  ;;  %v4849_v61 = vld [vmem:[%s8818_s2 + $0x328] sm:$0xff]  ;;  %v4854_v57 = vld [vmem:[%s8818_s2 + $0x338] sm:$0xff] }
  0x4d   :  { %491 = vmatpush2.msra.mxu0 %v4813_v58  ;;  %562 = vmatpush2.msra.mxu1 %v4818_v59  ;;  %9388 = vst [vmem:[#allocation114_spill] sm:$0xff] %v4849_v61  ;;  %9389 = vst [vmem:[#allocation115_spill] sm:$0xff] %v4854_v57  ;;  %v4861_v58 = vld [vmem:[%s8818_s2 + $0x320] sm:$0xff]  ;;  %v4866_v59 = vld [vmem:[%s8818_s2 + $0x330] sm:$0xff] }
  0x4e   :  { %492 = vmatprep.subr.mxu0 %v4825_v63  ;;  %563 = vmatprep.subr.mxu1 %v4830_v6  ;;  %9390 = vst [vmem:[#allocation116_spill] sm:$0xff] %v4861_v58  ;;  %9391 = vst [vmem:[#allocation117_spill] sm:$0xff] %v4866_v59  ;;  %v4873_v63 = vld [vmem:[%s8818_s2 + $0x308] sm:$0xff]  ;;  %v4878_v6 = vld [vmem:[%s8818_s2 + $0x318] sm:$0xff] }
  0x4f   :  { %493 = vmatpush2.msra.mxu0 %v4837_v62  ;;  %564 = vmatpush2.msra.mxu1 %v4842_v60  ;;  %9392 = vst [vmem:[#allocation118_spill] sm:$0xff] %v4873_v63  ;;  %9393 = vst [vmem:[#allocation119_spill] sm:$0xff] %v4878_v6  ;;  %v4885_v62 = vld [vmem:[%s8818_s2 + $0x300] sm:$0xff]  ;;  %v4890_v60 = vld [vmem:[%s8818_s2 + $0x310] sm:$0xff] }
  0x50   :  { %494 = vmatprep.subr.mxu0 %v4849_v61  ;;  %565 = vmatprep.subr.mxu1 %v4854_v57  ;;  %9394 = vst [vmem:[#allocation120_spill] sm:$0xff] %v4885_v62  ;;  %9395 = vst [vmem:[#allocation121_spill] sm:$0xff] %v4890_v60  ;;  %v4897_v61 = vld [vmem:[%s8818_s2 + $0x2e8] sm:$0xff]  ;;  %v4902_v57 = vld [vmem:[%s8818_s2 + $0x2f8] sm:$0xff] }
  0x51   :  { %495 = vmatpush2.msra.mxu0 %v4861_v58  ;;  %566 = vmatpush2.msra.mxu1 %v4866_v59  ;;  %9396 = vst [vmem:[#allocation122_spill] sm:$0xff] %v4897_v61  ;;  %9397 = vst [vmem:[#allocation123_spill] sm:$0xff] %v4902_v57  ;;  %v4909_v58 = vld [vmem:[%s8818_s2 + $0x2e0] sm:$0xff]  ;;  %v4914_v59 = vld [vmem:[%s8818_s2 + $0x2f0] sm:$0xff] }
  0x52   :  { %496 = vmatprep.subr.mxu0 %v4873_v63  ;;  %567 = vmatprep.subr.mxu1 %v4878_v6  ;;  %9398 = vst [vmem:[#allocation124_spill] sm:$0xff] %v4909_v58  ;;  %9399 = vst [vmem:[#allocation125_spill] sm:$0xff] %v4914_v59  ;;  %v4921_v63 = vld [vmem:[%s8818_s2 + $0x2c8] sm:$0xff]  ;;  %v4926_v6 = vld [vmem:[%s8818_s2 + $0x2d8] sm:$0xff] }
  0x53   :  { %497 = vmatpush2.msra.mxu0 %v4885_v62  ;;  %568 = vmatpush2.msra.mxu1 %v4890_v60  ;;  %9400 = vst [vmem:[#allocation126_spill] sm:$0xff] %v4921_v63  ;;  %9401 = vst [vmem:[#allocation127_spill] sm:$0xff] %v4926_v6  ;;  %v4933_v62 = vld [vmem:[%s8818_s2 + $0x2c0] sm:$0xff]  ;;  %v4938_v60 = vld [vmem:[%s8818_s2 + $0x2d0] sm:$0xff] }
  0x54   :  { %498 = vmatprep.subr.mxu0 %v4897_v61  ;;  %569 = vmatprep.subr.mxu1 %v4902_v57  ;;  %9402 = vst [vmem:[#allocation128_spill] sm:$0xff] %v4933_v62  ;;  %9403 = vst [vmem:[#allocation129_spill] sm:$0xff] %v4938_v60  ;;  %v4945_v61 = vld [vmem:[%s8818_s2 + $0x2a8] sm:$0xff]  ;;  %v4950_v57 = vld [vmem:[%s8818_s2 + $0x2b8] sm:$0xff] }
  0x55   :  { %499 = vmatpush2.msra.mxu0 %v4909_v58  ;;  %570 = vmatpush2.msra.mxu1 %v4914_v59  ;;  %9404 = vst [vmem:[#allocation130_spill] sm:$0xff] %v4945_v61  ;;  %9405 = vst [vmem:[#allocation131_spill] sm:$0xff] %v4950_v57  ;;  %v4957_v58 = vld [vmem:[%s8818_s2 + $0x2a0] sm:$0xff]  ;;  %v4962_v59 = vld [vmem:[%s8818_s2 + $0x2b0] sm:$0xff] }
  0x56   :  { %500 = vmatprep.subr.mxu0 %v4921_v63  ;;  %571 = vmatprep.subr.mxu1 %v4926_v6  ;;  %9406 = vst [vmem:[#allocation132_spill] sm:$0xff] %v4957_v58  ;;  %9407 = vst [vmem:[#allocation133_spill] sm:$0xff] %v4962_v59  ;;  %v4969_v63 = vld [vmem:[%s8818_s2 + $0x288] sm:$0xff]  ;;  %v4974_v6 = vld [vmem:[%s8818_s2 + $0x298] sm:$0xff] }
  0x57   :  { %501 = vmatpush2.msra.mxu0 %v4933_v62  ;;  %572 = vmatpush2.msra.mxu1 %v4938_v60  ;;  %9408 = vst [vmem:[#allocation134_spill] sm:$0xff] %v4969_v63  ;;  %9409 = vst [vmem:[#allocation135_spill] sm:$0xff] %v4974_v6  ;;  %v4981_v62 = vld [vmem:[%s8818_s2 + $0x280] sm:$0xff]  ;;  %v4986_v60 = vld [vmem:[%s8818_s2 + $0x290] sm:$0xff] }
  0x58   :  { %502 = vmatprep.subr.mxu0 %v4945_v61  ;;  %573 = vmatprep.subr.mxu1 %v4950_v57  ;;  %9410 = vst [vmem:[#allocation136_spill] sm:$0xff] %v4981_v62  ;;  %9411 = vst [vmem:[#allocation137_spill] sm:$0xff] %v4986_v60  ;;  %v4993_v61 = vld [vmem:[%s8818_s2 + $0x268] sm:$0xff]  ;;  %v4998_v57 = vld [vmem:[%s8818_s2 + $0x278] sm:$0xff] }
  0x59   :  { %503 = vmatpush2.msra.mxu0 %v4957_v58  ;;  %574 = vmatpush2.msra.mxu1 %v4962_v59  ;;  %9412 = vst [vmem:[#allocation138_spill] sm:$0xff] %v4993_v61  ;;  %9413 = vst [vmem:[#allocation139_spill] sm:$0xff] %v4998_v57  ;;  %v5005_v58 = vld [vmem:[%s8818_s2 + $0x260] sm:$0xff]  ;;  %v5010_v59 = vld [vmem:[%s8818_s2 + $0x270] sm:$0xff] }
  0x5a   :  { %504 = vmatprep.subr.mxu0 %v4969_v63  ;;  %575 = vmatprep.subr.mxu1 %v4974_v6  ;;  %9414 = vst [vmem:[#allocation140_spill] sm:$0xff] %v5005_v58  ;;  %9415 = vst [vmem:[#allocation141_spill] sm:$0xff] %v5010_v59  ;;  %v5017_v63 = vld [vmem:[%s8818_s2 + $0x248] sm:$0xff]  ;;  %v5022_v6 = vld [vmem:[%s8818_s2 + $0x258] sm:$0xff] }
  0x5b   :  { %505 = vmatpush2.msra.mxu0 %v4981_v62  ;;  %576 = vmatpush2.msra.mxu1 %v4986_v60  ;;  %9416 = vst [vmem:[#allocation142_spill] sm:$0xff] %v5017_v63  ;;  %9417 = vst [vmem:[#allocation143_spill] sm:$0xff] %v5022_v6  ;;  %v5029_v62 = vld [vmem:[%s8818_s2 + $0x240] sm:$0xff]  ;;  %v5034_v60 = vld [vmem:[%s8818_s2 + $0x250] sm:$0xff] }
  0x5c   :  { %506 = vmatprep.subr.mxu0 %v4993_v61  ;;  %577 = vmatprep.subr.mxu1 %v4998_v57  ;;  %9418 = vst [vmem:[#allocation144_spill] sm:$0xff] %v5029_v62  ;;  %9419 = vst [vmem:[#allocation145_spill] sm:$0xff] %v5034_v60  ;;  %v5041_v61 = vld [vmem:[%s8818_s2 + $0x228] sm:$0xff]  ;;  %v5046_v57 = vld [vmem:[%s8818_s2 + $0x238] sm:$0xff] }
  0x5d   :  { %507 = vmatpush2.msra.mxu0 %v5005_v58  ;;  %578 = vmatpush2.msra.mxu1 %v5010_v59  ;;  %9420 = vst [vmem:[#allocation146_spill] sm:$0xff] %v5041_v61  ;;  %9421 = vst [vmem:[#allocation147_spill] sm:$0xff] %v5046_v57  ;;  %v5053_v58 = vld [vmem:[%s8818_s2 + $0x220] sm:$0xff]  ;;  %v5058_v59 = vld [vmem:[%s8818_s2 + $0x230] sm:$0xff] }
  0x5e   :  { %508 = vmatprep.subr.mxu0 %v5017_v63  ;;  %579 = vmatprep.subr.mxu1 %v5022_v6  ;;  %9422 = vst [vmem:[#allocation148_spill] sm:$0xff] %v5053_v58  ;;  %9423 = vst [vmem:[#allocation149_spill] sm:$0xff] %v5058_v59  ;;  %v5065_v63 = vld [vmem:[%s8818_s2 + $0x208] sm:$0xff]  ;;  %v5070_v6 = vld [vmem:[%s8818_s2 + $0x218] sm:$0xff] }
  0x5f   :  { %509 = vmatpush2.msra.mxu0 %v5029_v62  ;;  %580 = vmatpush2.msra.mxu1 %v5034_v60  ;;  %9424 = vst [vmem:[#allocation150_spill] sm:$0xff] %v5065_v63  ;;  %9425 = vst [vmem:[#allocation151_spill] sm:$0xff] %v5070_v6  ;;  %v5077_v62 = vld [vmem:[%s8818_s2 + $0x200] sm:$0xff]  ;;  %v5082_v60 = vld [vmem:[%s8818_s2 + $0x210] sm:$0xff] }
  0x60   :  { %510 = vmatprep.subr.mxu0 %v5041_v61  ;;  %581 = vmatprep.subr.mxu1 %v5046_v57  ;;  %9426 = vst [vmem:[#allocation152_spill] sm:$0xff] %v5077_v62  ;;  %9427 = vst [vmem:[#allocation153_spill] sm:$0xff] %v5082_v60  ;;  %v3893_v57 = vmov 1983009808  }
  0x61   :  { %511 = vmatpush2.msra.mxu0 %v5053_v58  ;;  %582 = vmatpush2.msra.mxu1 %v5058_v59  ;;  %v378_v61 = vunpack.c.l.s4 %v3893_v57  ;;  %v380_v58 = vlaneseq }
  0x62   :  { %512 = vmatprep.subr.mxu0 %v5065_v63  ;;  %583 = vmatprep.subr.mxu1 %v5070_v6 }
  0x63   :  { %513 = vmatpush2.msra.mxu0 %v5077_v62  ;;  %584 = vmatpush2.msra.mxu1 %v5082_v60  ;;  %v379_v55 = vunpack.c.0.s8 %v378_v61  ;;  %v5092_v59 = vshrl.u32 %v380_v58, 7 }
  0x64   :  { %514 = vmatprep.mubr.f32.mxu0 %v426_v56  ;;  %585 = vmatprep.mubr.f32.mxu1 %v426_v56 }
  0x65   :  { %594 = vmatprep.subr.mxu0 %v3934_v0  ;;  %665 = vmatprep.subr.mxu1 %v3939_v1  ;;  %9428 = vst [vmem:[#allocation154_spill] sm:$0xff] %v5092_v59  ;;  %v5095_v6 = vsub.s32 %v379_v55, %v5092_v59  ;;  %v227_v1 = vld [vmem:[%s8816_s0] sm:$0xff] }
  0xe3   :  { %v295_v54 = vpop.f32.mrf.mxu0  ;;  %v366_v63 = vpop.f32.mrf.mxu1 }
  0xe5   :  { %v297_v62 = vpop.f32.mrf.mxu0  ;;  %v368_v53 = vpop.f32.mrf.mxu1 }
  0xe6   :  { %v375_v60 = vcombine.low %v295_v54, %v297_v62  ;;  %v376_v52 = vcombine.low %v366_v63, %v368_v53 }
  0xe8   :  { %v383_v56 = vrot.slane %v375_v60, %v5095_v6  ;;  %v390_v0 = vrot.slane %v376_v52, %v5095_v6 }
  0xea   :  { %v391_v61 = vcombine.low %v383_v56, %v390_v0  ;;  %v394_v56 = vld [vmem:[#allocation3] sm:$0x3] }
  0xec   :  { %v393_v58 = vadd.f32 %v391_v61, %v227_v1 }
  0xee   :  { %v2965_v57 = vmul.f32 -1.442695, %v393_v58  ;;  %v402_v51 = vrot.slane %v393_v58, 2  ;;  %v413_v55 = vrot.slane %v393_v58, 6  ;;  %v410_v54 = vrot.slane %v393_v58, 4 }
  0xf0   :  { %3070 = vpow2.f32 %v2965_v57  ;;  %v2966_v50 = vmul.f32 -1.442695, %v402_v51  ;;  %v2967_v59 = vmul.f32 -1.442695, %v413_v55  ;;  %v9475_v55 = vld [vmem:[#allocation55_spill] sm:$0xff] }
  0xf2   :  { %3072 = vpow2.f32 %v2966_v50 }
  0xf3   :  { %3074 = vpow2.f32 %v2967_v59 }
  0xfd   :  { %v3071_v49 = vpop.eup %3070 }
  0xfe   :  { %v398_v53 = vadd.f32 1.0, %v3071_v49 }
  0xff   :  { %v3073_v62 = vpop.eup %3072 }
 0x100   :  { %3076 = vrcp.f32 %v398_v53  ;;  %v407_v52 = vadd.f32 1.0, %v3073_v62  ;;  %v3075_v60 = vpop.eup %3074  ;;  %v9477_v53 = vld [vmem:[#allocation57_spill] sm:$0xff]  ;;  %v9478_v62 = vld [vmem:[#allocation58_spill] sm:$0xff] }
 0x101   :  { %3078 = vtanh.f32 %v410_v54  ;;  %v418_v61 = vadd.f32 1.0, %v3075_v60  ;;  %v9476_v54 = vld [vmem:[#allocation56_spill] sm:$0xff] }
 0x102   :  { %3080 = vrcp.f32 %v407_v52  ;;  %v9479_v52 = vld [vmem:[#allocation59_spill] sm:$0xff]  ;;  %v9480_v60 = vld [vmem:[#allocation60_spill] sm:$0xff] }
 0x103   :  { %3082 = vrcp.f32 %v418_v61  ;;  %v9485_v61 = vld [vmem:[#allocation65_spill] sm:$0xff] }
 0x10d   :  { %v3077_v63 = vpop.eup %3076 }
 0x10e   :  { %v3079_v0 = vpop.eup %3078 }
 0x10f   :  { %v3081_v1 = vpop.eup %3080  ;;  %v422_v51 = vmul.f32 %v3079_v0, %v3077_v63  ;;  %v9481_v63 = vld [vmem:[#allocation61_spill] sm:$0xff]  ;;  %v9483_v0 = vld [vmem:[#allocation63_spill] sm:$0xff] }
 0x110   :  { %v421_v57 = vmul.f32 %v3081_v1, %v394_v56  ;;  %v3083_v49 = vpop.eup %3082  ;;  %v9482_v56 = vld [vmem:[#allocation62_spill] sm:$0xff]  ;;  %v9484_v1 = vld [vmem:[#allocation64_spill] sm:$0xff] }
 0x112   :  { %v5102_v50 = vadd.f32 %v422_v51, %v421_v57  ;;  %v9486_v57 = vld [vmem:[#allocation66_spill] sm:$0xff]  ;;  %v9487_v51 = vld [vmem:[#allocation67_spill] sm:$0xff] }
 0x114   :  { %3084 = vtanh.f32 %v5102_v50 }
 0x121   :  { %v3085_v58 = vpop.eup %3084 }
 0x122   :  { %v5105_v59 = vmul.f32 %v3085_v58, %v3083_v49  ;;  %v9488_v49 = vld [vmem:[#allocation68_spill] sm:$0xff]  ;;  %v9489_v58 = vld [vmem:[#allocation69_spill] sm:$0xff] }
 0x124   :  { %515 = vmatmul.mubr.f32.vlgmr.msra.gmra.mxu0 %v5105_v59  ;;  %586 = vmatmul.mubr.f32.vlgmr.msra.gmra.mxu1 %v5105_v59 }
 0x125   :  { %595 = vmatpush1.msra.mxu0 %v3944_v2  ;;  %666 = vmatpush1.msra.mxu1 %v3951_v3  ;;  %v9429_v2 = vld [vmem:[#allocation10_spill] sm:$0xff]  ;;  %v9430_v3 = vld [vmem:[#allocation11_spill] sm:$0xff] }
 0x126   :  { %596 = vmatprep.subr.mxu0 %v3956_v4  ;;  %667 = vmatprep.subr.mxu1 %v3961_v5  ;;  %v9431_v4 = vld [vmem:[#allocation12_spill] sm:$0xff]  ;;  %v9432_v5 = vld [vmem:[#allocation13_spill] sm:$0xff] }
 0x127   :  { %597 = vmatpush1.msra.mxu0 %v3973_v7  ;;  %668 = vmatpush1.msra.mxu1 %v3978_v8  ;;  %v9433_v7 = vld [vmem:[#allocation14_spill] sm:$0xff]  ;;  %v9434_v8 = vld [vmem:[#allocation15_spill] sm:$0xff] }
 0x128   :  { %598 = vmatprep.subr.mxu0 %v3983_v9  ;;  %669 = vmatprep.subr.mxu1 %v3990_v10  ;;  %v9435_v9 = vld [vmem:[#allocation16_spill] sm:$0xff]  ;;  %v9436_v10 = vld [vmem:[#allocation17_spill] sm:$0xff] }
 0x129   :  { %599 = vmatpush1.msra.mxu0 %v3995_v11  ;;  %670 = vmatpush1.msra.mxu1 %v4000_v12  ;;  %v9437_v11 = vld [vmem:[#allocation18_spill] sm:$0xff]  ;;  %v9438_v12 = vld [vmem:[#allocation19_spill] sm:$0xff] }
 0x12a   :  { %600 = vmatprep.subr.mxu0 %v4007_v13  ;;  %671 = vmatprep.subr.mxu1 %v4012_v14  ;;  %v9439_v13 = vld [vmem:[#allocation20_spill] sm:$0xff]  ;;  %v9440_v14 = vld [vmem:[#allocation21_spill] sm:$0xff] }
 0x12b   :  { %601 = vmatpush1.msra.mxu0 %v4019_v15  ;;  %672 = vmatpush1.msra.mxu1 %v4024_v16  ;;  %v9441_v15 = vld [vmem:[#allocation22_spill] sm:$0xff]  ;;  %v9442_v16 = vld [vmem:[#allocation23_spill] sm:$0xff] }
 0x12c   :  { %602 = vmatprep.subr.mxu0 %v4031_v17  ;;  %673 = vmatprep.subr.mxu1 %v4036_v18  ;;  %v9443_v17 = vld [vmem:[#allocation24_spill] sm:$0xff]  ;;  %v9444_v18 = vmov 0.0  }
 0x12d   :  { %603 = vmatpush1.msra.mxu0 %v4043_v19  ;;  %674 = vmatpush1.msra.mxu1 %v4048_v20  ;;  %v9445_v19 = vld [vmem:[#allocation25_spill] sm:$0xff]  ;;  %v9446_v20 = vld [vmem:[#allocation26_spill] sm:$0xff] }
 0x12e   :  { %604 = vmatprep.subr.mxu0 %v4055_v21  ;;  %675 = vmatprep.subr.mxu1 %v4060_v22  ;;  %v9447_v21 = vld [vmem:[#allocation27_spill] sm:$0xff]  ;;  %v9448_v22 = vld [vmem:[#allocation28_spill] sm:$0xff] }
 0x12f   :  { %605 = vmatpush1.msra.mxu0 %v4067_v23  ;;  %676 = vmatpush1.msra.mxu1 %v4072_v24  ;;  %v9449_v23 = vld [vmem:[#allocation29_spill] sm:$0xff]  ;;  %v9450_v24 = vld [vmem:[#allocation30_spill] sm:$0xff] }
 0x130   :  { %606 = vmatprep.subr.mxu0 %v4079_v25  ;;  %677 = vmatprep.subr.mxu1 %v4084_v26  ;;  %v9451_v25 = vld [vmem:[#allocation31_spill] sm:$0xff]  ;;  %v9452_v26 = vld [vmem:[#allocation32_spill] sm:$0xff] }
 0x131   :  { %607 = vmatpush1.msra.mxu0 %v4091_v27  ;;  %678 = vmatpush1.msra.mxu1 %v4096_v28  ;;  %v9453_v27 = vld [vmem:[#allocation33_spill] sm:$0xff]  ;;  %v9454_v28 = vld [vmem:[#allocation34_spill] sm:$0xff] }
 0x132   :  { %608 = vmatprep.subr.mxu0 %v4103_v29  ;;  %679 = vmatprep.subr.mxu1 %v4108_v30  ;;  %v9455_v29 = vld [vmem:[#allocation35_spill] sm:$0xff]  ;;  %v9456_v30 = vld [vmem:[#allocation36_spill] sm:$0xff] }
 0x133   :  { %609 = vmatpush1.msra.mxu0 %v4115_v31  ;;  %680 = vmatpush1.msra.mxu1 %v4120_v32  ;;  %v9457_v31 = vld [vmem:[#allocation37_spill] sm:$0xff]  ;;  %v9458_v32 = vld [vmem:[#allocation38_spill] sm:$0xff] }
 0x134   :  { %610 = vmatprep.subr.mxu0 %v4127_v33  ;;  %681 = vmatprep.subr.mxu1 %v4132_v34  ;;  %v9459_v33 = vld [vmem:[#allocation39_spill] sm:$0xff]  ;;  %v9460_v34 = vld [vmem:[#allocation40_spill] sm:$0xff] }
 0x135   :  { %611 = vmatpush1.msra.mxu0 %v4139_v35  ;;  %682 = vmatpush1.msra.mxu1 %v4144_v36  ;;  %v9461_v35 = vld [vmem:[#allocation41_spill] sm:$0xff]  ;;  %v9462_v36 = vld [vmem:[#allocation42_spill] sm:$0xff] }
 0x136   :  { %612 = vmatprep.subr.mxu0 %v4151_v37  ;;  %683 = vmatprep.subr.mxu1 %v4156_v38  ;;  %v9463_v37 = vld [vmem:[#allocation43_spill] sm:$0xff]  ;;  %v9464_v38 = vld [vmem:[#allocation44_spill] sm:$0xff] }
 0x137   :  { %613 = vmatpush1.msra.mxu0 %v4163_v39  ;;  %684 = vmatpush1.msra.mxu1 %v4168_v40  ;;  %v9465_v39 = vld [vmem:[#allocation45_spill] sm:$0xff]  ;;  %v9466_v40 = vld [vmem:[#allocation46_spill] sm:$0xff] }
 0x138   :  { %614 = vmatprep.subr.mxu0 %v4175_v41  ;;  %685 = vmatprep.subr.mxu1 %v4180_v42  ;;  %v9467_v41 = vld [vmem:[#allocation47_spill] sm:$0xff]  ;;  %v9468_v42 = vld [vmem:[#allocation48_spill] sm:$0xff] }
 0x139   :  { %615 = vmatpush1.msra.mxu0 %v4187_v43  ;;  %686 = vmatpush1.msra.mxu1 %v4192_v44  ;;  %v9469_v43 = vld [vmem:[#allocation49_spill] sm:$0xff]  ;;  %v9470_v44 = vld [vmem:[#allocation50_spill] sm:$0xff] }
 0x13a   :  { %616 = vmatprep.subr.mxu0 %v4199_v45  ;;  %687 = vmatprep.subr.mxu1 %v4204_v46  ;;  %v9471_v45 = vld [vmem:[#allocation51_spill] sm:$0xff]  ;;  %v9472_v46 = vld [vmem:[#allocation52_spill] sm:$0xff] }
 0x13b   :  { %617 = vmatpush1.msra.mxu0 %v4211_v47  ;;  %688 = vmatpush1.msra.mxu1 %v4216_v48  ;;  %v9473_v47 = vld [vmem:[#allocation53_spill] sm:$0xff]  ;;  %v9474_v48 = vld [vmem:[#allocation54_spill] sm:$0xff] }
 0x13c   :  { %618 = vmatprep.subr.mxu0 %v9429_v2  ;;  %689 = vmatprep.subr.mxu1 %v9430_v3  ;;  %v9491_v2 = vld [vmem:[#allocation71_spill] sm:$0xff]  ;;  %v9492_v3 = vld [vmem:[#allocation72_spill] sm:$0xff] }
 0x13d   :  { %619 = vmatpush1.msra.mxu0 %v9431_v4  ;;  %690 = vmatpush1.msra.mxu1 %v9432_v5  ;;  %v9493_v4 = vld [vmem:[#allocation73_spill] sm:$0xff]  ;;  %v9494_v5 = vld [vmem:[#allocation74_spill] sm:$0xff] }
 0x13e   :  { %620 = vmatprep.subr.mxu0 %v9433_v7  ;;  %691 = vmatprep.subr.mxu1 %v9434_v8  ;;  %v9495_v7 = vld [vmem:[#allocation75_spill] sm:$0xff]  ;;  %v9496_v8 = vld [vmem:[#allocation76_spill] sm:$0xff] }
 0x13f   :  { %621 = vmatpush1.msra.mxu0 %v9435_v9  ;;  %692 = vmatpush1.msra.mxu1 %v9436_v10  ;;  %v9497_v9 = vld [vmem:[#allocation77_spill] sm:$0xff]  ;;  %v9498_v10 = vld [vmem:[#allocation78_spill] sm:$0xff] }
 0x140   :  { %622 = vmatprep.subr.mxu0 %v9437_v11  ;;  %693 = vmatprep.subr.mxu1 %v9438_v12  ;;  %v9499_v11 = vld [vmem:[#allocation79_spill] sm:$0xff]  ;;  %v9500_v12 = vld [vmem:[#allocation80_spill] sm:$0xff] }
 0x141   :  { %623 = vmatpush1.msra.mxu0 %v9439_v13  ;;  %694 = vmatpush1.msra.mxu1 %v9440_v14  ;;  %v9501_v13 = vld [vmem:[#allocation81_spill] sm:$0xff]  ;;  %v9502_v14 = vld [vmem:[#allocation82_spill] sm:$0xff] }
 0x142   :  { %624 = vmatprep.subr.mxu0 %v9441_v15  ;;  %695 = vmatprep.subr.mxu1 %v9442_v16  ;;  %v9503_v15 = vld [vmem:[#allocation83_spill] sm:$0xff]  ;;  %v9504_v16 = vld [vmem:[#allocation84_spill] sm:$0xff] }
 0x143   :  { %625 = vmatpush1.msra.mxu0 %v9443_v17  ;;  %658 = vmatprep.mubr.f32.mxu0 %v9444_v18  ;;  %v9505_v17 = vld [vmem:[#allocation85_spill] sm:$0xff] }
 0x144   :  { %696 = vmatpush1.msra.mxu1 %v9445_v19  ;;  %729 = vmatprep.mubr.f32.mxu1 %v9444_v18  ;;  %v9506_v19 = vld [vmem:[#allocation86_spill] sm:$0xff] }
 0x145   :  { %659 = vmatmul.mubr.f32.vlgmr.msra.gmra.mxu0 %v5105_v59  ;;  %730 = vmatmul.mubr.f32.vlgmr.msra.gmra.mxu1 %v5105_v59  ;;  %v9490_v59 = vld [vmem:[#allocation70_spill] sm:$0xff] }
 0x146   :  { %820 = vmatprep.subr.mxu0 %v9446_v20  ;;  %891 = vmatprep.subr.mxu1 %v9447_v21  ;;  %v9507_v20 = vld [vmem:[#allocation87_spill] sm:$0xff]  ;;  %v9508_v21 = vld [vmem:[#allocation88_spill] sm:$0xff] }
 0x147   :  { %821 = vmatpush1.msra.mxu0 %v9448_v22  ;;  %892 = vmatpush1.msra.mxu1 %v9449_v23  ;;  %v9509_v22 = vld [vmem:[#allocation89_spill] sm:$0xff]  ;;  %v9510_v23 = vld [vmem:[#allocation90_spill] sm:$0xff] }
 0x148   :  { %822 = vmatprep.subr.mxu0 %v9450_v24  ;;  %893 = vmatprep.subr.mxu1 %v9451_v25  ;;  %v9511_v24 = vld [vmem:[#allocation91_spill] sm:$0xff]  ;;  %v9512_v25 = vld [vmem:[#allocation92_spill] sm:$0xff] }
 0x149   :  { %823 = vmatpush1.msra.mxu0 %v9452_v26  ;;  %894 = vmatpush1.msra.mxu1 %v9453_v27  ;;  %v9513_v26 = vld [vmem:[#allocation93_spill] sm:$0xff]  ;;  %v9514_v27 = vld [vmem:[#allocation94_spill] sm:$0xff] }
 0x14a   :  { %824 = vmatprep.subr.mxu0 %v9454_v28  ;;  %895 = vmatprep.subr.mxu1 %v9455_v29  ;;  %v9515_v28 = vld [vmem:[#allocation95_spill] sm:$0xff]  ;;  %v9516_v29 = vld [vmem:[#allocation96_spill] sm:$0xff] }
 0x14b   :  { %825 = vmatpush1.msra.mxu0 %v9456_v30  ;;  %896 = vmatpush1.msra.mxu1 %v9457_v31  ;;  %v9517_v30 = vld [vmem:[#allocation97_spill] sm:$0xff]  ;;  %v9518_v31 = vld [vmem:[#allocation98_spill] sm:$0xff] }
 0x14c   :  { %826 = vmatprep.subr.mxu0 %v9458_v32  ;;  %897 = vmatprep.subr.mxu1 %v9459_v33  ;;  %v9519_v32 = vld [vmem:[#allocation99_spill] sm:$0xff]  ;;  %v9520_v33 = vld [vmem:[#allocation100_spill] sm:$0xff] }
 0x14d   :  { %827 = vmatpush1.msra.mxu0 %v9460_v34  ;;  %898 = vmatpush1.msra.mxu1 %v9461_v35  ;;  %v9521_v34 = vld [vmem:[#allocation101_spill] sm:$0xff]  ;;  %v9522_v35 = vld [vmem:[#allocation102_spill] sm:$0xff] }
 0x14e   :  { %828 = vmatprep.subr.mxu0 %v9462_v36  ;;  %899 = vmatprep.subr.mxu1 %v9463_v37  ;;  %v9523_v36 = vld [vmem:[#allocation103_spill] sm:$0xff]  ;;  %v9524_v37 = vld [vmem:[#allocation104_spill] sm:$0xff] }
 0x14f   :  { %829 = vmatpush1.msra.mxu0 %v9464_v38  ;;  %900 = vmatpush1.msra.mxu1 %v9465_v39  ;;  %v9525_v38 = vld [vmem:[#allocation105_spill] sm:$0xff]  ;;  %v9526_v39 = vld [vmem:[#allocation106_spill] sm:$0xff] }
 0x150   :  { %830 = vmatprep.subr.mxu0 %v9466_v40  ;;  %901 = vmatprep.subr.mxu1 %v9467_v41  ;;  %v9527_v40 = vld [vmem:[#allocation107_spill] sm:$0xff]  ;;  %v9528_v41 = vld [vmem:[#allocation108_spill] sm:$0xff] }
 0x151   :  { %831 = vmatpush1.msra.mxu0 %v9468_v42  ;;  %902 = vmatpush1.msra.mxu1 %v9469_v43  ;;  %v9529_v42 = vld [vmem:[#allocation109_spill] sm:$0xff]  ;;  %v9530_v43 = vld [vmem:[#allocation110_spill] sm:$0xff] }
 0x152   :  { %832 = vmatprep.subr.mxu0 %v9470_v44  ;;  %903 = vmatprep.subr.mxu1 %v9471_v45  ;;  %v9531_v44 = vld [vmem:[#allocation111_spill] sm:$0xff]  ;;  %v9532_v45 = vld [vmem:[#allocation112_spill] sm:$0xff] }
 0x153   :  { %833 = vmatpush1.msra.mxu0 %v9472_v46  ;;  %904 = vmatpush1.msra.mxu1 %v9473_v47  ;;  %v9533_v46 = vld [vmem:[#allocation113_spill] sm:$0xff]  ;;  %v9534_v47 = vld [vmem:[#allocation114_spill] sm:$0xff] }
 0x154   :  { %834 = vmatprep.subr.mxu0 %v9474_v48  ;;  %905 = vmatprep.subr.mxu1 %v9475_v55  ;;  %v9535_v48 = vld [vmem:[#allocation115_spill] sm:$0xff]  ;;  %v9536_v55 = vld [vmem:[#allocation116_spill] sm:$0xff] }
 0x155   :  { %835 = vmatpush1.msra.mxu0 %v9476_v54  ;;  %906 = vmatpush1.msra.mxu1 %v9477_v53  ;;  %v9537_v54 = vld [vmem:[#allocation117_spill] sm:$0xff]  ;;  %v9538_v53 = vld [vmem:[#allocation118_spill] sm:$0xff] }
 0x156   :  { %836 = vmatprep.subr.mxu0 %v9478_v62  ;;  %907 = vmatprep.subr.mxu1 %v9479_v52  ;;  %v9539_v62 = vld [vmem:[#allocation119_spill] sm:$0xff]  ;;  %v9540_v52 = vld [vmem:[#allocation120_spill] sm:$0xff] }
 0x157   :  { %837 = vmatpush1.msra.mxu0 %v9480_v60  ;;  %908 = vmatpush1.msra.mxu1 %v9481_v63  ;;  %v9541_v60 = vld [vmem:[#allocation121_spill] sm:$0xff]  ;;  %v9542_v63 = vld [vmem:[#allocation122_spill] sm:$0xff] }
 0x158   :  { %838 = vmatprep.subr.mxu0 %v9482_v56  ;;  %909 = vmatprep.subr.mxu1 %v9483_v0  ;;  %v9543_v56 = vld [vmem:[#allocation123_spill] sm:$0xff]  ;;  %v9544_v0 = vld [vmem:[#allocation124_spill] sm:$0xff] }
 0x159   :  { %839 = vmatpush1.msra.mxu0 %v9484_v1  ;;  %910 = vmatpush1.msra.mxu1 %v9485_v61  ;;  %v9545_v1 = vld [vmem:[#allocation125_spill] sm:$0xff]  ;;  %v9546_v61 = vld [vmem:[#allocation126_spill] sm:$0xff] }
 0x15a   :  { %840 = vmatprep.subr.mxu0 %v9486_v57  ;;  %911 = vmatprep.subr.mxu1 %v9487_v51  ;;  %v9547_v57 = vld [vmem:[#allocation127_spill] sm:$0xff]  ;;  %v9548_v51 = vld [vmem:[#allocation128_spill] sm:$0xff] }
 0x15b   :  { %841 = vmatpush1.msra.mxu0 %v9488_v49  ;;  %912 = vmatpush1.msra.mxu1 %v9489_v58  ;;  %v9549_v49 = vld [vmem:[#allocation129_spill] sm:$0xff]  ;;  %v9550_v58 = vld [vmem:[#allocation130_spill] sm:$0xff] }
 0x15c   :  { %842 = vmatprep.subr.mxu0 %v9490_v59  ;;  %913 = vmatprep.subr.mxu1 %v9491_v2  ;;  %v9551_v59 = vld [vmem:[#allocation131_spill] sm:$0xff]  ;;  %v9552_v2 = vld [vmem:[#allocation132_spill] sm:$0xff] }
 0x15d   :  { %843 = vmatpush1.msra.mxu0 %v9492_v3  ;;  %914 = vmatpush1.msra.mxu1 %v9493_v4  ;;  %v9553_v3 = vld [vmem:[#allocation133_spill] sm:$0xff]  ;;  %v9554_v4 = vld [vmem:[#allocation134_spill] sm:$0xff] }
 0x15e   :  { %844 = vmatprep.subr.mxu0 %v9494_v5  ;;  %915 = vmatprep.subr.mxu1 %v9495_v7  ;;  %v9555_v5 = vld [vmem:[#allocation135_spill] sm:$0xff]  ;;  %v9556_v7 = vld [vmem:[#allocation136_spill] sm:$0xff] }
 0x15f   :  { %845 = vmatpush1.msra.mxu0 %v9496_v8  ;;  %916 = vmatpush1.msra.mxu1 %v9497_v9  ;;  %v9557_v8 = vld [vmem:[#allocation137_spill] sm:$0xff]  ;;  %v9558_v9 = vld [vmem:[#allocation138_spill] sm:$0xff] }
 0x160   :  { %846 = vmatprep.subr.mxu0 %v9498_v10  ;;  %917 = vmatprep.subr.mxu1 %v9499_v11  ;;  %v9559_v10 = vld [vmem:[#allocation139_spill] sm:$0xff]  ;;  %v9560_v11 = vld [vmem:[#allocation140_spill] sm:$0xff] }
 0x161   :  { %847 = vmatpush1.msra.mxu0 %v9500_v12  ;;  %918 = vmatpush1.msra.mxu1 %v9501_v13  ;;  %v9561_v12 = vld [vmem:[#allocation141_spill] sm:$0xff]  ;;  %v9562_v13 = vld [vmem:[#allocation142_spill] sm:$0xff] }
 0x162   :  { %848 = vmatprep.subr.mxu0 %v9502_v14  ;;  %919 = vmatprep.subr.mxu1 %v9503_v15  ;;  %v9563_v14 = vld [vmem:[#allocation143_spill] sm:$0xff]  ;;  %v9564_v15 = vld [vmem:[#allocation144_spill] sm:$0xff] }
 0x163   :  { %849 = vmatpush1.msra.mxu0 %v9504_v16  ;;  %920 = vmatpush1.msra.mxu1 %v9505_v17  ;;  %v9565_v16 = vld [vmem:[#allocation145_spill] sm:$0xff]  ;;  %v9566_v17 = vld [vmem:[#allocation146_spill] sm:$0xff] }
 0x164   :  { %850 = vmatprep.subr.mxu0 %v9506_v19  ;;  %921 = vmatprep.subr.mxu1 %v9507_v20  ;;  %v9567_v19 = vld [vmem:[#allocation147_spill] sm:$0xff]  ;;  %v9568_v20 = vld [vmem:[#allocation148_spill] sm:$0xff] }
 0x165   :  { %851 = vmatpush1.msra.mxu0 %v9508_v21  ;;  %922 = vmatpush1.msra.mxu1 %v9509_v22  ;;  %v9569_v21 = vld [vmem:[#allocation149_spill] sm:$0xff]  ;;  %v9570_v22 = vld [vmem:[#allocation150_spill] sm:$0xff] }
 0x166   :  { %852 = vmatprep.subr.mxu0 %v9510_v23  ;;  %923 = vmatprep.subr.mxu1 %v9511_v24  ;;  %v9571_v23 = vld [vmem:[#allocation151_spill] sm:$0xff]  ;;  %v9572_v24 = vld [vmem:[#allocation152_spill] sm:$0xff] }
 0x167   :  { %853 = vmatpush2.msra.mxu0 %v9512_v25  ;;  %924 = vmatpush2.msra.mxu1 %v9513_v26  ;;  %v9573_v25 = vld [vmem:[#allocation153_spill] sm:$0xff] }
 0x168   :  { %854 = vmatprep.subr.mxu0 %v9514_v27  ;;  %925 = vmatprep.subr.mxu1 %v9515_v28  ;;  %v5306_v26 = vld [vmem:[%s8817_s1 + $0x1e8] sm:$0xff]  ;;  %v5312_v27 = vld [vmem:[%s8817_s1 + $0x1f8] sm:$0xff] }
 0x169   :  { %855 = vmatpush2.msra.mxu0 %v9516_v29  ;;  %926 = vmatpush2.msra.mxu1 %v9517_v30  ;;  %v9574_v28 = vld [vmem:[#allocation154_spill] sm:$0xff]  ;;  %v225_v30 = vld [vmem:[%s8819_s3] sm:$0xf] }
 0x16a   :  { %856 = vmatprep.subr.mxu0 %v9518_v31  ;;  %927 = vmatprep.subr.mxu1 %v9519_v32  ;;  %v432_v29 = vsub.s32 0, %v9574_v28  ;;  %v436_v31 = vsub.s32 1, %v9574_v28 }
 0x16b   :  { %857 = vmatpush2.msra.mxu0 %v9520_v33  ;;  %928 = vmatpush2.msra.mxu1 %v9521_v34 }
 0x16c   :  { %858 = vmatprep.subr.mxu0 %v9522_v35  ;;  %929 = vmatprep.subr.mxu1 %v9523_v36  ;;  %v5320_v32 = vrot.slane %v225_v30, %v432_v29  ;;  %v5322_v33 = vrot.slane %v225_v30, %v436_v31 }
 0x16d   :  { %859 = vmatpush2.msra.mxu0 %v9524_v37  ;;  %930 = vmatpush2.msra.mxu1 %v9525_v38 }
 0x16e   :  { %860 = vmatprep.subr.mxu0 %v9526_v39  ;;  %931 = vmatprep.subr.mxu1 %v9527_v40  ;;  %9575 = vst [vmem:[#allocation10_spill] sm:$0xff] %v5320_v32  ;;  %9576 = vst [vmem:[#allocation11_spill] sm:$0xff] %v5322_v33  ;;  %v444_v39 = vsub.s32 3, %v9574_v28 }
 0x16f   :  { %861 = vmatpush2.msra.mxu0 %v9528_v41  ;;  %932 = vmatpush2.msra.mxu1 %v9529_v42 }
 0x170   :  { %862 = vmatprep.subr.mxu0 %v9530_v43  ;;  %933 = vmatprep.subr.mxu1 %v9531_v44  ;;  %v5327_v42 = vrot.slane %v225_v30, %v444_v39  ;;  %v440_v44 = vsub.s32 2, %v9574_v28 }
 0x171   :  { %863 = vmatpush2.msra.mxu0 %v9532_v45  ;;  %934 = vmatpush2.msra.mxu1 %v9533_v46 }
 0x172   :  { %864 = vmatprep.subr.mxu0 %v9534_v47  ;;  %935 = vmatprep.subr.mxu1 %v9535_v48  ;;  %9577 = vst [vmem:[#allocation12_spill] sm:$0xff] %v5327_v42  ;;  %v5331_v46 = vrot.slane %v225_v30, %v440_v44  ;;  %v5381_v44 = vld [vmem:[%s8817_s1 + $0x1c0] sm:$0xff] }
 0x173   :  { %865 = vmatpush2.msra.mxu0 %v9536_v55  ;;  %936 = vmatpush2.msra.mxu1 %v9537_v54 }
 0x174   :  { %866 = vmatprep.subr.mxu0 %v9538_v53  ;;  %937 = vmatprep.subr.mxu1 %v9539_v62 }
 0x175   :  { %867 = vmatpush2.msra.mxu0 %v9540_v52  ;;  %938 = vmatpush2.msra.mxu1 %v9541_v60 }
 0x176   :  { %868 = vmatprep.subr.mxu0 %v9542_v63  ;;  %939 = vmatprep.subr.mxu1 %v9543_v56 }
 0x177   :  { %869 = vmatpush2.msra.mxu0 %v9544_v0  ;;  %940 = vmatpush2.msra.mxu1 %v9545_v1  ;;  %v427_v0 = vld [vmem:[#allocation5] sm:$0x3] }
 0x178   :  { %870 = vmatprep.subr.mxu0 %v9546_v61  ;;  %941 = vmatprep.subr.mxu1 %v9547_v57 }
 0x179   :  { %871 = vmatpush2.msra.mxu0 %v9548_v51  ;;  %942 = vmatpush2.msra.mxu1 %v9549_v49 }
 0x17a   :  { %872 = vmatprep.subr.mxu0 %v9550_v58  ;;  %943 = vmatprep.subr.mxu1 %v9551_v59 }
 0x17b   :  { %873 = vmatpush2.msra.mxu0 %v9552_v2  ;;  %944 = vmatpush2.msra.mxu1 %v9553_v3 }
 0x17c   :  { %874 = vmatprep.subr.mxu0 %v9554_v4  ;;  %945 = vmatprep.subr.mxu1 %v9555_v5 }
 0x17d   :  { %875 = vmatpush2.msra.mxu0 %v9556_v7  ;;  %946 = vmatpush2.msra.mxu1 %v9557_v8  ;;  %v2968_v7 = vld [vmem:[%s8816_s0 + $0x8] sm:$0xff] }
 0x17e   :  { %876 = vmatprep.subr.mxu0 %v9558_v9  ;;  %947 = vmatprep.subr.mxu1 %v9559_v10 }
 0x17f   :  { %877 = vmatpush2.msra.mxu0 %v9560_v11  ;;  %948 = vmatpush2.msra.mxu1 %v9561_v12 }
 0x180   :  { %878 = vmatprep.subr.mxu0 %v9562_v13  ;;  %949 = vmatprep.subr.mxu1 %v9563_v14 }
 0x181   :  { %879 = vmatpush2.msra.mxu0 %v9564_v15  ;;  %950 = vmatpush2.msra.mxu1 %v9565_v16 }
 0x182   :  { %880 = vmatprep.subr.mxu0 %v9566_v17  ;;  %951 = vmatprep.subr.mxu1 %v9567_v19 }
 0x183   :  { %881 = vmatpush2.msra.mxu0 %v9568_v20  ;;  %952 = vmatpush2.msra.mxu1 %v9569_v21 }
 0x184   :  { %882 = vmatprep.subr.mxu0 %v9570_v22  ;;  %953 = vmatprep.subr.mxu1 %v9571_v23 }
 0x185   :  { %883 = vmatpush2.msra.mxu0 %v9572_v24  ;;  %954 = vmatpush2.msra.mxu1 %v9573_v25 }
 0x186   :  { %964 = vmatprep.subr.mxu0 %v5306_v26  ;;  %1035 = vmatprep.subr.mxu1 %v5312_v27 }
 0x1e4   :  { %v516_v34 = vpop.f32.mrf.mxu0  ;;  %v587_v40 = vpop.f32.mrf.mxu1 }
 0x1e5   :  { %v517_v35 = vadd.f32 %v516_v34, %v5320_v32  ;;  %v588_v55 = vadd.f32 %v587_v40, %v5331_v46  ;;  %v5357_v40 = vld [vmem:[%s8817_s1 + $0x1e0] sm:$0xff] }
 0x1e6   :  { %v518_v36 = vpop.f32.mrf.mxu0  ;;  %v589_v43 = vpop.f32.mrf.mxu1 }
 0x1e7   :  { %v2969_v37 = vmul.f32 -1.442695, %v517_v35  ;;  %v519_v38 = vadd.f32 %v518_v36, %v5322_v33  ;;  %v590_v45 = vadd.f32 %v589_v43, %v5327_v42  ;;  %v5375_v43 = vld [vmem:[%s8817_s1 + $0x1d8] sm:$0xff] }
 0x1e9   :  { %3086 = vpow2.f32 %v2969_v37  ;;  %v2970_v41 = vmul.f32 -1.442695, %v519_v38  ;;  %v2971_v47 = vmul.f32 -1.442695, %v590_v45  ;;  %v5387_v45 = vld [vmem:[%s8817_s1 + $0x1d0] sm:$0xff] }
 0x1eb   :  { %3088 = vpow2.f32 %v2970_v41  ;;  %v5369_v41 = vld [vmem:[%s8817_s1 + $0x1c8] sm:$0xff] }
 0x1ec   :  { %3090 = vpow2.f32 %v2971_v47  ;;  %v5393_v47 = vld [vmem:[%s8817_s1 + $0x1a8] sm:$0xff] }
 0x1f6   :  { %v3087_v48 = vpop.eup %3086 }
 0x1f7   :  { %v762_v54 = vadd.f32 1.0, %v3087_v48  ;;  %v5399_v48 = vld [vmem:[%s8817_s1 + $0x1b8] sm:$0xff] }
 0x1f8   :  { %v3089_v53 = vpop.eup %3088 }
 0x1f9   :  { %3092 = vrcp.f32 %v762_v54  ;;  %v768_v62 = vadd.f32 1.0, %v3089_v53  ;;  %v3091_v52 = vpop.eup %3090  ;;  %v5411_v54 = vld [vmem:[%s8817_s1 + $0x1b0] sm:$0xff]  ;;  %v5417_v53 = vld [vmem:[%s8817_s1 + $0x188] sm:$0xff] }
 0x1fa   :  { %3094 = vtanh.f32 %v588_v55  ;;  %v775_v49 = vadd.f32 1.0, %v3091_v52  ;;  %v5405_v55 = vld [vmem:[%s8817_s1 + $0x1a0] sm:$0xff] }
 0x1fb   :  { %3096 = vrcp.f32 %v768_v62  ;;  %v5423_v62 = vld [vmem:[%s8817_s1 + $0x198] sm:$0xff]  ;;  %v5429_v52 = vld [vmem:[%s8817_s1 + $0x180] sm:$0xff] }
 0x1fc   :  { %3098 = vrcp.f32 %v775_v49  ;;  %v5483_v49 = vld [vmem:[%s8817_s1 + $0x150] sm:$0xff] }
 0x205   :  { %v660_v60 = vpop.f32.mrf.mxu0  ;;  %v731_v63 = vpop.f32.mrf.mxu1 }
 0x206   :  { %v3093_v56 = vpop.eup %3092 }
 0x207   :  { %v3095_v1 = vpop.eup %3094  ;;  %v662_v61 = vpop.f32.mrf.mxu0 }
 0x208   :  { %v733_v57 = vpop.f32.mrf.mxu1  ;;  %v3097_v51 = vpop.eup %3096  ;;  %v740_v58 = vcombine.low %v660_v60, %v662_v61  ;;  %v779_v2 = vmul.f32 %v3095_v1, %v3093_v56  ;;  %v5435_v60 = vld [vmem:[%s8817_s1 + $0x190] sm:$0xff]  ;;  %v5447_v56 = vld [vmem:[%s8817_s1 + $0x178] sm:$0xff]  ;;  %v5465_v61 = vld [vmem:[%s8817_s1 + $0x148] sm:$0xff] }
 0x209   :  { %v741_v59 = vcombine.low %v731_v63, %v733_v57  ;;  %v778_v3 = vmul.f32 %v3097_v51, %v427_v0  ;;  %v3099_v14 = vpop.eup %3098  ;;  %v5441_v63 = vld [vmem:[%s8817_s1 + $0x168] sm:$0xff]  ;;  %v5453_v0 = vld [vmem:[%s8817_s1 + $0x160] sm:$0xff]  ;;  %v5459_v1 = vld [vmem:[%s8817_s1 + $0x170] sm:$0xff] }
 0x20a   :  { %v748_v4 = vrot.slane %v740_v58, %v5095_v6  ;;  %v5471_v57 = vld [vmem:[%s8817_s1 + $0x158] sm:$0xff]  ;;  %v5477_v51 = vld [vmem:[%s8817_s1 + $0x140] sm:$0xff]  ;;  %v5489_v58 = vld [vmem:[%s8817_s1 + $0x128] sm:$0xff] }
 0x20b   :  { %v755_v5 = vrot.slane %v741_v59, %v5095_v6  ;;  %v5339_v8 = vadd.f32 %v779_v2, %v778_v3  ;;  %v5495_v59 = vld [vmem:[%s8817_s1 + $0x138] sm:$0xff]  ;;  %v5501_v2 = vld [vmem:[%s8817_s1 + $0x120] sm:$0xff]  ;;  %v5507_v3 = vld [vmem:[%s8817_s1 + $0x130] sm:$0xff] }
 0x20d   :  { %v756_v9 = vcombine.low %v748_v4, %v755_v5  ;;  %3100 = vtanh.f32 %v5339_v8  ;;  %v5513_v4 = vld [vmem:[%s8817_s1 + $0x108] sm:$0xff]  ;;  %v5519_v5 = vld [vmem:[%s8817_s1 + $0x118] sm:$0xff] }
 0x20f   :  { %v758_v10 = vadd.f32 %v2968_v7, %v756_v9  ;;  %v5525_v7 = vld [vmem:[%s8817_s1 + $0x100] sm:$0xff]  ;;  %v5531_v9 = vld [vmem:[%s8817_s1 + $0x110] sm:$0xff] }
 0x211   :  { %v2972_v11 = vmul.f32 -1.442695, %v758_v10  ;;  %v790_v12 = vrot.slane %v758_v10, 2  ;;  %v801_v15 = vrot.slane %v758_v10, 6  ;;  %v798_v21 = vrot.slane %v758_v10, 4  ;;  %v5537_v10 = vld [vmem:[%s8817_s1 + $0xe8] sm:$0xff] }
 0x213   :  { %3102 = vpow2.f32 %v2972_v11  ;;  %v2973_v13 = vmul.f32 -1.442695, %v790_v12  ;;  %v2974_v19 = vmul.f32 -1.442695, %v801_v15  ;;  %v5543_v11 = vld [vmem:[%s8817_s1 + $0xf8] sm:$0xff]  ;;  %v5549_v12 = vld [vmem:[%s8817_s1 + $0xe0] sm:$0xff] }
 0x214   :  { %v5567_v15 = vld [vmem:[%s8817_s1 + $0xd8] sm:$0xff] }
 0x215   :  { %3104 = vpow2.f32 %v2973_v13  ;;  %v5555_v13 = vld [vmem:[%s8817_s1 + $0xf0] sm:$0xff] }
 0x216   :  { %3106 = vpow2.f32 %v2974_v19  ;;  %v5579_v19 = vld [vmem:[%s8817_s1 + $0xd0] sm:$0xff] }
 0x21a   :  { %v3101_v16 = vpop.eup %3100 }
 0x21b   :  { %v5342_v17 = vmul.f32 %v3101_v16, %v3099_v14  ;;  %v5561_v14 = vld [vmem:[%s8817_s1 + $0xc8] sm:$0xff]  ;;  %v5573_v16 = vld [vmem:[%s8817_s1 + $0xc0] sm:$0xff] }
 0x21d   :  { %884 = vmatprep.mubr.f32.mxu0 %v5342_v17  ;;  %955 = vmatprep.mubr.f32.mxu1 %v5342_v17 }
 0x220   :  { %v3103_v20 = vpop.eup %3102 }
 0x221   :  { %v786_v22 = vadd.f32 1.0, %v3103_v20  ;;  %v5585_v20 = vld [vmem:[%s8817_s1 + $0xa8] sm:$0xff] }
 0x222   :  { %v3105_v23 = vpop.eup %3104 }
 0x223   :  { %3108 = vrcp.f32 %v786_v22  ;;  %v795_v24 = vadd.f32 1.0, %v3105_v23  ;;  %v3107_v25 = vpop.eup %3106  ;;  %v5597_v22 = vld [vmem:[%s8817_s1 + $0xa0] sm:$0xff]  ;;  %v5603_v23 = vld [vmem:[%s8817_s1 + $0xb0] sm:$0xff] }
 0x224   :  { %3110 = vtanh.f32 %v798_v21  ;;  %v806_v31 = vadd.f32 1.0, %v3107_v25  ;;  %v5591_v21 = vld [vmem:[%s8817_s1 + $0xb8] sm:$0xff]  ;;  %9578 = vst [vmem:[#allocation13_spill] sm:$0xff] %v5597_v22  ;;  %9579 = vst [vmem:[#allocation14_spill] sm:$0xff] %v5603_v23 }
 0x225   :  { %3112 = vrcp.f32 %v795_v24  ;;  %v5609_v24 = vld [vmem:[%s8817_s1 + $0x88] sm:$0xff]  ;;  %v5615_v25 = vld [vmem:[%s8817_s1 + $0x98] sm:$0xff] }
 0x226   :  { %3114 = vrcp.f32 %v806_v31  ;;  %9580 = vst [vmem:[#allocation15_spill] sm:$0xff] %v5609_v24  ;;  %9581 = vst [vmem:[#allocation16_spill] sm:$0xff] %v5615_v25  ;;  %v5639_v31 = vld [vmem:[%s8817_s1 + $0x78] sm:$0xff] }
 0x227   :  { %9585 = vst [vmem:[#allocation20_spill] sm:$0xff] %v5639_v31 }
 0x230   :  { %v3109_v28 = vpop.eup %3108 }
 0x231   :  { %v3111_v29 = vpop.eup %3110 }
 0x232   :  { %v3113_v30 = vpop.eup %3112  ;;  %v810_v35 = vmul.f32 %v3111_v29, %v3109_v28  ;;  %v5621_v28 = vld [vmem:[%s8817_s1 + $0x80] sm:$0xff]  ;;  %v5627_v29 = vld [vmem:[%s8817_s1 + $0x90] sm:$0xff] }
 0x233   :  { %v809_v34 = vmul.f32 %v3113_v30, %v5102_v50  ;;  %v3115_v37 = vpop.eup %3114  ;;  %v5363_v50 = vld [vmem:[%s8817_s1 + $0x1f0] sm:$0xff]  ;;  %9582 = vst [vmem:[#allocation17_spill] sm:$0xff] %v5621_v28  ;;  %9583 = vst [vmem:[#allocation18_spill] sm:$0xff] %v5627_v29  ;;  %v5633_v30 = vld [vmem:[%s8817_s1 + $0x68] sm:$0xff] }
 0x234   :  { %9584 = vst [vmem:[#allocation19_spill] sm:$0xff] %v5633_v30 }
 0x235   :  { %v5347_v36 = vadd.f32 %v810_v35, %v809_v34  ;;  %v5645_v34 = vld [vmem:[%s8817_s1 + $0x60] sm:$0xff]  ;;  %v5651_v35 = vld [vmem:[%s8817_s1 + $0x70] sm:$0xff] }
 0x236   :  { %9586 = vst [vmem:[#allocation21_spill] sm:$0xff] %v5645_v34  ;;  %9587 = vst [vmem:[#allocation22_spill] sm:$0xff] %v5651_v35 }
 0x237   :  { %3116 = vtanh.f32 %v5347_v36 }
 0x244   :  { %v3117_v38 = vpop.eup %3116 }
 0x245   :  { %v5350_v39 = vmul.f32 %v3117_v38, %v3115_v37  ;;  %v5657_v37 = vld [vmem:[%s8817_s1 + $0x48] sm:$0xff]  ;;  %v5663_v38 = vld [vmem:[%s8817_s1 + $0x58] sm:$0xff] }
 0x246   :  { %9588 = vst [vmem:[#allocation23_spill] sm:$0xff] %v5657_v37  ;;  %9589 = vst [vmem:[#allocation24_spill] sm:$0xff] %v5663_v38 }
 0x247   :  { %885 = vmatmul.mubr.f32.vlgmr.msra.gmra.mxu0 %v5350_v39  ;;  %956 = vmatmul.mubr.f32.vlgmr.msra.gmra.mxu1 %v5350_v39 }
 0x248   :  { %965 = vmatpush1.msra.mxu0 %v5357_v40  ;;  %1036 = vmatpush1.msra.mxu1 %v5363_v50 }
 0x249   :  { %966 = vmatprep.subr.mxu0 %v5369_v41  ;;  %1037 = vmatprep.subr.mxu1 %v5375_v43 }
 0x24a   :  { %967 = vmatpush1.msra.mxu0 %v5381_v44  ;;  %1038 = vmatpush1.msra.mxu1 %v5387_v45 }
 0x24b   :  { %968 = vmatprep.subr.mxu0 %v5393_v47  ;;  %1039 = vmatprep.subr.mxu1 %v5399_v48 }
 0x24c   :  { %969 = vmatpush1.msra.mxu0 %v5405_v55  ;;  %1040 = vmatpush1.msra.mxu1 %v5411_v54 }
 0x24d   :  { %970 = vmatprep.subr.mxu0 %v5417_v53  ;;  %1041 = vmatprep.subr.mxu1 %v5423_v62 }
 0x24e   :  { %971 = vmatpush1.msra.mxu0 %v5429_v52  ;;  %1042 = vmatpush1.msra.mxu1 %v5435_v60 }
 0x24f   :  { %972 = vmatprep.subr.mxu0 %v5441_v63  ;;  %1043 = vmatprep.subr.mxu1 %v5447_v56 }
 0x250   :  { %973 = vmatpush1.msra.mxu0 %v5453_v0  ;;  %1044 = vmatpush1.msra.mxu1 %v5459_v1 }
 0x251   :  { %974 = vmatprep.subr.mxu0 %v5465_v61  ;;  %1045 = vmatprep.subr.mxu1 %v5471_v57 }
 0x252   :  { %975 = vmatpush1.msra.mxu0 %v5477_v51  ;;  %1046 = vmatpush1.msra.mxu1 %v5483_v49 }
 0x253   :  { %976 = vmatprep.subr.mxu0 %v5489_v58  ;;  %1047 = vmatprep.subr.mxu1 %v5495_v59 }
 0x254   :  { %977 = vmatpush1.msra.mxu0 %v5501_v2  ;;  %1048 = vmatpush1.msra.mxu1 %v5507_v3 }
 0x255   :  { %978 = vmatprep.subr.mxu0 %v5513_v4  ;;  %1049 = vmatprep.subr.mxu1 %v5519_v5 }
 0x256   :  { %979 = vmatpush1.msra.mxu0 %v5525_v7  ;;  %1050 = vmatpush1.msra.mxu1 %v5531_v9 }
 0x257   :  { %980 = vmatprep.subr.mxu0 %v5537_v10  ;;  %1051 = vmatprep.subr.mxu1 %v5543_v11 }
 0x258   :  { %981 = vmatpush1.msra.mxu0 %v5549_v12  ;;  %1052 = vmatpush1.msra.mxu1 %v5555_v13 }
 0x259   :  { %982 = vmatprep.subr.mxu0 %v5561_v14  ;;  %1053 = vmatprep.subr.mxu1 %v5567_v15 }
 0x25a   :  { %983 = vmatpush1.msra.mxu0 %v5573_v16  ;;  %1054 = vmatpush1.msra.mxu1 %v5579_v19 }
 0x25b   :  { %984 = vmatprep.subr.mxu0 %v5585_v20  ;;  %1055 = vmatprep.subr.mxu1 %v5591_v21 }
 0x25c   :  { %985 = vmatpush1.msra.mxu0 %v5597_v22  ;;  %1056 = vmatpush1.msra.mxu1 %v5603_v23 }
 0x25d   :  { %986 = vmatprep.subr.mxu0 %v5609_v24  ;;  %1057 = vmatprep.subr.mxu1 %v5615_v25 }
 0x25e   :  { %987 = vmatpush1.msra.mxu0 %v5621_v28  ;;  %1058 = vmatpush1.msra.mxu1 %v5627_v29 }
 0x25f   :  { %988 = vmatprep.subr.mxu0 %v5633_v30  ;;  %1059 = vmatprep.subr.mxu1 %v5639_v31 }
 0x260   :  { %989 = vmatpush1.msra.mxu0 %v5645_v34  ;;  %1060 = vmatpush1.msra.mxu1 %v5651_v35  ;;  %v5669_v34 = vld [vmem:[%s8817_s1 + $0x40] sm:$0xff]  ;;  %v5675_v35 = vld [vmem:[%s8817_s1 + $0x50] sm:$0xff] }
 0x261   :  { %990 = vmatprep.subr.mxu0 %v5657_v37  ;;  %1061 = vmatprep.subr.mxu1 %v5663_v38  ;;  %9590 = vst [vmem:[#allocation25_spill] sm:$0xff] %v5669_v34  ;;  %9591 = vst [vmem:[#allocation26_spill] sm:$0xff] %v5675_v35  ;;  %v5681_v37 = vld [vmem:[%s8817_s1 + $0x28] sm:$0xff]  ;;  %v5687_v38 = vld [vmem:[%s8817_s1 + $0x38] sm:$0xff] }
 0x262   :  { %991 = vmatpush1.msra.mxu0 %v5669_v34  ;;  %1062 = vmatpush1.msra.mxu1 %v5675_v35  ;;  %9592 = vst [vmem:[#allocation27_spill] sm:$0xff] %v5681_v37  ;;  %9593 = vst [vmem:[#allocation28_spill] sm:$0xff] %v5687_v38  ;;  %v5693_v34 = vld [vmem:[%s8817_s1 + $0x20] sm:$0xff]  ;;  %v5699_v35 = vld [vmem:[%s8817_s1 + $0x30] sm:$0xff] }
 0x263   :  { %992 = vmatprep.subr.mxu0 %v5681_v37  ;;  %1063 = vmatprep.subr.mxu1 %v5687_v38  ;;  %9594 = vst [vmem:[#allocation29_spill] sm:$0xff] %v5693_v34  ;;  %9595 = vst [vmem:[#allocation30_spill] sm:$0xff] %v5699_v35  ;;  %v5705_v37 = vld [vmem:[%s8817_s1 + $0x8] sm:$0xff]  ;;  %v5711_v38 = vld [vmem:[%s8817_s1 + $0x18] sm:$0xff] }
 0x264   :  { %993 = vmatpush1.msra.mxu0 %v5693_v34  ;;  %1064 = vmatpush1.msra.mxu1 %v5699_v35  ;;  %9596 = vst [vmem:[#allocation31_spill] sm:$0xff] %v5705_v37  ;;  %9597 = vst [vmem:[#allocation32_spill] sm:$0xff] %v5711_v38  ;;  %v5717_v34 = vld [vmem:[%s8817_s1] sm:$0xff] }
 0x265   :  { %994 = vmatprep.subr.mxu0 %v5705_v37  ;;  %1065 = vmatprep.subr.mxu1 %v5711_v38  ;;  %9598 = vst [vmem:[#allocation33_spill] sm:$0xff] %v5717_v34  ;;  %v5724_v37 = vld [vmem:[%s8817_s1 + $0x10] sm:$0xff]  ;;  %v5733_v38 = vld [vmem:[%s8818_s2 + $0x1e8] sm:$0xff] }
 0x266   :  { %995 = vmatpush1.msra.mxu0 %v5717_v34  ;;  %1028 = vmatprep.mubr.f32.mxu0 %v9444_v18  ;;  %9599 = vst [vmem:[#allocation34_spill] sm:$0xff] %v5724_v37  ;;  %9600 = vst [vmem:[#allocation35_spill] sm:$0xff] %v5733_v38  ;;  %v5739_v34 = vld [vmem:[%s8818_s2 + $0x1f8] sm:$0xff] }
 0x267   :  { %1066 = vmatpush1.msra.mxu1 %v5724_v37  ;;  %1099 = vmatprep.mubr.f32.mxu1 %v9444_v18  ;;  %9601 = vst [vmem:[#allocation36_spill] sm:$0xff] %v5739_v34  ;;  %v5745_v37 = vld [vmem:[%s8818_s2 + $0x1e0] sm:$0xff] }
 0x268   :  { %1029 = vmatmul.mubr.f32.vlgmr.msra.gmra.mxu0 %v5350_v39  ;;  %1100 = vmatmul.mubr.f32.vlgmr.msra.gmra.mxu1 %v5350_v39  ;;  %9602 = vst [vmem:[#allocation37_spill] sm:$0xff] %v5745_v37  ;;  %v5751_v39 = vld [vmem:[%s8818_s2 + $0x1f0] sm:$0xff] }
 0x269   :  { %1191 = vmatprep.subr.mxu0 %v5733_v38  ;;  %1262 = vmatprep.subr.mxu1 %v5739_v34  ;;  %9603 = vst [vmem:[#allocation38_spill] sm:$0xff] %v5751_v39  ;;  %v5757_v38 = vld [vmem:[%s8818_s2 + $0x1c8] sm:$0xff]  ;;  %v5763_v34 = vld [vmem:[%s8818_s2 + $0x1d8] sm:$0xff] }
 0x26a   :  { %1192 = vmatpush1.msra.mxu0 %v5745_v37  ;;  %1263 = vmatpush1.msra.mxu1 %v5751_v39  ;;  %9604 = vst [vmem:[#allocation39_spill] sm:$0xff] %v5757_v38  ;;  %9605 = vst [vmem:[#allocation40_spill] sm:$0xff] %v5763_v34  ;;  %v5769_v37 = vld [vmem:[%s8818_s2 + $0x1c0] sm:$0xff]  ;;  %v5775_v39 = vld [vmem:[%s8818_s2 + $0x1d0] sm:$0xff] }
 0x26b   :  { %1193 = vmatprep.subr.mxu0 %v5757_v38  ;;  %1264 = vmatprep.subr.mxu1 %v5763_v34  ;;  %9606 = vst [vmem:[#allocation41_spill] sm:$0xff] %v5769_v37  ;;  %9607 = vst [vmem:[#allocation42_spill] sm:$0xff] %v5775_v39  ;;  %v5781_v38 = vld [vmem:[%s8818_s2 + $0x1a8] sm:$0xff]  ;;  %v5787_v34 = vld [vmem:[%s8818_s2 + $0x1b8] sm:$0xff] }
 0x26c   :  { %1194 = vmatpush1.msra.mxu0 %v5769_v37  ;;  %1265 = vmatpush1.msra.mxu1 %v5775_v39  ;;  %9608 = vst [vmem:[#allocation43_spill] sm:$0xff] %v5781_v38  ;;  %9609 = vst [vmem:[#allocation44_spill] sm:$0xff] %v5787_v34  ;;  %v5793_v37 = vld [vmem:[%s8818_s2 + $0x1a0] sm:$0xff]  ;;  %v5799_v39 = vld [vmem:[%s8818_s2 + $0x1b0] sm:$0xff] }
 0x26d   :  { %1195 = vmatprep.subr.mxu0 %v5781_v38  ;;  %1266 = vmatprep.subr.mxu1 %v5787_v34  ;;  %9610 = vst [vmem:[#allocation45_spill] sm:$0xff] %v5793_v37  ;;  %9611 = vst [vmem:[#allocation46_spill] sm:$0xff] %v5799_v39  ;;  %v5805_v38 = vld [vmem:[%s8818_s2 + $0x188] sm:$0xff]  ;;  %v5811_v34 = vld [vmem:[%s8818_s2 + $0x198] sm:$0xff] }
 0x26e   :  { %1196 = vmatpush1.msra.mxu0 %v5793_v37  ;;  %1267 = vmatpush1.msra.mxu1 %v5799_v39  ;;  %9612 = vst [vmem:[#allocation47_spill] sm:$0xff] %v5805_v38  ;;  %9613 = vst [vmem:[#allocation48_spill] sm:$0xff] %v5811_v34  ;;  %v5817_v37 = vld [vmem:[%s8818_s2 + $0x180] sm:$0xff]  ;;  %v5823_v39 = vld [vmem:[%s8818_s2 + $0x190] sm:$0xff] }
 0x26f   :  { %1197 = vmatprep.subr.mxu0 %v5805_v38  ;;  %1268 = vmatprep.subr.mxu1 %v5811_v34  ;;  %9614 = vst [vmem:[#allocation49_spill] sm:$0xff] %v5817_v37  ;;  %9615 = vst [vmem:[#allocation50_spill] sm:$0xff] %v5823_v39  ;;  %v5829_v38 = vld [vmem:[%s8818_s2 + $0x168] sm:$0xff]  ;;  %v5835_v34 = vld [vmem:[%s8818_s2 + $0x178] sm:$0xff] }
 0x270   :  { %1198 = vmatpush1.msra.mxu0 %v5817_v37  ;;  %1269 = vmatpush1.msra.mxu1 %v5823_v39  ;;  %9616 = vst [vmem:[#allocation51_spill] sm:$0xff] %v5829_v38  ;;  %9617 = vst [vmem:[#allocation52_spill] sm:$0xff] %v5835_v34  ;;  %v5841_v37 = vld [vmem:[%s8818_s2 + $0x160] sm:$0xff]  ;;  %v5847_v39 = vld [vmem:[%s8818_s2 + $0x170] sm:$0xff] }
 0x271   :  { %1199 = vmatprep.subr.mxu0 %v5829_v38  ;;  %1270 = vmatprep.subr.mxu1 %v5835_v34  ;;  %9618 = vst [vmem:[#allocation53_spill] sm:$0xff] %v5841_v37  ;;  %9619 = vst [vmem:[#allocation54_spill] sm:$0xff] %v5847_v39  ;;  %v5853_v38 = vld [vmem:[%s8818_s2 + $0x148] sm:$0xff]  ;;  %v5859_v34 = vld [vmem:[%s8818_s2 + $0x158] sm:$0xff] }
 0x272   :  { %1200 = vmatpush1.msra.mxu0 %v5841_v37  ;;  %1271 = vmatpush1.msra.mxu1 %v5847_v39  ;;  %9620 = vst [vmem:[#allocation55_spill] sm:$0xff] %v5853_v38  ;;  %9621 = vst [vmem:[#allocation56_spill] sm:$0xff] %v5859_v34  ;;  %v5865_v37 = vld [vmem:[%s8818_s2 + $0x140] sm:$0xff]  ;;  %v5871_v39 = vld [vmem:[%s8818_s2 + $0x150] sm:$0xff] }
 0x273   :  { %1201 = vmatprep.subr.mxu0 %v5853_v38  ;;  %1272 = vmatprep.subr.mxu1 %v5859_v34  ;;  %9622 = vst [vmem:[#allocation57_spill] sm:$0xff] %v5865_v37  ;;  %9623 = vst [vmem:[#allocation58_spill] sm:$0xff] %v5871_v39  ;;  %v5877_v38 = vld [vmem:[%s8818_s2 + $0x128] sm:$0xff]  ;;  %v5883_v34 = vld [vmem:[%s8818_s2 + $0x138] sm:$0xff] }
 0x274   :  { %1202 = vmatpush1.msra.mxu0 %v5865_v37  ;;  %1273 = vmatpush1.msra.mxu1 %v5871_v39  ;;  %9624 = vst [vmem:[#allocation59_spill] sm:$0xff] %v5877_v38  ;;  %9625 = vst [vmem:[#allocation60_spill] sm:$0xff] %v5883_v34  ;;  %v5889_v37 = vld [vmem:[%s8818_s2 + $0x120] sm:$0xff]  ;;  %v5895_v39 = vld [vmem:[%s8818_s2 + $0x130] sm:$0xff] }
 0x275   :  { %1203 = vmatprep.subr.mxu0 %v5877_v38  ;;  %1274 = vmatprep.subr.mxu1 %v5883_v34  ;;  %9626 = vst [vmem:[#allocation61_spill] sm:$0xff] %v5889_v37  ;;  %9627 = vst [vmem:[#allocation62_spill] sm:$0xff] %v5895_v39  ;;  %v5901_v38 = vld [vmem:[%s8818_s2 + $0x108] sm:$0xff]  ;;  %v5907_v34 = vld [vmem:[%s8818_s2 + $0x118] sm:$0xff] }
 0x276   :  { %1204 = vmatpush1.msra.mxu0 %v5889_v37  ;;  %1275 = vmatpush1.msra.mxu1 %v5895_v39  ;;  %9628 = vst [vmem:[#allocation63_spill] sm:$0xff] %v5901_v38  ;;  %9629 = vst [vmem:[#allocation64_spill] sm:$0xff] %v5907_v34  ;;  %v5913_v37 = vld [vmem:[%s8818_s2 + $0x100] sm:$0xff]  ;;  %v5919_v39 = vld [vmem:[%s8818_s2 + $0x110] sm:$0xff] }
 0x277   :  { %1205 = vmatprep.subr.mxu0 %v5901_v38  ;;  %1276 = vmatprep.subr.mxu1 %v5907_v34  ;;  %9630 = vst [vmem:[#allocation65_spill] sm:$0xff] %v5913_v37  ;;  %9631 = vst [vmem:[#allocation66_spill] sm:$0xff] %v5919_v39  ;;  %v5925_v38 = vld [vmem:[%s8818_s2 + $0xe8] sm:$0xff]  ;;  %v5931_v34 = vld [vmem:[%s8818_s2 + $0xf8] sm:$0xff] }
 0x278   :  { %1206 = vmatpush1.msra.mxu0 %v5913_v37  ;;  %1277 = vmatpush1.msra.mxu1 %v5919_v39  ;;  %9632 = vst [vmem:[#allocation67_spill] sm:$0xff] %v5925_v38  ;;  %9633 = vst [vmem:[#allocation68_spill] sm:$0xff] %v5931_v34  ;;  %v5937_v37 = vld [vmem:[%s8818_s2 + $0xe0] sm:$0xff]  ;;  %v5943_v39 = vld [vmem:[%s8818_s2 + $0xf0] sm:$0xff] }
 0x279   :  { %1207 = vmatprep.subr.mxu0 %v5925_v38  ;;  %1278 = vmatprep.subr.mxu1 %v5931_v34  ;;  %9634 = vst [vmem:[#allocation69_spill] sm:$0xff] %v5937_v37  ;;  %9635 = vst [vmem:[#allocation70_spill] sm:$0xff] %v5943_v39  ;;  %v5949_v38 = vld [vmem:[%s8818_s2 + $0xc8] sm:$0xff]  ;;  %v5955_v34 = vld [vmem:[%s8818_s2 + $0xd8] sm:$0xff] }
 0x27a   :  { %1208 = vmatpush1.msra.mxu0 %v5937_v37  ;;  %1279 = vmatpush1.msra.mxu1 %v5943_v39  ;;  %9636 = vst [vmem:[#allocation71_spill] sm:$0xff] %v5949_v38  ;;  %9637 = vst [vmem:[#allocation72_spill] sm:$0xff] %v5955_v34  ;;  %v5961_v37 = vld [vmem:[%s8818_s2 + $0xc0] sm:$0xff]  ;;  %v5967_v39 = vld [vmem:[%s8818_s2 + $0xd0] sm:$0xff] }
 0x27b   :  { %1209 = vmatprep.subr.mxu0 %v5949_v38  ;;  %1280 = vmatprep.subr.mxu1 %v5955_v34  ;;  %9638 = vst [vmem:[#allocation73_spill] sm:$0xff] %v5961_v37  ;;  %9639 = vst [vmem:[#allocation74_spill] sm:$0xff] %v5967_v39  ;;  %v5973_v38 = vld [vmem:[%s8818_s2 + $0xa8] sm:$0xff]  ;;  %v5979_v34 = vld [vmem:[%s8818_s2 + $0xb8] sm:$0xff] }
 0x27c   :  { %1210 = vmatpush1.msra.mxu0 %v5961_v37  ;;  %1281 = vmatpush1.msra.mxu1 %v5967_v39  ;;  %9640 = vst [vmem:[#allocation75_spill] sm:$0xff] %v5973_v38  ;;  %9641 = vst [vmem:[#allocation76_spill] sm:$0xff] %v5979_v34  ;;  %v5985_v37 = vld [vmem:[%s8818_s2 + $0xa0] sm:$0xff]  ;;  %v5991_v39 = vld [vmem:[%s8818_s2 + $0xb0] sm:$0xff] }
 0x27d   :  { %1211 = vmatprep.subr.mxu0 %v5973_v38  ;;  %1282 = vmatprep.subr.mxu1 %v5979_v34  ;;  %9642 = vst [vmem:[#allocation77_spill] sm:$0xff] %v5985_v37  ;;  %9643 = vst [vmem:[#allocation78_spill] sm:$0xff] %v5991_v39  ;;  %v5997_v38 = vld [vmem:[%s8818_s2 + $0x88] sm:$0xff]  ;;  %v6003_v34 = vld [vmem:[%s8818_s2 + $0x98] sm:$0xff] }
 0x27e   :  { %1212 = vmatpush1.msra.mxu0 %v5985_v37  ;;  %1283 = vmatpush1.msra.mxu1 %v5991_v39  ;;  %9644 = vst [vmem:[#allocation79_spill] sm:$0xff] %v5997_v38  ;;  %9645 = vst [vmem:[#allocation80_spill] sm:$0xff] %v6003_v34  ;;  %v6009_v37 = vld [vmem:[%s8818_s2 + $0x80] sm:$0xff]  ;;  %v6015_v39 = vld [vmem:[%s8818_s2 + $0x90] sm:$0xff] }
 0x27f   :  { %1213 = vmatprep.subr.mxu0 %v5997_v38  ;;  %1284 = vmatprep.subr.mxu1 %v6003_v34  ;;  %9646 = vst [vmem:[#allocation81_spill] sm:$0xff] %v6009_v37  ;;  %9647 = vst [vmem:[#allocation82_spill] sm:$0xff] %v6015_v39  ;;  %v6021_v38 = vld [vmem:[%s8818_s2 + $0x68] sm:$0xff]  ;;  %v6027_v34 = vld [vmem:[%s8818_s2 + $0x78] sm:$0xff] }
 0x280   :  { %1214 = vmatpush1.msra.mxu0 %v6009_v37  ;;  %1285 = vmatpush1.msra.mxu1 %v6015_v39  ;;  %9648 = vst [vmem:[#allocation83_spill] sm:$0xff] %v6021_v38  ;;  %9649 = vst [vmem:[#allocation84_spill] sm:$0xff] %v6027_v34  ;;  %v6033_v37 = vld [vmem:[%s8818_s2 + $0x60] sm:$0xff]  ;;  %v6039_v39 = vld [vmem:[%s8818_s2 + $0x70] sm:$0xff] }
 0x281   :  { %1215 = vmatprep.subr.mxu0 %v6021_v38  ;;  %1286 = vmatprep.subr.mxu1 %v6027_v34  ;;  %9650 = vst [vmem:[#allocation85_spill] sm:$0xff] %v6033_v37  ;;  %9651 = vst [vmem:[#allocation86_spill] sm:$0xff] %v6039_v39  ;;  %v6045_v38 = vld [vmem:[%s8818_s2 + $0x48] sm:$0xff]  ;;  %v6051_v34 = vld [vmem:[%s8818_s2 + $0x58] sm:$0xff] }
 0x282   :  { %1216 = vmatpush1.msra.mxu0 %v6033_v37  ;;  %1287 = vmatpush1.msra.mxu1 %v6039_v39  ;;  %9652 = vst [vmem:[#allocation87_spill] sm:$0xff] %v6045_v38  ;;  %9653 = vst [vmem:[#allocation88_spill] sm:$0xff] %v6051_v34  ;;  %v6057_v37 = vld [vmem:[%s8818_s2 + $0x40] sm:$0xff]  ;;  %v6063_v39 = vld [vmem:[%s8818_s2 + $0x50] sm:$0xff] }
 0x283   :  { %1217 = vmatprep.subr.mxu0 %v6045_v38  ;;  %1288 = vmatprep.subr.mxu1 %v6051_v34  ;;  %9654 = vst [vmem:[#allocation89_spill] sm:$0xff] %v6057_v37  ;;  %9655 = vst [vmem:[#allocation90_spill] sm:$0xff] %v6063_v39  ;;  %v6069_v38 = vld [vmem:[%s8818_s2 + $0x28] sm:$0xff]  ;;  %v6075_v34 = vld [vmem:[%s8818_s2 + $0x38] sm:$0xff] }
 0x284   :  { %1218 = vmatpush1.msra.mxu0 %v6057_v37  ;;  %1289 = vmatpush1.msra.mxu1 %v6063_v39  ;;  %9656 = vst [vmem:[#allocation91_spill] sm:$0xff] %v6069_v38  ;;  %9657 = vst [vmem:[#allocation92_spill] sm:$0xff] %v6075_v34  ;;  %v6081_v37 = vld [vmem:[%s8818_s2 + $0x20] sm:$0xff]  ;;  %v6087_v39 = vld [vmem:[%s8818_s2 + $0x30] sm:$0xff] }
 0x285   :  { %1219 = vmatprep.subr.mxu0 %v6069_v38  ;;  %1290 = vmatprep.subr.mxu1 %v6075_v34  ;;  %9658 = vst [vmem:[#allocation93_spill] sm:$0xff] %v6081_v37  ;;  %9659 = vst [vmem:[#allocation94_spill] sm:$0xff] %v6087_v39  ;;  %v6093_v38 = vld [vmem:[%s8818_s2 + $0x8] sm:$0xff]  ;;  %v6099_v34 = vld [vmem:[%s8818_s2 + $0x18] sm:$0xff] }
 0x286   :  { %1220 = vmatpush1.msra.mxu0 %v6081_v37  ;;  %1291 = vmatpush1.msra.mxu1 %v6087_v39  ;;  %9660 = vst [vmem:[#allocation95_spill] sm:$0xff] %v6093_v38  ;;  %9661 = vst [vmem:[#allocation96_spill] sm:$0xff] %v6099_v34  ;;  %v6105_v37 = vld [vmem:[%s8818_s2] sm:$0xff]  ;;  %v6111_v39 = vld [vmem:[%s8818_s2 + $0x10] sm:$0xff] }
 0x287   :  { %1221 = vmatprep.subr.mxu0 %v6093_v38  ;;  %1292 = vmatprep.subr.mxu1 %v6099_v34  ;;  %9662 = vst [vmem:[#allocation97_spill] sm:$0xff] %v6105_v37  ;;  %9663 = vst [vmem:[#allocation98_spill] sm:$0xff] %v6111_v39  ;;  %v6117_v38 = vld [vmem:[%s8818_s2 + $0x3e8] sm:$0xff]  ;;  %v6123_v34 = vld [vmem:[%s8818_s2 + $0x3f8] sm:$0xff] }
 0x288   :  { %1222 = vmatpush1.msra.mxu0 %v6105_v37  ;;  %1293 = vmatpush1.msra.mxu1 %v6111_v39  ;;  %9664 = vst [vmem:[#allocation99_spill] sm:$0xff] %v6117_v38  ;;  %9665 = vst [vmem:[#allocation100_spill] sm:$0xff] %v6123_v34  ;;  %v6129_v37 = vld [vmem:[%s8818_s2 + $0x3e0] sm:$0xff]  ;;  %v6135_v39 = vld [vmem:[%s8818_s2 + $0x3f0] sm:$0xff] }
 0x289   :  { %1223 = vmatprep.subr.mxu0 %v6117_v38  ;;  %1294 = vmatprep.subr.mxu1 %v6123_v34  ;;  %9666 = vst [vmem:[#allocation101_spill] sm:$0xff] %v6129_v37  ;;  %9667 = vst [vmem:[#allocation102_spill] sm:$0xff] %v6135_v39  ;;  %v6141_v38 = vld [vmem:[%s8818_s2 + $0x3c8] sm:$0xff]  ;;  %v6147_v34 = vld [vmem:[%s8818_s2 + $0x3d8] sm:$0xff] }
 0x28a   :  { %1224 = vmatpush2.msra.mxu0 %v6129_v37  ;;  %1295 = vmatpush2.msra.mxu1 %v6135_v39  ;;  %9668 = vst [vmem:[#allocation103_spill] sm:$0xff] %v6141_v38  ;;  %9669 = vst [vmem:[#allocation104_spill] sm:$0xff] %v6147_v34  ;;  %v6153_v37 = vld [vmem:[%s8818_s2 + $0x3c0] sm:$0xff]  ;;  %v6159_v39 = vld [vmem:[%s8818_s2 + $0x3d0] sm:$0xff] }
 0x28b   :  { %1225 = vmatprep.subr.mxu0 %v6141_v38  ;;  %1296 = vmatprep.subr.mxu1 %v6147_v34  ;;  %9670 = vst [vmem:[#allocation105_spill] sm:$0xff] %v6153_v37  ;;  %9671 = vst [vmem:[#allocation106_spill] sm:$0xff] %v6159_v39  ;;  %v6165_v38 = vld [vmem:[%s8818_s2 + $0x3a8] sm:$0xff]  ;;  %v6171_v34 = vld [vmem:[%s8818_s2 + $0x3b8] sm:$0xff] }
 0x28c   :  { %1226 = vmatpush2.msra.mxu0 %v6153_v37  ;;  %1297 = vmatpush2.msra.mxu1 %v6159_v39  ;;  %9672 = vst [vmem:[#allocation107_spill] sm:$0xff] %v6165_v38  ;;  %9673 = vst [vmem:[#allocation108_spill] sm:$0xff] %v6171_v34  ;;  %v6177_v37 = vld [vmem:[%s8818_s2 + $0x3a0] sm:$0xff]  ;;  %v6183_v39 = vld [vmem:[%s8818_s2 + $0x3b0] sm:$0xff] }
 0x28d   :  { %1227 = vmatprep.subr.mxu0 %v6165_v38  ;;  %1298 = vmatprep.subr.mxu1 %v6171_v34  ;;  %9674 = vst [vmem:[#allocation109_spill] sm:$0xff] %v6177_v37  ;;  %9675 = vst [vmem:[#allocation110_spill] sm:$0xff] %v6183_v39  ;;  %v6189_v38 = vld [vmem:[%s8818_s2 + $0x388] sm:$0xff]  ;;  %v6195_v34 = vld [vmem:[%s8818_s2 + $0x398] sm:$0xff] }
 0x28e   :  { %1228 = vmatpush2.msra.mxu0 %v6177_v37  ;;  %1299 = vmatpush2.msra.mxu1 %v6183_v39  ;;  %9676 = vst [vmem:[#allocation111_spill] sm:$0xff] %v6189_v38  ;;  %9677 = vst [vmem:[#allocation112_spill] sm:$0xff] %v6195_v34  ;;  %v6201_v37 = vld [vmem:[%s8818_s2 + $0x380] sm:$0xff]  ;;  %v6207_v39 = vld [vmem:[%s8818_s2 + $0x390] sm:$0xff] }
 0x28f   :  { %1229 = vmatprep.subr.mxu0 %v6189_v38  ;;  %1300 = vmatprep.subr.mxu1 %v6195_v34  ;;  %9678 = vst [vmem:[#allocation113_spill] sm:$0xff] %v6201_v37  ;;  %9679 = vst [vmem:[#allocation114_spill] sm:$0xff] %v6207_v39  ;;  %v6213_v38 = vld [vmem:[%s8818_s2 + $0x368] sm:$0xff]  ;;  %v6219_v34 = vld [vmem:[%s8818_s2 + $0x378] sm:$0xff] }
 0x290   :  { %1230 = vmatpush2.msra.mxu0 %v6201_v37  ;;  %1301 = vmatpush2.msra.mxu1 %v6207_v39  ;;  %9680 = vst [vmem:[#allocation115_spill] sm:$0xff] %v6213_v38  ;;  %9681 = vst [vmem:[#allocation116_spill] sm:$0xff] %v6219_v34  ;;  %v6225_v37 = vld [vmem:[%s8818_s2 + $0x360] sm:$0xff]  ;;  %v6231_v39 = vld [vmem:[%s8818_s2 + $0x370] sm:$0xff] }
 0x291   :  { %1231 = vmatprep.subr.mxu0 %v6213_v38  ;;  %1302 = vmatprep.subr.mxu1 %v6219_v34  ;;  %9682 = vst [vmem:[#allocation117_spill] sm:$0xff] %v6225_v37  ;;  %9683 = vst [vmem:[#allocation118_spill] sm:$0xff] %v6231_v39  ;;  %v6237_v38 = vld [vmem:[%s8818_s2 + $0x348] sm:$0xff]  ;;  %v6243_v34 = vld [vmem:[%s8818_s2 + $0x358] sm:$0xff] }
 0x292   :  { %1232 = vmatpush2.msra.mxu0 %v6225_v37  ;;  %1303 = vmatpush2.msra.mxu1 %v6231_v39  ;;  %9684 = vst [vmem:[#allocation119_spill] sm:$0xff] %v6237_v38  ;;  %9685 = vst [vmem:[#allocation120_spill] sm:$0xff] %v6243_v34  ;;  %v6249_v37 = vld [vmem:[%s8818_s2 + $0x340] sm:$0xff]  ;;  %v6255_v39 = vld [vmem:[%s8818_s2 + $0x350] sm:$0xff] }
 0x293   :  { %1233 = vmatprep.subr.mxu0 %v6237_v38  ;;  %1304 = vmatprep.subr.mxu1 %v6243_v34  ;;  %9686 = vst [vmem:[#allocation121_spill] sm:$0xff] %v6249_v37  ;;  %9687 = vst [vmem:[#allocation122_spill] sm:$0xff] %v6255_v39  ;;  %v6261_v38 = vld [vmem:[%s8818_s2 + $0x328] sm:$0xff]  ;;  %v6267_v34 = vld [vmem:[%s8818_s2 + $0x338] sm:$0xff] }
 0x294   :  { %1234 = vmatpush2.msra.mxu0 %v6249_v37  ;;  %1305 = vmatpush2.msra.mxu1 %v6255_v39  ;;  %9688 = vst [vmem:[#allocation123_spill] sm:$0xff] %v6261_v38  ;;  %9689 = vst [vmem:[#allocation124_spill] sm:$0xff] %v6267_v34  ;;  %v6273_v37 = vld [vmem:[%s8818_s2 + $0x320] sm:$0xff]  ;;  %v6279_v39 = vld [vmem:[%s8818_s2 + $0x330] sm:$0xff] }
 0x295   :  { %1235 = vmatprep.subr.mxu0 %v6261_v38  ;;  %1306 = vmatprep.subr.mxu1 %v6267_v34  ;;  %9690 = vst [vmem:[#allocation125_spill] sm:$0xff] %v6273_v37  ;;  %9691 = vst [vmem:[#allocation126_spill] sm:$0xff] %v6279_v39  ;;  %v6285_v38 = vld [vmem:[%s8818_s2 + $0x308] sm:$0xff]  ;;  %v6291_v34 = vld [vmem:[%s8818_s2 + $0x318] sm:$0xff] }
 0x296   :  { %1236 = vmatpush2.msra.mxu0 %v6273_v37  ;;  %1307 = vmatpush2.msra.mxu1 %v6279_v39  ;;  %9692 = vst [vmem:[#allocation127_spill] sm:$0xff] %v6285_v38  ;;  %9693 = vst [vmem:[#allocation128_spill] sm:$0xff] %v6291_v34  ;;  %v6297_v37 = vld [vmem:[%s8818_s2 + $0x300] sm:$0xff]  ;;  %v6303_v39 = vld [vmem:[%s8818_s2 + $0x310] sm:$0xff] }
 0x297   :  { %1237 = vmatprep.subr.mxu0 %v6285_v38  ;;  %1308 = vmatprep.subr.mxu1 %v6291_v34  ;;  %9694 = vst [vmem:[#allocation129_spill] sm:$0xff] %v6297_v37  ;;  %9695 = vst [vmem:[#allocation130_spill] sm:$0xff] %v6303_v39  ;;  %v6309_v38 = vld [vmem:[%s8818_s2 + $0x2e8] sm:$0xff]  ;;  %v6315_v34 = vld [vmem:[%s8818_s2 + $0x2f8] sm:$0xff] }
 0x298   :  { %1238 = vmatpush2.msra.mxu0 %v6297_v37  ;;  %1309 = vmatpush2.msra.mxu1 %v6303_v39  ;;  %9696 = vst [vmem:[#allocation131_spill] sm:$0xff] %v6309_v38  ;;  %9697 = vst [vmem:[#allocation132_spill] sm:$0xff] %v6315_v34  ;;  %v6321_v37 = vld [vmem:[%s8818_s2 + $0x2e0] sm:$0xff]  ;;  %v6327_v39 = vld [vmem:[%s8818_s2 + $0x2f0] sm:$0xff] }
 0x299   :  { %1239 = vmatprep.subr.mxu0 %v6309_v38  ;;  %1310 = vmatprep.subr.mxu1 %v6315_v34  ;;  %9698 = vst [vmem:[#allocation133_spill] sm:$0xff] %v6321_v37  ;;  %9699 = vst [vmem:[#allocation134_spill] sm:$0xff] %v6327_v39  ;;  %v6333_v38 = vld [vmem:[%s8818_s2 + $0x2c8] sm:$0xff]  ;;  %v6339_v34 = vld [vmem:[%s8818_s2 + $0x2d8] sm:$0xff] }
 0x29a   :  { %1240 = vmatpush2.msra.mxu0 %v6321_v37  ;;  %1311 = vmatpush2.msra.mxu1 %v6327_v39  ;;  %9700 = vst [vmem:[#allocation135_spill] sm:$0xff] %v6333_v38  ;;  %9701 = vst [vmem:[#allocation136_spill] sm:$0xff] %v6339_v34  ;;  %v6345_v37 = vld [vmem:[%s8818_s2 + $0x2c0] sm:$0xff]  ;;  %v6351_v39 = vld [vmem:[%s8818_s2 + $0x2d0] sm:$0xff] }
 0x29b   :  { %1241 = vmatprep.subr.mxu0 %v6333_v38  ;;  %1312 = vmatprep.subr.mxu1 %v6339_v34  ;;  %9702 = vst [vmem:[#allocation137_spill] sm:$0xff] %v6345_v37  ;;  %9703 = vst [vmem:[#allocation138_spill] sm:$0xff] %v6351_v39  ;;  %v6357_v38 = vld [vmem:[%s8818_s2 + $0x2a8] sm:$0xff]  ;;  %v6363_v34 = vld [vmem:[%s8818_s2 + $0x2b8] sm:$0xff] }
 0x29c   :  { %1242 = vmatpush2.msra.mxu0 %v6345_v37  ;;  %1313 = vmatpush2.msra.mxu1 %v6351_v39  ;;  %9704 = vst [vmem:[#allocation139_spill] sm:$0xff] %v6357_v38  ;;  %9705 = vst [vmem:[#allocation140_spill] sm:$0xff] %v6363_v34  ;;  %v6369_v37 = vld [vmem:[%s8818_s2 + $0x2a0] sm:$0xff]  ;;  %v6375_v39 = vld [vmem:[%s8818_s2 + $0x2b0] sm:$0xff] }
 0x29d   :  { %1243 = vmatprep.subr.mxu0 %v6357_v38  ;;  %1314 = vmatprep.subr.mxu1 %v6363_v34  ;;  %9706 = vst [vmem:[#allocation141_spill] sm:$0xff] %v6369_v37  ;;  %9707 = vst [vmem:[#allocation142_spill] sm:$0xff] %v6375_v39  ;;  %v6381_v38 = vld [vmem:[%s8818_s2 + $0x288] sm:$0xff]  ;;  %v6387_v34 = vld [vmem:[%s8818_s2 + $0x298] sm:$0xff] }
 0x29e   :  { %1244 = vmatpush2.msra.mxu0 %v6369_v37  ;;  %1315 = vmatpush2.msra.mxu1 %v6375_v39  ;;  %9708 = vst [vmem:[#allocation143_spill] sm:$0xff] %v6381_v38  ;;  %9709 = vst [vmem:[#allocation144_spill] sm:$0xff] %v6387_v34  ;;  %v6393_v37 = vld [vmem:[%s8818_s2 + $0x280] sm:$0xff]  ;;  %v6399_v39 = vld [vmem:[%s8818_s2 + $0x290] sm:$0xff] }
 0x29f   :  { %1245 = vmatprep.subr.mxu0 %v6381_v38  ;;  %1316 = vmatprep.subr.mxu1 %v6387_v34  ;;  %9710 = vst [vmem:[#allocation145_spill] sm:$0xff] %v6393_v37  ;;  %9711 = vst [vmem:[#allocation146_spill] sm:$0xff] %v6399_v39  ;;  %v6405_v38 = vld [vmem:[%s8818_s2 + $0x268] sm:$0xff]  ;;  %v6411_v34 = vld [vmem:[%s8818_s2 + $0x278] sm:$0xff] }
 0x2a0   :  { %1246 = vmatpush2.msra.mxu0 %v6393_v37  ;;  %1317 = vmatpush2.msra.mxu1 %v6399_v39  ;;  %9712 = vst [vmem:[#allocation147_spill] sm:$0xff] %v6405_v38  ;;  %9713 = vst [vmem:[#allocation148_spill] sm:$0xff] %v6411_v34  ;;  %v6417_v37 = vld [vmem:[%s8818_s2 + $0x260] sm:$0xff]  ;;  %v6423_v39 = vld [vmem:[%s8818_s2 + $0x270] sm:$0xff] }
 0x2a1   :  { %1247 = vmatprep.subr.mxu0 %v6405_v38  ;;  %1318 = vmatprep.subr.mxu1 %v6411_v34  ;;  %9714 = vst [vmem:[#allocation149_spill] sm:$0xff] %v6417_v37  ;;  %9715 = vst [vmem:[#allocation150_spill] sm:$0xff] %v6423_v39  ;;  %v6429_v38 = vld [vmem:[%s8818_s2 + $0x248] sm:$0xff]  ;;  %v6435_v34 = vld [vmem:[%s8818_s2 + $0x258] sm:$0xff] }
 0x2a2   :  { %1248 = vmatpush2.msra.mxu0 %v6417_v37  ;;  %1319 = vmatpush2.msra.mxu1 %v6423_v39  ;;  %9716 = vst [vmem:[#allocation151_spill] sm:$0xff] %v6429_v38  ;;  %9717 = vst [vmem:[#allocation152_spill] sm:$0xff] %v6435_v34  ;;  %v6441_v37 = vld [vmem:[%s8818_s2 + $0x240] sm:$0xff]  ;;  %v6447_v39 = vld [vmem:[%s8818_s2 + $0x250] sm:$0xff] }
 0x2a3   :  { %1249 = vmatprep.subr.mxu0 %v6429_v38  ;;  %1320 = vmatprep.subr.mxu1 %v6435_v34  ;;  %9718 = vst [vmem:[#allocation153_spill] sm:$0xff] %v6441_v37  ;;  %9719 = vst [vmem:[#allocation154_spill] sm:$0xff] %v6447_v39  ;;  %v6453_v38 = vld [vmem:[%s8818_s2 + $0x228] sm:$0xff]  ;;  %v6459_v34 = vld [vmem:[%s8818_s2 + $0x238] sm:$0xff] }
 0x2a4   :  { %1250 = vmatpush2.msra.mxu0 %v6441_v37  ;;  %1321 = vmatpush2.msra.mxu1 %v6447_v39  ;;  %9720 = vst [vmem:[#allocation155_spill] sm:$0xff] %v6453_v38  ;;  %9721 = vst [vmem:[#allocation156_spill] sm:$0xff] %v6459_v34  ;;  %v6465_v37 = vld [vmem:[%s8818_s2 + $0x220] sm:$0xff]  ;;  %v6471_v39 = vld [vmem:[%s8818_s2 + $0x230] sm:$0xff] }
 0x2a5   :  { %1251 = vmatprep.subr.mxu0 %v6453_v38  ;;  %1322 = vmatprep.subr.mxu1 %v6459_v34  ;;  %9722 = vst [vmem:[#allocation157_spill] sm:$0xff] %v6465_v37  ;;  %9723 = vst [vmem:[#allocation158_spill] sm:$0xff] %v6471_v39  ;;  %v6477_v38 = vld [vmem:[%s8818_s2 + $0x208] sm:$0xff]  ;;  %v6483_v34 = vld [vmem:[%s8818_s2 + $0x218] sm:$0xff] }
 0x2a6   :  { %1252 = vmatpush2.msra.mxu0 %v6465_v37  ;;  %1323 = vmatpush2.msra.mxu1 %v6471_v39  ;;  %9724 = vst [vmem:[#allocation159_spill] sm:$0xff] %v6477_v38  ;;  %9725 = vst [vmem:[#allocation160_spill] sm:$0xff] %v6483_v34  ;;  %v6489_v37 = vld [vmem:[%s8818_s2 + $0x200] sm:$0xff]  ;;  %v6495_v39 = vld [vmem:[%s8818_s2 + $0x210] sm:$0xff] }
 0x2a7   :  { %1253 = vmatprep.subr.mxu0 %v6477_v38  ;;  %1324 = vmatprep.subr.mxu1 %v6483_v34  ;;  %9726 = vst [vmem:[#allocation161_spill] sm:$0xff] %v6489_v37  ;;  %9727 = vst [vmem:[#allocation162_spill] sm:$0xff] %v6495_v39 }
 0x2a8   :  { %1254 = vmatpush2.msra.mxu0 %v6489_v37  ;;  %1325 = vmatpush2.msra.mxu1 %v6495_v39 }
 0x2a9   :  { %1335 = vmatprep.subr.mxu0 %v5306_v26  ;;  %1406 = vmatprep.subr.mxu1 %v5312_v27 }
 0x307   :  { %v886_v38 = vpop.f32.mrf.mxu0  ;;  %v957_v37 = vpop.f32.mrf.mxu1 }
 0x308   :  { %v887_v34 = vadd.f32 %v886_v38, %v5320_v32  ;;  %v958_v26 = vadd.f32 %v957_v37, %v5331_v46 }
 0x309   :  { %v888_v18 = vpop.f32.mrf.mxu0  ;;  %v959_v29 = vpop.f32.mrf.mxu1 }
 0x30a   :  { %v2976_v35 = vmul.f32 -1.442695, %v887_v34  ;;  %v889_v31 = vadd.f32 %v888_v18, %v5322_v33  ;;  %v960_v28 = vadd.f32 %v959_v29, %v5327_v42 }
 0x30c   :  { %3118 = vpow2.f32 %v2976_v35  ;;  %v2977_v30 = vmul.f32 -1.442695, %v889_v31  ;;  %v2978_v25 = vmul.f32 -1.442695, %v960_v28 }
 0x30e   :  { %3120 = vpow2.f32 %v2977_v30 }
 0x30f   :  { %3122 = vpow2.f32 %v2978_v25 }
 0x319   :  { %v3119_v39 = vpop.eup %3118 }
 0x31a   :  { %v1132_v24 = vadd.f32 1.0, %v3119_v39  ;;  %v2975_v39 = vld [vmem:[%s8816_s0 + $0x10] sm:$0xff] }
 0x31b   :  { %v3121_v27 = vpop.eup %3120 }
 0x31c   :  { %3124 = vrcp.f32 %v1132_v24  ;;  %v1138_v38 = vadd.f32 1.0, %v3121_v27  ;;  %v3123_v34 = vpop.eup %3122 }
 0x31d   :  { %3126 = vtanh.f32 %v958_v26  ;;  %v1145_v29 = vadd.f32 1.0, %v3123_v34 }
 0x31e   :  { %3128 = vrcp.f32 %v1138_v38 }
 0x31f   :  { %3130 = vrcp.f32 %v1145_v29 }
 0x328   :  { %v1030_v18 = vpop.f32.mrf.mxu0  ;;  %v1101_v35 = vpop.f32.mrf.mxu1 }
 0x329   :  { %v3125_v33 = vpop.eup %3124 }
 0x32a   :  { %v3127_v31 = vpop.eup %3126  ;;  %v1032_v30 = vpop.f32.mrf.mxu0 }
 0x32b   :  { %v1103_v32 = vpop.f32.mrf.mxu1  ;;  %v3129_v23 = vpop.eup %3128  ;;  %v1110_v28 = vcombine.low %v1030_v18, %v1032_v30  ;;  %v1149_v22 = vmul.f32 %v3127_v31, %v3125_v33 }
 0x32c   :  { %v1111_v42 = vcombine.low %v1101_v35, %v1103_v32  ;;  %v1148_v37 = vmul.f32 %v3129_v23, %v5339_v8  ;;  %v428_v8 = vld [vmem:[#allocation6] sm:$0x3]  ;;  %v3131_v23 = vpop.eup %3130 }
 0x32d   :  { %v1118_v25 = vrot.slane %v1110_v28, %v5095_v6  ;;  %v819_v35 = vadd.f32 %v5342_v17, %v428_v8 }
 0x32e   :  { %v1125_v24 = vrot.slane %v1111_v42, %v5095_v6  ;;  %v6510_v26 = vadd.f32 %v1149_v22, %v1148_v37 }
 0x330   :  { %v1126_v27 = vcombine.low %v1118_v25, %v1125_v24  ;;  %3132 = vtanh.f32 %v6510_v26 }
 0x332   :  { %v1128_v38 = vadd.f32 %v2975_v39, %v1126_v27 }
 0x334   :  { %v2979_v34 = vmul.f32 -1.442695, %v1128_v38  ;;  %v1160_v32 = vrot.slane %v1128_v38, 2  ;;  %v1171_v18 = vrot.slane %v1128_v38, 6  ;;  %v1168_v28 = vrot.slane %v1128_v38, 4 }
 0x336   :  { %3134 = vpow2.f32 %v2979_v34  ;;  %v2980_v33 = vmul.f32 -1.442695, %v1160_v32  ;;  %v2981_v30 = vmul.f32 -1.442695, %v1171_v18 }
 0x338   :  { %3136 = vpow2.f32 %v2980_v33 }
 0x339   :  { %3138 = vpow2.f32 %v2981_v30  ;;  %v9771_v30 = vld [vmem:[#allocation55_spill] sm:$0xff] }
 0x33d   :  { %v3133_v42 = vpop.eup %3132 }
 0x33e   :  { %v1152_v31 = vmul.f32 %v3133_v42, %v3131_v23 }
 0x340   :  { %v6514_v22 = vadd.f32 %v1152_v31, %v819_v35  ;;  %1255 = vmatprep.mubr.f32.mxu0 %v1152_v31  ;;  %1326 = vmatprep.mubr.f32.mxu1 %v1152_v31  ;;  %v9769_v35 = vld [vmem:[#allocation53_spill] sm:$0xff]  ;;  %v9770_v31 = vld [vmem:[#allocation54_spill] sm:$0xff] }
 0x343   :  { %v3135_v29 = vpop.eup %3134 }
 0x344   :  { %v1156_v37 = vadd.f32 1.0, %v3135_v29  ;;  %v9772_v29 = vld [vmem:[#allocation56_spill] sm:$0xff] }
 0x345   :  { %v3137_v25 = vpop.eup %3136 }
 0x346   :  { %3140 = vrcp.f32 %v1156_v37  ;;  %v1165_v24 = vadd.f32 1.0, %v3137_v25  ;;  %v3139_v39 = vpop.eup %3138  ;;  %v9774_v37 = vld [vmem:[#allocation58_spill] sm:$0xff]  ;;  %v9775_v25 = vld [vmem:[#allocation59_spill] sm:$0xff] }
 0x347   :  { %3142 = vtanh.f32 %v1168_v28  ;;  %v1176_v17 = vadd.f32 1.0, %v3139_v39  ;;  %v9773_v28 = vld [vmem:[#allocation57_spill] sm:$0xff] }
 0x348   :  { %3144 = vrcp.f32 %v1165_v24  ;;  %v9776_v24 = vld [vmem:[#allocation60_spill] sm:$0xff]  ;;  %v9777_v39 = vld [vmem:[#allocation61_spill] sm:$0xff] }
 0x349   :  { %3146 = vrcp.f32 %v1176_v17  ;;  %v9781_v17 = vld [vmem:[#allocation65_spill] sm:$0xff] }
 0x353   :  { %v3141_v27 = vpop.eup %3140 }
 0x354   :  { %v3143_v34 = vpop.eup %3142 }
 0x355   :  { %v3145_v32 = vpop.eup %3144  ;;  %v1180_v8 = vmul.f32 %v3143_v34, %v3141_v27  ;;  %v9778_v27 = vld [vmem:[#allocation62_spill] sm:$0xff]  ;;  %v9779_v34 = vld [vmem:[#allocation63_spill] sm:$0xff] }
 0x356   :  { %v1179_v33 = vmul.f32 %v3145_v32, %v5347_v36  ;;  %v3147_v38 = vpop.eup %3146  ;;  %v9728_v36 = vld [vmem:[#allocation13_spill] sm:$0xff]  ;;  %v9780_v32 = vld [vmem:[#allocation64_spill] sm:$0xff] }
 0x358   :  { %v6517_v23 = vadd.f32 %v1180_v8, %v1179_v33  ;;  %v9782_v33 = vld [vmem:[#allocation66_spill] sm:$0xff]  ;;  %v9783_v8 = vld [vmem:[#allocation67_spill] sm:$0xff] }
 0x35a   :  { %3148 = vtanh.f32 %v6517_v23 }
 0x367   :  { %v3149_v18 = vpop.eup %3148 }
 0x368   :  { %v6520_v42 = vmul.f32 %v3149_v18, %v3147_v38  ;;  %v9784_v38 = vld [vmem:[#allocation68_spill] sm:$0xff]  ;;  %v9785_v18 = vld [vmem:[#allocation69_spill] sm:$0xff] }
 0x36a   :  { %1256 = vmatmul.mubr.f32.vlgmr.msra.gmra.mxu0 %v6520_v42  ;;  %1327 = vmatmul.mubr.f32.vlgmr.msra.gmra.mxu1 %v6520_v42 }
 0x36b   :  { %1336 = vmatpush1.msra.mxu0 %v5357_v40  ;;  %1407 = vmatpush1.msra.mxu1 %v5363_v50  ;;  %v9729_v40 = vld [vmem:[#allocation14_spill] sm:$0xff]  ;;  %v9730_v50 = vld [vmem:[#allocation15_spill] sm:$0xff] }
 0x36c   :  { %1337 = vmatprep.subr.mxu0 %v5369_v41  ;;  %1408 = vmatprep.subr.mxu1 %v5375_v43  ;;  %v9731_v41 = vld [vmem:[#allocation16_spill] sm:$0xff]  ;;  %v9732_v43 = vld [vmem:[#allocation17_spill] sm:$0xff] }
 0x36d   :  { %1338 = vmatpush1.msra.mxu0 %v5381_v44  ;;  %1409 = vmatpush1.msra.mxu1 %v5387_v45  ;;  %v9733_v44 = vld [vmem:[#allocation18_spill] sm:$0xff]  ;;  %v9734_v45 = vld [vmem:[#allocation19_spill] sm:$0xff] }
 0x36e   :  { %1339 = vmatprep.subr.mxu0 %v5393_v47  ;;  %1410 = vmatprep.subr.mxu1 %v5399_v48  ;;  %v9735_v47 = vld [vmem:[#allocation20_spill] sm:$0xff]  ;;  %v9736_v48 = vld [vmem:[#allocation21_spill] sm:$0xff] }
 0x36f   :  { %1340 = vmatpush1.msra.mxu0 %v5405_v55  ;;  %1411 = vmatpush1.msra.mxu1 %v5411_v54  ;;  %v9737_v55 = vld [vmem:[#allocation22_spill] sm:$0xff]  ;;  %v9738_v54 = vld [vmem:[#allocation23_spill] sm:$0xff] }
 0x370   :  { %1341 = vmatprep.subr.mxu0 %v5417_v53  ;;  %1412 = vmatprep.subr.mxu1 %v5423_v62  ;;  %v9739_v53 = vld [vmem:[#allocation24_spill] sm:$0xff]  ;;  %v9740_v62 = vld [vmem:[#allocation25_spill] sm:$0xff] }
 0x371   :  { %1342 = vmatpush1.msra.mxu0 %v5429_v52  ;;  %1413 = vmatpush1.msra.mxu1 %v5435_v60  ;;  %v9741_v52 = vld [vmem:[#allocation26_spill] sm:$0xff]  ;;  %v9742_v60 = vld [vmem:[#allocation27_spill] sm:$0xff] }
 0x372   :  { %1343 = vmatprep.subr.mxu0 %v5441_v63  ;;  %1414 = vmatprep.subr.mxu1 %v5447_v56  ;;  %v9743_v63 = vld [vmem:[#allocation28_spill] sm:$0xff]  ;;  %v9744_v56 = vld [vmem:[#allocation29_spill] sm:$0xff] }
 0x373   :  { %1344 = vmatpush1.msra.mxu0 %v5453_v0  ;;  %1415 = vmatpush1.msra.mxu1 %v5459_v1  ;;  %v9745_v0 = vld [vmem:[#allocation30_spill] sm:$0xff]  ;;  %v9746_v1 = vld [vmem:[#allocation31_spill] sm:$0xff] }
 0x374   :  { %1345 = vmatprep.subr.mxu0 %v5465_v61  ;;  %1416 = vmatprep.subr.mxu1 %v5471_v57  ;;  %v9747_v61 = vld [vmem:[#allocation32_spill] sm:$0xff]  ;;  %v9748_v57 = vld [vmem:[#allocation33_spill] sm:$0xff] }
 0x375   :  { %1346 = vmatpush1.msra.mxu0 %v5477_v51  ;;  %1417 = vmatpush1.msra.mxu1 %v5483_v49  ;;  %v9749_v51 = vmov 0.0   ;;  %v9750_v49 = vld [vmem:[#allocation34_spill] sm:$0xff] }
 0x376   :  { %1347 = vmatprep.subr.mxu0 %v5489_v58  ;;  %1418 = vmatprep.subr.mxu1 %v5495_v59  ;;  %v9751_v58 = vld [vmem:[#allocation35_spill] sm:$0xff]  ;;  %v9752_v59 = vld [vmem:[#allocation36_spill] sm:$0xff] }
 0x377   :  { %1348 = vmatpush1.msra.mxu0 %v5501_v2  ;;  %1419 = vmatpush1.msra.mxu1 %v5507_v3  ;;  %v9753_v2 = vld [vmem:[#allocation37_spill] sm:$0xff]  ;;  %v9754_v3 = vld [vmem:[#allocation38_spill] sm:$0xff] }
 0x378   :  { %1349 = vmatprep.subr.mxu0 %v5513_v4  ;;  %1420 = vmatprep.subr.mxu1 %v5519_v5  ;;  %v9755_v4 = vld [vmem:[#allocation39_spill] sm:$0xff]  ;;  %v9756_v5 = vld [vmem:[#allocation40_spill] sm:$0xff] }
 0x379   :  { %1350 = vmatpush1.msra.mxu0 %v5525_v7  ;;  %1421 = vmatpush1.msra.mxu1 %v5531_v9  ;;  %v9757_v7 = vld [vmem:[#allocation41_spill] sm:$0xff]  ;;  %v9758_v9 = vld [vmem:[#allocation42_spill] sm:$0xff] }
 0x37a   :  { %1351 = vmatprep.subr.mxu0 %v5537_v10  ;;  %1422 = vmatprep.subr.mxu1 %v5543_v11  ;;  %v9759_v10 = vld [vmem:[#allocation43_spill] sm:$0xff]  ;;  %v9760_v11 = vld [vmem:[#allocation44_spill] sm:$0xff] }
 0x37b   :  { %1352 = vmatpush1.msra.mxu0 %v5549_v12  ;;  %1423 = vmatpush1.msra.mxu1 %v5555_v13  ;;  %v9761_v12 = vld [vmem:[#allocation45_spill] sm:$0xff]  ;;  %v9762_v13 = vld [vmem:[#allocation46_spill] sm:$0xff] }
 0x37c   :  { %1353 = vmatprep.subr.mxu0 %v5561_v14  ;;  %1424 = vmatprep.subr.mxu1 %v5567_v15  ;;  %v9763_v14 = vld [vmem:[#allocation47_spill] sm:$0xff]  ;;  %v9764_v15 = vld [vmem:[#allocation48_spill] sm:$0xff] }
 0x37d   :  { %1354 = vmatpush1.msra.mxu0 %v5573_v16  ;;  %1425 = vmatpush1.msra.mxu1 %v5579_v19  ;;  %v9765_v16 = vld [vmem:[#allocation49_spill] sm:$0xff]  ;;  %v9766_v19 = vld [vmem:[#allocation50_spill] sm:$0xff] }
 0x37e   :  { %1355 = vmatprep.subr.mxu0 %v5585_v20  ;;  %1426 = vmatprep.subr.mxu1 %v5591_v21  ;;  %v9767_v20 = vld [vmem:[#allocation51_spill] sm:$0xff]  ;;  %v9768_v21 = vld [vmem:[#allocation52_spill] sm:$0xff] }
 0x37f   :  { %1356 = vmatpush1.msra.mxu0 %v9728_v36  ;;  %1427 = vmatpush1.msra.mxu1 %v9729_v40  ;;  %v9787_v36 = vld [vmem:[#allocation71_spill] sm:$0xff]  ;;  %v9788_v40 = vld [vmem:[#allocation72_spill] sm:$0xff] }
 0x380   :  { %1357 = vmatprep.subr.mxu0 %v9730_v50  ;;  %1428 = vmatprep.subr.mxu1 %v9731_v41  ;;  %v9789_v50 = vld [vmem:[#allocation73_spill] sm:$0xff]  ;;  %v9790_v41 = vld [vmem:[#allocation74_spill] sm:$0xff] }
 0x381   :  { %1358 = vmatpush1.msra.mxu0 %v9732_v43  ;;  %1429 = vmatpush1.msra.mxu1 %v9733_v44  ;;  %v9791_v43 = vld [vmem:[#allocation75_spill] sm:$0xff]  ;;  %v9792_v44 = vld [vmem:[#allocation76_spill] sm:$0xff] }
 0x382   :  { %1359 = vmatprep.subr.mxu0 %v9734_v45  ;;  %1430 = vmatprep.subr.mxu1 %v9735_v47  ;;  %v9793_v45 = vld [vmem:[#allocation77_spill] sm:$0xff]  ;;  %v9794_v47 = vld [vmem:[#allocation78_spill] sm:$0xff] }
 0x383   :  { %1360 = vmatpush1.msra.mxu0 %v9736_v48  ;;  %1431 = vmatpush1.msra.mxu1 %v9737_v55  ;;  %v9795_v48 = vld [vmem:[#allocation79_spill] sm:$0xff]  ;;  %v9796_v55 = vld [vmem:[#allocation80_spill] sm:$0xff] }
 0x384   :  { %1361 = vmatprep.subr.mxu0 %v9738_v54  ;;  %1432 = vmatprep.subr.mxu1 %v9739_v53  ;;  %v9797_v54 = vld [vmem:[#allocation81_spill] sm:$0xff]  ;;  %v9798_v53 = vld [vmem:[#allocation82_spill] sm:$0xff] }
 0x385   :  { %1362 = vmatpush1.msra.mxu0 %v9740_v62  ;;  %1433 = vmatpush1.msra.mxu1 %v9741_v52  ;;  %v9799_v62 = vld [vmem:[#allocation83_spill] sm:$0xff]  ;;  %v9800_v52 = vld [vmem:[#allocation84_spill] sm:$0xff] }
 0x386   :  { %1363 = vmatprep.subr.mxu0 %v9742_v60  ;;  %1434 = vmatprep.subr.mxu1 %v9743_v63  ;;  %v9801_v60 = vld [vmem:[#allocation85_spill] sm:$0xff]  ;;  %v9802_v63 = vld [vmem:[#allocation86_spill] sm:$0xff] }
 0x387   :  { %1364 = vmatpush1.msra.mxu0 %v9744_v56  ;;  %1435 = vmatpush1.msra.mxu1 %v9745_v0  ;;  %v9803_v56 = vld [vmem:[#allocation87_spill] sm:$0xff]  ;;  %v9804_v0 = vld [vmem:[#allocation88_spill] sm:$0xff] }
 0x388   :  { %1365 = vmatprep.subr.mxu0 %v9746_v1  ;;  %1436 = vmatprep.subr.mxu1 %v9747_v61  ;;  %v9805_v1 = vld [vmem:[#allocation89_spill] sm:$0xff]  ;;  %v9806_v61 = vld [vmem:[#allocation90_spill] sm:$0xff] }
 0x389   :  { %1366 = vmatpush1.msra.mxu0 %v9748_v57  ;;  %1399 = vmatprep.mubr.f32.mxu0 %v9749_v51  ;;  %v9807_v57 = vld [vmem:[#allocation91_spill] sm:$0xff] }
 0x38a   :  { %1437 = vmatpush1.msra.mxu1 %v9750_v49  ;;  %1470 = vmatprep.mubr.f32.mxu1 %v9749_v51  ;;  %v9808_v49 = vld [vmem:[#allocation92_spill] sm:$0xff] }
 0x38b   :  { %1400 = vmatmul.mubr.f32.vlgmr.msra.gmra.mxu0 %v6520_v42  ;;  %1471 = vmatmul.mubr.f32.vlgmr.msra.gmra.mxu1 %v6520_v42  ;;  %v9786_v42 = vld [vmem:[#allocation70_spill] sm:$0xff] }
 0x38c   :  { %1562 = vmatprep.subr.mxu0 %v9751_v58  ;;  %1633 = vmatprep.subr.mxu1 %v9752_v59  ;;  %v9809_v58 = vld [vmem:[#allocation93_spill] sm:$0xff]  ;;  %v9810_v59 = vld [vmem:[#allocation94_spill] sm:$0xff] }
 0x38d   :  { %1563 = vmatpush1.msra.mxu0 %v9753_v2  ;;  %1634 = vmatpush1.msra.mxu1 %v9754_v3  ;;  %v9811_v2 = vld [vmem:[#allocation95_spill] sm:$0xff]  ;;  %v9812_v3 = vld [vmem:[#allocation96_spill] sm:$0xff] }
 0x38e   :  { %1564 = vmatprep.subr.mxu0 %v9755_v4  ;;  %1635 = vmatprep.subr.mxu1 %v9756_v5  ;;  %v9813_v4 = vld [vmem:[#allocation97_spill] sm:$0xff]  ;;  %v9814_v5 = vld [vmem:[#allocation98_spill] sm:$0xff] }
 0x38f   :  { %1565 = vmatpush1.msra.mxu0 %v9757_v7  ;;  %1636 = vmatpush1.msra.mxu1 %v9758_v9  ;;  %v9815_v7 = vld [vmem:[#allocation99_spill] sm:$0xff]  ;;  %v9816_v9 = vld [vmem:[#allocation100_spill] sm:$0xff] }
 0x390   :  { %1566 = vmatprep.subr.mxu0 %v9759_v10  ;;  %1637 = vmatprep.subr.mxu1 %v9760_v11  ;;  %v9817_v10 = vld [vmem:[#allocation101_spill] sm:$0xff]  ;;  %v9818_v11 = vld [vmem:[#allocation102_spill] sm:$0xff] }
 0x391   :  { %1567 = vmatpush1.msra.mxu0 %v9761_v12  ;;  %1638 = vmatpush1.msra.mxu1 %v9762_v13  ;;  %v9819_v12 = vld [vmem:[#allocation103_spill] sm:$0xff]  ;;  %v9820_v13 = vld [vmem:[#allocation104_spill] sm:$0xff] }
 0x392   :  { %1568 = vmatprep.subr.mxu0 %v9763_v14  ;;  %1639 = vmatprep.subr.mxu1 %v9764_v15  ;;  %v9821_v14 = vld [vmem:[#allocation105_spill] sm:$0xff]  ;;  %v9822_v15 = vld [vmem:[#allocation106_spill] sm:$0xff] }
 0x393   :  { %1569 = vmatpush1.msra.mxu0 %v9765_v16  ;;  %1640 = vmatpush1.msra.mxu1 %v9766_v19  ;;  %v9823_v16 = vld [vmem:[#allocation107_spill] sm:$0xff]  ;;  %v9824_v19 = vld [vmem:[#allocation108_spill] sm:$0xff] }
 0x394   :  { %1570 = vmatprep.subr.mxu0 %v9767_v20  ;;  %1641 = vmatprep.subr.mxu1 %v9768_v21  ;;  %v9825_v20 = vld [vmem:[#allocation109_spill] sm:$0xff]  ;;  %v9826_v21 = vld [vmem:[#allocation110_spill] sm:$0xff] }
 0x395   :  { %1571 = vmatpush1.msra.mxu0 %v9769_v35  ;;  %1642 = vmatpush1.msra.mxu1 %v9770_v31  ;;  %v9827_v35 = vld [vmem:[#allocation111_spill] sm:$0xff]  ;;  %v9828_v31 = vld [vmem:[#allocation112_spill] sm:$0xff] }
 0x396   :  { %1572 = vmatprep.subr.mxu0 %v9771_v30  ;;  %1643 = vmatprep.subr.mxu1 %v9772_v29  ;;  %v9829_v30 = vld [vmem:[#allocation113_spill] sm:$0xff]  ;;  %v9830_v29 = vld [vmem:[#allocation114_spill] sm:$0xff] }
 0x397   :  { %1573 = vmatpush1.msra.mxu0 %v9773_v28  ;;  %1644 = vmatpush1.msra.mxu1 %v9774_v37  ;;  %v9831_v28 = vld [vmem:[#allocation115_spill] sm:$0xff]  ;;  %v9832_v37 = vld [vmem:[#allocation116_spill] sm:$0xff] }
 0x398   :  { %1574 = vmatprep.subr.mxu0 %v9775_v25  ;;  %1645 = vmatprep.subr.mxu1 %v9776_v24  ;;  %v9833_v25 = vld [vmem:[#allocation117_spill] sm:$0xff]  ;;  %v9834_v24 = vld [vmem:[#allocation118_spill] sm:$0xff] }
 0x399   :  { %1575 = vmatpush1.msra.mxu0 %v9777_v39  ;;  %1646 = vmatpush1.msra.mxu1 %v9778_v27  ;;  %v9835_v39 = vld [vmem:[#allocation119_spill] sm:$0xff]  ;;  %v9836_v27 = vld [vmem:[#allocation120_spill] sm:$0xff] }
 0x39a   :  { %1576 = vmatprep.subr.mxu0 %v9779_v34  ;;  %1647 = vmatprep.subr.mxu1 %v9780_v32  ;;  %v9837_v34 = vld [vmem:[#allocation121_spill] sm:$0xff]  ;;  %v9838_v32 = vld [vmem:[#allocation122_spill] sm:$0xff] }
 0x39b   :  { %1577 = vmatpush1.msra.mxu0 %v9781_v17  ;;  %1648 = vmatpush1.msra.mxu1 %v9782_v33  ;;  %v9839_v17 = vld [vmem:[#allocation123_spill] sm:$0xff]  ;;  %v9840_v33 = vld [vmem:[#allocation124_spill] sm:$0xff] }
 0x39c   :  { %1578 = vmatprep.subr.mxu0 %v9783_v8  ;;  %1649 = vmatprep.subr.mxu1 %v9784_v38  ;;  %v9841_v8 = vld [vmem:[#allocation125_spill] sm:$0xff]  ;;  %v9842_v38 = vld [vmem:[#allocation126_spill] sm:$0xff] }
 0x39d   :  { %1579 = vmatpush1.msra.mxu0 %v9785_v18  ;;  %1650 = vmatpush1.msra.mxu1 %v9786_v42  ;;  %v9843_v18 = vld [vmem:[#allocation127_spill] sm:$0xff]  ;;  %v9844_v42 = vld [vmem:[#allocation128_spill] sm:$0xff] }
 0x39e   :  { %1580 = vmatprep.subr.mxu0 %v9787_v36  ;;  %1651 = vmatprep.subr.mxu1 %v9788_v40  ;;  %v9845_v36 = vld [vmem:[#allocation129_spill] sm:$0xff]  ;;  %v9846_v40 = vld [vmem:[#allocation130_spill] sm:$0xff] }
 0x39f   :  { %1581 = vmatpush1.msra.mxu0 %v9789_v50  ;;  %1652 = vmatpush1.msra.mxu1 %v9790_v41  ;;  %v9847_v50 = vld [vmem:[#allocation131_spill] sm:$0xff]  ;;  %v9848_v41 = vld [vmem:[#allocation132_spill] sm:$0xff] }
 0x3a0   :  { %1582 = vmatprep.subr.mxu0 %v9791_v43  ;;  %1653 = vmatprep.subr.mxu1 %v9792_v44  ;;  %v9849_v43 = vld [vmem:[#allocation133_spill] sm:$0xff]  ;;  %v9850_v44 = vld [vmem:[#allocation134_spill] sm:$0xff] }
 0x3a1   :  { %1583 = vmatpush1.msra.mxu0 %v9793_v45  ;;  %1654 = vmatpush1.msra.mxu1 %v9794_v47  ;;  %v9851_v45 = vld [vmem:[#allocation135_spill] sm:$0xff]  ;;  %v9852_v47 = vld [vmem:[#allocation136_spill] sm:$0xff] }
 0x3a2   :  { %1584 = vmatprep.subr.mxu0 %v9795_v48  ;;  %1655 = vmatprep.subr.mxu1 %v9796_v55  ;;  %v9853_v48 = vld [vmem:[#allocation137_spill] sm:$0xff]  ;;  %v9854_v55 = vld [vmem:[#allocation138_spill] sm:$0xff] }
 0x3a3   :  { %1585 = vmatpush1.msra.mxu0 %v9797_v54  ;;  %1656 = vmatpush1.msra.mxu1 %v9798_v53  ;;  %v9855_v54 = vld [vmem:[#allocation139_spill] sm:$0xff]  ;;  %v9856_v53 = vld [vmem:[#allocation140_spill] sm:$0xff] }
 0x3a4   :  { %1586 = vmatprep.subr.mxu0 %v9799_v62  ;;  %1657 = vmatprep.subr.mxu1 %v9800_v52  ;;  %v9857_v62 = vld [vmem:[#allocation141_spill] sm:$0xff]  ;;  %v9858_v52 = vld [vmem:[#allocation142_spill] sm:$0xff] }
 0x3a5   :  { %1587 = vmatpush1.msra.mxu0 %v9801_v60  ;;  %1658 = vmatpush1.msra.mxu1 %v9802_v63  ;;  %v9859_v60 = vld [vmem:[#allocation143_spill] sm:$0xff]  ;;  %v9860_v63 = vld [vmem:[#allocation144_spill] sm:$0xff] }
 0x3a6   :  { %1588 = vmatprep.subr.mxu0 %v9803_v56  ;;  %1659 = vmatprep.subr.mxu1 %v9804_v0  ;;  %v9861_v56 = vld [vmem:[#allocation145_spill] sm:$0xff]  ;;  %v9862_v0 = vld [vmem:[#allocation146_spill] sm:$0xff] }
 0x3a7   :  { %1589 = vmatpush1.msra.mxu0 %v9805_v1  ;;  %1660 = vmatpush1.msra.mxu1 %v9806_v61  ;;  %v9863_v1 = vld [vmem:[#allocation147_spill] sm:$0xff]  ;;  %v9864_v61 = vld [vmem:[#allocation148_spill] sm:$0xff] }
 0x3a8   :  { %1590 = vmatprep.subr.mxu0 %v9807_v57  ;;  %1661 = vmatprep.subr.mxu1 %v9808_v49  ;;  %v9865_v57 = vld [vmem:[#allocation149_spill] sm:$0xff]  ;;  %v9866_v49 = vld [vmem:[#allocation150_spill] sm:$0xff] }
 0x3a9   :  { %1591 = vmatpush1.msra.mxu0 %v9809_v58  ;;  %1662 = vmatpush1.msra.mxu1 %v9810_v59  ;;  %v9867_v58 = vld [vmem:[#allocation151_spill] sm:$0xff]  ;;  %v9868_v59 = vld [vmem:[#allocation152_spill] sm:$0xff] }
 0x3aa   :  { %1592 = vmatprep.subr.mxu0 %v9811_v2  ;;  %1663 = vmatprep.subr.mxu1 %v9812_v3  ;;  %v9869_v2 = vld [vmem:[#allocation153_spill] sm:$0xff]  ;;  %v9870_v3 = vld [vmem:[#allocation154_spill] sm:$0xff] }
 0x3ab   :  { %1593 = vmatpush1.msra.mxu0 %v9813_v4  ;;  %1664 = vmatpush1.msra.mxu1 %v9814_v5  ;;  %v9871_v4 = vld [vmem:[#allocation155_spill] sm:$0xff]  ;;  %v9872_v5 = vld [vmem:[#allocation156_spill] sm:$0xff] }
 0x3ac   :  { %1594 = vmatprep.subr.mxu0 %v9815_v7  ;;  %1665 = vmatprep.subr.mxu1 %v9816_v9  ;;  %v9873_v7 = vld [vmem:[#allocation157_spill] sm:$0xff]  ;;  %v9874_v9 = vld [vmem:[#allocation158_spill] sm:$0xff] }
 0x3ad   :  { %1595 = vmatpush2.msra.mxu0 %v9817_v10  ;;  %1666 = vmatpush2.msra.mxu1 %v9818_v11  ;;  %v9875_v10 = vld [vmem:[#allocation159_spill] sm:$0xff]  ;;  %v9876_v11 = vld [vmem:[#allocation160_spill] sm:$0xff] }
 0x3ae   :  { %1596 = vmatprep.subr.mxu0 %v9819_v12  ;;  %1667 = vmatprep.subr.mxu1 %v9820_v13  ;;  %v9877_v12 = vld [vmem:[#allocation161_spill] sm:$0xff]  ;;  %v9878_v13 = vld [vmem:[#allocation162_spill] sm:$0xff] }
 0x3af   :  { %1597 = vmatpush2.msra.mxu0 %v9821_v14  ;;  %1668 = vmatpush2.msra.mxu1 %v9822_v15  ;;  %v6721_v14 = vld [vmem:[%s8817_s1 + $0x1e8] sm:$0xff]  ;;  %v6727_v15 = vld [vmem:[%s8817_s1 + $0x1f8] sm:$0xff] }
 0x3b0   :  { %1598 = vmatprep.subr.mxu0 %v9823_v16  ;;  %1669 = vmatprep.subr.mxu1 %v9824_v19  ;;  %v9879_v19 = vld [vmem:[#allocation10_spill] sm:$0xff] }
 0x3b1   :  { %1599 = vmatpush2.msra.mxu0 %v9825_v20  ;;  %1670 = vmatpush2.msra.mxu1 %v9826_v21 }
 0x3b2   :  { %1600 = vmatprep.subr.mxu0 %v9827_v35  ;;  %1671 = vmatprep.subr.mxu1 %v9828_v31  ;;  %v9880_v31 = vld [vmem:[#allocation11_spill] sm:$0xff] }
 0x3b3   :  { %1601 = vmatpush2.msra.mxu0 %v9829_v30  ;;  %1672 = vmatpush2.msra.mxu1 %v9830_v29 }
 0x3b4   :  { %1602 = vmatprep.subr.mxu0 %v9831_v28  ;;  %1673 = vmatprep.subr.mxu1 %v9832_v37 }
 0x3b5   :  { %1603 = vmatpush2.msra.mxu0 %v9833_v25  ;;  %1674 = vmatpush2.msra.mxu1 %v9834_v24  ;;  %v9881_v25 = vld [vmem:[#allocation12_spill] sm:$0xff] }
 0x3b6   :  { %1604 = vmatprep.subr.mxu0 %v9835_v39  ;;  %1675 = vmatprep.subr.mxu1 %v9836_v27 }
 0x3b7   :  { %1605 = vmatpush2.msra.mxu0 %v9837_v34  ;;  %1676 = vmatpush2.msra.mxu1 %v9838_v32 }
 0x3b8   :  { %1606 = vmatprep.subr.mxu0 %v9839_v17  ;;  %1677 = vmatprep.subr.mxu1 %v9840_v33 }
 0x3b9   :  { %1607 = vmatpush2.msra.mxu0 %v9841_v8  ;;  %1678 = vmatpush2.msra.mxu1 %v9842_v38 }
 0x3ba   :  { %1608 = vmatprep.subr.mxu0 %v9843_v18  ;;  %1679 = vmatprep.subr.mxu1 %v9844_v42 }
 0x3bb   :  { %1609 = vmatpush2.msra.mxu0 %v9845_v36  ;;  %1680 = vmatpush2.msra.mxu1 %v9846_v40 }
 0x3bc   :  { %1610 = vmatprep.subr.mxu0 %v9847_v50  ;;  %1681 = vmatprep.subr.mxu1 %v9848_v41 }
 0x3bd   :  { %1611 = vmatpush2.msra.mxu0 %v9849_v43  ;;  %1682 = vmatpush2.msra.mxu1 %v9850_v44 }
 0x3be   :  { %1612 = vmatprep.subr.mxu0 %v9851_v45  ;;  %1683 = vmatprep.subr.mxu1 %v9852_v47 }
 0x3bf   :  { %1613 = vmatpush2.msra.mxu0 %v9853_v48  ;;  %1684 = vmatpush2.msra.mxu1 %v9854_v55 }
 0x3c0   :  { %1614 = vmatprep.subr.mxu0 %v9855_v54  ;;  %1685 = vmatprep.subr.mxu1 %v9856_v53  ;;  %v2982_v53 = vld [vmem:[%s8816_s0 + $0x18] sm:$0xff] }
 0x3c1   :  { %1615 = vmatpush2.msra.mxu0 %v9857_v62  ;;  %1686 = vmatpush2.msra.mxu1 %v9858_v52 }
 0x3c2   :  { %1616 = vmatprep.subr.mxu0 %v9859_v60  ;;  %1687 = vmatprep.subr.mxu1 %v9860_v63 }
 0x3c3   :  { %1617 = vmatpush2.msra.mxu0 %v9861_v56  ;;  %1688 = vmatpush2.msra.mxu1 %v9862_v0 }
 0x3c4   :  { %1618 = vmatprep.subr.mxu0 %v9863_v1  ;;  %1689 = vmatprep.subr.mxu1 %v9864_v61 }
 0x3c5   :  { %1619 = vmatpush2.msra.mxu0 %v9865_v57  ;;  %1690 = vmatpush2.msra.mxu1 %v9866_v49 }
 0x3c6   :  { %1620 = vmatprep.subr.mxu0 %v9867_v58  ;;  %1691 = vmatprep.subr.mxu1 %v9868_v59 }
 0x3c7   :  { %1621 = vmatpush2.msra.mxu0 %v9869_v2  ;;  %1692 = vmatpush2.msra.mxu1 %v9870_v3 }
 0x3c8   :  { %1622 = vmatprep.subr.mxu0 %v9871_v4  ;;  %1693 = vmatprep.subr.mxu1 %v9872_v5 }
 0x3c9   :  { %1623 = vmatpush2.msra.mxu0 %v9873_v7  ;;  %1694 = vmatpush2.msra.mxu1 %v9874_v9 }
 0x3ca   :  { %1624 = vmatprep.subr.mxu0 %v9875_v10  ;;  %1695 = vmatprep.subr.mxu1 %v9876_v11 }
 0x3cb   :  { %1625 = vmatpush2.msra.mxu0 %v9877_v12  ;;  %1696 = vmatpush2.msra.mxu1 %v9878_v13 }
 0x3cc   :  { %1706 = vmatprep.subr.mxu0 %v6721_v14  ;;  %1777 = vmatprep.subr.mxu1 %v6727_v15 }
 0x42a   :  { %v1257_v16 = vpop.f32.mrf.mxu0  ;;  %v1328_v29 = vpop.f32.mrf.mxu1 }
 0x42b   :  { %v1258_v20 = vadd.f32 %v1257_v16, %v9879_v19  ;;  %v1329_v34 = vadd.f32 %v1328_v29, %v5331_v46  ;;  %v6769_v29 = vld [vmem:[%s8817_s1 + $0x1c8] sm:$0xff] }
 0x42c   :  { %v1259_v21 = vpop.f32.mrf.mxu0  ;;  %v1330_v37 = vpop.f32.mrf.mxu1 }
 0x42d   :  { %v2983_v35 = vmul.f32 -1.442695, %v1258_v20  ;;  %v1260_v30 = vadd.f32 %v1259_v21, %v9880_v31  ;;  %v1331_v24 = vadd.f32 %v1330_v37, %v9881_v25  ;;  %v6781_v37 = vld [vmem:[%s8817_s1 + $0x1c0] sm:$0xff] }
 0x42f   :  { %3150 = vpow2.f32 %v2983_v35  ;;  %v2984_v28 = vmul.f32 -1.442695, %v1260_v30  ;;  %v2985_v39 = vmul.f32 -1.442695, %v1331_v24  ;;  %v6757_v30 = vld [vmem:[%s8817_s1 + $0x1e0] sm:$0xff]  ;;  %v6787_v24 = vld [vmem:[%s8817_s1 + $0x1d0] sm:$0xff] }
 0x431   :  { %3152 = vpow2.f32 %v2984_v28  ;;  %v6775_v28 = vld [vmem:[%s8817_s1 + $0x1d8] sm:$0xff] }
 0x432   :  { %3154 = vpow2.f32 %v2985_v39  ;;  %v6793_v39 = vld [vmem:[%s8817_s1 + $0x1a8] sm:$0xff] }
 0x43c   :  { %v3151_v27 = vpop.eup %3150 }
 0x43d   :  { %v1503_v32 = vadd.f32 1.0, %v3151_v27  ;;  %v6799_v27 = vld [vmem:[%s8817_s1 + $0x1b8] sm:$0xff] }
 0x43e   :  { %v3153_v17 = vpop.eup %3152 }
 0x43f   :  { %3156 = vrcp.f32 %v1503_v32  ;;  %v1509_v33 = vadd.f32 1.0, %v3153_v17  ;;  %v3155_v8 = vpop.eup %3154  ;;  %v6811_v32 = vld [vmem:[%s8817_s1 + $0x1b0] sm:$0xff]  ;;  %v6817_v17 = vld [vmem:[%s8817_s1 + $0x188] sm:$0xff] }
 0x440   :  { %3158 = vtanh.f32 %v1329_v34  ;;  %v1516_v43 = vadd.f32 1.0, %v3155_v8  ;;  %v6805_v34 = vld [vmem:[%s8817_s1 + $0x1a0] sm:$0xff] }
 0x441   :  { %3160 = vrcp.f32 %v1509_v33  ;;  %v6823_v33 = vld [vmem:[%s8817_s1 + $0x198] sm:$0xff]  ;;  %v6829_v8 = vld [vmem:[%s8817_s1 + $0x180] sm:$0xff] }
 0x442   :  { %3162 = vrcp.f32 %v1516_v43  ;;  %v6877_v43 = vld [vmem:[%s8817_s1 + $0x140] sm:$0xff] }
 0x44b   :  { %v1401_v38 = vpop.f32.mrf.mxu0  ;;  %v1472_v18 = vpop.f32.mrf.mxu1 }
 0x44c   :  { %v3157_v42 = vpop.eup %3156 }
 0x44d   :  { %v3159_v36 = vpop.eup %3158  ;;  %v1403_v40 = vpop.f32.mrf.mxu0 }
 0x44e   :  { %v1474_v50 = vpop.f32.mrf.mxu1  ;;  %v3161_v41 = vpop.eup %3160  ;;  %v1481_v44 = vcombine.low %v1401_v38, %v1403_v40  ;;  %v1520_v47 = vmul.f32 %v3159_v36, %v3157_v42  ;;  %v6835_v38 = vld [vmem:[%s8817_s1 + $0x190] sm:$0xff]  ;;  %v6847_v42 = vld [vmem:[%s8817_s1 + $0x178] sm:$0xff]  ;;  %v6853_v36 = vld [vmem:[%s8817_s1 + $0x160] sm:$0xff] }
 0x44f   :  { %v1482_v45 = vcombine.low %v1472_v18, %v1474_v50  ;;  %v1519_v48 = vmul.f32 %v3161_v41, %v6510_v26  ;;  %v3163_v26 = vpop.eup %3162  ;;  %v6841_v18 = vld [vmem:[%s8817_s1 + $0x168] sm:$0xff]  ;;  %v6859_v40 = vld [vmem:[%s8817_s1 + $0x170] sm:$0xff]  ;;  %v6871_v41 = vld [vmem:[%s8817_s1 + $0x158] sm:$0xff] }
 0x450   :  { %v1489_v55 = vrot.slane %v1481_v44, %v5095_v6  ;;  %v6865_v50 = vld [vmem:[%s8817_s1 + $0x148] sm:$0xff]  ;;  %v6883_v44 = vld [vmem:[%s8817_s1 + $0x150] sm:$0xff] }
 0x451   :  { %v1496_v54 = vrot.slane %v1482_v45, %v5095_v6  ;;  %v6740_v62 = vadd.f32 %v1520_v47, %v1519_v48  ;;  %v6889_v45 = vld [vmem:[%s8817_s1 + $0x128] sm:$0xff]  ;;  %v6895_v47 = vld [vmem:[%s8817_s1 + $0x138] sm:$0xff]  ;;  %v6901_v48 = vld [vmem:[%s8817_s1 + $0x120] sm:$0xff] }
 0x453   :  { %v1497_v52 = vcombine.low %v1489_v55, %v1496_v54  ;;  %3164 = vtanh.f32 %v6740_v62  ;;  %v6907_v55 = vld [vmem:[%s8817_s1 + $0x130] sm:$0xff]  ;;  %v6913_v54 = vld [vmem:[%s8817_s1 + $0x108] sm:$0xff] }
 0x455   :  { %v1499_v60 = vadd.f32 %v2982_v53, %v1497_v52  ;;  %v6919_v53 = vld [vmem:[%s8817_s1 + $0x118] sm:$0xff]  ;;  %v6925_v52 = vld [vmem:[%s8817_s1 + $0x100] sm:$0xff] }
 0x457   :  { %v2986_v63 = vmul.f32 -1.442695, %v1499_v60  ;;  %v1531_v56 = vrot.slane %v1499_v60, 2  ;;  %v1542_v1 = vrot.slane %v1499_v60, 6  ;;  %v1539_v2 = vrot.slane %v1499_v60, 4  ;;  %v6931_v60 = vld [vmem:[%s8817_s1 + $0x110] sm:$0xff] }
 0x459   :  { %3166 = vpow2.f32 %v2986_v63  ;;  %v2987_v0 = vmul.f32 -1.442695, %v1531_v56  ;;  %v2988_v49 = vmul.f32 -1.442695, %v1542_v1  ;;  %v6937_v63 = vld [vmem:[%s8817_s1 + $0xe8] sm:$0xff]  ;;  %v6943_v56 = vld [vmem:[%s8817_s1 + $0xf8] sm:$0xff] }
 0x45a   :  { %v6961_v1 = vld [vmem:[%s8817_s1 + $0xc8] sm:$0xff] }
 0x45b   :  { %3168 = vpow2.f32 %v2987_v0  ;;  %v6949_v0 = vld [vmem:[%s8817_s1 + $0xe0] sm:$0xff] }
 0x45c   :  { %3170 = vpow2.f32 %v2988_v49  ;;  %v6979_v49 = vld [vmem:[%s8817_s1 + $0xd0] sm:$0xff] }
 0x460   :  { %v3165_v61 = vpop.eup %3164 }
 0x461   :  { %v1523_v57 = vmul.f32 %v3165_v61, %v3163_v26  ;;  %v6955_v26 = vld [vmem:[%s8817_s1 + $0xf0] sm:$0xff]  ;;  %v6967_v61 = vld [vmem:[%s8817_s1 + $0xd8] sm:$0xff] }
 0x463   :  { %v6744_v58 = vadd.f32 %v1523_v57, %v6514_v22  ;;  %1626 = vmatprep.mubr.f32.mxu0 %v1523_v57  ;;  %1697 = vmatprep.mubr.f32.mxu1 %v1523_v57  ;;  %v6973_v57 = vld [vmem:[%s8817_s1 + $0xc0] sm:$0xff] }
 0x466   :  { %v3167_v59 = vpop.eup %3166 }
 0x467   :  { %v1527_v3 = vadd.f32 1.0, %v3167_v59  ;;  %v6985_v59 = vld [vmem:[%s8817_s1 + $0xa8] sm:$0xff] }
 0x468   :  { %v3169_v4 = vpop.eup %3168 }
 0x469   :  { %3172 = vrcp.f32 %v1527_v3  ;;  %v1536_v5 = vadd.f32 1.0, %v3169_v4  ;;  %v3171_v7 = vpop.eup %3170  ;;  %v6997_v3 = vld [vmem:[%s8817_s1 + $0xa0] sm:$0xff]  ;;  %v7003_v4 = vld [vmem:[%s8817_s1 + $0xb0] sm:$0xff] }
 0x46a   :  { %3174 = vtanh.f32 %v1539_v2  ;;  %v1547_v12 = vadd.f32 1.0, %v3171_v7  ;;  %v6991_v2 = vld [vmem:[%s8817_s1 + $0xb8] sm:$0xff]  ;;  %9882 = vst [vmem:[#allocation13_spill] sm:$0xff] %v6997_v3  ;;  %9883 = vst [vmem:[#allocation14_spill] sm:$0xff] %v7003_v4 }
 0x46b   :  { %3176 = vrcp.f32 %v1536_v5  ;;  %v7009_v5 = vld [vmem:[%s8817_s1 + $0x88] sm:$0xff]  ;;  %v7015_v7 = vld [vmem:[%s8817_s1 + $0x98] sm:$0xff] }
 0x46c   :  { %3178 = vrcp.f32 %v1547_v12  ;;  %9884 = vst [vmem:[#allocation15_spill] sm:$0xff] %v7009_v5  ;;  %9885 = vst [vmem:[#allocation16_spill] sm:$0xff] %v7015_v7  ;;  %v7039_v12 = vld [vmem:[%s8817_s1 + $0x78] sm:$0xff] }
 0x46d   :  { %9889 = vst [vmem:[#allocation20_spill] sm:$0xff] %v7039_v12 }
 0x476   :  { %v3173_v9 = vpop.eup %3172 }
 0x477   :  { %v3175_v10 = vpop.eup %3174 }
 0x478   :  { %v3177_v11 = vpop.eup %3176  ;;  %v1551_v22 = vmul.f32 %v3175_v10, %v3173_v9  ;;  %v7021_v9 = vld [vmem:[%s8817_s1 + $0x80] sm:$0xff]  ;;  %v7027_v10 = vld [vmem:[%s8817_s1 + $0x90] sm:$0xff] }
 0x479   :  { %v1550_v13 = vmul.f32 %v3177_v11, %v6517_v23  ;;  %v3179_v20 = vpop.eup %3178  ;;  %v6763_v23 = vld [vmem:[%s8817_s1 + $0x1f0] sm:$0xff]  ;;  %9886 = vst [vmem:[#allocation17_spill] sm:$0xff] %v7021_v9  ;;  %9887 = vst [vmem:[#allocation18_spill] sm:$0xff] %v7027_v10  ;;  %v7033_v11 = vld [vmem:[%s8817_s1 + $0x68] sm:$0xff] }
 0x47a   :  { %9888 = vst [vmem:[#allocation19_spill] sm:$0xff] %v7033_v11 }
 0x47b   :  { %v6747_v16 = vadd.f32 %v1551_v22, %v1550_v13  ;;  %v7045_v13 = vld [vmem:[%s8817_s1 + $0x60] sm:$0xff]  ;;  %v7051_v22 = vld [vmem:[%s8817_s1 + $0x70] sm:$0xff] }
 0x47c   :  { %9890 = vst [vmem:[#allocation21_spill] sm:$0xff] %v7045_v13  ;;  %9891 = vst [vmem:[#allocation22_spill] sm:$0xff] %v7051_v22 }
 0x47d   :  { %3180 = vtanh.f32 %v6747_v16 }
 0x48a   :  { %v3181_v21 = vpop.eup %3180 }
 0x48b   :  { %v6750_v35 = vmul.f32 %v3181_v21, %v3179_v20  ;;  %v7057_v20 = vld [vmem:[%s8817_s1 + $0x48] sm:$0xff]  ;;  %v7063_v21 = vld [vmem:[%s8817_s1 + $0x58] sm:$0xff] }
 0x48c   :  { %9892 = vst [vmem:[#allocation23_spill] sm:$0xff] %v7057_v20  ;;  %9893 = vst [vmem:[#allocation24_spill] sm:$0xff] %v7063_v21 }
 0x48d   :  { %1627 = vmatmul.mubr.f32.vlgmr.msra.gmra.mxu0 %v6750_v35  ;;  %1698 = vmatmul.mubr.f32.vlgmr.msra.gmra.mxu1 %v6750_v35 }
 0x48e   :  { %1707 = vmatpush1.msra.mxu0 %v6757_v30  ;;  %1778 = vmatpush1.msra.mxu1 %v6763_v23 }
 0x48f   :  { %1708 = vmatprep.subr.mxu0 %v6769_v29  ;;  %1779 = vmatprep.subr.mxu1 %v6775_v28 }
 0x490   :  { %1709 = vmatpush1.msra.mxu0 %v6781_v37  ;;  %1780 = vmatpush1.msra.mxu1 %v6787_v24 }
 0x491   :  { %1710 = vmatprep.subr.mxu0 %v6793_v39  ;;  %1781 = vmatprep.subr.mxu1 %v6799_v27 }
 0x492   :  { %1711 = vmatpush1.msra.mxu0 %v6805_v34  ;;  %1782 = vmatpush1.msra.mxu1 %v6811_v32 }
 0x493   :  { %1712 = vmatprep.subr.mxu0 %v6817_v17  ;;  %1783 = vmatprep.subr.mxu1 %v6823_v33 }
 0x494   :  { %1713 = vmatpush1.msra.mxu0 %v6829_v8  ;;  %1784 = vmatpush1.msra.mxu1 %v6835_v38 }
 0x495   :  { %1714 = vmatprep.subr.mxu0 %v6841_v18  ;;  %1785 = vmatprep.subr.mxu1 %v6847_v42 }
 0x496   :  { %1715 = vmatpush1.msra.mxu0 %v6853_v36  ;;  %1786 = vmatpush1.msra.mxu1 %v6859_v40 }
 0x497   :  { %1716 = vmatprep.subr.mxu0 %v6865_v50  ;;  %1787 = vmatprep.subr.mxu1 %v6871_v41 }
 0x498   :  { %1717 = vmatpush1.msra.mxu0 %v6877_v43  ;;  %1788 = vmatpush1.msra.mxu1 %v6883_v44 }
 0x499   :  { %1718 = vmatprep.subr.mxu0 %v6889_v45  ;;  %1789 = vmatprep.subr.mxu1 %v6895_v47 }
 0x49a   :  { %1719 = vmatpush1.msra.mxu0 %v6901_v48  ;;  %1790 = vmatpush1.msra.mxu1 %v6907_v55 }
 0x49b   :  { %1720 = vmatprep.subr.mxu0 %v6913_v54  ;;  %1791 = vmatprep.subr.mxu1 %v6919_v53 }
 0x49c   :  { %1721 = vmatpush1.msra.mxu0 %v6925_v52  ;;  %1792 = vmatpush1.msra.mxu1 %v6931_v60 }
 0x49d   :  { %1722 = vmatprep.subr.mxu0 %v6937_v63  ;;  %1793 = vmatprep.subr.mxu1 %v6943_v56 }
 0x49e   :  { %1723 = vmatpush1.msra.mxu0 %v6949_v0  ;;  %1794 = vmatpush1.msra.mxu1 %v6955_v26 }
 0x49f   :  { %1724 = vmatprep.subr.mxu0 %v6961_v1  ;;  %1795 = vmatprep.subr.mxu1 %v6967_v61 }
 0x4a0   :  { %1725 = vmatpush1.msra.mxu0 %v6973_v57  ;;  %1796 = vmatpush1.msra.mxu1 %v6979_v49 }
 0x4a1   :  { %1726 = vmatprep.subr.mxu0 %v6985_v59  ;;  %1797 = vmatprep.subr.mxu1 %v6991_v2 }
 0x4a2   :  { %1727 = vmatpush1.msra.mxu0 %v6997_v3  ;;  %1798 = vmatpush1.msra.mxu1 %v7003_v4 }
 0x4a3   :  { %1728 = vmatprep.subr.mxu0 %v7009_v5  ;;  %1799 = vmatprep.subr.mxu1 %v7015_v7 }
 0x4a4   :  { %1729 = vmatpush1.msra.mxu0 %v7021_v9  ;;  %1800 = vmatpush1.msra.mxu1 %v7027_v10 }
 0x4a5   :  { %1730 = vmatprep.subr.mxu0 %v7033_v11  ;;  %1801 = vmatprep.subr.mxu1 %v7039_v12 }
 0x4a6   :  { %1731 = vmatpush1.msra.mxu0 %v7045_v13  ;;  %1802 = vmatpush1.msra.mxu1 %v7051_v22  ;;  %v7069_v13 = vld [vmem:[%s8817_s1 + $0x40] sm:$0xff]  ;;  %v7075_v22 = vld [vmem:[%s8817_s1 + $0x50] sm:$0xff] }
 0x4a7   :  { %1732 = vmatprep.subr.mxu0 %v7057_v20  ;;  %1803 = vmatprep.subr.mxu1 %v7063_v21  ;;  %9894 = vst [vmem:[#allocation25_spill] sm:$0xff] %v7069_v13  ;;  %9895 = vst [vmem:[#allocation26_spill] sm:$0xff] %v7075_v22  ;;  %v7081_v20 = vld [vmem:[%s8817_s1 + $0x28] sm:$0xff]  ;;  %v7087_v21 = vld [vmem:[%s8817_s1 + $0x38] sm:$0xff] }
 0x4a8   :  { %1733 = vmatpush1.msra.mxu0 %v7069_v13  ;;  %1804 = vmatpush1.msra.mxu1 %v7075_v22  ;;  %9896 = vst [vmem:[#allocation27_spill] sm:$0xff] %v7081_v20  ;;  %9897 = vst [vmem:[#allocation28_spill] sm:$0xff] %v7087_v21  ;;  %v7093_v13 = vld [vmem:[%s8817_s1 + $0x20] sm:$0xff]  ;;  %v7099_v22 = vld [vmem:[%s8817_s1 + $0x30] sm:$0xff] }
 0x4a9   :  { %1734 = vmatprep.subr.mxu0 %v7081_v20  ;;  %1805 = vmatprep.subr.mxu1 %v7087_v21  ;;  %9898 = vst [vmem:[#allocation29_spill] sm:$0xff] %v7093_v13  ;;  %9899 = vst [vmem:[#allocation30_spill] sm:$0xff] %v7099_v22  ;;  %v7105_v20 = vld [vmem:[%s8817_s1 + $0x8] sm:$0xff]  ;;  %v7111_v21 = vld [vmem:[%s8817_s1 + $0x18] sm:$0xff] }
 0x4aa   :  { %1735 = vmatpush1.msra.mxu0 %v7093_v13  ;;  %1806 = vmatpush1.msra.mxu1 %v7099_v22  ;;  %9900 = vst [vmem:[#allocation31_spill] sm:$0xff] %v7105_v20  ;;  %9901 = vst [vmem:[#allocation32_spill] sm:$0xff] %v7111_v21  ;;  %v7117_v13 = vld [vmem:[%s8817_s1] sm:$0xff] }
 0x4ab   :  { %1736 = vmatprep.subr.mxu0 %v7105_v20  ;;  %1807 = vmatprep.subr.mxu1 %v7111_v21  ;;  %9902 = vst [vmem:[#allocation33_spill] sm:$0xff] %v7117_v13  ;;  %v7124_v20 = vld [vmem:[%s8817_s1 + $0x10] sm:$0xff]  ;;  %v7133_v21 = vld [vmem:[%s8818_s2 + $0x1e8] sm:$0xff] }
 0x4ac   :  { %1737 = vmatpush1.msra.mxu0 %v7117_v13  ;;  %1770 = vmatprep.mubr.f32.mxu0 %v9749_v51  ;;  %9903 = vst [vmem:[#allocation34_spill] sm:$0xff] %v7124_v20  ;;  %9904 = vst [vmem:[#allocation35_spill] sm:$0xff] %v7133_v21  ;;  %v7139_v13 = vld [vmem:[%s8818_s2 + $0x1f8] sm:$0xff] }
 0x4ad   :  { %1808 = vmatpush1.msra.mxu1 %v7124_v20  ;;  %1841 = vmatprep.mubr.f32.mxu1 %v9749_v51  ;;  %9905 = vst [vmem:[#allocation36_spill] sm:$0xff] %v7139_v13  ;;  %v7145_v20 = vld [vmem:[%s8818_s2 + $0x1e0] sm:$0xff] }
 0x4ae   :  { %1771 = vmatmul.mubr.f32.vlgmr.msra.gmra.mxu0 %v6750_v35  ;;  %1842 = vmatmul.mubr.f32.vlgmr.msra.gmra.mxu1 %v6750_v35  ;;  %9906 = vst [vmem:[#allocation37_spill] sm:$0xff] %v7145_v20  ;;  %v7151_v35 = vld [vmem:[%s8818_s2 + $0x1f0] sm:$0xff] }
 0x4af   :  { %1933 = vmatprep.subr.mxu0 %v7133_v21  ;;  %2004 = vmatprep.subr.mxu1 %v7139_v13  ;;  %9907 = vst [vmem:[#allocation38_spill] sm:$0xff] %v7151_v35  ;;  %v7157_v21 = vld [vmem:[%s8818_s2 + $0x1c8] sm:$0xff]  ;;  %v7163_v13 = vld [vmem:[%s8818_s2 + $0x1d8] sm:$0xff] }
 0x4b0   :  { %1934 = vmatpush1.msra.mxu0 %v7145_v20  ;;  %2005 = vmatpush1.msra.mxu1 %v7151_v35  ;;  %9908 = vst [vmem:[#allocation39_spill] sm:$0xff] %v7157_v21  ;;  %9909 = vst [vmem:[#allocation40_spill] sm:$0xff] %v7163_v13  ;;  %v7169_v20 = vld [vmem:[%s8818_s2 + $0x1c0] sm:$0xff]  ;;  %v7175_v35 = vld [vmem:[%s8818_s2 + $0x1d0] sm:$0xff] }
 0x4b1   :  { %1935 = vmatprep.subr.mxu0 %v7157_v21  ;;  %2006 = vmatprep.subr.mxu1 %v7163_v13  ;;  %9910 = vst [vmem:[#allocation41_spill] sm:$0xff] %v7169_v20  ;;  %9911 = vst [vmem:[#allocation42_spill] sm:$0xff] %v7175_v35  ;;  %v7181_v21 = vld [vmem:[%s8818_s2 + $0x1a8] sm:$0xff]  ;;  %v7187_v13 = vld [vmem:[%s8818_s2 + $0x1b8] sm:$0xff] }
 0x4b2   :  { %1936 = vmatpush1.msra.mxu0 %v7169_v20  ;;  %2007 = vmatpush1.msra.mxu1 %v7175_v35  ;;  %9912 = vst [vmem:[#allocation43_spill] sm:$0xff] %v7181_v21  ;;  %9913 = vst [vmem:[#allocation44_spill] sm:$0xff] %v7187_v13  ;;  %v7193_v20 = vld [vmem:[%s8818_s2 + $0x1a0] sm:$0xff]  ;;  %v7199_v35 = vld [vmem:[%s8818_s2 + $0x1b0] sm:$0xff] }
 0x4b3   :  { %1937 = vmatprep.subr.mxu0 %v7181_v21  ;;  %2008 = vmatprep.subr.mxu1 %v7187_v13  ;;  %9914 = vst [vmem:[#allocation45_spill] sm:$0xff] %v7193_v20  ;;  %9915 = vst [vmem:[#allocation46_spill] sm:$0xff] %v7199_v35  ;;  %v7205_v21 = vld [vmem:[%s8818_s2 + $0x188] sm:$0xff]  ;;  %v7211_v13 = vld [vmem:[%s8818_s2 + $0x198] sm:$0xff] }
 0x4b4   :  { %1938 = vmatpush1.msra.mxu0 %v7193_v20  ;;  %2009 = vmatpush1.msra.mxu1 %v7199_v35  ;;  %9916 = vst [vmem:[#allocation47_spill] sm:$0xff] %v7205_v21  ;;  %9917 = vst [vmem:[#allocation48_spill] sm:$0xff] %v7211_v13  ;;  %v7217_v20 = vld [vmem:[%s8818_s2 + $0x180] sm:$0xff]  ;;  %v7223_v35 = vld [vmem:[%s8818_s2 + $0x190] sm:$0xff] }
 0x4b5   :  { %1939 = vmatprep.subr.mxu0 %v7205_v21  ;;  %2010 = vmatprep.subr.mxu1 %v7211_v13  ;;  %9918 = vst [vmem:[#allocation49_spill] sm:$0xff] %v7217_v20  ;;  %9919 = vst [vmem:[#allocation50_spill] sm:$0xff] %v7223_v35  ;;  %v7229_v21 = vld [vmem:[%s8818_s2 + $0x168] sm:$0xff]  ;;  %v7235_v13 = vld [vmem:[%s8818_s2 + $0x178] sm:$0xff] }
 0x4b6   :  { %1940 = vmatpush1.msra.mxu0 %v7217_v20  ;;  %2011 = vmatpush1.msra.mxu1 %v7223_v35  ;;  %9920 = vst [vmem:[#allocation51_spill] sm:$0xff] %v7229_v21  ;;  %9921 = vst [vmem:[#allocation52_spill] sm:$0xff] %v7235_v13  ;;  %v7241_v20 = vld [vmem:[%s8818_s2 + $0x160] sm:$0xff]  ;;  %v7247_v35 = vld [vmem:[%s8818_s2 + $0x170] sm:$0xff] }
 0x4b7   :  { %1941 = vmatprep.subr.mxu0 %v7229_v21  ;;  %2012 = vmatprep.subr.mxu1 %v7235_v13  ;;  %9922 = vst [vmem:[#allocation53_spill] sm:$0xff] %v7241_v20  ;;  %9923 = vst [vmem:[#allocation54_spill] sm:$0xff] %v7247_v35  ;;  %v7253_v21 = vld [vmem:[%s8818_s2 + $0x148] sm:$0xff]  ;;  %v7259_v13 = vld [vmem:[%s8818_s2 + $0x158] sm:$0xff] }
 0x4b8   :  { %1942 = vmatpush1.msra.mxu0 %v7241_v20  ;;  %2013 = vmatpush1.msra.mxu1 %v7247_v35  ;;  %9924 = vst [vmem:[#allocation55_spill] sm:$0xff] %v7253_v21  ;;  %9925 = vst [vmem:[#allocation56_spill] sm:$0xff] %v7259_v13  ;;  %v7265_v20 = vld [vmem:[%s8818_s2 + $0x140] sm:$0xff]  ;;  %v7271_v35 = vld [vmem:[%s8818_s2 + $0x150] sm:$0xff] }
 0x4b9   :  { %1943 = vmatprep.subr.mxu0 %v7253_v21  ;;  %2014 = vmatprep.subr.mxu1 %v7259_v13  ;;  %9926 = vst [vmem:[#allocation57_spill] sm:$0xff] %v7265_v20  ;;  %9927 = vst [vmem:[#allocation58_spill] sm:$0xff] %v7271_v35  ;;  %v7277_v21 = vld [vmem:[%s8818_s2 + $0x128] sm:$0xff]  ;;  %v7283_v13 = vld [vmem:[%s8818_s2 + $0x138] sm:$0xff] }
 0x4ba   :  { %1944 = vmatpush1.msra.mxu0 %v7265_v20  ;;  %2015 = vmatpush1.msra.mxu1 %v7271_v35  ;;  %9928 = vst [vmem:[#allocation59_spill] sm:$0xff] %v7277_v21  ;;  %9929 = vst [vmem:[#allocation60_spill] sm:$0xff] %v7283_v13  ;;  %v7289_v20 = vld [vmem:[%s8818_s2 + $0x120] sm:$0xff]  ;;  %v7295_v35 = vld [vmem:[%s8818_s2 + $0x130] sm:$0xff] }
 0x4bb   :  { %1945 = vmatprep.subr.mxu0 %v7277_v21  ;;  %2016 = vmatprep.subr.mxu1 %v7283_v13  ;;  %9930 = vst [vmem:[#allocation61_spill] sm:$0xff] %v7289_v20  ;;  %9931 = vst [vmem:[#allocation62_spill] sm:$0xff] %v7295_v35  ;;  %v7301_v21 = vld [vmem:[%s8818_s2 + $0x108] sm:$0xff]  ;;  %v7307_v13 = vld [vmem:[%s8818_s2 + $0x118] sm:$0xff] }
 0x4bc   :  { %1946 = vmatpush1.msra.mxu0 %v7289_v20  ;;  %2017 = vmatpush1.msra.mxu1 %v7295_v35  ;;  %9932 = vst [vmem:[#allocation63_spill] sm:$0xff] %v7301_v21  ;;  %9933 = vst [vmem:[#allocation64_spill] sm:$0xff] %v7307_v13  ;;  %v7313_v20 = vld [vmem:[%s8818_s2 + $0x100] sm:$0xff]  ;;  %v7319_v35 = vld [vmem:[%s8818_s2 + $0x110] sm:$0xff] }
 0x4bd   :  { %1947 = vmatprep.subr.mxu0 %v7301_v21  ;;  %2018 = vmatprep.subr.mxu1 %v7307_v13  ;;  %9934 = vst [vmem:[#allocation65_spill] sm:$0xff] %v7313_v20  ;;  %9935 = vst [vmem:[#allocation66_spill] sm:$0xff] %v7319_v35  ;;  %v7325_v21 = vld [vmem:[%s8818_s2 + $0xe8] sm:$0xff]  ;;  %v7331_v13 = vld [vmem:[%s8818_s2 + $0xf8] sm:$0xff] }
 0x4be   :  { %1948 = vmatpush1.msra.mxu0 %v7313_v20  ;;  %2019 = vmatpush1.msra.mxu1 %v7319_v35  ;;  %9936 = vst [vmem:[#allocation67_spill] sm:$0xff] %v7325_v21  ;;  %9937 = vst [vmem:[#allocation68_spill] sm:$0xff] %v7331_v13  ;;  %v7337_v20 = vld [vmem:[%s8818_s2 + $0xe0] sm:$0xff]  ;;  %v7343_v35 = vld [vmem:[%s8818_s2 + $0xf0] sm:$0xff] }
 0x4bf   :  { %1949 = vmatprep.subr.mxu0 %v7325_v21  ;;  %2020 = vmatprep.subr.mxu1 %v7331_v13  ;;  %9938 = vst [vmem:[#allocation69_spill] sm:$0xff] %v7337_v20  ;;  %9939 = vst [vmem:[#allocation70_spill] sm:$0xff] %v7343_v35  ;;  %v7349_v21 = vld [vmem:[%s8818_s2 + $0xc8] sm:$0xff]  ;;  %v7355_v13 = vld [vmem:[%s8818_s2 + $0xd8] sm:$0xff] }
 0x4c0   :  { %1950 = vmatpush1.msra.mxu0 %v7337_v20  ;;  %2021 = vmatpush1.msra.mxu1 %v7343_v35  ;;  %9940 = vst [vmem:[#allocation71_spill] sm:$0xff] %v7349_v21  ;;  %9941 = vst [vmem:[#allocation72_spill] sm:$0xff] %v7355_v13  ;;  %v7361_v20 = vld [vmem:[%s8818_s2 + $0xc0] sm:$0xff]  ;;  %v7367_v35 = vld [vmem:[%s8818_s2 + $0xd0] sm:$0xff] }
 0x4c1   :  { %1951 = vmatprep.subr.mxu0 %v7349_v21  ;;  %2022 = vmatprep.subr.mxu1 %v7355_v13  ;;  %9942 = vst [vmem:[#allocation73_spill] sm:$0xff] %v7361_v20  ;;  %9943 = vst [vmem:[#allocation74_spill] sm:$0xff] %v7367_v35  ;;  %v7373_v21 = vld [vmem:[%s8818_s2 + $0xa8] sm:$0xff]  ;;  %v7379_v13 = vld [vmem:[%s8818_s2 + $0xb8] sm:$0xff] }
 0x4c2   :  { %1952 = vmatpush1.msra.mxu0 %v7361_v20  ;;  %2023 = vmatpush1.msra.mxu1 %v7367_v35  ;;  %9944 = vst [vmem:[#allocation75_spill] sm:$0xff] %v7373_v21  ;;  %9945 = vst [vmem:[#allocation76_spill] sm:$0xff] %v7379_v13  ;;  %v7385_v20 = vld [vmem:[%s8818_s2 + $0xa0] sm:$0xff]  ;;  %v7391_v35 = vld [vmem:[%s8818_s2 + $0xb0] sm:$0xff] }
 0x4c3   :  { %1953 = vmatprep.subr.mxu0 %v7373_v21  ;;  %2024 = vmatprep.subr.mxu1 %v7379_v13  ;;  %9946 = vst [vmem:[#allocation77_spill] sm:$0xff] %v7385_v20  ;;  %9947 = vst [vmem:[#allocation78_spill] sm:$0xff] %v7391_v35  ;;  %v7397_v21 = vld [vmem:[%s8818_s2 + $0x88] sm:$0xff]  ;;  %v7403_v13 = vld [vmem:[%s8818_s2 + $0x98] sm:$0xff] }
 0x4c4   :  { %1954 = vmatpush1.msra.mxu0 %v7385_v20  ;;  %2025 = vmatpush1.msra.mxu1 %v7391_v35  ;;  %9948 = vst [vmem:[#allocation79_spill] sm:$0xff] %v7397_v21  ;;  %9949 = vst [vmem:[#allocation80_spill] sm:$0xff] %v7403_v13  ;;  %v7409_v20 = vld [vmem:[%s8818_s2 + $0x80] sm:$0xff]  ;;  %v7415_v35 = vld [vmem:[%s8818_s2 + $0x90] sm:$0xff] }
 0x4c5   :  { %1955 = vmatprep.subr.mxu0 %v7397_v21  ;;  %2026 = vmatprep.subr.mxu1 %v7403_v13  ;;  %9950 = vst [vmem:[#allocation81_spill] sm:$0xff] %v7409_v20  ;;  %9951 = vst [vmem:[#allocation82_spill] sm:$0xff] %v7415_v35  ;;  %v7421_v21 = vld [vmem:[%s8818_s2 + $0x68] sm:$0xff]  ;;  %v7427_v13 = vld [vmem:[%s8818_s2 + $0x78] sm:$0xff] }
 0x4c6   :  { %1956 = vmatpush1.msra.mxu0 %v7409_v20  ;;  %2027 = vmatpush1.msra.mxu1 %v7415_v35  ;;  %9952 = vst [vmem:[#allocation83_spill] sm:$0xff] %v7421_v21  ;;  %9953 = vst [vmem:[#allocation84_spill] sm:$0xff] %v7427_v13  ;;  %v7433_v20 = vld [vmem:[%s8818_s2 + $0x60] sm:$0xff]  ;;  %v7439_v35 = vld [vmem:[%s8818_s2 + $0x70] sm:$0xff] }
 0x4c7   :  { %1957 = vmatprep.subr.mxu0 %v7421_v21  ;;  %2028 = vmatprep.subr.mxu1 %v7427_v13  ;;  %9954 = vst [vmem:[#allocation85_spill] sm:$0xff] %v7433_v20  ;;  %9955 = vst [vmem:[#allocation86_spill] sm:$0xff] %v7439_v35  ;;  %v7445_v21 = vld [vmem:[%s8818_s2 + $0x48] sm:$0xff]  ;;  %v7451_v13 = vld [vmem:[%s8818_s2 + $0x58] sm:$0xff] }
 0x4c8   :  { %1958 = vmatpush1.msra.mxu0 %v7433_v20  ;;  %2029 = vmatpush1.msra.mxu1 %v7439_v35  ;;  %9956 = vst [vmem:[#allocation87_spill] sm:$0xff] %v7445_v21  ;;  %9957 = vst [vmem:[#allocation88_spill] sm:$0xff] %v7451_v13  ;;  %v7457_v20 = vld [vmem:[%s8818_s2 + $0x40] sm:$0xff]  ;;  %v7463_v35 = vld [vmem:[%s8818_s2 + $0x50] sm:$0xff] }
 0x4c9   :  { %1959 = vmatprep.subr.mxu0 %v7445_v21  ;;  %2030 = vmatprep.subr.mxu1 %v7451_v13  ;;  %9958 = vst [vmem:[#allocation89_spill] sm:$0xff] %v7457_v20  ;;  %9959 = vst [vmem:[#allocation90_spill] sm:$0xff] %v7463_v35  ;;  %v7469_v21 = vld [vmem:[%s8818_s2 + $0x28] sm:$0xff]  ;;  %v7475_v13 = vld [vmem:[%s8818_s2 + $0x38] sm:$0xff] }
 0x4ca   :  { %1960 = vmatpush1.msra.mxu0 %v7457_v20  ;;  %2031 = vmatpush1.msra.mxu1 %v7463_v35  ;;  %9960 = vst [vmem:[#allocation91_spill] sm:$0xff] %v7469_v21  ;;  %9961 = vst [vmem:[#allocation92_spill] sm:$0xff] %v7475_v13  ;;  %v7481_v20 = vld [vmem:[%s8818_s2 + $0x20] sm:$0xff]  ;;  %v7487_v35 = vld [vmem:[%s8818_s2 + $0x30] sm:$0xff] }
 0x4cb   :  { %1961 = vmatprep.subr.mxu0 %v7469_v21  ;;  %2032 = vmatprep.subr.mxu1 %v7475_v13  ;;  %9962 = vst [vmem:[#allocation93_spill] sm:$0xff] %v7481_v20  ;;  %9963 = vst [vmem:[#allocation94_spill] sm:$0xff] %v7487_v35  ;;  %v7493_v21 = vld [vmem:[%s8818_s2 + $0x8] sm:$0xff]  ;;  %v7499_v13 = vld [vmem:[%s8818_s2 + $0x18] sm:$0xff] }
 0x4cc   :  { %1962 = vmatpush1.msra.mxu0 %v7481_v20  ;;  %2033 = vmatpush1.msra.mxu1 %v7487_v35  ;;  %9964 = vst [vmem:[#allocation95_spill] sm:$0xff] %v7493_v21  ;;  %9965 = vst [vmem:[#allocation96_spill] sm:$0xff] %v7499_v13  ;;  %v7505_v20 = vld [vmem:[%s8818_s2] sm:$0xff]  ;;  %v7511_v35 = vld [vmem:[%s8818_s2 + $0x10] sm:$0xff] }
 0x4cd   :  { %1963 = vmatprep.subr.mxu0 %v7493_v21  ;;  %2034 = vmatprep.subr.mxu1 %v7499_v13  ;;  %9966 = vst [vmem:[#allocation97_spill] sm:$0xff] %v7505_v20  ;;  %9967 = vst [vmem:[#allocation98_spill] sm:$0xff] %v7511_v35  ;;  %v7517_v21 = vld [vmem:[%s8818_s2 + $0x3e8] sm:$0xff]  ;;  %v7523_v13 = vld [vmem:[%s8818_s2 + $0x3f8] sm:$0xff] }
 0x4ce   :  { %1964 = vmatpush1.msra.mxu0 %v7505_v20  ;;  %2035 = vmatpush1.msra.mxu1 %v7511_v35  ;;  %9968 = vst [vmem:[#allocation99_spill] sm:$0xff] %v7517_v21  ;;  %9969 = vst [vmem:[#allocation100_spill] sm:$0xff] %v7523_v13  ;;  %v7529_v20 = vld [vmem:[%s8818_s2 + $0x3e0] sm:$0xff]  ;;  %v7535_v35 = vld [vmem:[%s8818_s2 + $0x3f0] sm:$0xff] }
 0x4cf   :  { %1965 = vmatprep.subr.mxu0 %v7517_v21  ;;  %2036 = vmatprep.subr.mxu1 %v7523_v13  ;;  %9970 = vst [vmem:[#allocation101_spill] sm:$0xff] %v7529_v20  ;;  %9971 = vst [vmem:[#allocation102_spill] sm:$0xff] %v7535_v35  ;;  %v7541_v21 = vld [vmem:[%s8818_s2 + $0x3c8] sm:$0xff]  ;;  %v7547_v13 = vld [vmem:[%s8818_s2 + $0x3d8] sm:$0xff] }
 0x4d0   :  { %1966 = vmatpush2.msra.mxu0 %v7529_v20  ;;  %2037 = vmatpush2.msra.mxu1 %v7535_v35  ;;  %9972 = vst [vmem:[#allocation103_spill] sm:$0xff] %v7541_v21  ;;  %9973 = vst [vmem:[#allocation104_spill] sm:$0xff] %v7547_v13  ;;  %v7553_v20 = vld [vmem:[%s8818_s2 + $0x3c0] sm:$0xff]  ;;  %v7559_v35 = vld [vmem:[%s8818_s2 + $0x3d0] sm:$0xff] }
 0x4d1   :  { %1967 = vmatprep.subr.mxu0 %v7541_v21  ;;  %2038 = vmatprep.subr.mxu1 %v7547_v13  ;;  %9974 = vst [vmem:[#allocation105_spill] sm:$0xff] %v7553_v20  ;;  %9975 = vst [vmem:[#allocation106_spill] sm:$0xff] %v7559_v35  ;;  %v7565_v21 = vld [vmem:[%s8818_s2 + $0x3a8] sm:$0xff]  ;;  %v7571_v13 = vld [vmem:[%s8818_s2 + $0x3b8] sm:$0xff] }
 0x4d2   :  { %1968 = vmatpush2.msra.mxu0 %v7553_v20  ;;  %2039 = vmatpush2.msra.mxu1 %v7559_v35  ;;  %9976 = vst [vmem:[#allocation107_spill] sm:$0xff] %v7565_v21  ;;  %9977 = vst [vmem:[#allocation108_spill] sm:$0xff] %v7571_v13  ;;  %v7577_v20 = vld [vmem:[%s8818_s2 + $0x3a0] sm:$0xff]  ;;  %v7583_v35 = vld [vmem:[%s8818_s2 + $0x3b0] sm:$0xff] }
 0x4d3   :  { %1969 = vmatprep.subr.mxu0 %v7565_v21  ;;  %2040 = vmatprep.subr.mxu1 %v7571_v13  ;;  %9978 = vst [vmem:[#allocation109_spill] sm:$0xff] %v7577_v20  ;;  %9979 = vst [vmem:[#allocation110_spill] sm:$0xff] %v7583_v35  ;;  %v7589_v21 = vld [vmem:[%s8818_s2 + $0x388] sm:$0xff]  ;;  %v7595_v13 = vld [vmem:[%s8818_s2 + $0x398] sm:$0xff] }
 0x4d4   :  { %1970 = vmatpush2.msra.mxu0 %v7577_v20  ;;  %2041 = vmatpush2.msra.mxu1 %v7583_v35  ;;  %9980 = vst [vmem:[#allocation111_spill] sm:$0xff] %v7589_v21  ;;  %9981 = vst [vmem:[#allocation112_spill] sm:$0xff] %v7595_v13  ;;  %v7601_v20 = vld [vmem:[%s8818_s2 + $0x380] sm:$0xff]  ;;  %v7607_v35 = vld [vmem:[%s8818_s2 + $0x390] sm:$0xff] }
 0x4d5   :  { %1971 = vmatprep.subr.mxu0 %v7589_v21  ;;  %2042 = vmatprep.subr.mxu1 %v7595_v13  ;;  %9982 = vst [vmem:[#allocation113_spill] sm:$0xff] %v7601_v20  ;;  %9983 = vst [vmem:[#allocation114_spill] sm:$0xff] %v7607_v35  ;;  %v7613_v21 = vld [vmem:[%s8818_s2 + $0x368] sm:$0xff]  ;;  %v7619_v13 = vld [vmem:[%s8818_s2 + $0x378] sm:$0xff] }
 0x4d6   :  { %1972 = vmatpush2.msra.mxu0 %v7601_v20  ;;  %2043 = vmatpush2.msra.mxu1 %v7607_v35  ;;  %9984 = vst [vmem:[#allocation115_spill] sm:$0xff] %v7613_v21  ;;  %9985 = vst [vmem:[#allocation116_spill] sm:$0xff] %v7619_v13  ;;  %v7625_v20 = vld [vmem:[%s8818_s2 + $0x360] sm:$0xff]  ;;  %v7631_v35 = vld [vmem:[%s8818_s2 + $0x370] sm:$0xff] }
 0x4d7   :  { %1973 = vmatprep.subr.mxu0 %v7613_v21  ;;  %2044 = vmatprep.subr.mxu1 %v7619_v13  ;;  %9986 = vst [vmem:[#allocation117_spill] sm:$0xff] %v7625_v20  ;;  %9987 = vst [vmem:[#allocation118_spill] sm:$0xff] %v7631_v35  ;;  %v7637_v21 = vld [vmem:[%s8818_s2 + $0x348] sm:$0xff]  ;;  %v7643_v13 = vld [vmem:[%s8818_s2 + $0x358] sm:$0xff] }
 0x4d8   :  { %1974 = vmatpush2.msra.mxu0 %v7625_v20  ;;  %2045 = vmatpush2.msra.mxu1 %v7631_v35  ;;  %9988 = vst [vmem:[#allocation119_spill] sm:$0xff] %v7637_v21  ;;  %9989 = vst [vmem:[#allocation120_spill] sm:$0xff] %v7643_v13  ;;  %v7649_v20 = vld [vmem:[%s8818_s2 + $0x340] sm:$0xff]  ;;  %v7655_v35 = vld [vmem:[%s8818_s2 + $0x350] sm:$0xff] }
 0x4d9   :  { %1975 = vmatprep.subr.mxu0 %v7637_v21  ;;  %2046 = vmatprep.subr.mxu1 %v7643_v13  ;;  %9990 = vst [vmem:[#allocation121_spill] sm:$0xff] %v7649_v20  ;;  %9991 = vst [vmem:[#allocation122_spill] sm:$0xff] %v7655_v35  ;;  %v7661_v21 = vld [vmem:[%s8818_s2 + $0x328] sm:$0xff]  ;;  %v7667_v13 = vld [vmem:[%s8818_s2 + $0x338] sm:$0xff] }
 0x4da   :  { %1976 = vmatpush2.msra.mxu0 %v7649_v20  ;;  %2047 = vmatpush2.msra.mxu1 %v7655_v35  ;;  %9992 = vst [vmem:[#allocation123_spill] sm:$0xff] %v7661_v21  ;;  %9993 = vst [vmem:[#allocation124_spill] sm:$0xff] %v7667_v13  ;;  %v7673_v20 = vld [vmem:[%s8818_s2 + $0x320] sm:$0xff]  ;;  %v7679_v35 = vld [vmem:[%s8818_s2 + $0x330] sm:$0xff] }
 0x4db   :  { %1977 = vmatprep.subr.mxu0 %v7661_v21  ;;  %2048 = vmatprep.subr.mxu1 %v7667_v13  ;;  %9994 = vst [vmem:[#allocation125_spill] sm:$0xff] %v7673_v20  ;;  %9995 = vst [vmem:[#allocation126_spill] sm:$0xff] %v7679_v35  ;;  %v7685_v21 = vld [vmem:[%s8818_s2 + $0x308] sm:$0xff]  ;;  %v7691_v13 = vld [vmem:[%s8818_s2 + $0x318] sm:$0xff] }
 0x4dc   :  { %1978 = vmatpush2.msra.mxu0 %v7673_v20  ;;  %2049 = vmatpush2.msra.mxu1 %v7679_v35  ;;  %9996 = vst [vmem:[#allocation127_spill] sm:$0xff] %v7685_v21  ;;  %9997 = vst [vmem:[#allocation128_spill] sm:$0xff] %v7691_v13  ;;  %v7697_v20 = vld [vmem:[%s8818_s2 + $0x300] sm:$0xff]  ;;  %v7703_v35 = vld [vmem:[%s8818_s2 + $0x310] sm:$0xff] }
 0x4dd   :  { %1979 = vmatprep.subr.mxu0 %v7685_v21  ;;  %2050 = vmatprep.subr.mxu1 %v7691_v13  ;;  %9998 = vst [vmem:[#allocation129_spill] sm:$0xff] %v7697_v20  ;;  %9999 = vst [vmem:[#allocation130_spill] sm:$0xff] %v7703_v35  ;;  %v7709_v21 = vld [vmem:[%s8818_s2 + $0x2e8] sm:$0xff]  ;;  %v7715_v13 = vld [vmem:[%s8818_s2 + $0x2f8] sm:$0xff] }
 0x4de   :  { %1980 = vmatpush2.msra.mxu0 %v7697_v20  ;;  %2051 = vmatpush2.msra.mxu1 %v7703_v35  ;;  %10000 = vst [vmem:[#allocation131_spill] sm:$0xff] %v7709_v21  ;;  %10001 = vst [vmem:[#allocation132_spill] sm:$0xff] %v7715_v13  ;;  %v7721_v20 = vld [vmem:[%s8818_s2 + $0x2e0] sm:$0xff]  ;;  %v7727_v35 = vld [vmem:[%s8818_s2 + $0x2f0] sm:$0xff] }
 0x4df   :  { %1981 = vmatprep.subr.mxu0 %v7709_v21  ;;  %2052 = vmatprep.subr.mxu1 %v7715_v13  ;;  %10002 = vst [vmem:[#allocation133_spill] sm:$0xff] %v7721_v20  ;;  %10003 = vst [vmem:[#allocation134_spill] sm:$0xff] %v7727_v35  ;;  %v7733_v21 = vld [vmem:[%s8818_s2 + $0x2c8] sm:$0xff]  ;;  %v7739_v13 = vld [vmem:[%s8818_s2 + $0x2d8] sm:$0xff] }
 0x4e0   :  { %1982 = vmatpush2.msra.mxu0 %v7721_v20  ;;  %2053 = vmatpush2.msra.mxu1 %v7727_v35  ;;  %10004 = vst [vmem:[#allocation135_spill] sm:$0xff] %v7733_v21  ;;  %10005 = vst [vmem:[#allocation136_spill] sm:$0xff] %v7739_v13  ;;  %v7745_v20 = vld [vmem:[%s8818_s2 + $0x2c0] sm:$0xff]  ;;  %v7751_v35 = vld [vmem:[%s8818_s2 + $0x2d0] sm:$0xff] }
 0x4e1   :  { %1983 = vmatprep.subr.mxu0 %v7733_v21  ;;  %2054 = vmatprep.subr.mxu1 %v7739_v13  ;;  %10006 = vst [vmem:[#allocation137_spill] sm:$0xff] %v7745_v20  ;;  %10007 = vst [vmem:[#allocation138_spill] sm:$0xff] %v7751_v35  ;;  %v7757_v21 = vld [vmem:[%s8818_s2 + $0x2a8] sm:$0xff]  ;;  %v7763_v13 = vld [vmem:[%s8818_s2 + $0x2b8] sm:$0xff] }
 0x4e2   :  { %1984 = vmatpush2.msra.mxu0 %v7745_v20  ;;  %2055 = vmatpush2.msra.mxu1 %v7751_v35  ;;  %10008 = vst [vmem:[#allocation139_spill] sm:$0xff] %v7757_v21  ;;  %10009 = vst [vmem:[#allocation140_spill] sm:$0xff] %v7763_v13  ;;  %v7769_v20 = vld [vmem:[%s8818_s2 + $0x2a0] sm:$0xff]  ;;  %v7775_v35 = vld [vmem:[%s8818_s2 + $0x2b0] sm:$0xff] }
 0x4e3   :  { %1985 = vmatprep.subr.mxu0 %v7757_v21  ;;  %2056 = vmatprep.subr.mxu1 %v7763_v13  ;;  %10010 = vst [vmem:[#allocation141_spill] sm:$0xff] %v7769_v20  ;;  %10011 = vst [vmem:[#allocation142_spill] sm:$0xff] %v7775_v35  ;;  %v7781_v21 = vld [vmem:[%s8818_s2 + $0x288] sm:$0xff]  ;;  %v7787_v13 = vld [vmem:[%s8818_s2 + $0x298] sm:$0xff] }
 0x4e4   :  { %1986 = vmatpush2.msra.mxu0 %v7769_v20  ;;  %2057 = vmatpush2.msra.mxu1 %v7775_v35  ;;  %10012 = vst [vmem:[#allocation143_spill] sm:$0xff] %v7781_v21  ;;  %10013 = vst [vmem:[#allocation144_spill] sm:$0xff] %v7787_v13  ;;  %v7793_v20 = vld [vmem:[%s8818_s2 + $0x280] sm:$0xff]  ;;  %v7799_v35 = vld [vmem:[%s8818_s2 + $0x290] sm:$0xff] }
 0x4e5   :  { %1987 = vmatprep.subr.mxu0 %v7781_v21  ;;  %2058 = vmatprep.subr.mxu1 %v7787_v13  ;;  %10014 = vst [vmem:[#allocation145_spill] sm:$0xff] %v7793_v20  ;;  %10015 = vst [vmem:[#allocation146_spill] sm:$0xff] %v7799_v35  ;;  %v7805_v21 = vld [vmem:[%s8818_s2 + $0x268] sm:$0xff]  ;;  %v7811_v13 = vld [vmem:[%s8818_s2 + $0x278] sm:$0xff] }
 0x4e6   :  { %1988 = vmatpush2.msra.mxu0 %v7793_v20  ;;  %2059 = vmatpush2.msra.mxu1 %v7799_v35  ;;  %10016 = vst [vmem:[#allocation147_spill] sm:$0xff] %v7805_v21  ;;  %10017 = vst [vmem:[#allocation148_spill] sm:$0xff] %v7811_v13  ;;  %v7817_v20 = vld [vmem:[%s8818_s2 + $0x260] sm:$0xff]  ;;  %v7823_v35 = vld [vmem:[%s8818_s2 + $0x270] sm:$0xff] }
 0x4e7   :  { %1989 = vmatprep.subr.mxu0 %v7805_v21  ;;  %2060 = vmatprep.subr.mxu1 %v7811_v13  ;;  %10018 = vst [vmem:[#allocation149_spill] sm:$0xff] %v7817_v20  ;;  %10019 = vst [vmem:[#allocation150_spill] sm:$0xff] %v7823_v35  ;;  %v7829_v21 = vld [vmem:[%s8818_s2 + $0x248] sm:$0xff]  ;;  %v7835_v13 = vld [vmem:[%s8818_s2 + $0x258] sm:$0xff] }
 0x4e8   :  { %1990 = vmatpush2.msra.mxu0 %v7817_v20  ;;  %2061 = vmatpush2.msra.mxu1 %v7823_v35  ;;  %10020 = vst [vmem:[#allocation151_spill] sm:$0xff] %v7829_v21  ;;  %10021 = vst [vmem:[#allocation152_spill] sm:$0xff] %v7835_v13  ;;  %v7841_v20 = vld [vmem:[%s8818_s2 + $0x240] sm:$0xff]  ;;  %v7847_v35 = vld [vmem:[%s8818_s2 + $0x250] sm:$0xff] }
 0x4e9   :  { %1991 = vmatprep.subr.mxu0 %v7829_v21  ;;  %2062 = vmatprep.subr.mxu1 %v7835_v13  ;;  %10022 = vst [vmem:[#allocation153_spill] sm:$0xff] %v7841_v20  ;;  %10023 = vst [vmem:[#allocation154_spill] sm:$0xff] %v7847_v35  ;;  %v7853_v21 = vld [vmem:[%s8818_s2 + $0x228] sm:$0xff]  ;;  %v7859_v13 = vld [vmem:[%s8818_s2 + $0x238] sm:$0xff] }
 0x4ea   :  { %1992 = vmatpush2.msra.mxu0 %v7841_v20  ;;  %2063 = vmatpush2.msra.mxu1 %v7847_v35  ;;  %10024 = vst [vmem:[#allocation155_spill] sm:$0xff] %v7853_v21  ;;  %10025 = vst [vmem:[#allocation156_spill] sm:$0xff] %v7859_v13  ;;  %v7865_v20 = vld [vmem:[%s8818_s2 + $0x220] sm:$0xff]  ;;  %v7871_v35 = vld [vmem:[%s8818_s2 + $0x230] sm:$0xff] }
 0x4eb   :  { %1993 = vmatprep.subr.mxu0 %v7853_v21  ;;  %2064 = vmatprep.subr.mxu1 %v7859_v13  ;;  %10026 = vst [vmem:[#allocation157_spill] sm:$0xff] %v7865_v20  ;;  %10027 = vst [vmem:[#allocation158_spill] sm:$0xff] %v7871_v35  ;;  %v7877_v21 = vld [vmem:[%s8818_s2 + $0x208] sm:$0xff]  ;;  %v7883_v13 = vld [vmem:[%s8818_s2 + $0x218] sm:$0xff] }
 0x4ec   :  { %1994 = vmatpush2.msra.mxu0 %v7865_v20  ;;  %2065 = vmatpush2.msra.mxu1 %v7871_v35  ;;  %10028 = vst [vmem:[#allocation159_spill] sm:$0xff] %v7877_v21  ;;  %10029 = vst [vmem:[#allocation160_spill] sm:$0xff] %v7883_v13  ;;  %v7889_v20 = vld [vmem:[%s8818_s2 + $0x200] sm:$0xff]  ;;  %v7895_v35 = vld [vmem:[%s8818_s2 + $0x210] sm:$0xff] }
 0x4ed   :  { %1995 = vmatprep.subr.mxu0 %v7877_v21  ;;  %2066 = vmatprep.subr.mxu1 %v7883_v13  ;;  %10030 = vst [vmem:[#allocation161_spill] sm:$0xff] %v7889_v20  ;;  %10031 = vst [vmem:[#allocation162_spill] sm:$0xff] %v7895_v35 }
 0x4ee   :  { %1996 = vmatpush2.msra.mxu0 %v7889_v20  ;;  %2067 = vmatpush2.msra.mxu1 %v7895_v35 }
 0x4ef   :  { %2077 = vmatprep.subr.mxu0 %v6721_v14  ;;  %2148 = vmatprep.subr.mxu1 %v6727_v15 }
 0x54d   :  { %v1628_v21 = vpop.f32.mrf.mxu0  ;;  %v1699_v20 = vpop.f32.mrf.mxu1 }
 0x54e   :  { %v1629_v13 = vadd.f32 %v1628_v21, %v9879_v19  ;;  %v1700_v14 = vadd.f32 %v1699_v20, %v5331_v46 }
 0x54f   :  { %v1630_v51 = vpop.f32.mrf.mxu0  ;;  %v1701_v10 = vpop.f32.mrf.mxu1 }
 0x550   :  { %v2990_v22 = vmul.f32 -1.442695, %v1629_v13  ;;  %v1631_v12 = vadd.f32 %v1630_v51, %v9880_v31  ;;  %v1702_v9 = vadd.f32 %v1701_v10, %v9881_v25 }
 0x552   :  { %3182 = vpow2.f32 %v2990_v22  ;;  %v2991_v11 = vmul.f32 -1.442695, %v1631_v12  ;;  %v2992_v7 = vmul.f32 -1.442695, %v1702_v9 }
 0x554   :  { %3184 = vpow2.f32 %v2991_v11 }
 0x555   :  { %3186 = vpow2.f32 %v2992_v7 }
 0x55f   :  { %v3183_v35 = vpop.eup %3182 }
 0x560   :  { %v1874_v5 = vadd.f32 1.0, %v3183_v35  ;;  %v2989_v35 = vld [vmem:[%s8816_s0 + $0x20] sm:$0xff] }
 0x561   :  { %v3185_v15 = vpop.eup %3184 }
 0x562   :  { %3188 = vrcp.f32 %v1874_v5  ;;  %v1880_v21 = vadd.f32 1.0, %v3185_v15  ;;  %v3187_v13 = vpop.eup %3186 }
 0x563   :  { %3190 = vtanh.f32 %v1700_v14  ;;  %v1887_v10 = vadd.f32 1.0, %v3187_v13 }
 0x564   :  { %3192 = vrcp.f32 %v1880_v21 }
 0x565   :  { %3194 = vrcp.f32 %v1887_v10 }
 0x56e   :  { %v1772_v51 = vpop.f32.mrf.mxu0  ;;  %v1843_v22 = vpop.f32.mrf.mxu1 }
 0x56f   :  { %v3189_v31 = vpop.eup %3188 }
 0x570   :  { %v3191_v12 = vpop.eup %3190  ;;  %v1774_v11 = vpop.f32.mrf.mxu0 }
 0x571   :  { %v1845_v19 = vpop.f32.mrf.mxu1  ;;  %v3193_v4 = vpop.eup %3192  ;;  %v1852_v9 = vcombine.low %v1772_v51, %v1774_v11  ;;  %v1891_v3 = vmul.f32 %v3191_v12, %v3189_v31 }
 0x572   :  { %v1853_v25 = vcombine.low %v1843_v22, %v1845_v19  ;;  %v1890_v20 = vmul.f32 %v3193_v4, %v6740_v62  ;;  %v3195_v62 = vpop.eup %3194 }
 0x573   :  { %v1860_v7 = vrot.slane %v1852_v9, %v5095_v6 }
 0x574   :  { %v1867_v5 = vrot.slane %v1853_v25, %v5095_v6  ;;  %v7910_v14 = vadd.f32 %v1891_v3, %v1890_v20 }
 0x576   :  { %v1868_v15 = vcombine.low %v1860_v7, %v1867_v5  ;;  %3196 = vtanh.f32 %v7910_v14 }
 0x578   :  { %v1870_v21 = vadd.f32 %v2989_v35, %v1868_v15 }
 0x57a   :  { %v2993_v13 = vmul.f32 -1.442695, %v1870_v21  ;;  %v1902_v19 = vrot.slane %v1870_v21, 2  ;;  %v1913_v4 = vrot.slane %v1870_v21, 6  ;;  %v1910_v11 = vrot.slane %v1870_v21, 4 }
 0x57c   :  { %3198 = vpow2.f32 %v2993_v13  ;;  %v2994_v31 = vmul.f32 -1.442695, %v1902_v19  ;;  %v2995_v22 = vmul.f32 -1.442695, %v1913_v4 }
 0x57e   :  { %3200 = vpow2.f32 %v2994_v31 }
 0x57f   :  { %3202 = vpow2.f32 %v2995_v22  ;;  %v10075_v22 = vld [vmem:[#allocation55_spill] sm:$0xff] }
 0x583   :  { %v3197_v51 = vpop.eup %3196 }
 0x584   :  { %v1894_v25 = vmul.f32 %v3197_v51, %v3195_v62  ;;  %v10073_v51 = vld [vmem:[#allocation53_spill] sm:$0xff] }
 0x586   :  { %v7914_v12 = vadd.f32 %v1894_v25, %v6744_v58  ;;  %1997 = vmatprep.mubr.f32.mxu0 %v1894_v25  ;;  %2068 = vmatprep.mubr.f32.mxu1 %v1894_v25  ;;  %v10074_v25 = vld [vmem:[#allocation54_spill] sm:$0xff] }
 0x589   :  { %v3199_v3 = vpop.eup %3198 }
 0x58a   :  { %v1898_v10 = vadd.f32 1.0, %v3199_v3  ;;  %v10076_v3 = vld [vmem:[#allocation56_spill] sm:$0xff] }
 0x58b   :  { %v3201_v9 = vpop.eup %3200 }
 0x58c   :  { %3204 = vrcp.f32 %v1898_v10  ;;  %v1907_v20 = vadd.f32 1.0, %v3201_v9  ;;  %v3203_v7 = vpop.eup %3202  ;;  %v10078_v10 = vld [vmem:[#allocation58_spill] sm:$0xff]  ;;  %v10079_v9 = vld [vmem:[#allocation59_spill] sm:$0xff] }
 0x58d   :  { %3206 = vtanh.f32 %v1910_v11  ;;  %v1918_v13 = vadd.f32 1.0, %v3203_v7  ;;  %v10077_v11 = vld [vmem:[#allocation57_spill] sm:$0xff] }
 0x58e   :  { %3208 = vrcp.f32 %v1907_v20  ;;  %v10080_v20 = vld [vmem:[#allocation60_spill] sm:$0xff]  ;;  %v10081_v7 = vld [vmem:[#allocation61_spill] sm:$0xff] }
 0x58f   :  { %3210 = vrcp.f32 %v1918_v13  ;;  %v10085_v13 = vld [vmem:[#allocation65_spill] sm:$0xff] }
 0x599   :  { %v3205_v5 = vpop.eup %3204 }
 0x59a   :  { %v3207_v35 = vpop.eup %3206 }
 0x59b   :  { %v3209_v15 = vpop.eup %3208  ;;  %v1922_v58 = vmul.f32 %v3207_v35, %v3205_v5  ;;  %v10082_v5 = vld [vmem:[#allocation62_spill] sm:$0xff]  ;;  %v10083_v35 = vld [vmem:[#allocation63_spill] sm:$0xff] }
 0x59c   :  { %v1921_v19 = vmul.f32 %v3209_v15, %v6747_v16  ;;  %v3211_v21 = vpop.eup %3210  ;;  %v10032_v16 = vld [vmem:[#allocation13_spill] sm:$0xff]  ;;  %v10084_v15 = vld [vmem:[#allocation64_spill] sm:$0xff] }
 0x59e   :  { %v7917_v31 = vadd.f32 %v1922_v58, %v1921_v19  ;;  %v10086_v19 = vld [vmem:[#allocation66_spill] sm:$0xff]  ;;  %v10087_v58 = vld [vmem:[#allocation67_spill] sm:$0xff] }
 0x5a0   :  { %3212 = vtanh.f32 %v7917_v31 }
 0x5ad   :  { %v3213_v62 = vpop.eup %3212 }
 0x5ae   :  { %v7920_v4 = vmul.f32 %v3213_v62, %v3211_v21  ;;  %v10088_v21 = vld [vmem:[#allocation68_spill] sm:$0xff]  ;;  %v10089_v62 = vld [vmem:[#allocation69_spill] sm:$0xff] }
 0x5b0   :  { %1998 = vmatmul.mubr.f32.vlgmr.msra.gmra.mxu0 %v7920_v4  ;;  %2069 = vmatmul.mubr.f32.vlgmr.msra.gmra.mxu1 %v7920_v4 }
 0x5b1   :  { %2078 = vmatpush1.msra.mxu0 %v6757_v30  ;;  %2149 = vmatpush1.msra.mxu1 %v6763_v23  ;;  %v10033_v30 = vld [vmem:[#allocation14_spill] sm:$0xff]  ;;  %v10034_v23 = vld [vmem:[#allocation15_spill] sm:$0xff] }
 0x5b2   :  { %2079 = vmatprep.subr.mxu0 %v6769_v29  ;;  %2150 = vmatprep.subr.mxu1 %v6775_v28  ;;  %v10035_v29 = vld [vmem:[#allocation16_spill] sm:$0xff]  ;;  %v10036_v28 = vld [vmem:[#allocation17_spill] sm:$0xff] }
 0x5b3   :  { %2080 = vmatpush1.msra.mxu0 %v6781_v37  ;;  %2151 = vmatpush1.msra.mxu1 %v6787_v24  ;;  %v10037_v37 = vld [vmem:[#allocation18_spill] sm:$0xff]  ;;  %v10038_v24 = vld [vmem:[#allocation19_spill] sm:$0xff] }
 0x5b4   :  { %2081 = vmatprep.subr.mxu0 %v6793_v39  ;;  %2152 = vmatprep.subr.mxu1 %v6799_v27  ;;  %v10039_v39 = vld [vmem:[#allocation20_spill] sm:$0xff]  ;;  %v10040_v27 = vld [vmem:[#allocation21_spill] sm:$0xff] }
 0x5b5   :  { %2082 = vmatpush1.msra.mxu0 %v6805_v34  ;;  %2153 = vmatpush1.msra.mxu1 %v6811_v32  ;;  %v10041_v34 = vld [vmem:[#allocation22_spill] sm:$0xff]  ;;  %v10042_v32 = vld [vmem:[#allocation23_spill] sm:$0xff] }
 0x5b6   :  { %2083 = vmatprep.subr.mxu0 %v6817_v17  ;;  %2154 = vmatprep.subr.mxu1 %v6823_v33  ;;  %v10043_v17 = vld [vmem:[#allocation24_spill] sm:$0xff]  ;;  %v10044_v33 = vld [vmem:[#allocation25_spill] sm:$0xff] }
 0x5b7   :  { %2084 = vmatpush1.msra.mxu0 %v6829_v8  ;;  %2155 = vmatpush1.msra.mxu1 %v6835_v38  ;;  %v10045_v8 = vld [vmem:[#allocation26_spill] sm:$0xff]  ;;  %v10046_v38 = vld [vmem:[#allocation27_spill] sm:$0xff] }
 0x5b8   :  { %2085 = vmatprep.subr.mxu0 %v6841_v18  ;;  %2156 = vmatprep.subr.mxu1 %v6847_v42  ;;  %v10047_v18 = vld [vmem:[#allocation28_spill] sm:$0xff]  ;;  %v10048_v42 = vld [vmem:[#allocation29_spill] sm:$0xff] }
 0x5b9   :  { %2086 = vmatpush1.msra.mxu0 %v6853_v36  ;;  %2157 = vmatpush1.msra.mxu1 %v6859_v40  ;;  %v10049_v36 = vld [vmem:[#allocation30_spill] sm:$0xff]  ;;  %v10050_v40 = vld [vmem:[#allocation31_spill] sm:$0xff] }
 0x5ba   :  { %2087 = vmatprep.subr.mxu0 %v6865_v50  ;;  %2158 = vmatprep.subr.mxu1 %v6871_v41  ;;  %v10051_v50 = vld [vmem:[#allocation32_spill] sm:$0xff]  ;;  %v10052_v41 = vld [vmem:[#allocation33_spill] sm:$0xff] }
 0x5bb   :  { %2088 = vmatpush1.msra.mxu0 %v6877_v43  ;;  %2159 = vmatpush1.msra.mxu1 %v6883_v44  ;;  %v10053_v43 = vmov 0.0   ;;  %v10054_v44 = vld [vmem:[#allocation34_spill] sm:$0xff] }
 0x5bc   :  { %2089 = vmatprep.subr.mxu0 %v6889_v45  ;;  %2160 = vmatprep.subr.mxu1 %v6895_v47  ;;  %v10055_v45 = vld [vmem:[#allocation35_spill] sm:$0xff]  ;;  %v10056_v47 = vld [vmem:[#allocation36_spill] sm:$0xff] }
 0x5bd   :  { %2090 = vmatpush1.msra.mxu0 %v6901_v48  ;;  %2161 = vmatpush1.msra.mxu1 %v6907_v55  ;;  %v10057_v48 = vld [vmem:[#allocation37_spill] sm:$0xff]  ;;  %v10058_v55 = vld [vmem:[#allocation38_spill] sm:$0xff] }
 0x5be   :  { %2091 = vmatprep.subr.mxu0 %v6913_v54  ;;  %2162 = vmatprep.subr.mxu1 %v6919_v53  ;;  %v10059_v54 = vld [vmem:[#allocation39_spill] sm:$0xff]  ;;  %v10060_v53 = vld [vmem:[#allocation40_spill] sm:$0xff] }
 0x5bf   :  { %2092 = vmatpush1.msra.mxu0 %v6925_v52  ;;  %2163 = vmatpush1.msra.mxu1 %v6931_v60  ;;  %v10061_v52 = vld [vmem:[#allocation41_spill] sm:$0xff]  ;;  %v10062_v60 = vld [vmem:[#allocation42_spill] sm:$0xff] }
 0x5c0   :  { %2093 = vmatprep.subr.mxu0 %v6937_v63  ;;  %2164 = vmatprep.subr.mxu1 %v6943_v56  ;;  %v10063_v63 = vld [vmem:[#allocation43_spill] sm:$0xff]  ;;  %v10064_v56 = vld [vmem:[#allocation44_spill] sm:$0xff] }
 0x5c1   :  { %2094 = vmatpush1.msra.mxu0 %v6949_v0  ;;  %2165 = vmatpush1.msra.mxu1 %v6955_v26  ;;  %v10065_v0 = vld [vmem:[#allocation45_spill] sm:$0xff]  ;;  %v10066_v26 = vld [vmem:[#allocation46_spill] sm:$0xff] }
 0x5c2   :  { %2095 = vmatprep.subr.mxu0 %v6961_v1  ;;  %2166 = vmatprep.subr.mxu1 %v6967_v61  ;;  %v10067_v1 = vld [vmem:[#allocation47_spill] sm:$0xff]  ;;  %v10068_v61 = vld [vmem:[#allocation48_spill] sm:$0xff] }
 0x5c3   :  { %2096 = vmatpush1.msra.mxu0 %v6973_v57  ;;  %2167 = vmatpush1.msra.mxu1 %v6979_v49  ;;  %v10069_v57 = vld [vmem:[#allocation49_spill] sm:$0xff]  ;;  %v10070_v49 = vld [vmem:[#allocation50_spill] sm:$0xff] }
 0x5c4   :  { %2097 = vmatprep.subr.mxu0 %v6985_v59  ;;  %2168 = vmatprep.subr.mxu1 %v6991_v2  ;;  %v10071_v59 = vld [vmem:[#allocation51_spill] sm:$0xff]  ;;  %v10072_v2 = vld [vmem:[#allocation52_spill] sm:$0xff] }
 0x5c5   :  { %2098 = vmatpush1.msra.mxu0 %v10032_v16  ;;  %2169 = vmatpush1.msra.mxu1 %v10033_v30  ;;  %v10091_v16 = vld [vmem:[#allocation71_spill] sm:$0xff]  ;;  %v10092_v30 = vld [vmem:[#allocation72_spill] sm:$0xff] }
 0x5c6   :  { %2099 = vmatprep.subr.mxu0 %v10034_v23  ;;  %2170 = vmatprep.subr.mxu1 %v10035_v29  ;;  %v10093_v23 = vld [vmem:[#allocation73_spill] sm:$0xff]  ;;  %v10094_v29 = vld [vmem:[#allocation74_spill] sm:$0xff] }
 0x5c7   :  { %2100 = vmatpush1.msra.mxu0 %v10036_v28  ;;  %2171 = vmatpush1.msra.mxu1 %v10037_v37  ;;  %v10095_v28 = vld [vmem:[#allocation75_spill] sm:$0xff]  ;;  %v10096_v37 = vld [vmem:[#allocation76_spill] sm:$0xff] }
 0x5c8   :  { %2101 = vmatprep.subr.mxu0 %v10038_v24  ;;  %2172 = vmatprep.subr.mxu1 %v10039_v39  ;;  %v10097_v24 = vld [vmem:[#allocation77_spill] sm:$0xff]  ;;  %v10098_v39 = vld [vmem:[#allocation78_spill] sm:$0xff] }
 0x5c9   :  { %2102 = vmatpush1.msra.mxu0 %v10040_v27  ;;  %2173 = vmatpush1.msra.mxu1 %v10041_v34  ;;  %v10099_v27 = vld [vmem:[#allocation79_spill] sm:$0xff]  ;;  %v10100_v34 = vld [vmem:[#allocation80_spill] sm:$0xff] }
 0x5ca   :  { %2103 = vmatprep.subr.mxu0 %v10042_v32  ;;  %2174 = vmatprep.subr.mxu1 %v10043_v17  ;;  %v10101_v32 = vld [vmem:[#allocation81_spill] sm:$0xff]  ;;  %v10102_v17 = vld [vmem:[#allocation82_spill] sm:$0xff] }
 0x5cb   :  { %2104 = vmatpush1.msra.mxu0 %v10044_v33  ;;  %2175 = vmatpush1.msra.mxu1 %v10045_v8  ;;  %v10103_v33 = vld [vmem:[#allocation83_spill] sm:$0xff]  ;;  %v10104_v8 = vld [vmem:[#allocation84_spill] sm:$0xff] }
 0x5cc   :  { %2105 = vmatprep.subr.mxu0 %v10046_v38  ;;  %2176 = vmatprep.subr.mxu1 %v10047_v18  ;;  %v10105_v38 = vld [vmem:[#allocation85_spill] sm:$0xff]  ;;  %v10106_v18 = vld [vmem:[#allocation86_spill] sm:$0xff] }
 0x5cd   :  { %2106 = vmatpush1.msra.mxu0 %v10048_v42  ;;  %2177 = vmatpush1.msra.mxu1 %v10049_v36  ;;  %v10107_v42 = vld [vmem:[#allocation87_spill] sm:$0xff]  ;;  %v10108_v36 = vld [vmem:[#allocation88_spill] sm:$0xff] }
 0x5ce   :  { %2107 = vmatprep.subr.mxu0 %v10050_v40  ;;  %2178 = vmatprep.subr.mxu1 %v10051_v50  ;;  %v10109_v40 = vld [vmem:[#allocation89_spill] sm:$0xff]  ;;  %v10110_v50 = vld [vmem:[#allocation90_spill] sm:$0xff] }
 0x5cf   :  { %2108 = vmatpush1.msra.mxu0 %v10052_v41  ;;  %2141 = vmatprep.mubr.f32.mxu0 %v10053_v43  ;;  %v10111_v41 = vld [vmem:[#allocation91_spill] sm:$0xff] }
 0x5d0   :  { %2179 = vmatpush1.msra.mxu1 %v10054_v44  ;;  %2212 = vmatprep.mubr.f32.mxu1 %v10053_v43  ;;  %v10112_v44 = vld [vmem:[#allocation92_spill] sm:$0xff] }
 0x5d1   :  { %2142 = vmatmul.mubr.f32.vlgmr.msra.gmra.mxu0 %v7920_v4  ;;  %2213 = vmatmul.mubr.f32.vlgmr.msra.gmra.mxu1 %v7920_v4  ;;  %v10090_v4 = vld [vmem:[#allocation70_spill] sm:$0xff] }
 0x5d2   :  { %2304 = vmatprep.subr.mxu0 %v10055_v45  ;;  %2375 = vmatprep.subr.mxu1 %v10056_v47  ;;  %v10113_v45 = vld [vmem:[#allocation93_spill] sm:$0xff]  ;;  %v10114_v47 = vld [vmem:[#allocation94_spill] sm:$0xff] }
 0x5d3   :  { %2305 = vmatpush1.msra.mxu0 %v10057_v48  ;;  %2376 = vmatpush1.msra.mxu1 %v10058_v55  ;;  %v10115_v48 = vld [vmem:[#allocation95_spill] sm:$0xff]  ;;  %v10116_v55 = vld [vmem:[#allocation96_spill] sm:$0xff] }
 0x5d4   :  { %2306 = vmatprep.subr.mxu0 %v10059_v54  ;;  %2377 = vmatprep.subr.mxu1 %v10060_v53  ;;  %v10117_v54 = vld [vmem:[#allocation97_spill] sm:$0xff]  ;;  %v10118_v53 = vld [vmem:[#allocation98_spill] sm:$0xff] }
 0x5d5   :  { %2307 = vmatpush1.msra.mxu0 %v10061_v52  ;;  %2378 = vmatpush1.msra.mxu1 %v10062_v60  ;;  %v10119_v52 = vld [vmem:[#allocation99_spill] sm:$0xff]  ;;  %v10120_v60 = vld [vmem:[#allocation100_spill] sm:$0xff] }
 0x5d6   :  { %2308 = vmatprep.subr.mxu0 %v10063_v63  ;;  %2379 = vmatprep.subr.mxu1 %v10064_v56  ;;  %v10121_v63 = vld [vmem:[#allocation101_spill] sm:$0xff]  ;;  %v10122_v56 = vld [vmem:[#allocation102_spill] sm:$0xff] }
 0x5d7   :  { %2309 = vmatpush1.msra.mxu0 %v10065_v0  ;;  %2380 = vmatpush1.msra.mxu1 %v10066_v26  ;;  %v10123_v0 = vld [vmem:[#allocation103_spill] sm:$0xff]  ;;  %v10124_v26 = vld [vmem:[#allocation104_spill] sm:$0xff] }
 0x5d8   :  { %2310 = vmatprep.subr.mxu0 %v10067_v1  ;;  %2381 = vmatprep.subr.mxu1 %v10068_v61  ;;  %v10125_v1 = vld [vmem:[#allocation105_spill] sm:$0xff]  ;;  %v10126_v61 = vld [vmem:[#allocation106_spill] sm:$0xff] }
 0x5d9   :  { %2311 = vmatpush1.msra.mxu0 %v10069_v57  ;;  %2382 = vmatpush1.msra.mxu1 %v10070_v49  ;;  %v10127_v57 = vld [vmem:[#allocation107_spill] sm:$0xff]  ;;  %v10128_v49 = vld [vmem:[#allocation108_spill] sm:$0xff] }
 0x5da   :  { %2312 = vmatprep.subr.mxu0 %v10071_v59  ;;  %2383 = vmatprep.subr.mxu1 %v10072_v2  ;;  %v10129_v59 = vld [vmem:[#allocation109_spill] sm:$0xff]  ;;  %v10130_v2 = vld [vmem:[#allocation110_spill] sm:$0xff] }
 0x5db   :  { %2313 = vmatpush1.msra.mxu0 %v10073_v51  ;;  %2384 = vmatpush1.msra.mxu1 %v10074_v25  ;;  %v10131_v51 = vld [vmem:[#allocation111_spill] sm:$0xff]  ;;  %v10132_v25 = vld [vmem:[#allocation112_spill] sm:$0xff] }
 0x5dc   :  { %2314 = vmatprep.subr.mxu0 %v10075_v22  ;;  %2385 = vmatprep.subr.mxu1 %v10076_v3  ;;  %v10133_v22 = vld [vmem:[#allocation113_spill] sm:$0xff]  ;;  %v10134_v3 = vld [vmem:[#allocation114_spill] sm:$0xff] }
 0x5dd   :  { %2315 = vmatpush1.msra.mxu0 %v10077_v11  ;;  %2386 = vmatpush1.msra.mxu1 %v10078_v10  ;;  %v10135_v11 = vld [vmem:[#allocation115_spill] sm:$0xff]  ;;  %v10136_v10 = vld [vmem:[#allocation116_spill] sm:$0xff] }
 0x5de   :  { %2316 = vmatprep.subr.mxu0 %v10079_v9  ;;  %2387 = vmatprep.subr.mxu1 %v10080_v20  ;;  %v10137_v9 = vld [vmem:[#allocation117_spill] sm:$0xff]  ;;  %v10138_v20 = vld [vmem:[#allocation118_spill] sm:$0xff] }
 0x5df   :  { %2317 = vmatpush1.msra.mxu0 %v10081_v7  ;;  %2388 = vmatpush1.msra.mxu1 %v10082_v5  ;;  %v10139_v7 = vld [vmem:[#allocation119_spill] sm:$0xff]  ;;  %v10140_v5 = vld [vmem:[#allocation120_spill] sm:$0xff] }
 0x5e0   :  { %2318 = vmatprep.subr.mxu0 %v10083_v35  ;;  %2389 = vmatprep.subr.mxu1 %v10084_v15  ;;  %v10141_v35 = vld [vmem:[#allocation121_spill] sm:$0xff]  ;;  %v10142_v15 = vld [vmem:[#allocation122_spill] sm:$0xff] }
 0x5e1   :  { %2319 = vmatpush1.msra.mxu0 %v10085_v13  ;;  %2390 = vmatpush1.msra.mxu1 %v10086_v19  ;;  %v10143_v13 = vld [vmem:[#allocation123_spill] sm:$0xff]  ;;  %v10144_v19 = vld [vmem:[#allocation124_spill] sm:$0xff] }
 0x5e2   :  { %2320 = vmatprep.subr.mxu0 %v10087_v58  ;;  %2391 = vmatprep.subr.mxu1 %v10088_v21  ;;  %v10145_v58 = vld [vmem:[#allocation125_spill] sm:$0xff]  ;;  %v10146_v21 = vld [vmem:[#allocation126_spill] sm:$0xff] }
 0x5e3   :  { %2321 = vmatpush1.msra.mxu0 %v10089_v62  ;;  %2392 = vmatpush1.msra.mxu1 %v10090_v4  ;;  %v10147_v62 = vld [vmem:[#allocation127_spill] sm:$0xff]  ;;  %v10148_v4 = vld [vmem:[#allocation128_spill] sm:$0xff] }
 0x5e4   :  { %2322 = vmatprep.subr.mxu0 %v10091_v16  ;;  %2393 = vmatprep.subr.mxu1 %v10092_v30  ;;  %v10149_v16 = vld [vmem:[#allocation129_spill] sm:$0xff]  ;;  %v10150_v30 = vld [vmem:[#allocation130_spill] sm:$0xff] }
 0x5e5   :  { %2323 = vmatpush1.msra.mxu0 %v10093_v23  ;;  %2394 = vmatpush1.msra.mxu1 %v10094_v29  ;;  %v10151_v23 = vld [vmem:[#allocation131_spill] sm:$0xff]  ;;  %v10152_v29 = vld [vmem:[#allocation132_spill] sm:$0xff] }
 0x5e6   :  { %2324 = vmatprep.subr.mxu0 %v10095_v28  ;;  %2395 = vmatprep.subr.mxu1 %v10096_v37  ;;  %v10153_v28 = vld [vmem:[#allocation133_spill] sm:$0xff]  ;;  %v10154_v37 = vld [vmem:[#allocation134_spill] sm:$0xff] }
 0x5e7   :  { %2325 = vmatpush1.msra.mxu0 %v10097_v24  ;;  %2396 = vmatpush1.msra.mxu1 %v10098_v39  ;;  %v10155_v24 = vld [vmem:[#allocation135_spill] sm:$0xff]  ;;  %v10156_v39 = vld [vmem:[#allocation136_spill] sm:$0xff] }
 0x5e8   :  { %2326 = vmatprep.subr.mxu0 %v10099_v27  ;;  %2397 = vmatprep.subr.mxu1 %v10100_v34  ;;  %v10157_v27 = vld [vmem:[#allocation137_spill] sm:$0xff]  ;;  %v10158_v34 = vld [vmem:[#allocation138_spill] sm:$0xff] }
 0x5e9   :  { %2327 = vmatpush1.msra.mxu0 %v10101_v32  ;;  %2398 = vmatpush1.msra.mxu1 %v10102_v17  ;;  %v10159_v32 = vld [vmem:[#allocation139_spill] sm:$0xff]  ;;  %v10160_v17 = vld [vmem:[#allocation140_spill] sm:$0xff] }
 0x5ea   :  { %2328 = vmatprep.subr.mxu0 %v10103_v33  ;;  %2399 = vmatprep.subr.mxu1 %v10104_v8  ;;  %v10161_v33 = vld [vmem:[#allocation141_spill] sm:$0xff]  ;;  %v10162_v8 = vld [vmem:[#allocation142_spill] sm:$0xff] }
 0x5eb   :  { %2329 = vmatpush1.msra.mxu0 %v10105_v38  ;;  %2400 = vmatpush1.msra.mxu1 %v10106_v18  ;;  %v10163_v38 = vld [vmem:[#allocation143_spill] sm:$0xff]  ;;  %v10164_v18 = vld [vmem:[#allocation144_spill] sm:$0xff] }
 0x5ec   :  { %2330 = vmatprep.subr.mxu0 %v10107_v42  ;;  %2401 = vmatprep.subr.mxu1 %v10108_v36  ;;  %v10165_v42 = vld [vmem:[#allocation145_spill] sm:$0xff]  ;;  %v10166_v36 = vld [vmem:[#allocation146_spill] sm:$0xff] }
 0x5ed   :  { %2331 = vmatpush1.msra.mxu0 %v10109_v40  ;;  %2402 = vmatpush1.msra.mxu1 %v10110_v50  ;;  %v10167_v40 = vld [vmem:[#allocation147_spill] sm:$0xff]  ;;  %v10168_v50 = vld [vmem:[#allocation148_spill] sm:$0xff] }
 0x5ee   :  { %2332 = vmatprep.subr.mxu0 %v10111_v41  ;;  %2403 = vmatprep.subr.mxu1 %v10112_v44  ;;  %v10169_v41 = vld [vmem:[#allocation149_spill] sm:$0xff]  ;;  %v10170_v44 = vld [vmem:[#allocation150_spill] sm:$0xff] }
 0x5ef   :  { %2333 = vmatpush1.msra.mxu0 %v10113_v45  ;;  %2404 = vmatpush1.msra.mxu1 %v10114_v47  ;;  %v10171_v45 = vld [vmem:[#allocation151_spill] sm:$0xff]  ;;  %v10172_v47 = vld [vmem:[#allocation152_spill] sm:$0xff] }
 0x5f0   :  { %2334 = vmatprep.subr.mxu0 %v10115_v48  ;;  %2405 = vmatprep.subr.mxu1 %v10116_v55  ;;  %v10173_v48 = vld [vmem:[#allocation153_spill] sm:$0xff]  ;;  %v10174_v55 = vld [vmem:[#allocation154_spill] sm:$0xff] }
 0x5f1   :  { %2335 = vmatpush1.msra.mxu0 %v10117_v54  ;;  %2406 = vmatpush1.msra.mxu1 %v10118_v53  ;;  %v10175_v54 = vld [vmem:[#allocation155_spill] sm:$0xff]  ;;  %v10176_v53 = vld [vmem:[#allocation156_spill] sm:$0xff] }
 0x5f2   :  { %2336 = vmatprep.subr.mxu0 %v10119_v52  ;;  %2407 = vmatprep.subr.mxu1 %v10120_v60  ;;  %v10177_v52 = vld [vmem:[#allocation157_spill] sm:$0xff]  ;;  %v10178_v60 = vld [vmem:[#allocation158_spill] sm:$0xff] }
 0x5f3   :  { %2337 = vmatpush2.msra.mxu0 %v10121_v63  ;;  %2408 = vmatpush2.msra.mxu1 %v10122_v56  ;;  %v10179_v63 = vld [vmem:[#allocation159_spill] sm:$0xff]  ;;  %v10180_v56 = vld [vmem:[#allocation160_spill] sm:$0xff] }
 0x5f4   :  { %2338 = vmatprep.subr.mxu0 %v10123_v0  ;;  %2409 = vmatprep.subr.mxu1 %v10124_v26  ;;  %v10181_v0 = vld [vmem:[#allocation161_spill] sm:$0xff]  ;;  %v10182_v26 = vld [vmem:[#allocation162_spill] sm:$0xff] }
 0x5f5   :  { %2339 = vmatpush2.msra.mxu0 %v10125_v1  ;;  %2410 = vmatpush2.msra.mxu1 %v10126_v61  ;;  %v3678_v1 = vld [vmem:[%s8817_s1 + $0x1e8] sm:$0xff]  ;;  %v3679_v61 = vld [vmem:[%s8817_s1 + $0x1f8] sm:$0xff] }
 0x5f6   :  { %2340 = vmatprep.subr.mxu0 %v10127_v57  ;;  %2411 = vmatprep.subr.mxu1 %v10128_v49  ;;  %v10183_v49 = vld [vmem:[#allocation10_spill] sm:$0xff] }
 0x5f7   :  { %2341 = vmatpush2.msra.mxu0 %v10129_v59  ;;  %2412 = vmatpush2.msra.mxu1 %v10130_v2 }
 0x5f8   :  { %2342 = vmatprep.subr.mxu0 %v10131_v51  ;;  %2413 = vmatprep.subr.mxu1 %v10132_v25  ;;  %v10184_v25 = vld [vmem:[#allocation11_spill] sm:$0xff] }
 0x5f9   :  { %2343 = vmatpush2.msra.mxu0 %v10133_v22  ;;  %2414 = vmatpush2.msra.mxu1 %v10134_v3 }
 0x5fa   :  { %2344 = vmatprep.subr.mxu0 %v10135_v11  ;;  %2415 = vmatprep.subr.mxu1 %v10136_v10 }
 0x5fb   :  { %2345 = vmatpush2.msra.mxu0 %v10137_v9  ;;  %2416 = vmatpush2.msra.mxu1 %v10138_v20  ;;  %v10185_v9 = vld [vmem:[#allocation12_spill] sm:$0xff] }
 0x5fc   :  { %2346 = vmatprep.subr.mxu0 %v10139_v7  ;;  %2417 = vmatprep.subr.mxu1 %v10140_v5 }
 0x5fd   :  { %2347 = vmatpush2.msra.mxu0 %v10141_v35  ;;  %2418 = vmatpush2.msra.mxu1 %v10142_v15 }
 0x5fe   :  { %2348 = vmatprep.subr.mxu0 %v10143_v13  ;;  %2419 = vmatprep.subr.mxu1 %v10144_v19 }
 0x5ff   :  { %2349 = vmatpush2.msra.mxu0 %v10145_v58  ;;  %2420 = vmatpush2.msra.mxu1 %v10146_v21 }
 0x600   :  { %2350 = vmatprep.subr.mxu0 %v10147_v62  ;;  %2421 = vmatprep.subr.mxu1 %v10148_v4 }
 0x601   :  { %2351 = vmatpush2.msra.mxu0 %v10149_v16  ;;  %2422 = vmatpush2.msra.mxu1 %v10150_v30 }
 0x602   :  { %2352 = vmatprep.subr.mxu0 %v10151_v23  ;;  %2423 = vmatprep.subr.mxu1 %v10152_v29 }
 0x603   :  { %2353 = vmatpush2.msra.mxu0 %v10153_v28  ;;  %2424 = vmatpush2.msra.mxu1 %v10154_v37 }
 0x604   :  { %2354 = vmatprep.subr.mxu0 %v10155_v24  ;;  %2425 = vmatprep.subr.mxu1 %v10156_v39 }
 0x605   :  { %2355 = vmatpush2.msra.mxu0 %v10157_v27  ;;  %2426 = vmatpush2.msra.mxu1 %v10158_v34 }
 0x606   :  { %2356 = vmatprep.subr.mxu0 %v10159_v32  ;;  %2427 = vmatprep.subr.mxu1 %v10160_v17  ;;  %v2996_v17 = vld [vmem:[%s8816_s0 + $0x28] sm:$0xff] }
 0x607   :  { %2357 = vmatpush2.msra.mxu0 %v10161_v33  ;;  %2428 = vmatpush2.msra.mxu1 %v10162_v8 }
 0x608   :  { %2358 = vmatprep.subr.mxu0 %v10163_v38  ;;  %2429 = vmatprep.subr.mxu1 %v10164_v18 }
 0x609   :  { %2359 = vmatpush2.msra.mxu0 %v10165_v42  ;;  %2430 = vmatpush2.msra.mxu1 %v10166_v36 }
 0x60a   :  { %2360 = vmatprep.subr.mxu0 %v10167_v40  ;;  %2431 = vmatprep.subr.mxu1 %v10168_v50 }
 0x60b   :  { %2361 = vmatpush2.msra.mxu0 %v10169_v41  ;;  %2432 = vmatpush2.msra.mxu1 %v10170_v44 }
 0x60c   :  { %2362 = vmatprep.subr.mxu0 %v10171_v45  ;;  %2433 = vmatprep.subr.mxu1 %v10172_v47 }
 0x60d   :  { %2363 = vmatpush2.msra.mxu0 %v10173_v48  ;;  %2434 = vmatpush2.msra.mxu1 %v10174_v55 }
 0x60e   :  { %2364 = vmatprep.subr.mxu0 %v10175_v54  ;;  %2435 = vmatprep.subr.mxu1 %v10176_v53 }
 0x60f   :  { %2365 = vmatpush2.msra.mxu0 %v10177_v52  ;;  %2436 = vmatpush2.msra.mxu1 %v10178_v60 }
 0x610   :  { %2366 = vmatprep.subr.mxu0 %v10179_v63  ;;  %2437 = vmatprep.subr.mxu1 %v10180_v56 }
 0x611   :  { %2367 = vmatpush2.msra.mxu0 %v10181_v0  ;;  %2438 = vmatpush2.msra.mxu1 %v10182_v26 }
 0x612   :  { %2448 = vmatprep.subr.mxu0 %v3678_v1  ;;  %2519 = vmatprep.subr.mxu1 %v3679_v61 }
 0x670   :  { %v1999_v57 = vpop.f32.mrf.mxu0  ;;  %v2070_v3 = vpop.f32.mrf.mxu1 }
 0x671   :  { %v2000_v59 = vadd.f32 %v1999_v57, %v10183_v49  ;;  %v2071_v35 = vadd.f32 %v2070_v3, %v5331_v46  ;;  %v3684_v3 = vld [vmem:[%s8817_s1 + $0x1c0] sm:$0xff] }
 0x672   :  { %v2001_v2 = vpop.f32.mrf.mxu0  ;;  %v2072_v10 = vpop.f32.mrf.mxu1 }
 0x673   :  { %v2997_v51 = vmul.f32 -1.442695, %v2000_v59  ;;  %v2002_v22 = vadd.f32 %v2001_v2, %v10184_v25  ;;  %v2073_v20 = vadd.f32 %v2072_v10, %v10185_v9  ;;  %v3680_v2 = vld [vmem:[%s8817_s1 + $0x1e0] sm:$0xff]  ;;  %v3686_v10 = vld [vmem:[%s8817_s1 + $0x1a8] sm:$0xff] }
 0x675   :  { %3214 = vpow2.f32 %v2997_v51  ;;  %v2998_v11 = vmul.f32 -1.442695, %v2002_v22  ;;  %v2999_v7 = vmul.f32 -1.442695, %v2073_v20  ;;  %v3682_v51 = vld [vmem:[%s8817_s1 + $0x1c8] sm:$0xff]  ;;  %v3683_v22 = vld [vmem:[%s8817_s1 + $0x1d8] sm:$0xff] }
 0x676   :  { %v3687_v20 = vld [vmem:[%s8817_s1 + $0x1b8] sm:$0xff] }
 0x677   :  { %3216 = vpow2.f32 %v2998_v11  ;;  %v3685_v11 = vld [vmem:[%s8817_s1 + $0x1d0] sm:$0xff] }
 0x678   :  { %3218 = vpow2.f32 %v2999_v7  ;;  %v3688_v7 = vld [vmem:[%s8817_s1 + $0x1a0] sm:$0xff] }
 0x682   :  { %v3215_v5 = vpop.eup %3214 }
 0x683   :  { %v2245_v15 = vadd.f32 1.0, %v3215_v5  ;;  %v3689_v5 = vld [vmem:[%s8817_s1 + $0x1b0] sm:$0xff] }
 0x684   :  { %v3217_v13 = vpop.eup %3216 }
 0x685   :  { %3220 = vrcp.f32 %v2245_v15  ;;  %v2251_v19 = vadd.f32 1.0, %v3217_v13  ;;  %v3219_v58 = vpop.eup %3218  ;;  %v3691_v15 = vld [vmem:[%s8817_s1 + $0x198] sm:$0xff]  ;;  %v3692_v13 = vld [vmem:[%s8817_s1 + $0x180] sm:$0xff] }
 0x686   :  { %3222 = vtanh.f32 %v2071_v35  ;;  %v2258_v28 = vadd.f32 1.0, %v3219_v58  ;;  %v3690_v35 = vld [vmem:[%s8817_s1 + $0x188] sm:$0xff] }
 0x687   :  { %3224 = vrcp.f32 %v2251_v19  ;;  %v3693_v19 = vld [vmem:[%s8817_s1 + $0x190] sm:$0xff]  ;;  %v3694_v58 = vld [vmem:[%s8817_s1 + $0x168] sm:$0xff] }
 0x688   :  { %3226 = vrcp.f32 %v2258_v28  ;;  %v3702_v28 = vld [vmem:[%s8817_s1 + $0x128] sm:$0xff] }
 0x691   :  { %v2143_v21 = vpop.f32.mrf.mxu0  ;;  %v2214_v62 = vpop.f32.mrf.mxu1 }
 0x692   :  { %v3221_v4 = vpop.eup %3220 }
 0x693   :  { %v3223_v16 = vpop.eup %3222  ;;  %v2145_v30 = vpop.f32.mrf.mxu0 }
 0x694   :  { %v2216_v23 = vpop.f32.mrf.mxu1  ;;  %v3225_v29 = vpop.eup %3224  ;;  %v2223_v37 = vcombine.low %v2143_v21, %v2145_v30  ;;  %v2262_v39 = vmul.f32 %v3223_v16, %v3221_v4  ;;  %v3695_v21 = vld [vmem:[%s8817_s1 + $0x178] sm:$0xff]  ;;  %v3697_v4 = vld [vmem:[%s8817_s1 + $0x170] sm:$0xff]  ;;  %v3698_v16 = vld [vmem:[%s8817_s1 + $0x148] sm:$0xff] }
 0x695   :  { %v2224_v24 = vcombine.low %v2214_v62, %v2216_v23  ;;  %v2261_v27 = vmul.f32 %v3225_v29, %v7910_v14  ;;  %v3227_v14 = vpop.eup %3226  ;;  %v3696_v62 = vld [vmem:[%s8817_s1 + $0x160] sm:$0xff]  ;;  %v3699_v30 = vld [vmem:[%s8817_s1 + $0x158] sm:$0xff]  ;;  %v3701_v29 = vld [vmem:[%s8817_s1 + $0x150] sm:$0xff] }
 0x696   :  { %v2231_v34 = vrot.slane %v2223_v37, %v5095_v6  ;;  %v3700_v23 = vld [vmem:[%s8817_s1 + $0x140] sm:$0xff]  ;;  %v3703_v37 = vld [vmem:[%s8817_s1 + $0x138] sm:$0xff] }
 0x697   :  { %v2238_v32 = vrot.slane %v2224_v24, %v5095_v6  ;;  %v8134_v33 = vadd.f32 %v2262_v39, %v2261_v27  ;;  %v3704_v24 = vld [vmem:[%s8817_s1 + $0x120] sm:$0xff]  ;;  %v3705_v39 = vld [vmem:[%s8817_s1 + $0x130] sm:$0xff]  ;;  %v3706_v27 = vld [vmem:[%s8817_s1 + $0x108] sm:$0xff] }
 0x699   :  { %v2239_v8 = vcombine.low %v2231_v34, %v2238_v32  ;;  %3228 = vtanh.f32 %v8134_v33  ;;  %v3707_v34 = vld [vmem:[%s8817_s1 + $0x118] sm:$0xff]  ;;  %v3708_v32 = vld [vmem:[%s8817_s1 + $0x100] sm:$0xff] }
 0x69b   :  { %v2241_v38 = vadd.f32 %v2996_v17, %v2239_v8  ;;  %v3709_v17 = vld [vmem:[%s8817_s1 + $0x110] sm:$0xff]  ;;  %v3710_v8 = vld [vmem:[%s8817_s1 + $0xe8] sm:$0xff] }
 0x69d   :  { %v3000_v18 = vmul.f32 -1.442695, %v2241_v38  ;;  %v2273_v42 = vrot.slane %v2241_v38, 2  ;;  %v2284_v40 = vrot.slane %v2241_v38, 6  ;;  %v2281_v48 = vrot.slane %v2241_v38, 4  ;;  %v3711_v38 = vld [vmem:[%s8817_s1 + $0xf8] sm:$0xff] }
 0x69f   :  { %3230 = vpow2.f32 %v3000_v18  ;;  %v3001_v36 = vmul.f32 -1.442695, %v2273_v42  ;;  %v3002_v44 = vmul.f32 -1.442695, %v2284_v40  ;;  %v3712_v18 = vld [vmem:[%s8817_s1 + $0xe0] sm:$0xff]  ;;  %v3713_v42 = vld [vmem:[%s8817_s1 + $0xf0] sm:$0xff] }
 0x6a0   :  { %v3716_v40 = vld [vmem:[%s8817_s1 + $0xc0] sm:$0xff] }
 0x6a1   :  { %3232 = vpow2.f32 %v3001_v36  ;;  %v3714_v36 = vld [vmem:[%s8817_s1 + $0xc8] sm:$0xff] }
 0x6a2   :  { %3234 = vpow2.f32 %v3002_v44  ;;  %v3719_v44 = vld [vmem:[%s8817_s1 + $0xb8] sm:$0xff] }
 0x6a6   :  { %v3229_v50 = vpop.eup %3228 }
 0x6a7   :  { %v2265_v41 = vmul.f32 %v3229_v50, %v3227_v14  ;;  %v3715_v14 = vld [vmem:[%s8817_s1 + $0xd8] sm:$0xff]  ;;  %v3717_v50 = vld [vmem:[%s8817_s1 + $0xd0] sm:$0xff] }
 0x6a9   :  { %v8138_v45 = vadd.f32 %v2265_v41, %v7914_v12  ;;  %2368 = vmatprep.mubr.f32.mxu0 %v2265_v41  ;;  %2439 = vmatprep.mubr.f32.mxu1 %v2265_v41  ;;  %v3718_v41 = vld [vmem:[%s8817_s1 + $0xa8] sm:$0xff] }
 0x6ac   :  { %v3231_v47 = vpop.eup %3230 }
 0x6ad   :  { %v2269_v55 = vadd.f32 1.0, %v3231_v47  ;;  %v3720_v47 = vld [vmem:[%s8817_s1 + $0xa0] sm:$0xff] }
 0x6ae   :  { %v3233_v54 = vpop.eup %3232 }
 0x6af   :  { %3236 = vrcp.f32 %v2269_v55  ;;  %v2278_v53 = vadd.f32 1.0, %v3233_v54  ;;  %v3235_v52 = vpop.eup %3234  ;;  %v3722_v55 = vld [vmem:[%s8817_s1 + $0x88] sm:$0xff]  ;;  %v3723_v54 = vld [vmem:[%s8817_s1 + $0x98] sm:$0xff] }
 0x6b0   :  { %3238 = vtanh.f32 %v2281_v48  ;;  %v2289_v0 = vadd.f32 1.0, %v3235_v52  ;;  %v3721_v48 = vld [vmem:[%s8817_s1 + $0xb0] sm:$0xff] }
 0x6b1   :  { %3240 = vrcp.f32 %v2278_v53  ;;  %v3724_v53 = vld [vmem:[%s8817_s1 + $0x80] sm:$0xff]  ;;  %v3725_v52 = vld [vmem:[%s8817_s1 + $0x90] sm:$0xff] }
 0x6b2   :  { %3242 = vrcp.f32 %v2289_v0  ;;  %v3729_v0 = vld [vmem:[%s8817_s1 + $0x70] sm:$0xff] }
 0x6bc   :  { %v3237_v60 = vpop.eup %3236 }
 0x6bd   :  { %v3239_v63 = vpop.eup %3238 }
 0x6be   :  { %v3241_v56 = vpop.eup %3240  ;;  %v2293_v12 = vmul.f32 %v3239_v63, %v3237_v60  ;;  %v3726_v60 = vld [vmem:[%s8817_s1 + $0x68] sm:$0xff]  ;;  %v3727_v63 = vld [vmem:[%s8817_s1 + $0x78] sm:$0xff] }
 0x6bf   :  { %v2292_v26 = vmul.f32 %v3241_v56, %v7917_v31  ;;  %v3243_v61 = vpop.eup %3242  ;;  %v3681_v31 = vld [vmem:[%s8817_s1 + $0x1f0] sm:$0xff]  ;;  %v3728_v56 = vld [vmem:[%s8817_s1 + $0x60] sm:$0xff] }
 0x6c1   :  { %v8141_v1 = vadd.f32 %v2293_v12, %v2292_v26  ;;  %v3730_v26 = vld [vmem:[%s8817_s1 + $0x48] sm:$0xff]  ;;  %v3731_v12 = vld [vmem:[%s8817_s1 + $0x58] sm:$0xff] }
 0x6c3   :  { %3244 = vtanh.f32 %v8141_v1 }
 0x6d0   :  { %v3245_v57 = vpop.eup %3244 }
 0x6d1   :  { %v8144_v59 = vmul.f32 %v3245_v57, %v3243_v61  ;;  %v3732_v61 = vld [vmem:[%s8817_s1 + $0x40] sm:$0xff]  ;;  %v3733_v57 = vld [vmem:[%s8817_s1 + $0x50] sm:$0xff] }
 0x6d3   :  { %2369 = vmatmul.mubr.f32.vlgmr.msra.gmra.mxu0 %v8144_v59  ;;  %2440 = vmatmul.mubr.f32.vlgmr.msra.gmra.mxu1 %v8144_v59 }
 0x6d4   :  { %2449 = vmatpush1.msra.mxu0 %v3680_v2  ;;  %2520 = vmatpush1.msra.mxu1 %v3681_v31  ;;  %v3734_v2 = vld [vmem:[%s8817_s1 + $0x28] sm:$0xff]  ;;  %v3735_v31 = vld [vmem:[%s8817_s1 + $0x38] sm:$0xff] }
 0x6d5   :  { %2450 = vmatprep.subr.mxu0 %v3682_v51  ;;  %2521 = vmatprep.subr.mxu1 %v3683_v22  ;;  %v3736_v51 = vld [vmem:[%s8817_s1 + $0x20] sm:$0xff]  ;;  %v3737_v22 = vld [vmem:[%s8817_s1 + $0x30] sm:$0xff] }
 0x6d6   :  { %2451 = vmatpush1.msra.mxu0 %v3684_v3  ;;  %2522 = vmatpush1.msra.mxu1 %v3685_v11  ;;  %v3738_v3 = vld [vmem:[%s8817_s1 + $0x8] sm:$0xff]  ;;  %v3739_v11 = vld [vmem:[%s8817_s1 + $0x18] sm:$0xff] }
 0x6d7   :  { %2452 = vmatprep.subr.mxu0 %v3686_v10  ;;  %2523 = vmatprep.subr.mxu1 %v3687_v20  ;;  %v3740_v10 = vld [vmem:[%s8817_s1] sm:$0xff]  ;;  %v3741_v20 = vld [vmem:[%s8817_s1 + $0x10] sm:$0xff] }
 0x6d8   :  { %2453 = vmatpush1.msra.mxu0 %v3688_v7  ;;  %2524 = vmatpush1.msra.mxu1 %v3689_v5  ;;  %v3742_v7 = vld [vmem:[%s8818_s2 + $0x1e8] sm:$0xff]  ;;  %v3743_v5 = vld [vmem:[%s8818_s2 + $0x1f8] sm:$0xff] }
 0x6d9   :  { %2454 = vmatprep.subr.mxu0 %v3690_v35  ;;  %2525 = vmatprep.subr.mxu1 %v3691_v15  ;;  %v3744_v35 = vld [vmem:[%s8818_s2 + $0x1e0] sm:$0xff]  ;;  %v3745_v15 = vld [vmem:[%s8818_s2 + $0x1f0] sm:$0xff] }
 0x6da   :  { %2455 = vmatpush1.msra.mxu0 %v3692_v13  ;;  %2526 = vmatpush1.msra.mxu1 %v3693_v19  ;;  %v3747_v13 = vld [vmem:[%s8818_s2 + $0x1d8] sm:$0xff]  ;;  %v3748_v19 = vld [vmem:[%s8818_s2 + $0x1c0] sm:$0xff] }
 0x6db   :  { %2456 = vmatprep.subr.mxu0 %v3694_v58  ;;  %2527 = vmatprep.subr.mxu1 %v3695_v21  ;;  %v3749_v58 = vld [vmem:[%s8818_s2 + $0x1d0] sm:$0xff]  ;;  %v3750_v21 = vld [vmem:[%s8818_s2 + $0x1a8] sm:$0xff] }
 0x6dc   :  { %2457 = vmatpush1.msra.mxu0 %v3696_v62  ;;  %2528 = vmatpush1.msra.mxu1 %v3697_v4  ;;  %v3751_v62 = vld [vmem:[%s8818_s2 + $0x1b8] sm:$0xff]  ;;  %v3752_v4 = vld [vmem:[%s8818_s2 + $0x1a0] sm:$0xff] }
 0x6dd   :  { %2458 = vmatprep.subr.mxu0 %v3698_v16  ;;  %2529 = vmatprep.subr.mxu1 %v3699_v30  ;;  %v3753_v16 = vld [vmem:[%s8818_s2 + $0x1b0] sm:$0xff]  ;;  %v3754_v30 = vld [vmem:[%s8818_s2 + $0x188] sm:$0xff] }
 0x6de   :  { %2459 = vmatpush1.msra.mxu0 %v3700_v23  ;;  %2530 = vmatpush1.msra.mxu1 %v3701_v29  ;;  %v3755_v23 = vld [vmem:[%s8818_s2 + $0x198] sm:$0xff]  ;;  %v3756_v29 = vld [vmem:[%s8818_s2 + $0x180] sm:$0xff] }
 0x6df   :  { %2460 = vmatprep.subr.mxu0 %v3702_v28  ;;  %2531 = vmatprep.subr.mxu1 %v3703_v37  ;;  %v3757_v28 = vld [vmem:[%s8818_s2 + $0x190] sm:$0xff]  ;;  %v3758_v37 = vld [vmem:[%s8818_s2 + $0x168] sm:$0xff] }
 0x6e0   :  { %2461 = vmatpush1.msra.mxu0 %v3704_v24  ;;  %2532 = vmatpush1.msra.mxu1 %v3705_v39  ;;  %v3759_v24 = vld [vmem:[%s8818_s2 + $0x178] sm:$0xff]  ;;  %v3760_v39 = vld [vmem:[%s8818_s2 + $0x160] sm:$0xff] }
 0x6e1   :  { %2462 = vmatprep.subr.mxu0 %v3706_v27  ;;  %2533 = vmatprep.subr.mxu1 %v3707_v34  ;;  %v3761_v27 = vld [vmem:[%s8818_s2 + $0x170] sm:$0xff]  ;;  %v3762_v34 = vld [vmem:[%s8818_s2 + $0x148] sm:$0xff] }
 0x6e2   :  { %2463 = vmatpush1.msra.mxu0 %v3708_v32  ;;  %2534 = vmatpush1.msra.mxu1 %v3709_v17  ;;  %v3763_v32 = vld [vmem:[%s8818_s2 + $0x158] sm:$0xff]  ;;  %v3764_v17 = vld [vmem:[%s8818_s2 + $0x140] sm:$0xff] }
 0x6e3   :  { %2464 = vmatprep.subr.mxu0 %v3710_v8  ;;  %2535 = vmatprep.subr.mxu1 %v3711_v38  ;;  %v3765_v8 = vld [vmem:[%s8818_s2 + $0x150] sm:$0xff]  ;;  %v3766_v38 = vld [vmem:[%s8818_s2 + $0x128] sm:$0xff] }
 0x6e4   :  { %2465 = vmatpush1.msra.mxu0 %v3712_v18  ;;  %2536 = vmatpush1.msra.mxu1 %v3713_v42  ;;  %v3767_v18 = vld [vmem:[%s8818_s2 + $0x138] sm:$0xff]  ;;  %v3768_v42 = vld [vmem:[%s8818_s2 + $0x120] sm:$0xff] }
 0x6e5   :  { %2466 = vmatprep.subr.mxu0 %v3714_v36  ;;  %2537 = vmatprep.subr.mxu1 %v3715_v14  ;;  %v3769_v36 = vld [vmem:[%s8818_s2 + $0x130] sm:$0xff]  ;;  %v3770_v14 = vld [vmem:[%s8818_s2 + $0x108] sm:$0xff] }
 0x6e6   :  { %2467 = vmatpush1.msra.mxu0 %v3716_v40  ;;  %2538 = vmatpush1.msra.mxu1 %v3717_v50  ;;  %v3771_v40 = vld [vmem:[%s8818_s2 + $0x118] sm:$0xff]  ;;  %v3772_v50 = vld [vmem:[%s8818_s2 + $0x100] sm:$0xff] }
 0x6e7   :  { %2468 = vmatprep.subr.mxu0 %v3718_v41  ;;  %2539 = vmatprep.subr.mxu1 %v3719_v44  ;;  %v3773_v41 = vld [vmem:[%s8818_s2 + $0x110] sm:$0xff]  ;;  %v3774_v44 = vld [vmem:[%s8818_s2 + $0xe8] sm:$0xff] }
 0x6e8   :  { %2469 = vmatpush1.msra.mxu0 %v3720_v47  ;;  %2540 = vmatpush1.msra.mxu1 %v3721_v48  ;;  %v3775_v47 = vld [vmem:[%s8818_s2 + $0xf8] sm:$0xff]  ;;  %v3776_v48 = vld [vmem:[%s8818_s2 + $0xe0] sm:$0xff] }
 0x6e9   :  { %2470 = vmatprep.subr.mxu0 %v3722_v55  ;;  %2541 = vmatprep.subr.mxu1 %v3723_v54  ;;  %v3777_v55 = vld [vmem:[%s8818_s2 + $0xf0] sm:$0xff]  ;;  %v3778_v54 = vld [vmem:[%s8818_s2 + $0xc8] sm:$0xff] }
 0x6ea   :  { %2471 = vmatpush1.msra.mxu0 %v3724_v53  ;;  %2542 = vmatpush1.msra.mxu1 %v3725_v52  ;;  %v3779_v53 = vld [vmem:[%s8818_s2 + $0xd8] sm:$0xff]  ;;  %v3780_v52 = vld [vmem:[%s8818_s2 + $0xc0] sm:$0xff] }
 0x6eb   :  { %2472 = vmatprep.subr.mxu0 %v3726_v60  ;;  %2543 = vmatprep.subr.mxu1 %v3727_v63  ;;  %v3781_v60 = vld [vmem:[%s8818_s2 + $0xd0] sm:$0xff]  ;;  %v3782_v63 = vld [vmem:[%s8818_s2 + $0xa8] sm:$0xff] }
 0x6ec   :  { %2473 = vmatpush1.msra.mxu0 %v3728_v56  ;;  %2544 = vmatpush1.msra.mxu1 %v3729_v0  ;;  %v3783_v56 = vld [vmem:[%s8818_s2 + $0xb8] sm:$0xff]  ;;  %v3784_v0 = vld [vmem:[%s8818_s2 + $0xa0] sm:$0xff] }
 0x6ed   :  { %2474 = vmatprep.subr.mxu0 %v3730_v26  ;;  %2545 = vmatprep.subr.mxu1 %v3731_v12  ;;  %v3785_v26 = vld [vmem:[%s8818_s2 + $0xb0] sm:$0xff]  ;;  %v3786_v12 = vld [vmem:[%s8818_s2 + $0x88] sm:$0xff] }
 0x6ee   :  { %2475 = vmatpush1.msra.mxu0 %v3732_v61  ;;  %2546 = vmatpush1.msra.mxu1 %v3733_v57  ;;  %v3787_v61 = vld [vmem:[%s8818_s2 + $0x98] sm:$0xff]  ;;  %v3788_v57 = vld [vmem:[%s8818_s2 + $0x80] sm:$0xff] }
 0x6ef   :  { %2476 = vmatprep.subr.mxu0 %v3734_v2  ;;  %2547 = vmatprep.subr.mxu1 %v3735_v31  ;;  %v3789_v2 = vld [vmem:[%s8818_s2 + $0x90] sm:$0xff]  ;;  %v3790_v31 = vld [vmem:[%s8818_s2 + $0x68] sm:$0xff] }
 0x6f0   :  { %2477 = vmatpush1.msra.mxu0 %v3736_v51  ;;  %2548 = vmatpush1.msra.mxu1 %v3737_v22  ;;  %v3791_v51 = vld [vmem:[%s8818_s2 + $0x78] sm:$0xff]  ;;  %v3792_v22 = vld [vmem:[%s8818_s2 + $0x60] sm:$0xff] }
 0x6f1   :  { %2478 = vmatprep.subr.mxu0 %v3738_v3  ;;  %2549 = vmatprep.subr.mxu1 %v3739_v11  ;;  %v3793_v3 = vld [vmem:[%s8818_s2 + $0x70] sm:$0xff]  ;;  %v3794_v11 = vld [vmem:[%s8818_s2 + $0x48] sm:$0xff] }
 0x6f2   :  { %2479 = vmatpush1.msra.mxu0 %v3740_v10  ;;  %2512 = vmatprep.mubr.f32.mxu0 %v10053_v43  ;;  %v3795_v10 = vld [vmem:[%s8818_s2 + $0x58] sm:$0xff] }
 0x6f3   :  { %2550 = vmatpush1.msra.mxu1 %v3741_v20  ;;  %2583 = vmatprep.mubr.f32.mxu1 %v10053_v43  ;;  %v3796_v20 = vld [vmem:[%s8818_s2 + $0x40] sm:$0xff] }
 0x6f4   :  { %2513 = vmatmul.mubr.f32.vlgmr.msra.gmra.mxu0 %v8144_v59  ;;  %2584 = vmatmul.mubr.f32.vlgmr.msra.gmra.mxu1 %v8144_v59  ;;  %v3746_v59 = vld [vmem:[%s8818_s2 + $0x1c8] sm:$0xff] }
 0x6f5   :  { %2675 = vmatprep.subr.mxu0 %v3742_v7  ;;  %2746 = vmatprep.subr.mxu1 %v3743_v5  ;;  %v3797_v7 = vld [vmem:[%s8818_s2 + $0x50] sm:$0xff]  ;;  %v3798_v5 = vld [vmem:[%s8818_s2 + $0x28] sm:$0xff] }
 0x6f6   :  { %2676 = vmatpush1.msra.mxu0 %v3744_v35  ;;  %2747 = vmatpush1.msra.mxu1 %v3745_v15  ;;  %v3799_v35 = vld [vmem:[%s8818_s2 + $0x38] sm:$0xff]  ;;  %v3800_v15 = vld [vmem:[%s8818_s2 + $0x20] sm:$0xff] }
 0x6f7   :  { %2677 = vmatprep.subr.mxu0 %v3746_v59  ;;  %2748 = vmatprep.subr.mxu1 %v3747_v13  ;;  %v3801_v59 = vld [vmem:[%s8818_s2 + $0x30] sm:$0xff]  ;;  %v3802_v13 = vld [vmem:[%s8818_s2 + $0x8] sm:$0xff] }
 0x6f8   :  { %2678 = vmatpush1.msra.mxu0 %v3748_v19  ;;  %2749 = vmatpush1.msra.mxu1 %v3749_v58  ;;  %v3803_v19 = vld [vmem:[%s8818_s2 + $0x18] sm:$0xff]  ;;  %v3804_v58 = vld [vmem:[%s8818_s2] sm:$0xff] }
 0x6f9   :  { %2679 = vmatprep.subr.mxu0 %v3750_v21  ;;  %2750 = vmatprep.subr.mxu1 %v3751_v62  ;;  %v3805_v21 = vld [vmem:[%s8818_s2 + $0x10] sm:$0xff]  ;;  %v3806_v62 = vld [vmem:[%s8818_s2 + $0x3e8] sm:$0xff] }
 0x6fa   :  { %2680 = vmatpush1.msra.mxu0 %v3752_v4  ;;  %2751 = vmatpush1.msra.mxu1 %v3753_v16  ;;  %v3807_v4 = vld [vmem:[%s8818_s2 + $0x3f8] sm:$0xff]  ;;  %v3808_v16 = vld [vmem:[%s8818_s2 + $0x3e0] sm:$0xff] }
 0x6fb   :  { %2681 = vmatprep.subr.mxu0 %v3754_v30  ;;  %2752 = vmatprep.subr.mxu1 %v3755_v23  ;;  %v3809_v30 = vld [vmem:[%s8818_s2 + $0x3f0] sm:$0xff]  ;;  %v3810_v23 = vld [vmem:[%s8818_s2 + $0x3c8] sm:$0xff] }
 0x6fc   :  { %2682 = vmatpush1.msra.mxu0 %v3756_v29  ;;  %2753 = vmatpush1.msra.mxu1 %v3757_v28  ;;  %v3811_v29 = vld [vmem:[%s8818_s2 + $0x3d8] sm:$0xff]  ;;  %v3812_v28 = vld [vmem:[%s8818_s2 + $0x3c0] sm:$0xff] }
 0x6fd   :  { %2683 = vmatprep.subr.mxu0 %v3758_v37  ;;  %2754 = vmatprep.subr.mxu1 %v3759_v24  ;;  %v3813_v37 = vld [vmem:[%s8818_s2 + $0x3d0] sm:$0xff]  ;;  %v3814_v24 = vld [vmem:[%s8818_s2 + $0x3a8] sm:$0xff] }
 0x6fe   :  { %2684 = vmatpush1.msra.mxu0 %v3760_v39  ;;  %2755 = vmatpush1.msra.mxu1 %v3761_v27  ;;  %v3815_v39 = vld [vmem:[%s8818_s2 + $0x3b8] sm:$0xff]  ;;  %v3816_v27 = vld [vmem:[%s8818_s2 + $0x3a0] sm:$0xff] }
 0x6ff   :  { %2685 = vmatprep.subr.mxu0 %v3762_v34  ;;  %2756 = vmatprep.subr.mxu1 %v3763_v32  ;;  %v3817_v34 = vld [vmem:[%s8818_s2 + $0x3b0] sm:$0xff]  ;;  %v3818_v32 = vld [vmem:[%s8818_s2 + $0x388] sm:$0xff] }
 0x700   :  { %2686 = vmatpush1.msra.mxu0 %v3764_v17  ;;  %2757 = vmatpush1.msra.mxu1 %v3765_v8  ;;  %v3819_v17 = vld [vmem:[%s8818_s2 + $0x398] sm:$0xff]  ;;  %v3820_v8 = vld [vmem:[%s8818_s2 + $0x380] sm:$0xff] }
 0x701   :  { %2687 = vmatprep.subr.mxu0 %v3766_v38  ;;  %2758 = vmatprep.subr.mxu1 %v3767_v18  ;;  %v3821_v38 = vld [vmem:[%s8818_s2 + $0x390] sm:$0xff]  ;;  %v3822_v18 = vld [vmem:[%s8818_s2 + $0x368] sm:$0xff] }
 0x702   :  { %2688 = vmatpush1.msra.mxu0 %v3768_v42  ;;  %2759 = vmatpush1.msra.mxu1 %v3769_v36  ;;  %v3823_v42 = vld [vmem:[%s8818_s2 + $0x378] sm:$0xff]  ;;  %v3824_v36 = vld [vmem:[%s8818_s2 + $0x360] sm:$0xff] }
 0x703   :  { %2689 = vmatprep.subr.mxu0 %v3770_v14  ;;  %2760 = vmatprep.subr.mxu1 %v3771_v40  ;;  %v3825_v14 = vld [vmem:[%s8818_s2 + $0x370] sm:$0xff]  ;;  %v3826_v40 = vld [vmem:[%s8818_s2 + $0x348] sm:$0xff] }
 0x704   :  { %2690 = vmatpush1.msra.mxu0 %v3772_v50  ;;  %2761 = vmatpush1.msra.mxu1 %v3773_v41  ;;  %v3827_v50 = vld [vmem:[%s8818_s2 + $0x358] sm:$0xff]  ;;  %v3828_v41 = vld [vmem:[%s8818_s2 + $0x340] sm:$0xff] }
 0x705   :  { %2691 = vmatprep.subr.mxu0 %v3774_v44  ;;  %2762 = vmatprep.subr.mxu1 %v3775_v47  ;;  %v3829_v44 = vld [vmem:[%s8818_s2 + $0x350] sm:$0xff]  ;;  %v3830_v47 = vld [vmem:[%s8818_s2 + $0x328] sm:$0xff] }
 0x706   :  { %2692 = vmatpush1.msra.mxu0 %v3776_v48  ;;  %2763 = vmatpush1.msra.mxu1 %v3777_v55  ;;  %v3831_v48 = vld [vmem:[%s8818_s2 + $0x338] sm:$0xff]  ;;  %v3832_v55 = vld [vmem:[%s8818_s2 + $0x320] sm:$0xff] }
 0x707   :  { %2693 = vmatprep.subr.mxu0 %v3778_v54  ;;  %2764 = vmatprep.subr.mxu1 %v3779_v53  ;;  %v3833_v54 = vld [vmem:[%s8818_s2 + $0x330] sm:$0xff]  ;;  %v3834_v53 = vld [vmem:[%s8818_s2 + $0x308] sm:$0xff] }
 0x708   :  { %2694 = vmatpush1.msra.mxu0 %v3780_v52  ;;  %2765 = vmatpush1.msra.mxu1 %v3781_v60  ;;  %v3835_v52 = vld [vmem:[%s8818_s2 + $0x318] sm:$0xff]  ;;  %v3836_v60 = vld [vmem:[%s8818_s2 + $0x300] sm:$0xff] }
 0x709   :  { %2695 = vmatprep.subr.mxu0 %v3782_v63  ;;  %2766 = vmatprep.subr.mxu1 %v3783_v56  ;;  %v3837_v63 = vld [vmem:[%s8818_s2 + $0x310] sm:$0xff]  ;;  %v3838_v56 = vld [vmem:[%s8818_s2 + $0x2e8] sm:$0xff] }
 0x70a   :  { %2696 = vmatpush1.msra.mxu0 %v3784_v0  ;;  %2767 = vmatpush1.msra.mxu1 %v3785_v26  ;;  %v3839_v0 = vld [vmem:[%s8818_s2 + $0x2f8] sm:$0xff]  ;;  %v3840_v26 = vld [vmem:[%s8818_s2 + $0x2e0] sm:$0xff] }
 0x70b   :  { %2697 = vmatprep.subr.mxu0 %v3786_v12  ;;  %2768 = vmatprep.subr.mxu1 %v3787_v61  ;;  %v3841_v12 = vld [vmem:[%s8818_s2 + $0x2f0] sm:$0xff]  ;;  %v3842_v61 = vld [vmem:[%s8818_s2 + $0x2c8] sm:$0xff] }
 0x70c   :  { %2698 = vmatpush1.msra.mxu0 %v3788_v57  ;;  %2769 = vmatpush1.msra.mxu1 %v3789_v2  ;;  %v3843_v57 = vld [vmem:[%s8818_s2 + $0x2d8] sm:$0xff]  ;;  %v3844_v2 = vld [vmem:[%s8818_s2 + $0x2c0] sm:$0xff] }
 0x70d   :  { %2699 = vmatprep.subr.mxu0 %v3790_v31  ;;  %2770 = vmatprep.subr.mxu1 %v3791_v51  ;;  %v3845_v31 = vld [vmem:[%s8818_s2 + $0x2d0] sm:$0xff]  ;;  %v3846_v51 = vld [vmem:[%s8818_s2 + $0x2a8] sm:$0xff] }
 0x70e   :  { %2700 = vmatpush1.msra.mxu0 %v3792_v22  ;;  %2771 = vmatpush1.msra.mxu1 %v3793_v3  ;;  %v3847_v22 = vld [vmem:[%s8818_s2 + $0x2b8] sm:$0xff]  ;;  %v3848_v3 = vld [vmem:[%s8818_s2 + $0x2a0] sm:$0xff] }
 0x70f   :  { %2701 = vmatprep.subr.mxu0 %v3794_v11  ;;  %2772 = vmatprep.subr.mxu1 %v3795_v10  ;;  %v3849_v11 = vld [vmem:[%s8818_s2 + $0x2b0] sm:$0xff]  ;;  %v3850_v10 = vld [vmem:[%s8818_s2 + $0x288] sm:$0xff] }
 0x710   :  { %2702 = vmatpush1.msra.mxu0 %v3796_v20  ;;  %2773 = vmatpush1.msra.mxu1 %v3797_v7  ;;  %v3851_v20 = vld [vmem:[%s8818_s2 + $0x298] sm:$0xff]  ;;  %v3852_v7 = vld [vmem:[%s8818_s2 + $0x280] sm:$0xff] }
 0x711   :  { %2703 = vmatprep.subr.mxu0 %v3798_v5  ;;  %2774 = vmatprep.subr.mxu1 %v3799_v35  ;;  %v3853_v5 = vld [vmem:[%s8818_s2 + $0x290] sm:$0xff]  ;;  %v3854_v35 = vld [vmem:[%s8818_s2 + $0x268] sm:$0xff] }
 0x712   :  { %2704 = vmatpush1.msra.mxu0 %v3800_v15  ;;  %2775 = vmatpush1.msra.mxu1 %v3801_v59  ;;  %v3855_v15 = vld [vmem:[%s8818_s2 + $0x278] sm:$0xff]  ;;  %v3856_v59 = vld [vmem:[%s8818_s2 + $0x260] sm:$0xff] }
 0x713   :  { %2705 = vmatprep.subr.mxu0 %v3802_v13  ;;  %2776 = vmatprep.subr.mxu1 %v3803_v19  ;;  %v3857_v13 = vld [vmem:[%s8818_s2 + $0x270] sm:$0xff]  ;;  %v3858_v19 = vld [vmem:[%s8818_s2 + $0x248] sm:$0xff] }
 0x714   :  { %2706 = vmatpush1.msra.mxu0 %v3804_v58  ;;  %2777 = vmatpush1.msra.mxu1 %v3805_v21  ;;  %v3859_v58 = vld [vmem:[%s8818_s2 + $0x258] sm:$0xff]  ;;  %v3860_v21 = vld [vmem:[%s8818_s2 + $0x240] sm:$0xff] }
 0x715   :  { %2707 = vmatprep.subr.mxu0 %v3806_v62  ;;  %2778 = vmatprep.subr.mxu1 %v3807_v4  ;;  %v3861_v62 = vld [vmem:[%s8818_s2 + $0x250] sm:$0xff]  ;;  %v3862_v4 = vld [vmem:[%s8818_s2 + $0x228] sm:$0xff] }
 0x716   :  { %2708 = vmatpush2.msra.mxu0 %v3808_v16  ;;  %2779 = vmatpush2.msra.mxu1 %v3809_v30  ;;  %v3863_v16 = vld [vmem:[%s8818_s2 + $0x238] sm:$0xff]  ;;  %v3864_v30 = vld [vmem:[%s8818_s2 + $0x220] sm:$0xff] }
 0x717   :  { %2709 = vmatprep.subr.mxu0 %v3810_v23  ;;  %2780 = vmatprep.subr.mxu1 %v3811_v29  ;;  %v3865_v23 = vld [vmem:[%s8818_s2 + $0x230] sm:$0xff]  ;;  %v3866_v29 = vld [vmem:[%s8818_s2 + $0x208] sm:$0xff] }
 0x718   :  { %2710 = vmatpush2.msra.mxu0 %v3812_v28  ;;  %2781 = vmatpush2.msra.mxu1 %v3813_v37  ;;  %v3867_v28 = vld [vmem:[%s8818_s2 + $0x218] sm:$0xff]  ;;  %v3868_v37 = vld [vmem:[%s8818_s2 + $0x200] sm:$0xff] }
 0x719   :  { %2711 = vmatprep.subr.mxu0 %v3814_v24  ;;  %2782 = vmatprep.subr.mxu1 %v3815_v39  ;;  %v3869_v24 = vld [vmem:[%s8818_s2 + $0x210] sm:$0xff] }
 0x71a   :  { %2712 = vmatpush2.msra.mxu0 %v3816_v27  ;;  %2783 = vmatpush2.msra.mxu1 %v3817_v34 }
 0x71b   :  { %2713 = vmatprep.subr.mxu0 %v3818_v32  ;;  %2784 = vmatprep.subr.mxu1 %v3819_v17 }
 0x71c   :  { %2714 = vmatpush2.msra.mxu0 %v3820_v8  ;;  %2785 = vmatpush2.msra.mxu1 %v3821_v38 }
 0x71d   :  { %2715 = vmatprep.subr.mxu0 %v3822_v18  ;;  %2786 = vmatprep.subr.mxu1 %v3823_v42 }
 0x71e   :  { %2716 = vmatpush2.msra.mxu0 %v3824_v36  ;;  %2787 = vmatpush2.msra.mxu1 %v3825_v14 }
 0x71f   :  { %2717 = vmatprep.subr.mxu0 %v3826_v40  ;;  %2788 = vmatprep.subr.mxu1 %v3827_v50 }
 0x720   :  { %2718 = vmatpush2.msra.mxu0 %v3828_v41  ;;  %2789 = vmatpush2.msra.mxu1 %v3829_v44 }
 0x721   :  { %2719 = vmatprep.subr.mxu0 %v3830_v47  ;;  %2790 = vmatprep.subr.mxu1 %v3831_v48 }
 0x722   :  { %2720 = vmatpush2.msra.mxu0 %v3832_v55  ;;  %2791 = vmatpush2.msra.mxu1 %v3833_v54 }
 0x723   :  { %2721 = vmatprep.subr.mxu0 %v3834_v53  ;;  %2792 = vmatprep.subr.mxu1 %v3835_v52 }
 0x724   :  { %2722 = vmatpush2.msra.mxu0 %v3836_v60  ;;  %2793 = vmatpush2.msra.mxu1 %v3837_v63 }
 0x725   :  { %2723 = vmatprep.subr.mxu0 %v3838_v56  ;;  %2794 = vmatprep.subr.mxu1 %v3839_v0 }
 0x726   :  { %2724 = vmatpush2.msra.mxu0 %v3840_v26  ;;  %2795 = vmatpush2.msra.mxu1 %v3841_v12 }
 0x727   :  { %2725 = vmatprep.subr.mxu0 %v3842_v61  ;;  %2796 = vmatprep.subr.mxu1 %v3843_v57 }
 0x728   :  { %2726 = vmatpush2.msra.mxu0 %v3844_v2  ;;  %2797 = vmatpush2.msra.mxu1 %v3845_v31  ;;  %v3003_v31 = vld [vmem:[%s8816_s0 + $0x30] sm:$0xff] }
 0x729   :  { %2727 = vmatprep.subr.mxu0 %v3846_v51  ;;  %2798 = vmatprep.subr.mxu1 %v3847_v22 }
 0x72a   :  { %2728 = vmatpush2.msra.mxu0 %v3848_v3  ;;  %2799 = vmatpush2.msra.mxu1 %v3849_v11 }
 0x72b   :  { %2729 = vmatprep.subr.mxu0 %v3850_v10  ;;  %2800 = vmatprep.subr.mxu1 %v3851_v20 }
 0x72c   :  { %2730 = vmatpush2.msra.mxu0 %v3852_v7  ;;  %2801 = vmatpush2.msra.mxu1 %v3853_v5 }
 0x72d   :  { %2731 = vmatprep.subr.mxu0 %v3854_v35  ;;  %2802 = vmatprep.subr.mxu1 %v3855_v15 }
 0x72e   :  { %2732 = vmatpush2.msra.mxu0 %v3856_v59  ;;  %2803 = vmatpush2.msra.mxu1 %v3857_v13 }
 0x72f   :  { %2733 = vmatprep.subr.mxu0 %v3858_v19  ;;  %2804 = vmatprep.subr.mxu1 %v3859_v58 }
 0x730   :  { %2734 = vmatpush2.msra.mxu0 %v3860_v21  ;;  %2805 = vmatpush2.msra.mxu1 %v3861_v62 }
 0x731   :  { %2735 = vmatprep.subr.mxu0 %v3862_v4  ;;  %2806 = vmatprep.subr.mxu1 %v3863_v16 }
 0x732   :  { %2736 = vmatpush2.msra.mxu0 %v3864_v30  ;;  %2807 = vmatpush2.msra.mxu1 %v3865_v23 }
 0x733   :  { %2737 = vmatprep.subr.mxu0 %v3866_v29  ;;  %2808 = vmatprep.subr.mxu1 %v3867_v28 }
 0x734   :  { %2738 = vmatpush2.msra.mxu0 %v3868_v37  ;;  %2809 = vmatpush2.msra.mxu1 %v3869_v24 }
 0x735   :  { %3031 = vmatprep.subr.mxu0 %v10053_v43 }
 0x793   :  { %v2370_v39 = vpop.f32.mrf.mxu0  ;;  %v2441_v8 = vpop.f32.mrf.mxu1 }
 0x794   :  { %v2371_v27 = vadd.f32 %v2370_v39, %v10183_v49  ;;  %v2442_v40 = vadd.f32 %v2441_v8, %v5331_v46  ;;  %v2867_v8 = vld [vmem:[%s8820_s4 + $0x50] sm:$0xff] }
 0x795   :  { %v2372_v34 = vpop.f32.mrf.mxu0  ;;  %v2443_v18 = vpop.f32.mrf.mxu1 }
 0x796   :  { %v3004_v32 = vmul.f32 -1.442695, %v2371_v27  ;;  %v2373_v17 = vadd.f32 %v2372_v34, %v10184_v25  ;;  %v2444_v42 = vadd.f32 %v2443_v18, %v10185_v9  ;;  %v2872_v27 = vld [vmem:[%s8820_s4 + $0x78] sm:$0xff]  ;;  %v2870_v34 = vld [vmem:[%s8820_s4 + $0x68] sm:$0xff]  ;;  %v2865_v18 = vld [vmem:[%s8820_s4 + $0x40] sm:$0xff] }
 0x798   :  { %3246 = vpow2.f32 %v3004_v32  ;;  %v3005_v38 = vmul.f32 -1.442695, %v2373_v17  ;;  %v3006_v36 = vmul.f32 -1.442695, %v2444_v42  ;;  %v2869_v32 = vld [vmem:[%s8820_s4 + $0x60] sm:$0xff]  ;;  %v2868_v17 = vld [vmem:[%s8820_s4 + $0x58] sm:$0xff] }
 0x799   :  { %v2864_v42 = vld [vmem:[%s8820_s4 + $0x38] sm:$0xff] }
 0x79a   :  { %3248 = vpow2.f32 %v3005_v38  ;;  %v2866_v38 = vld [vmem:[%s8820_s4 + $0x48] sm:$0xff] }
 0x79b   :  { %3250 = vpow2.f32 %v3006_v36  ;;  %v2863_v36 = vld [vmem:[%s8820_s4 + $0x30] sm:$0xff] }
 0x7a5   :  { %v3247_v14 = vpop.eup %3246 }
 0x7a6   :  { %v2616_v50 = vadd.f32 1.0, %v3247_v14  ;;  %v2862_v14 = vld [vmem:[%s8820_s4 + $0x28] sm:$0xff] }
 0x7a7   :  { %v3249_v41 = vpop.eup %3248 }
 0x7a8   :  { %3252 = vrcp.f32 %v2616_v50  ;;  %v2622_v44 = vadd.f32 1.0, %v3249_v41  ;;  %v3251_v47 = vpop.eup %3250  ;;  %v2860_v50 = vld [vmem:[%s8820_s4 + $0x18] sm:$0xff]  ;;  %v2859_v41 = vld [vmem:[%s8820_s4 + $0x10] sm:$0xff] }
 0x7a9   :  { %3254 = vtanh.f32 %v2442_v40  ;;  %v2629_v56 = vadd.f32 1.0, %v3251_v47  ;;  %v2861_v40 = vld [vmem:[%s8820_s4 + $0x20] sm:$0xff] }
 0x7aa   :  { %3256 = vrcp.f32 %v2622_v44  ;;  %v2858_v44 = vld [vmem:[%s8820_s4 + $0x8] sm:$0xff]  ;;  %v2857_v47 = vld [vmem:[%s8820_s4] sm:$0xff] }
 0x7ab   :  { %3258 = vrcp.f32 %v2629_v56 }
 0x7b4   :  { %v2514_v48 = vpop.f32.mrf.mxu0  ;;  %v2585_v55 = vpop.f32.mrf.mxu1 }
 0x7b5   :  { %v3253_v54 = vpop.eup %3252 }
 0x7b6   :  { %v3255_v53 = vpop.eup %3254  ;;  %v2516_v52 = vpop.f32.mrf.mxu0 }
 0x7b7   :  { %v2587_v60 = vpop.f32.mrf.mxu1  ;;  %v3257_v63 = vpop.eup %3256  ;;  %v2594_v0 = vcombine.low %v2514_v48, %v2516_v52  ;;  %v2633_v12 = vmul.f32 %v3255_v53, %v3253_v54 }
 0x7b8   :  { %v2595_v26 = vcombine.low %v2585_v55, %v2587_v60  ;;  %v2632_v61 = vmul.f32 %v3257_v63, %v8134_v33  ;;  %v3259_v33 = vpop.eup %3258 }
 0x7b9   :  { %v2602_v57 = vrot.slane %v2594_v0, %v5095_v6 }
 0x7ba   :  { %v2609_v2 = vrot.slane %v2595_v26, %v5095_v6  ;;  %v8733_v51 = vadd.f32 %v2633_v12, %v2632_v61 }
 0x7bc   :  { %v2610_v22 = vcombine.low %v2602_v57, %v2609_v2  ;;  %3260 = vtanh.f32 %v8733_v51 }
 0x7be   :  { %v2612_v3 = vadd.f32 %v3003_v31, %v2610_v22 }
 0x7c0   :  { %v3007_v11 = vmul.f32 -1.442695, %v2612_v3  ;;  %v2644_v10 = vrot.slane %v2612_v3, 2  ;;  %v2655_v7 = vrot.slane %v2612_v3, 6  ;;  %v2652_v13 = vrot.slane %v2612_v3, 4 }
 0x7c2   :  { %3262 = vpow2.f32 %v3007_v11  ;;  %v3008_v20 = vmul.f32 -1.442695, %v2644_v10  ;;  %v3009_v35 = vmul.f32 -1.442695, %v2655_v7 }
 0x7c4   :  { %3264 = vpow2.f32 %v3008_v20 }
 0x7c5   :  { %3266 = vpow2.f32 %v3009_v35 }
 0x7c9   :  { %v3261_v5 = vpop.eup %3260 }
 0x7ca   :  { %v2636_v6 = vmul.f32 %v3261_v5, %v3259_v33 }
 0x7cc   :  { %v8737_v15 = vadd.f32 %v2636_v6, %v8138_v45  ;;  %2739 = vmatprep.mubr.f32.mxu0 %v2636_v6  ;;  %2810 = vmatprep.mubr.f32.mxu1 %v2636_v6  ;;  %v3013_v6 = vld [vmem:[%s8821_s5] ss:$0 sm:$0xff] }
 0x7cf   :  { %v3263_v59 = vpop.eup %3262 }
 0x7d0   :  { %v2640_v19 = vadd.f32 1.0, %v3263_v59 }
 0x7d1   :  { %v3265_v58 = vpop.eup %3264 }
 0x7d2   :  { %3268 = vrcp.f32 %v2640_v19  ;;  %v2649_v21 = vadd.f32 1.0, %v3265_v58  ;;  %v3267_v62 = vpop.eup %3266 }
 0x7d3   :  { %3270 = vtanh.f32 %v2652_v13  ;;  %v2660_v23 = vadd.f32 1.0, %v3267_v62 }
 0x7d4   :  { %3272 = vrcp.f32 %v2649_v21 }
 0x7d5   :  { %3274 = vrcp.f32 %v2660_v23 }
 0x7df   :  { %v3269_v4 = vpop.eup %3268 }
 0x7e0   :  { %v3271_v16 = vpop.eup %3270 }
 0x7e1   :  { %v3273_v30 = vpop.eup %3272  ;;  %v2664_v45 = vmul.f32 %v3271_v16, %v3269_v4 }
 0x7e2   :  { %v2663_v29 = vmul.f32 %v3273_v30, %v8141_v1  ;;  %v3275_v37 = vpop.eup %3274  ;;  %v2871_v1 = vld [vmem:[%s8820_s4 + $0x70] sm:$0xff] }
 0x7e4   :  { %v2665_v28 = vadd.f32 %v2664_v45, %v2663_v29 }
 0x7e6   :  { %3276 = vtanh.f32 %v2665_v28  ;;  %2849 = vst [vmem:[#allocation3] sm:$0x3] %v2665_v28 }
 0x7f3   :  { %v3277_v24 = vpop.eup %3276 }
 0x7f4   :  { %v2667_v39 = vmul.f32 %v3277_v24, %v3275_v37 }
 0x7f6   :  { %2740 = vmatmul.mubr.f32.vlgmr.msra.gmra.mxu0 %v2667_v39  ;;  %2848 = vst [vmem:[#allocation2] sm:$0x3] %v2667_v39  ;;  %2811 = vmatmul.mubr.f32.vlgmr.msra.gmra.mxu1 %v2667_v39 }
 0x7f7   :  { %3032 = vmatpush3.msra.mxu0 %v2872_v27  ;;  %3063 = vmatprep.mubr.msk.f32.mxu0 %vm3894_vm0, %v10053_v43 }
 0x7f8   :  { %3033 = vmatprep.subr.mxu0 %v10053_v43 }
 0x7f9   :  { %3034 = vmatpush3.msra.mxu0 %v2871_v1 }
 0x7fa   :  { %3035 = vmatprep.subr.mxu0 %v10053_v43 }
 0x7fb   :  { %3036 = vmatpush3.msra.mxu0 %v2870_v34 }
 0x7fc   :  { %3037 = vmatprep.subr.mxu0 %v10053_v43 }
 0x7fd   :  { %3038 = vmatpush3.msra.mxu0 %v2869_v32 }
 0x7fe   :  { %3039 = vmatprep.subr.mxu0 %v10053_v43 }
 0x7ff   :  { %3040 = vmatpush3.msra.mxu0 %v2868_v17 }
 0x800   :  { %3041 = vmatprep.subr.mxu0 %v10053_v43 }
 0x801   :  { %3042 = vmatpush3.msra.mxu0 %v2867_v8 }
 0x802   :  { %3043 = vmatprep.subr.mxu0 %v10053_v43 }
 0x803   :  { %3044 = vmatpush3.msra.mxu0 %v2866_v38 }
 0x804   :  { %3045 = vmatprep.subr.mxu0 %v10053_v43 }
 0x805   :  { %3046 = vmatpush3.msra.mxu0 %v2865_v18 }
 0x806   :  { %3047 = vmatprep.subr.mxu0 %v10053_v43 }
 0x807   :  { %3048 = vmatpush3.msra.mxu0 %v2864_v42 }
 0x808   :  { %3049 = vmatprep.subr.mxu0 %v10053_v43 }
 0x809   :  { %3050 = vmatpush3.msra.mxu0 %v2863_v36 }
 0x80a   :  { %3051 = vmatprep.subr.mxu0 %v10053_v43 }
 0x80b   :  { %3052 = vmatpush3.msra.mxu0 %v2862_v14 }
 0x80c   :  { %3053 = vmatprep.subr.mxu0 %v10053_v43 }
 0x80d   :  { %3054 = vmatpush3.msra.mxu0 %v2861_v40 }
 0x80e   :  { %3055 = vmatprep.subr.mxu0 %v10053_v43 }
 0x80f   :  { %3056 = vmatpush3.msra.mxu0 %v2860_v50 }
 0x810   :  { %3057 = vmatprep.subr.mxu0 %v10053_v43 }
 0x811   :  { %3058 = vmatpush3.msra.mxu0 %v2859_v41 }
 0x812   :  { %3059 = vmatprep.subr.mxu0 %v10053_v43 }
 0x813   :  { %3060 = vmatpush3.msra.mxu0 %v2858_v44 }
 0x814   :  { %3061 = vmatprep.subr.mxu0 %v10053_v43 }
 0x815   :  { %3062 = vmatpush3.msra.mxu0 %v2857_v47 }
 0x8b6   :  { %v2741_v48 = vpop.f32.mrf.mxu0  ;;  %v2812_v60 = vpop.f32.mrf.mxu1 }
 0x8b7   :  { %v2742_v55 = vadd.f32 %v2741_v48, %v10183_v49  ;;  %v2813_v61 = vadd.f32 %v2812_v60, %v5331_v46 }
 0x8b8   :  { %v2743_v54 = vpop.f32.mrf.mxu0  ;;  %v2814_v56 = vpop.f32.mrf.mxu1 }
 0x8b9   :  { %v3010_v53 = vmul.f32 -1.442695, %v2742_v55  ;;  %v2744_v52 = vadd.f32 %v2743_v54, %v10184_v25  ;;  %v2815_v0 = vadd.f32 %v2814_v56, %v10185_v9 }
 0x8bb   :  { %3278 = vpow2.f32 %v3010_v53  ;;  %v3011_v63 = vmul.f32 -1.442695, %v2744_v52  ;;  %v3012_v26 = vmul.f32 -1.442695, %v2815_v0 }
 0x8bd   :  { %3280 = vpow2.f32 %v3011_v63 }
 0x8be   :  { %3282 = vpow2.f32 %v3012_v26 }
 0x8c8   :  { %v3279_v12 = vpop.eup %3278 }
 0x8c9   :  { %v2820_v43 = vadd.f32 1.0, %v3279_v12 }
 0x8ca   :  { %v3281_v57 = vpop.eup %3280 }
 0x8cb   :  { %3284 = vrcp.f32 %v2820_v43  ;;  %v2826_v49 = vadd.f32 1.0, %v3281_v57  ;;  %v3283_v2 = vpop.eup %3282 }
 0x8cc   :  { %3286 = vtanh.f32 %v2813_v61  ;;  %v2833_v3 = vadd.f32 1.0, %v3283_v2 }
 0x8cd   :  { %3288 = vrcp.f32 %v2826_v49 }
 0x8ce   :  { %3290 = vrcp.f32 %v2833_v3 }
 0x8d8   :  { %v3285_v25 = vpop.eup %3284 }
 0x8d9   :  { %v3287_v31 = vpop.eup %3286 }
 0x8da   :  { %v3289_v22 = vpop.eup %3288  ;;  %v2837_v11 = vmul.f32 %v3287_v31, %v3285_v25 }
 0x8db   :  { %v2836_v10 = vmul.f32 %v3289_v22, %v8733_v51  ;;  %v3291_v46 = vpop.eup %3290 }
 0x8dd   :  { %v2838_v9 = vadd.f32 %v2837_v11, %v2836_v10 }
 0x8df   :  { %3292 = vtanh.f32 %v2838_v9  ;;  %2851 = vst [vmem:[#allocation5] sm:$0x3] %v2838_v9 }
 0x8ec   :  { %v3293_v20 = vpop.eup %3292 }
 0x8ed   :  { %v2840_v33 = vmul.f32 %v3293_v20, %v3291_v46 }
 0x8ef   :  { %v2847_v7 = vadd.f32 %v2840_v33, %v8737_v15  ;;  %2850 = vst [vmem:[#allocation4] sm:$0x3] %v2840_v33 }
 0x8f1   :  { %2852 = vst [vmem:[#allocation6] sm:$0x3] %v2847_v7  ;;  %v2856_v5 = vmul.f32 0.14285715, %v2847_v7 }
 0x8f3   :  { %3064 = vmatmul.mubr.f32.vlgmr.msra.gmra.mxu0 %v2856_v5 }
 0x9b3   :  { %v2946_v51 = vpop.f32.mrf.mxu0 }
 0x9b4   :  { %v2947_v35 = vadd.f32 %v3013_v6, %v2946_v51 }
 0x9b5   :  { %v3065_v59 = vpop.f32.mrf.mxu0 }
 0x9b6   :  { %2950 = vst [vmem:[#allocation7] sm:$0x3] %v2947_v35 }
 0x9b7   :  { %3881 = shalt.err (!%p3878_p4)
}
 0x9b8   :  { %2960 = dma.vmem_to_hbm [thread:$0]  %s2958_s8, 32, %s8822_s6, [#allocation8]  }
 0x9b9   :  { %3890 = dma.done.wait [#allocation8], 32  }
 0x9ba   :  { %3891 = vsyncadd [#allocation8], 4294967264 }
 0x9bb   :  { %2964 = vsyncpa [#allocation8], 1 }

</bundles_post_ra>
